<compile_context>
chip_gen: v6e
topology: v6e:2x2x1
jax: 0.10.0
libtpu: 0.0.40
codegen_flags: <defaults>
</compile_context>

<pallas_src>
import functools

import jax
import jax.numpy as jnp
from jax.experimental import pallas as pl
from jax.experimental.pallas import tpu as pltpu

_COMPILER_PARAMS_CLS = getattr(pltpu, "CompilerParams", None) or getattr(
    pltpu, "TPUCompilerParams")

_VMEM_LIMIT = 32 * 1024 * 1024          # safe on v5e/v6e (128 MiB) and v7x (64 MiB)
_VMEM_BUDGET = 20 * 1024 * 1024         # tile-sizing budget (headroom for dbl-buffer)
_NARROW_COUT = 4                        # Cout <= this -> transposed (lane-dense) GEMM


def _round_up(x, m):
    return (x + m - 1) // m * m


def _full_spec(shape):
    nd = len(shape)
    return pl.BlockSpec(shape, lambda i, _nd=nd: (0,) * _nd)


def _compiler_params():
    return _COMPILER_PARAMS_CLS(dimension_semantics=("parallel",),
                                vmem_limit_bytes=_VMEM_LIMIT)


# ---------------------------------------------------------------------------
# Pallas kernel 1: GEMM + bias + activation, output (M, N), M-tiled.
# a:(M,K) bf16, b:(K,N) bf16 (BN scale pre-folded), bias:(1,N) f32.
# ---------------------------------------------------------------------------
def _mm_bias_act_kernel(a_ref, b_ref, bias_ref, o_ref, *, act):
    acc = jnp.dot(a_ref[...], b_ref[...], preferred_element_type=jnp.float32)
    y = acc + bias_ref[...]
    if act == "tanh":
        y = jnp.tanh(y)
    elif act == "leaky":
        y = jnp.where(y >= 0, y, 0.3 * y)      # F.leaky_relu(negative_slope=0.3)
    o_ref[...] = y.astype(o_ref.dtype)


def _choose_tm(M, K, N):
    fixed = 2 * (K * N * 2 + N * 4)            # b (bf16) + bias (f32), dbl-buffered
    per_row = 2 * (K * 2 + N * 4)              # a row (bf16) + out row (f32)
    tm = (_VMEM_BUDGET - fixed) // max(per_row, 1)
    tm = (tm // 16) * 16
    tm = max(16, min(512, tm))
    return min(tm, _round_up(M, 16))


def matmul_bias_act(a, b, bias, act="none"):
    """act(a @ b + bias); a:(M,K)  b:(K,N)  bias:(N,) -> (M,N) f32."""
    M, K = a.shape
    K2, N = b.shape
    assert K == K2
    a = a.astype(jnp.bfloat16)
    b = b.astype(jnp.bfloat16)
    bias2 = bias.astype(jnp.float32).reshape(1, N)
    tm = _choose_tm(M, K, N)
    return pl.pallas_call(
        functools.partial(_mm_bias_act_kernel, act=act),
        out_shape=jax.ShapeDtypeStruct((M, N), jnp.float32),
        grid=(pl.cdiv(M, tm),),
        in_specs=[pl.BlockSpec((tm, K), lambda i: (i, 0)),
                  pl.BlockSpec((K, N), lambda i: (0, 0)),
                  pl.BlockSpec((1, N), lambda i: (0, 0))],
        out_specs=pl.BlockSpec((tm, N), lambda i: (i, 0)),
        compiler_params=_compiler_params(),
    )(a, b, bias2)


# ---------------------------------------------------------------------------
# Pallas kernel 2: transposed GEMM for narrow Cout, output (N, M) lane-dense.
# bt:(N,K) bf16 weights, at:(K,M) bf16 patches, bias:(N,1) f32.
# ---------------------------------------------------------------------------
def _mm_nm_bias_act_kernel(bt_ref, at_ref, bias_ref, o_ref, *, act):
    acc = jnp.dot(bt_ref[...], at_ref[...], preferred_element_type=jnp.float32)
    y = acc + bias_ref[...]
    if act == "tanh":
        y = jnp.tanh(y)
    elif act == "leaky":
        y = jnp.where(y >= 0, y, 0.3 * y)
    o_ref[...] = y.astype(o_ref.dtype)


def _choose_tm_lanes(M, K, N):
    fixed = 2 * (N * K * 2 + N * 4)
    per_col = 2 * (K * 2 + N * 4)
    tm = (_VMEM_BUDGET - fixed) // max(per_col, 1)
    tm = (tm // 128) * 128
    tm = max(128, min(4096, tm))
    return min(tm, _round_up(M, 128))


def matmul_nm_bias_act(bt, at, bias, act="none"):
    """act(bt @ at + bias[:,None]); bt:(N,K)  at:(K,M) -> (N,M) f32 (M on lanes)."""
    N, K = bt.shape
    K2, M = at.shape
    assert K == K2
    bt = bt.astype(jnp.bfloat16)
    at = at.astype(jnp.bfloat16)
    bias2 = bias.astype(jnp.float32).reshape(N, 1)
    tm = _choose_tm_lanes(M, K, N)
    return pl.pallas_call(
        functools.partial(_mm_nm_bias_act_kernel, act=act),
        out_shape=jax.ShapeDtypeStruct((N, M), jnp.float32),
        grid=(pl.cdiv(M, tm),),
        in_specs=[pl.BlockSpec((N, K), lambda i: (0, 0)),
                  pl.BlockSpec((K, tm), lambda i: (0, i)),
                  pl.BlockSpec((N, 1), lambda i: (0, 0))],
        out_specs=pl.BlockSpec((N, tm), lambda i: (0, i)),
        compiler_params=_compiler_params(),
    )(bt, at, bias2)


# ---------------------------------------------------------------------------
# Pallas kernel 3: bidirectional LSTM recurrence (no bias, batch_first).
# Input gates gx = x @ [Wih_f | Wih_b] are precomputed (hoisted GEMM);
# only h @ Whh remains inside the sequential steps.  PyTorch gate order
# (i, f, g, o).  gx: (T, B, 8H) f32, whh_*: (H, 4H) bf16.
# ---------------------------------------------------------------------------
def _bilstm_kernel(gx_ref, whh_f_ref, whh_b_ref, of_ref, ob_ref, *, T, H):
    whh_f = whh_f_ref[...]
    whh_b = whh_b_ref[...]
    B = gx_ref.shape[1]

    def lstm_cell(gates, c):
        i_g = jax.nn.sigmoid(gates[:, 0:H])
        f_g = jax.nn.sigmoid(gates[:, H:2 * H])
        g_g = jnp.tanh(gates[:, 2 * H:3 * H])
        o_g = jax.nn.sigmoid(gates[:, 3 * H:4 * H])
        c_new = f_g * c + i_g * g_g
        h_new = o_g * jnp.tanh(c_new)
        return h_new, c_new

    h0 = jnp.zeros((B, H), jnp.float32)
    c0 = jnp.zeros((B, H), jnp.float32)

    def fwd_body(t, carry):
        h, c = carry
        g = gx_ref[t]                                             # (B, 8H)
        gates = g[:, 0:4 * H] + jnp.dot(h.astype(jnp.bfloat16), whh_f,
                                        preferred_element_type=jnp.float32)
        h, c = lstm_cell(gates, c)
        of_ref[t] = h
        return (h, c)

    def bwd_body(k, carry):
        t = T - 1 - k
        h, c = carry
        g = gx_ref[t]
        gates = g[:, 4 * H:8 * H] + jnp.dot(h.astype(jnp.bfloat16), whh_b,
                                            preferred_element_type=jnp.float32)
        h, c = lstm_cell(gates, c)
        ob_ref[t] = h
        return (h, c)

    _ = jax.lax.fori_loop(0, T, fwd_body, (h0, c0))
    _ = jax.lax.fori_loop(0, T, bwd_body, (h0, c0))


def bilstm_recurrence(gx, whh_f, whh_b, H):
    """gx: (T, B, 8H) precomputed input gates -> (B, T, 2H) (nn.LSTM bi output)."""
    T, B, _ = gx.shape
    o_f, o_b = pl.pallas_call(
        functools.partial(_bilstm_kernel, T=T, H=H),
        out_shape=(jax.ShapeDtypeStruct((T, B, H), jnp.float32),
                   jax.ShapeDtypeStruct((T, B, H), jnp.float32)),
        grid=(1,),
        in_specs=[_full_spec((T, B, 8 * H)),
                  _full_spec((H, 4 * H)),
                  _full_spec((H, 4 * H))],
        out_specs=(_full_spec((T, B, H)), _full_spec((T, B, H))),
    )(gx.astype(jnp.float32), whh_f, whh_b)
    return jnp.concatenate([o_f, o_b], axis=-1).transpose(1, 0, 2)


# ---------------------------------------------------------------------------
# Conv / ConvTranspose wrappers: im2col glue (bf16) in JAX, GEMM in Pallas.
# ---------------------------------------------------------------------------
def conv2d_gemm(x, layer, act):
    """x: NCHW.  layer carries a prepacked weight matrix (BN scale folded)."""
    # TODO(synk): move im2col inside the Pallas kernel (slab DMA + pl.ds) to
    # avoid materializing the (N*OH*OW, Cin*KH*KW) patches tensor in HBM.
    x = x.astype(jnp.bfloat16)
    N, Cin, H, W = x.shape
    KH, KW, Cout = layer["kh"], layer["kw"], layer["cout"]
    sh, sw = layer["stride"]
    (phl, phh), (pwl, pwh) = layer["pad"]
    xp = jnp.pad(x, ((0, 0), (0, 0), (phl, phh), (pwl, pwh)))
    Hp, Wp = xp.shape[2], xp.shape[3]
    OH = (Hp - KH) // sh + 1
    OW = (Wp - KW) // sw + 1
    cols = []
    for i in range(KH):
        for j in range(KW):
            cols.append(xp[:, :, i:i + sh * OH:sh, j:j + sw * OW:sw])  # (N,Cin,OH,OW)
    patches = jnp.stack(cols, axis=2)                # (N, Cin, KH*KW, OH, OW)
    if layer["layout"] == "nm":
        # lane-dense output (Cout, M): better stores for tiny Cout layers.
        pt = patches.transpose(1, 2, 0, 3, 4).reshape(Cin * KH * KW, N * OH * OW)
        out_t = matmul_nm_bias_act(layer["wmat"], pt, layer["shift"], act)
        return out_t.reshape(Cout, N, OH, OW).transpose(1, 0, 2, 3)
    else:
        pm = patches.transpose(0, 3, 4, 1, 2).reshape(N * OH * OW, Cin * KH * KW)
        out = matmul_bias_act(pm, layer["wmat"], layer["shift"], act)
        return out.reshape(N, OH, OW, Cout).transpose(0, 3, 1, 2)


def conv_transpose2d_gemm(x, layer, act):
    """ConvTranspose2d via input dilation + stride-1 conv (weights pre-flipped)."""
    # TODO(synk): decompose into sub-pixel (phase-split) stride-1 convolutions
    # to skip the structurally-zero im2col rows introduced by the dilation.
    sh, sw = layer["dil_stride"]
    x = x.astype(jnp.bfloat16)
    N, Cin, H, W = x.shape
    Hd, Wd = (H - 1) * sh + 1, (W - 1) * sw + 1
    xd = jnp.zeros((N, Cin, Hd, Wd), x.dtype).at[:, :, ::sh, ::sw].set(x)
    return conv2d_gemm(xd, layer, act)


# ---------------------------------------------------------------------------
# Deterministic parameter construction mirroring AV_Fusion_Model.__init__
# (all torch layers are bias=False; BN in eval mode with fixed running stats).
# ---------------------------------------------------------------------------
def _conv_out(sz, k, s, p):
    return (sz + 2 * p - k) // s + 1


def _bn_scale_shift(key, n, eps=1e-5):
    k1, k2, k3, k4 = jax.random.split(key, 4)
    gamma = jax.random.uniform(k1, (n,), minval=0.5, maxval=1.5)
    beta = jax.random.uniform(k2, (n,), minval=-0.1, maxval=0.1)
    mean = jax.random.uniform(k3, (n,), minval=-0.1, maxval=0.1)
    var = jax.random.uniform(k4, (n,), minval=0.5, maxval=1.5)
    scale = gamma / jnp.sqrt(var + eps)
    shift = beta - mean * scale
    return scale.astype(jnp.float32), shift.astype(jnp.float32)


def _pack_conv(w_oihw, scale, shift, kh, kw, cout, stride, pad, has_bn):
    """Fold BN scale into the flattened weight matrix, pick GEMM orientation."""
    wm = w_oihw.reshape(cout, -1) * scale[:, None]      # (Cout, Cin*KH*KW)
    layout = "nm" if cout <= _NARROW_COUT else "mn"
    wmat = (wm if layout == "nm" else wm.T).astype(jnp.bfloat16)
    return dict(wmat=wmat, shift=shift.astype(jnp.float32), layout=layout,
                cout=cout, kh=kh, kw=kw, stride=stride, pad=pad, has_bn=has_bn)


def build_model(key, stft_shape, pgram_shape, latent_channels, fc_size):
    keys = iter(jax.random.split(key, 64))
    p = {}

    # ----- phasegram encoder: Conv2d(k=(1,9), s=(1,2), p=(0,4)) + BN + Tanh -----
    pg_h, pg_w = pgram_shape[2], pgram_shape[3]
    in_ch, h, w = 1, pg_h, pg_w
    pg_enc = []
    while w * h * latent_channels > fc_size // 2:
        out_ch = min(in_ch * 2, latent_channels)
        wgt = 0.2 * jax.random.normal(next(keys), (out_ch, in_ch, 1, 9), jnp.float32)
        scale, shift = _bn_scale_shift(next(keys), out_ch)
        pg_enc.append(_pack_conv(wgt, scale, shift, 1, 9, out_ch,
                                 stride=(1, 2), pad=((0, 0), (4, 4)), has_bn=True))
        w = _conv_out(w, 9, 2, 4)
        in_ch = out_ch
    p["pg_enc"] = pg_enc
    enc_h, enc_w = h, w
    assert in_ch == latent_channels, "phasegram encoder must reach latent_channels"

    # ----- phasegram decoder: ConvT(k=(1,9), s=(1,2), p=(0,4), op=(0,1)) -----
    pg_dec = []
    in_ch, wd = latent_channels, enc_w
    while wd < pg_w:
        out_ch = max(in_ch // 2, 1)
        wgt = 0.2 * jax.random.normal(next(keys), (in_ch, out_ch, 1, 9), jnp.float32)
        wd = (wd - 1) * 2 - 2 * 4 + 9 + 1
        has_bn = wd != pg_w
        if has_bn:
            scale, shift = _bn_scale_shift(next(keys), out_ch)
        else:
            scale = jnp.ones((out_ch,), jnp.float32)
            shift = jnp.zeros((out_ch,), jnp.float32)
        wc = jnp.flip(wgt, axis=(2, 3)).transpose(1, 0, 2, 3)     # (Cout,Cin,1,9)
        layer = _pack_conv(wc, scale, shift, 1, 9, out_ch,
                           stride=(1, 1),
                           pad=((0, 0), (9 - 1 - 4, 9 - 1 - 4 + 1)),  # op_w = 1
                           has_bn=has_bn)
        layer["dil_stride"] = (1, 2)
        pg_dec.append(layer)
        in_ch = out_ch
    p["pg_dec"] = pg_dec

    # ----- stft encoder: Conv2d(k=(3,9), p=(1,4)) + BN + Tanh -----
    st_enc = []
    in_ch = 2
    out_shape = [stft_shape[2], stft_shape[3]]
    target = [enc_h, enc_w]
    while out_shape != target:
        out_ch = min(in_ch * 4, latent_channels)
        stride = [1, 1]
        if out_shape[0] > target[0]:
            stride[0] = 2
            out_shape[0] //= 2
        if out_shape[1] > target[1]:
            stride[1] = 2
            out_shape[1] //= 2
        wgt = 0.2 * jax.random.normal(next(keys), (out_ch, in_ch, 3, 9), jnp.float32)
        scale, shift = _bn_scale_shift(next(keys), out_ch)
        st_enc.append(_pack_conv(wgt, scale, shift, 3, 9, out_ch,
                                 stride=tuple(stride), pad=((1, 1), (4, 4)),
                                 has_bn=True))
        in_ch = out_ch
    p["stft_enc"] = st_enc
    assert in_ch == latent_channels, "stft encoder must reach latent_channels"

    # ----- LSTM + FC1 + FC2 (all bias=False) -----
    D = 2 * latent_channels * enc_w
    H = 256
    assert fc_size == enc_h * 2 * H, "fc_size must equal seq_len * 512"
    fc2_out = latent_channels * enc_h * enc_w
    wih_f = 0.05 * jax.random.normal(next(keys), (D, 4 * H), jnp.float32)
    whh_f = 0.05 * jax.random.normal(next(keys), (H, 4 * H), jnp.float32)
    wih_b = 0.05 * jax.random.normal(next(keys), (D, 4 * H), jnp.float32)
    whh_b = 0.05 * jax.random.normal(next(keys), (H, 4 * H), jnp.float32)
    p["lstm_H"] = H
    p["lstm_wih"] = jnp.concatenate([wih_f, wih_b], axis=1).astype(jnp.bfloat16)
    p["lstm_whh_f"] = whh_f.astype(jnp.bfloat16)
    p["lstm_whh_b"] = whh_b.astype(jnp.bfloat16)
    p["fc1"] = (0.05 * jax.random.normal(next(keys), (fc_size, fc_size // 2),
                                         jnp.float32)).astype(jnp.bfloat16)
    p["fc2"] = (0.05 * jax.random.normal(next(keys), (fc_size // 2, fc2_out),
                                         jnp.float32)).astype(jnp.bfloat16)

    # ----- stft decoder: ConvT(k=(3,9), p=(1,4)) -----
    st_dec = []
    in_ch = latent_channels
    enc_shape = [enc_h, enc_w]
    while enc_shape != [stft_shape[2], stft_shape[3]]:
        out_ch = max(in_ch // 4, stft_shape[1])
        stride = [1, 1]
        outpad = [0, 0]
        if enc_shape[0] < stft_shape[2]:
            stride[0] = 2
            outpad[0] = 1
            enc_shape[0] *= 2
        if enc_shape[1] < stft_shape[3]:
            stride[1] = 2
            outpad[1] = 1
            enc_shape[1] *= 2
        has_bn = enc_shape != [stft_shape[2], stft_shape[3]]
        wgt = 0.2 * jax.random.normal(next(keys), (in_ch, out_ch, 3, 9), jnp.float32)
        if has_bn:
            scale, shift = _bn_scale_shift(next(keys), out_ch)
        else:
            scale = jnp.ones((out_ch,), jnp.float32)
            shift = jnp.zeros((out_ch,), jnp.float32)
        wc = jnp.flip(wgt, axis=(2, 3)).transpose(1, 0, 2, 3)     # (Cout,Cin,3,9)
        pad_h = (3 - 1 - 1, 3 - 1 - 1 + outpad[0])
        pad_w = (9 - 1 - 4, 9 - 1 - 4 + outpad[1])
        layer = _pack_conv(wc, scale, shift, 3, 9, out_ch,
                           stride=(1, 1), pad=(pad_h, pad_w), has_bn=has_bn)
        layer["dil_stride"] = tuple(stride)
        st_dec.append(layer)
        in_ch = out_ch
    p["stft_dec"] = st_dec
    return p


# ---------------------------------------------------------------------------
# Forward pass (== AV_Fusion_Model.forward)
# ---------------------------------------------------------------------------
def forward(p, x_a, x_v):
    # stft_encoder
    h = x_a
    for layer in p["stft_enc"]:
        h = conv2d_gemm(h, layer, act="tanh")
    x_a_enc = h
    # phasegram_encoder
    h = x_v
    for layer in p["pg_enc"]:
        h = conv2d_gemm(h, layer, act="tanh")
    x_v_enc = h

    # av_fusion_forward
    B, C, Ht, W = x_v_enc.shape
    xv = jnp.transpose(x_v_enc, (0, 2, 1, 3))          # (B, Ht, C, W)
    xa = jnp.transpose(x_a_enc, (0, 2, 1, 3))          # (B, Ht, C, W)
    x_cat = jnp.concatenate([xv, xa], axis=2).reshape(B, Ht, -1)    # (B, T, D)
    D = x_cat.shape[-1]
    Hh = p["lstm_H"]
    # hoisted LSTM input projection: one lane-dense GEMM over all timesteps
    gx = matmul_bias_act(x_cat.reshape(B * Ht, D), p["lstm_wih"],
                         jnp.zeros((8 * Hh,), jnp.float32), act="none")
    gx = gx.reshape(B, Ht, 8 * Hh).transpose(1, 0, 2)               # (T, B, 8H)
    av = bilstm_recurrence(gx, p["lstm_whh_f"], p["lstm_whh_b"], Hh)  # (B, T, 2H)
    av = av.reshape(B, -1)
    av = matmul_bias_act(av, p["fc1"],
                         jnp.zeros((p["fc1"].shape[1],), jnp.float32), act="leaky")
    av = matmul_bias_act(av, p["fc2"],
                         jnp.zeros((p["fc2"].shape[1],), jnp.float32), act="leaky")
    x_av_fused = av

    x_v_out = x_av_fused.reshape(x_v_enc.shape)
    x_a_out = x_av_fused.reshape(x_a_enc.shape)

    # stft_decoder
    h = x_a_out
    for layer in p["stft_dec"]:
        h = conv_transpose2d_gemm(h, layer, "tanh" if layer["has_bn"] else "none")
    x_a_dec = h
    # phasegram_decoder
    h = x_v_out
    for layer in p["pg_dec"]:
        h = conv_transpose2d_gemm(h, layer, "tanh" if layer["has_bn"] else "none")
    x_v_dec = h

    return x_a_dec, x_v_dec, x_av_fused


if __name__ == "__main__":
    # Small shapes consistent with the module's construction constraints:
    #  - LSTM seq_len (= encoded temporal dim) * 512 must equal fc_size.
    #  - both encoders must reach `latent_channels` channels.
    B = 2
    latent_channels = 8
    fc_size = 1024                       # = enc_h(2) * 512
    pgram_shape = (B, 1, 2, 256)         # (N, 1, H_pg, W_pg)
    stft_shape = (B, 2, 4, 64)           # (N, 2, T, F)

    key = jax.random.PRNGKey(0)
    kp, ka, kv = jax.random.split(key, 3)
    params = build_model(kp, stft_shape, pgram_shape, latent_channels, fc_size)

    x_a = jax.random.normal(ka, stft_shape, jnp.float32)
    x_v = jax.random.normal(kv, pgram_shape, jnp.float32)

    fwd = jax.jit(lambda xa, xv: forward(params, xa, xv))
    x_a_out, x_v_out, x_av_fused = fwd(x_a, x_v)
    jax.block_until_ready((x_a_out, x_v_out, x_av_fused))

    assert x_a_out.shape == stft_shape
    assert x_v_out.shape == pgram_shape
    assert x_av_fused.shape == (B, latent_channels * 2 * 32)   # (2, 512)
    assert bool(jnp.all(jnp.isfinite(x_a_out))) and bool(jnp.all(jnp.isfinite(x_v_out)))
    # TODO(synk): torchsummary printing / grad-toggle helpers and the unused
    # a_fc1 / v_fc1 heads have no kernel equivalent (no compute in forward).
    print("KERNEL_OK")
</pallas_src>

<mosaic_0001>
module attributes {stable_mosaic.version = 11 : i64} {
  func.func @_mm_nm_bias_act_kernel(%arg0: i32, %arg1: memref<2x9xbf16, #tpu.memory_space<vmem>>, %arg2: memref<9x512xbf16, #tpu.memory_space<vmem>>, %arg3: memref<2x1xf32, #tpu.memory_space<vmem>>, %arg4: memref<2x512xf32, #tpu.memory_space<vmem>>) attributes {dimension_semantics = [#tpu.dimension_semantics<parallel>], iteration_bounds = array<i64: 1>, scalar_prefetch = 0 : i64, scratch_operands = 0 : i64, tpu.core_type = #tpu.core_type<tc>, window_params = [{pipeline_mode = #tpu.pipeline_mode<synchronous>, transform_indices = @transform_0, window_bounds = array<i64: 2, 9>}, {transform_indices = @transform_1, window_bounds = array<i64: 9, 512>}, {pipeline_mode = #tpu.pipeline_mode<synchronous>, transform_indices = @transform_2, window_bounds = array<i64: 2, 1>}, {transform_indices = @transform_3, window_bounds = array<i64: 2, 512>}]} {
    %c0 = arith.constant 0 : index
    %c0_0 = arith.constant 0 : index
    %0 = vector.load %arg1[%c0, %c0_0] : memref<2x9xbf16, #tpu.memory_space<vmem>>, vector<2x9xbf16>
    %c0_1 = arith.constant 0 : index
    %c0_2 = arith.constant 0 : index
    %1 = vector.load %arg2[%c0_1, %c0_2] : memref<9x512xbf16, #tpu.memory_space<vmem>>, vector<9x512xbf16>
    %cst = arith.constant dense<0.000000e+00> : vector<2x512xf32>
    %2 = tpu.matmul %0, %1, %cst {dimension_numbers = #tpu.dot_dimension_numbers<[1], [0], [0], [1], [0, 0, 1, 1], [], []>} : vector<2x9xbf16>, vector<9x512xbf16>, vector<2x512xf32> -> vector<2x512xf32>
    %c0_3 = arith.constant 0 : index
    %c0_4 = arith.constant 0 : index
    %3 = vector.load %arg3[%c0_3, %c0_4] : memref<2x1xf32, #tpu.memory_space<vmem>>, vector<2x1xf32>
    %4 = vector.broadcast %3 : vector<2x1xf32> to vector<2x512xf32>
    %5 = arith.addf %2, %4 : vector<2x512xf32>
    %6 = math.tanh %5 : vector<2x512xf32>
    %c0_5 = arith.constant 0 : index
    %c0_6 = arith.constant 0 : index
    %7 = vector.load %arg4[%c0_5, %c0_6] : memref<2x512xf32, #tpu.memory_space<vmem>>, vector<2x512xf32>
    tpu.vector_store %arg4[%c0_5, %c0_6], %6 {strides = array<i32>} : memref<2x512xf32, #tpu.memory_space<vmem>>, vector<2x512xf32>,
    return
  }
  func.func @transform_0(%arg0: i32) -> (i32, i32) {
    %c0_i32 = arith.constant 0 : i32
    %c0_i32_0 = arith.constant 0 : i32
    %c0_i32_1 = arith.constant 0 : i32
    return %c0_i32, %c0_i32_0 : i32, i32
  }
  func.func @transform_1(%arg0: i32) -> (i32, i32) {
    %c0_i32 = arith.constant 0 : i32
    %c0_i32_0 = arith.constant 0 : i32
    return %c0_i32, %arg0 : i32, i32
  }
  func.func @transform_2(%arg0: i32) -> (i32, i32) {
    %c0_i32 = arith.constant 0 : i32
    %c0_i32_0 = arith.constant 0 : i32
    %c0_i32_1 = arith.constant 0 : i32
    return %c0_i32, %c0_i32_0 : i32, i32
  }
  func.func @transform_3(%arg0: i32) -> (i32, i32) {
    %c0_i32 = arith.constant 0 : i32
    %c0_i32_0 = arith.constant 0 : i32
    return %c0_i32, %arg0 : i32, i32
  }
}

module attributes {stable_mosaic.version = 11 : i64} {
  func.func @_mm_nm_bias_act_kernel(%arg0: i32, %arg1: memref<4x18xbf16, #tpu.memory_space<vmem>>, %arg2: memref<18x256xbf16, #tpu.memory_space<vmem>>, %arg3: memref<4x1xf32, #tpu.memory_space<vmem>>, %arg4: memref<4x256xf32, #tpu.memory_space<vmem>>) attributes {dimension_semantics = [#tpu.dimension_semantics<parallel>], iteration_bounds = array<i64: 1>, scalar_prefetch = 0 : i64, scratch_operands = 0 : i64, tpu.core_type = #tpu.core_type<tc>, window_params = [{pipeline_mode = #tpu.pipeline_mode<synchronous>, transform_indices = @transform_0, window_bounds = array<i64: 4, 18>}, {transform_indices = @transform_1, window_bounds = array<i64: 18, 256>}, {pipeline_mode = #tpu.pipeline_mode<synchronous>, transform_indices = @transform_2, window_bounds = array<i64: 4, 1>}, {transform_indices = @transform_3, window_bounds = array<i64: 4, 256>}]} {
    %c0 = arith.constant 0 : index
    %c0_0 = arith.constant 0 : index
    %0 = vector.load %arg1[%c0, %c0_0] : memref<4x18xbf16, #tpu.memory_space<vmem>>, vector<4x18xbf16>
    %c0_1 = arith.constant 0 : index
    %c0_2 = arith.constant 0 : index
    %1 = vector.load %arg2[%c0_1, %c0_2] : memref<18x256xbf16, #tpu.memory_space<vmem>>, vector<18x256xbf16>
    %cst = arith.constant dense<0.000000e+00> : vector<4x256xf32>
    %2 = tpu.matmul %0, %1, %cst {dimension_numbers = #tpu.dot_dimension_numbers<[1], [0], [0], [1], [0, 0, 1, 1], [], []>} : vector<4x18xbf16>, vector<18x256xbf16>, vector<4x256xf32> -> vector<4x256xf32>
    %c0_3 = arith.constant 0 : index
    %c0_4 = arith.constant 0 : index
    %3 = vector.load %arg3[%c0_3, %c0_4] : memref<4x1xf32, #tpu.memory_space<vmem>>, vector<4x1xf32>
    %4 = vector.broadcast %3 : vector<4x1xf32> to vector<4x256xf32>
    %5 = arith.addf %2, %4 : vector<4x256xf32>
    %6 = math.tanh %5 : vector<4x256xf32>
    %c0_5 = arith.constant 0 : index
    %c0_6 = arith.constant 0 : index
    %7 = vector.load %arg4[%c0_5, %c0_6] : memref<4x256xf32, #tpu.memory_space<vmem>>, vector<4x256xf32>
    tpu.vector_store %arg4[%c0_5, %c0_6], %6 {strides = array<i32>} : memref<4x256xf32, #tpu.memory_space<vmem>>, vector<4x256xf32>,
    return
  }
  func.func @transform_0(%arg0: i32) -> (i32, i32) {
    %c0_i32 = arith.constant 0 : i32
    %c0_i32_0 = arith.constant 0 : i32
    %c0_i32_1 = arith.constant 0 : i32
    return %c0_i32, %c0_i32_0 : i32, i32
  }
  func.func @transform_1(%arg0: i32) -> (i32, i32) {
    %c0_i32 = arith.constant 0 : i32
    %c0_i32_0 = arith.constant 0 : i32
    return %c0_i32, %arg0 : i32, i32
  }
  func.func @transform_2(%arg0: i32) -> (i32, i32) {
    %c0_i32 = arith.constant 0 : i32
    %c0_i32_0 = arith.constant 0 : i32
    %c0_i32_1 = arith.constant 0 : i32
    return %c0_i32, %c0_i32_0 : i32, i32
  }
  func.func @transform_3(%arg0: i32) -> (i32, i32) {
    %c0_i32 = arith.constant 0 : i32
    %c0_i32_0 = arith.constant 0 : i32
    return %c0_i32, %arg0 : i32, i32
  }
}

module attributes {stable_mosaic.version = 11 : i64} {
  func.func @_mm_bias_act_kernel(%arg0: i32, %arg1: memref<128x36xbf16, #tpu.memory_space<vmem>>, %arg2: memref<36x8xbf16, #tpu.memory_space<vmem>>, %arg3: memref<1x8xf32, #tpu.memory_space<vmem>>, %arg4: memref<128x8xf32, #tpu.memory_space<vmem>>) attributes {dimension_semantics = [#tpu.dimension_semantics<parallel>], iteration_bounds = array<i64: 1>, scalar_prefetch = 0 : i64, scratch_operands = 0 : i64, tpu.core_type = #tpu.core_type<tc>, window_params = [{transform_indices = @transform_0, window_bounds = array<i64: 128, 36>}, {pipeline_mode = #tpu.pipeline_mode<synchronous>, transform_indices = @transform_1, window_bounds = array<i64: 36, 8>}, {pipeline_mode = #tpu.pipeline_mode<synchronous>, transform_indices = @transform_2, window_bounds = array<i64: 1, 8>}, {transform_indices = @transform_3, window_bounds = array<i64: 128, 8>}]} {
    %c0 = arith.constant 0 : index
    %c0_0 = arith.constant 0 : index
    %0 = vector.load %arg1[%c0, %c0_0] : memref<128x36xbf16, #tpu.memory_space<vmem>>, vector<128x36xbf16>
    %c0_1 = arith.constant 0 : index
    %c0_2 = arith.constant 0 : index
    %1 = vector.load %arg2[%c0_1, %c0_2] : memref<36x8xbf16, #tpu.memory_space<vmem>>, vector<36x8xbf16>
    %cst = arith.constant dense<0.000000e+00> : vector<128x8xf32>
    %2 = tpu.matmul %0, %1, %cst {dimension_numbers = #tpu.dot_dimension_numbers<[1], [0], [0], [1], [0, 0, 1, 1], [], []>} : vector<128x36xbf16>, vector<36x8xbf16>, vector<128x8xf32> -> vector<128x8xf32>
    %c0_3 = arith.constant 0 : index
    %c0_4 = arith.constant 0 : index
    %3 = vector.load %arg3[%c0_3, %c0_4] : memref<1x8xf32, #tpu.memory_space<vmem>>, vector<1x8xf32>
    %4 = vector.broadcast %3 : vector<1x8xf32> to vector<128x8xf32>
    %5 = arith.addf %2, %4 : vector<128x8xf32>
    %6 = math.tanh %5 : vector<128x8xf32>
    %c0_5 = arith.constant 0 : index
    %c0_6 = arith.constant 0 : index
    %7 = vector.load %arg4[%c0_5, %c0_6] : memref<128x8xf32, #tpu.memory_space<vmem>>, vector<128x8xf32>
    tpu.vector_store %arg4[%c0_5, %c0_6], %6 {strides = array<i32>} : memref<128x8xf32, #tpu.memory_space<vmem>>, vector<128x8xf32>,
    return
  }
  func.func @transform_0(%arg0: i32) -> (i32, i32) {
    %c0_i32 = arith.constant 0 : i32
    %c0_i32_0 = arith.constant 0 : i32
    return %arg0, %c0_i32 : i32, i32
  }
  func.func @transform_1(%arg0: i32) -> (i32, i32) {
    %c0_i32 = arith.constant 0 : i32
    %c0_i32_0 = arith.constant 0 : i32
    %c0_i32_1 = arith.constant 0 : i32
    return %c0_i32, %c0_i32_0 : i32, i32
  }
  func.func @transform_2(%arg0: i32) -> (i32, i32) {
    %c0_i32 = arith.constant 0 : i32
    %c0_i32_0 = arith.constant 0 : i32
    %c0_i32_1 = arith.constant 0 : i32
    return %c0_i32, %c0_i32_0 : i32, i32
  }
  func.func @transform_3(%arg0: i32) -> (i32, i32) {
    %c0_i32 = arith.constant 0 : i32
    %c0_i32_0 = arith.constant 0 : i32
    return %arg0, %c0_i32 : i32, i32
  }
}

module attributes {stable_mosaic.version = 11 : i64} {
  func.func @_mm_bias_act_kernel(%arg0: i32, %arg1: memref<128x54xbf16, #tpu.memory_space<vmem>>, %arg2: memref<54x8xbf16, #tpu.memory_space<vmem>>, %arg3: memref<1x8xf32, #tpu.memory_space<vmem>>, %arg4: memref<128x8xf32, #tpu.memory_space<vmem>>) attributes {dimension_semantics = [#tpu.dimension_semantics<parallel>], iteration_bounds = array<i64: 1>, scalar_prefetch = 0 : i64, scratch_operands = 0 : i64, tpu.core_type = #tpu.core_type<tc>, window_params = [{transform_indices = @transform_0, window_bounds = array<i64: 128, 54>}, {pipeline_mode = #tpu.pipeline_mode<synchronous>, transform_indices = @transform_1, window_bounds = array<i64: 54, 8>}, {pipeline_mode = #tpu.pipeline_mode<synchronous>, transform_indices = @transform_2, window_bounds = array<i64: 1, 8>}, {transform_indices = @transform_3, window_bounds = array<i64: 128, 8>}]} {
    %c0 = arith.constant 0 : index
    %c0_0 = arith.constant 0 : index
    %0 = vector.load %arg1[%c0, %c0_0] : memref<128x54xbf16, #tpu.memory_space<vmem>>, vector<128x54xbf16>
    %c0_1 = arith.constant 0 : index
    %c0_2 = arith.constant 0 : index
    %1 = vector.load %arg2[%c0_1, %c0_2] : memref<54x8xbf16, #tpu.memory_space<vmem>>, vector<54x8xbf16>
    %cst = arith.constant dense<0.000000e+00> : vector<128x8xf32>
    %2 = tpu.matmul %0, %1, %cst {dimension_numbers = #tpu.dot_dimension_numbers<[1], [0], [0], [1], [0, 0, 1, 1], [], []>} : vector<128x54xbf16>, vector<54x8xbf16>, vector<128x8xf32> -> vector<128x8xf32>
    %c0_3 = arith.constant 0 : index
    %c0_4 = arith.constant 0 : index
    %3 = vector.load %arg3[%c0_3, %c0_4] : memref<1x8xf32, #tpu.memory_space<vmem>>, vector<1x8xf32>
    %4 = vector.broadcast %3 : vector<1x8xf32> to vector<128x8xf32>
    %5 = arith.addf %2, %4 : vector<128x8xf32>
    %6 = math.tanh %5 : vector<128x8xf32>
    %c0_5 = arith.constant 0 : index
    %c0_6 = arith.constant 0 : index
    %7 = vector.load %arg4[%c0_5, %c0_6] : memref<128x8xf32, #tpu.memory_space<vmem>>, vector<128x8xf32>
    tpu.vector_store %arg4[%c0_5, %c0_6], %6 {strides = array<i32>} : memref<128x8xf32, #tpu.memory_space<vmem>>, vector<128x8xf32>,
    return
  }
  func.func @transform_0(%arg0: i32) -> (i32, i32) {
    %c0_i32 = arith.constant 0 : i32
    %c0_i32_0 = arith.constant 0 : i32
    return %arg0, %c0_i32 : i32, i32
  }
  func.func @transform_1(%arg0: i32) -> (i32, i32) {
    %c0_i32 = arith.constant 0 : i32
    %c0_i32_0 = arith.constant 0 : i32
    %c0_i32_1 = arith.constant 0 : i32
    return %c0_i32, %c0_i32_0 : i32, i32
  }
  func.func @transform_2(%arg0: i32) -> (i32, i32) {
    %c0_i32 = arith.constant 0 : i32
    %c0_i32_0 = arith.constant 0 : i32
    %c0_i32_1 = arith.constant 0 : i32
    return %c0_i32, %c0_i32_0 : i32, i32
  }
  func.func @transform_3(%arg0: i32) -> (i32, i32) {
    %c0_i32 = arith.constant 0 : i32
    %c0_i32_0 = arith.constant 0 : i32
    return %arg0, %c0_i32 : i32, i32
  }
}

module attributes {stable_mosaic.version = 11 : i64} {
  func.func @_mm_bias_act_kernel(%arg0: i32, %arg1: memref<16x512xbf16, #tpu.memory_space<vmem>>, %arg2: memref<512x2048xbf16, #tpu.memory_space<vmem>>, %arg3: memref<1x2048xf32, #tpu.memory_space<vmem>>, %arg4: memref<16x2048xf32, #tpu.memory_space<vmem>>) attributes {dimension_semantics = [#tpu.dimension_semantics<parallel>], iteration_bounds = array<i64: 1>, scalar_prefetch = 0 : i64, scratch_operands = 0 : i64, tpu.core_type = #tpu.core_type<tc>, window_params = [{transform_indices = @transform_0, window_bounds = array<i64: 16, 512>}, {pipeline_mode = #tpu.pipeline_mode<synchronous>, transform_indices = @transform_1, window_bounds = array<i64: 512, 2048>}, {pipeline_mode = #tpu.pipeline_mode<synchronous>, transform_indices = @transform_2, window_bounds = array<i64: 1, 2048>}, {transform_indices = @transform_3, window_bounds = array<i64: 16, 2048>}]} {
    %c0 = arith.constant 0 : index
    %c0_0 = arith.constant 0 : index
    %0 = vector.load %arg1[%c0, %c0_0] : memref<16x512xbf16, #tpu.memory_space<vmem>>, vector<16x512xbf16>
    %c0_1 = arith.constant 0 : index
    %c0_2 = arith.constant 0 : index
    %1 = vector.load %arg2[%c0_1, %c0_2] : memref<512x2048xbf16, #tpu.memory_space<vmem>>, vector<512x2048xbf16>
    %cst = arith.constant dense<0.000000e+00> : vector<16x2048xf32>
    %2 = tpu.matmul %0, %1, %cst {dimension_numbers = #tpu.dot_dimension_numbers<[1], [0], [0], [1], [0, 0, 1, 1], [], []>} : vector<16x512xbf16>, vector<512x2048xbf16>, vector<16x2048xf32> -> vector<16x2048xf32>
    %c0_3 = arith.constant 0 : index
    %c0_4 = arith.constant 0 : index
    %3 = vector.load %arg3[%c0_3, %c0_4] : memref<1x2048xf32, #tpu.memory_space<vmem>>, vector<1x2048xf32>
    %4 = vector.broadcast %3 : vector<1x2048xf32> to vector<16x2048xf32>
    %5 = arith.addf %2, %4 : vector<16x2048xf32>
    %c0_5 = arith.constant 0 : index
    %c0_6 = arith.constant 0 : index
    %6 = vector.load %arg4[%c0_5, %c0_6] : memref<16x2048xf32, #tpu.memory_space<vmem>>, vector<16x2048xf32>
    tpu.vector_store %arg4[%c0_5, %c0_6], %5 {strides = array<i32>} : memref<16x2048xf32, #tpu.memory_space<vmem>>, vector<16x2048xf32>,
    return
  }
  func.func @transform_0(%arg0: i32) -> (i32, i32) {
    %c0_i32 = arith.constant 0 : i32
    %c0_i32_0 = arith.constant 0 : i32
    return %arg0, %c0_i32 : i32, i32
  }
  func.func @transform_1(%arg0: i32) -> (i32, i32) {
    %c0_i32 = arith.constant 0 : i32
    %c0_i32_0 = arith.constant 0 : i32
    %c0_i32_1 = arith.constant 0 : i32
    return %c0_i32, %c0_i32_0 : i32, i32
  }
  func.func @transform_2(%arg0: i32) -> (i32, i32) {
    %c0_i32 = arith.constant 0 : i32
    %c0_i32_0 = arith.constant 0 : i32
    %c0_i32_1 = arith.constant 0 : i32
    return %c0_i32, %c0_i32_0 : i32, i32
  }
  func.func @transform_3(%arg0: i32) -> (i32, i32) {
    %c0_i32 = arith.constant 0 : i32
    %c0_i32_0 = arith.constant 0 : i32
    return %arg0, %c0_i32 : i32, i32
  }
}

module attributes {stable_mosaic.version = 11 : i64} {
  func.func @_bilstm_kernel(%arg0: i32, %arg1: memref<2x2x2048xf32, #tpu.memory_space<vmem>>, %arg2: memref<256x1024xbf16, #tpu.memory_space<vmem>>, %arg3: memref<256x1024xbf16, #tpu.memory_space<vmem>>, %arg4: memref<2x2x256xf32, #tpu.memory_space<vmem>>, %arg5: memref<2x2x256xf32, #tpu.memory_space<vmem>>) attributes {dimension_semantics = [#tpu.dimension_semantics<arbitrary>], iteration_bounds = array<i64: 1>, scalar_prefetch = 0 : i64, scratch_operands = 0 : i64, tpu.core_type = #tpu.core_type<tc>, window_params = [{pipeline_mode = #tpu.pipeline_mode<synchronous>, transform_indices = @transform_0, window_bounds = array<i64: 2, 2, 2048>}, {pipeline_mode = #tpu.pipeline_mode<synchronous>, transform_indices = @transform_1, window_bounds = array<i64: 256, 1024>}, {pipeline_mode = #tpu.pipeline_mode<synchronous>, transform_indices = @transform_2, window_bounds = array<i64: 256, 1024>}, {pipeline_mode = #tpu.pipeline_mode<synchronous>, transform_indices = @transform_3, window_bounds = array<i64: 2, 2, 256>}, {pipeline_mode = #tpu.pipeline_mode<synchronous>, transform_indices = @transform_4, window_bounds = array<i64: 2, 2, 256>}]} {
    %c0 = arith.constant 0 : index
    %c0_0 = arith.constant 0 : index
    %0 = vector.load %arg2[%c0, %c0_0] : memref<256x1024xbf16, #tpu.memory_space<vmem>>, vector<256x1024xbf16>
    %c0_1 = arith.constant 0 : index
    %c0_2 = arith.constant 0 : index
    %1 = vector.load %arg3[%c0_1, %c0_2] : memref<256x1024xbf16, #tpu.memory_space<vmem>>, vector<256x1024xbf16>
    %cst = arith.constant 0.000000e+00 : f32
    %2 = vector.broadcast %cst : f32 to vector<2x256xf32>
    %cst_3 = arith.constant 0.000000e+00 : f32
    %3 = vector.broadcast %cst_3 : f32 to vector<2x256xf32>
    %c0_i32 = arith.constant 0 : i32
    %c2_i32 = arith.constant 2 : i32
    %4 = arith.addi %c0_i32, %c2_i32 : i32
    %c1_i32 = arith.constant 1 : i32
    %5:2 = scf.for %arg6 = %c0_i32 to %4 step %c1_i32 iter_args(%arg7 = %2, %arg8 = %3) -> (vector<2x256xf32>, vector<2x256xf32>)  : i32 {
      %8 = arith.index_cast %arg6 : i32 to index
      %c0_9 = arith.constant 0 : index
      %c0_10 = arith.constant 0 : index
      %9 = vector.load %arg1[%8, %c0_9, %c0_10] : memref<2x2x2048xf32, #tpu.memory_space<vmem>>, vector<1x2x2048xf32>
      %10 = vector.shape_cast %9 : vector<1x2x2048xf32> to vector<2x2048xf32>
      %11 = vector.extract_strided_slice %10 {offsets = [0, 0], sizes = [2, 1024], strides = [1, 1]} : vector<2x2048xf32> to vector<2x1024xf32>
      %12 = arith.truncf %arg7 : vector<2x256xf32> to vector<2x256xbf16>
      %cst_11 = arith.constant dense<0.000000e+00> : vector<2x1024xf32>
      %13 = tpu.matmul %12, %0, %cst_11 {dimension_numbers = #tpu.dot_dimension_numbers<[1], [0], [0], [1], [0, 0, 1, 1], [], []>} : vector<2x256xbf16>, vector<256x1024xbf16>, vector<2x1024xf32> -> vector<2x1024xf32>
      %14 = arith.addf %11, %13 : vector<2x1024xf32>
      %15 = vector.extract_strided_slice %14 {offsets = [0, 0], sizes = [2, 256], strides = [1, 1]} : vector<2x1024xf32> to vector<2x256xf32>
      %16 = arith.negf %15 : vector<2x256xf32>
      %17 = math.exp %16 : vector<2x256xf32>
      %cst_12 = arith.constant 1.000000e+00 : f32
      %18 = vector.broadcast %cst_12 : f32 to vector<2x256xf32>
      %19 = arith.addf %18, %17 : vector<2x256xf32>
      %20 = arith.divf %18, %19 : vector<2x256xf32>
      %21 = vector.extract_strided_slice %14 {offsets = [0, 256], sizes = [2, 256], strides = [1, 1]} : vector<2x1024xf32> to vector<2x256xf32>
      %22 = arith.negf %21 : vector<2x256xf32>
      %23 = math.exp %22 : vector<2x256xf32>
      %cst_13 = arith.constant 1.000000e+00 : f32
      %24 = vector.broadcast %cst_13 : f32 to vector<2x256xf32>
      %25 = arith.addf %24, %23 : vector<2x256xf32>
      %26 = arith.divf %24, %25 : vector<2x256xf32>
      %27 = vector.extract_strided_slice %14 {offsets = [0, 512], sizes = [2, 256], strides = [1, 1]} : vector<2x1024xf32> to vector<2x256xf32>
      %28 = math.tanh %27 : vector<2x256xf32>
      %29 = vector.extract_strided_slice %14 {offsets = [0, 768], sizes = [2, 256], strides = [1, 1]} : vector<2x1024xf32> to vector<2x256xf32>
      %30 = arith.negf %29 : vector<2x256xf32>
      %31 = math.exp %30 : vector<2x256xf32>
      %cst_14 = arith.constant 1.000000e+00 : f32
      %32 = vector.broadcast %cst_14 : f32 to vector<2x256xf32>
      %33 = arith.addf %32, %31 : vector<2x256xf32>
      %34 = arith.divf %32, %33 : vector<2x256xf32>
      %35 = arith.mulf %26, %arg8 : vector<2x256xf32>
      %36 = arith.mulf %20, %28 : vector<2x256xf32>
      %37 = arith.addf %35, %36 : vector<2x256xf32>
      %38 = math.tanh %37 : vector<2x256xf32>
      %39 = arith.mulf %34, %38 : vector<2x256xf32>
      %40 = arith.index_cast %arg6 : i32 to index
      %c0_15 = arith.constant 0 : index
      %c0_16 = arith.constant 0 : index
      %41 = vector.load %arg4[%40, %c0_15, %c0_16] : memref<2x2x256xf32, #tpu.memory_space<vmem>>, vector<1x2x256xf32>
      %42 = vector.shape_cast %41 : vector<1x2x256xf32> to vector<2x256xf32>
      %43 = vector.shape_cast %39 : vector<2x256xf32> to vector<1x2x256xf32>
      tpu.vector_store %arg4[%40, %c0_15, %c0_16], %43 {strides = array<i32>} : memref<2x2x256xf32, #tpu.memory_space<vmem>>, vector<1x2x256xf32>,
      scf.yield %39, %37 : vector<2x256xf32>, vector<2x256xf32>
    }
    %c2_i32_4 = arith.constant 2 : i32
    %c0_i32_5 = arith.constant 0 : i32
    %c2_i32_6 = arith.constant 2 : i32
    %6 = arith.addi %c0_i32_5, %c2_i32_6 : i32
    %c1_i32_7 = arith.constant 1 : i32
    %7:2 = scf.for %arg6 = %c0_i32_5 to %6 step %c1_i32_7 iter_args(%arg7 = %2, %arg8 = %3) -> (vector<2x256xf32>, vector<2x256xf32>)  : i32 {
      %c1_i32_9 = arith.constant 1 : i32
      %8 = arith.subi %c1_i32_9, %arg6 : i32
      %9 = arith.index_cast %8 : i32 to index
      %c0_10 = arith.constant 0 : index
      %c0_11 = arith.constant 0 : index
      %10 = vector.load %arg1[%9, %c0_10, %c0_11] : memref<2x2x2048xf32, #tpu.memory_space<vmem>>, vector<1x2x2048xf32>
      %11 = vector.shape_cast %10 : vector<1x2x2048xf32> to vector<2x2048xf32>
      %12 = vector.extract_strided_slice %11 {offsets = [0, 1024], sizes = [2, 1024], strides = [1, 1]} : vector<2x2048xf32> to vector<2x1024xf32>
      %13 = arith.truncf %arg7 : vector<2x256xf32> to vector<2x256xbf16>
      %cst_12 = arith.constant dense<0.000000e+00> : vector<2x1024xf32>
      %14 = tpu.matmul %13, %1, %cst_12 {dimension_numbers = #tpu.dot_dimension_numbers<[1], [0], [0], [1], [0, 0, 1, 1], [], []>} : vector<2x256xbf16>, vector<256x1024xbf16>, vector<2x1024xf32> -> vector<2x1024xf32>
      %15 = arith.addf %12, %14 : vector<2x1024xf32>
      %16 = vector.extract_strided_slice %15 {offsets = [0, 0], sizes = [2, 256], strides = [1, 1]} : vector<2x1024xf32> to vector<2x256xf32>
      %17 = arith.negf %16 : vector<2x256xf32>
      %18 = math.exp %17 : vector<2x256xf32>
      %cst_13 = arith.constant 1.000000e+00 : f32
      %19 = vector.broadcast %cst_13 : f32 to vector<2x256xf32>
      %20 = arith.addf %19, %18 : vector<2x256xf32>
      %21 = arith.divf %19, %20 : vector<2x256xf32>
      %22 = vector.extract_strided_slice %15 {offsets = [0, 256], sizes = [2, 256], strides = [1, 1]} : vector<2x1024xf32> to vector<2x256xf32>
      %23 = arith.negf %22 : vector<2x256xf32>
      %24 = math.exp %23 : vector<2x256xf32>
      %cst_14 = arith.constant 1.000000e+00 : f32
      %25 = vector.broadcast %cst_14 : f32 to vector<2x256xf32>
      %26 = arith.addf %25, %24 : vector<2x256xf32>
      %27 = arith.divf %25, %26 : vector<2x256xf32>
      %28 = vector.extract_strided_slice %15 {offsets = [0, 512], sizes = [2, 256], strides = [1, 1]} : vector<2x1024xf32> to vector<2x256xf32>
      %29 = math.tanh %28 : vector<2x256xf32>
      %30 = vector.extract_strided_slice %15 {offsets = [0, 768], sizes = [2, 256], strides = [1, 1]} : vector<2x1024xf32> to vector<2x256xf32>
      %31 = arith.negf %30 : vector<2x256xf32>
      %32 = math.exp %31 : vector<2x256xf32>
      %cst_15 = arith.constant 1.000000e+00 : f32
      %33 = vector.broadcast %cst_15 : f32 to vector<2x256xf32>
      %34 = arith.addf %33, %32 : vector<2x256xf32>
      %35 = arith.divf %33, %34 : vector<2x256xf32>
      %36 = arith.mulf %27, %arg8 : vector<2x256xf32>
      %37 = arith.mulf %21, %29 : vector<2x256xf32>
      %38 = arith.addf %36, %37 : vector<2x256xf32>
      %39 = math.tanh %38 : vector<2x256xf32>
      %40 = arith.mulf %35, %39 : vector<2x256xf32>
      %41 = arith.index_cast %8 : i32 to index
      %c0_16 = arith.constant 0 : index
      %c0_17 = arith.constant 0 : index
      %42 = vector.load %arg5[%41, %c0_16, %c0_17] : memref<2x2x256xf32, #tpu.memory_space<vmem>>, vector<1x2x256xf32>
      %43 = vector.shape_cast %42 : vector<1x2x256xf32> to vector<2x256xf32>
      %44 = vector.shape_cast %40 : vector<2x256xf32> to vector<1x2x256xf32>
      tpu.vector_store %arg5[%41, %c0_16, %c0_17], %44 {strides = array<i32>} : memref<2x2x256xf32, #tpu.memory_space<vmem>>, vector<1x2x256xf32>,
      scf.yield %40, %38 : vector<2x256xf32>, vector<2x256xf32>
    }
    %c2_i32_8 = arith.constant 2 : i32
    return
  }
  func.func @transform_0(%arg0: i32) -> (i32, i32, i32) {
    %c0_i32 = arith.constant 0 : i32
    %c0_i32_0 = arith.constant 0 : i32
    %c0_i32_1 = arith.constant 0 : i32
    %c0_i32_2 = arith.constant 0 : i32
    return %c0_i32, %c0_i32_0, %c0_i32_1 : i32, i32, i32
  }
  func.func @transform_1(%arg0: i32) -> (i32, i32) {
    %c0_i32 = arith.constant 0 : i32
    %c0_i32_0 = arith.constant 0 : i32
    %c0_i32_1 = arith.constant 0 : i32
    return %c0_i32, %c0_i32_0 : i32, i32
  }
  func.func @transform_2(%arg0: i32) -> (i32, i32) {
    %c0_i32 = arith.constant 0 : i32
    %c0_i32_0 = arith.constant 0 : i32
    %c0_i32_1 = arith.constant 0 : i32
    return %c0_i32, %c0_i32_0 : i32, i32
  }
  func.func @transform_3(%arg0: i32) -> (i32, i32, i32) {
    %c0_i32 = arith.constant 0 : i32
    %c0_i32_0 = arith.constant 0 : i32
    %c0_i32_1 = arith.constant 0 : i32
    %c0_i32_2 = arith.constant 0 : i32
    return %c0_i32, %c0_i32_0, %c0_i32_1 : i32, i32, i32
  }
  func.func @transform_4(%arg0: i32) -> (i32, i32, i32) {
    %c0_i32 = arith.constant 0 : i32
    %c0_i32_0 = arith.constant 0 : i32
    %c0_i32_1 = arith.constant 0 : i32
    %c0_i32_2 = arith.constant 0 : i32
    return %c0_i32, %c0_i32_0, %c0_i32_1 : i32, i32, i32
  }
}

module attributes {stable_mosaic.version = 11 : i64} {
  func.func @_mm_bias_act_kernel(%arg0: i32, %arg1: memref<16x512xbf16, #tpu.memory_space<vmem>>, %arg2: memref<512x512xbf16, #tpu.memory_space<vmem>>, %arg3: memref<1x512xf32, #tpu.memory_space<vmem>>, %arg4: memref<16x512xf32, #tpu.memory_space<vmem>>) attributes {dimension_semantics = [#tpu.dimension_semantics<parallel>], iteration_bounds = array<i64: 1>, scalar_prefetch = 0 : i64, scratch_operands = 0 : i64, tpu.core_type = #tpu.core_type<tc>, window_params = [{transform_indices = @transform_0, window_bounds = array<i64: 16, 512>}, {pipeline_mode = #tpu.pipeline_mode<synchronous>, transform_indices = @transform_1, window_bounds = array<i64: 512, 512>}, {pipeline_mode = #tpu.pipeline_mode<synchronous>, transform_indices = @transform_2, window_bounds = array<i64: 1, 512>}, {transform_indices = @transform_3, window_bounds = array<i64: 16, 512>}]} {
    %c0 = arith.constant 0 : index
    %c0_0 = arith.constant 0 : index
    %0 = vector.load %arg1[%c0, %c0_0] : memref<16x512xbf16, #tpu.memory_space<vmem>>, vector<16x512xbf16>
    %c0_1 = arith.constant 0 : index
    %c0_2 = arith.constant 0 : index
    %1 = vector.load %arg2[%c0_1, %c0_2] : memref<512x512xbf16, #tpu.memory_space<vmem>>, vector<512x512xbf16>
    %cst = arith.constant dense<0.000000e+00> : vector<16x512xf32>
    %2 = tpu.matmul %0, %1, %cst {dimension_numbers = #tpu.dot_dimension_numbers<[1], [0], [0], [1], [0, 0, 1, 1], [], []>} : vector<16x512xbf16>, vector<512x512xbf16>, vector<16x512xf32> -> vector<16x512xf32>
    %c0_3 = arith.constant 0 : index
    %c0_4 = arith.constant 0 : index
    %3 = vector.load %arg3[%c0_3, %c0_4] : memref<1x512xf32, #tpu.memory_space<vmem>>, vector<1x512xf32>
    %4 = vector.broadcast %3 : vector<1x512xf32> to vector<16x512xf32>
    %5 = arith.addf %2, %4 : vector<16x512xf32>
    %cst_5 = arith.constant 0.000000e+00 : f32
    %6 = vector.broadcast %cst_5 : f32 to vector<16x512xf32>
    %7 = arith.cmpf oge, %5, %6 : vector<16x512xf32>
    %cst_6 = arith.constant 3.000000e-01 : f32
    %8 = vector.broadcast %cst_6 : f32 to vector<16x512xf32>
    %9 = arith.mulf %8, %5 : vector<16x512xf32>
    %10 = arith.select %7, %5, %9 : vector<16x512xi1>, vector<16x512xf32>
    %c0_7 = arith.constant 0 : index
    %c0_8 = arith.constant 0 : index
    %11 = vector.load %arg4[%c0_7, %c0_8] : memref<16x512xf32, #tpu.memory_space<vmem>>, vector<16x512xf32>
    tpu.vector_store %arg4[%c0_7, %c0_8], %10 {strides = array<i32>} : memref<16x512xf32, #tpu.memory_space<vmem>>, vector<16x512xf32>,
    return
  }
  func.func @transform_0(%arg0: i32) -> (i32, i32) {
    %c0_i32 = arith.constant 0 : i32
    %c0_i32_0 = arith.constant 0 : i32
    return %arg0, %c0_i32 : i32, i32
  }
  func.func @transform_1(%arg0: i32) -> (i32, i32) {
    %c0_i32 = arith.constant 0 : i32
    %c0_i32_0 = arith.constant 0 : i32
    %c0_i32_1 = arith.constant 0 : i32
    return %c0_i32, %c0_i32_0 : i32, i32
  }
  func.func @transform_2(%arg0: i32) -> (i32, i32) {
    %c0_i32 = arith.constant 0 : i32
    %c0_i32_0 = arith.constant 0 : i32
    %c0_i32_1 = arith.constant 0 : i32
    return %c0_i32, %c0_i32_0 : i32, i32
  }
  func.func @transform_3(%arg0: i32) -> (i32, i32) {
    %c0_i32 = arith.constant 0 : i32
    %c0_i32_0 = arith.constant 0 : i32
    return %arg0, %c0_i32 : i32, i32
  }
}

module attributes {stable_mosaic.version = 11 : i64} {
  func.func @_mm_bias_act_kernel(%arg0: i32, %arg1: memref<16x1024xbf16, #tpu.memory_space<vmem>>, %arg2: memref<1024x512xbf16, #tpu.memory_space<vmem>>, %arg3: memref<1x512xf32, #tpu.memory_space<vmem>>, %arg4: memref<16x512xf32, #tpu.memory_space<vmem>>) attributes {dimension_semantics = [#tpu.dimension_semantics<parallel>], iteration_bounds = array<i64: 1>, scalar_prefetch = 0 : i64, scratch_operands = 0 : i64, tpu.core_type = #tpu.core_type<tc>, window_params = [{transform_indices = @transform_0, window_bounds = array<i64: 16, 1024>}, {pipeline_mode = #tpu.pipeline_mode<synchronous>, transform_indices = @transform_1, window_bounds = array<i64: 1024, 512>}, {pipeline_mode = #tpu.pipeline_mode<synchronous>, transform_indices = @transform_2, window_bounds = array<i64: 1, 512>}, {transform_indices = @transform_3, window_bounds = array<i64: 16, 512>}]} {
    %c0 = arith.constant 0 : index
    %c0_0 = arith.constant 0 : index
    %0 = vector.load %arg1[%c0, %c0_0] : memref<16x1024xbf16, #tpu.memory_space<vmem>>, vector<16x1024xbf16>
    %c0_1 = arith.constant 0 : index
    %c0_2 = arith.constant 0 : index
    %1 = vector.load %arg2[%c0_1, %c0_2] : memref<1024x512xbf16, #tpu.memory_space<vmem>>, vector<1024x512xbf16>
    %cst = arith.constant dense<0.000000e+00> : vector<16x512xf32>
    %2 = tpu.matmul %0, %1, %cst {dimension_numbers = #tpu.dot_dimension_numbers<[1], [0], [0], [1], [0, 0, 1, 1], [], []>} : vector<16x1024xbf16>, vector<1024x512xbf16>, vector<16x512xf32> -> vector<16x512xf32>
    %c0_3 = arith.constant 0 : index
    %c0_4 = arith.constant 0 : index
    %3 = vector.load %arg3[%c0_3, %c0_4] : memref<1x512xf32, #tpu.memory_space<vmem>>, vector<1x512xf32>
    %4 = vector.broadcast %3 : vector<1x512xf32> to vector<16x512xf32>
    %5 = arith.addf %2, %4 : vector<16x512xf32>
    %cst_5 = arith.constant 0.000000e+00 : f32
    %6 = vector.broadcast %cst_5 : f32 to vector<16x512xf32>
    %7 = arith.cmpf oge, %5, %6 : vector<16x512xf32>
    %cst_6 = arith.constant 3.000000e-01 : f32
    %8 = vector.broadcast %cst_6 : f32 to vector<16x512xf32>
    %9 = arith.mulf %8, %5 : vector<16x512xf32>
    %10 = arith.select %7, %5, %9 : vector<16x512xi1>, vector<16x512xf32>
    %c0_7 = arith.constant 0 : index
    %c0_8 = arith.constant 0 : index
    %11 = vector.load %arg4[%c0_7, %c0_8] : memref<16x512xf32, #tpu.memory_space<vmem>>, vector<16x512xf32>
    tpu.vector_store %arg4[%c0_7, %c0_8], %10 {strides = array<i32>} : memref<16x512xf32, #tpu.memory_space<vmem>>, vector<16x512xf32>,
    return
  }
  func.func @transform_0(%arg0: i32) -> (i32, i32) {
    %c0_i32 = arith.constant 0 : i32
    %c0_i32_0 = arith.constant 0 : i32
    return %arg0, %c0_i32 : i32, i32
  }
  func.func @transform_1(%arg0: i32) -> (i32, i32) {
    %c0_i32 = arith.constant 0 : i32
    %c0_i32_0 = arith.constant 0 : i32
    %c0_i32_1 = arith.constant 0 : i32
    return %c0_i32, %c0_i32_0 : i32, i32
  }
  func.func @transform_2(%arg0: i32) -> (i32, i32) {
    %c0_i32 = arith.constant 0 : i32
    %c0_i32_0 = arith.constant 0 : i32
    %c0_i32_1 = arith.constant 0 : i32
    return %c0_i32, %c0_i32_0 : i32, i32
  }
  func.func @transform_3(%arg0: i32) -> (i32, i32) {
    %c0_i32 = arith.constant 0 : i32
    %c0_i32_0 = arith.constant 0 : i32
    return %arg0, %c0_i32 : i32, i32
  }
}

module attributes {stable_mosaic.version = 11 : i64} {
  func.func @_mm_nm_bias_act_kernel(%arg0: i32, %arg1: memref<4x72xbf16, #tpu.memory_space<vmem>>, %arg2: memref<72x256xbf16, #tpu.memory_space<vmem>>, %arg3: memref<4x1xf32, #tpu.memory_space<vmem>>, %arg4: memref<4x256xf32, #tpu.memory_space<vmem>>) attributes {dimension_semantics = [#tpu.dimension_semantics<parallel>], iteration_bounds = array<i64: 1>, scalar_prefetch = 0 : i64, scratch_operands = 0 : i64, tpu.core_type = #tpu.core_type<tc>, window_params = [{pipeline_mode = #tpu.pipeline_mode<synchronous>, transform_indices = @transform_0, window_bounds = array<i64: 4, 72>}, {transform_indices = @transform_1, window_bounds = array<i64: 72, 256>}, {pipeline_mode = #tpu.pipeline_mode<synchronous>, transform_indices = @transform_2, window_bounds = array<i64: 4, 1>}, {transform_indices = @transform_3, window_bounds = array<i64: 4, 256>}]} {
    %c0 = arith.constant 0 : index
    %c0_0 = arith.constant 0 : index
    %0 = vector.load %arg1[%c0, %c0_0] : memref<4x72xbf16, #tpu.memory_space<vmem>>, vector<4x72xbf16>
    %c0_1 = arith.constant 0 : index
    %c0_2 = arith.constant 0 : index
    %1 = vector.load %arg2[%c0_1, %c0_2] : memref<72x256xbf16, #tpu.memory_space<vmem>>, vector<72x256xbf16>
    %cst = arith.constant dense<0.000000e+00> : vector<4x256xf32>
    %2 = tpu.matmul %0, %1, %cst {dimension_numbers = #tpu.dot_dimension_numbers<[1], [0], [0], [1], [0, 0, 1, 1], [], []>} : vector<4x72xbf16>, vector<72x256xbf16>, vector<4x256xf32> -> vector<4x256xf32>
    %c0_3 = arith.constant 0 : index
    %c0_4 = arith.constant 0 : index
    %3 = vector.load %arg3[%c0_3, %c0_4] : memref<4x1xf32, #tpu.memory_space<vmem>>, vector<4x1xf32>
    %4 = vector.broadcast %3 : vector<4x1xf32> to vector<4x256xf32>
    %5 = arith.addf %2, %4 : vector<4x256xf32>
    %6 = math.tanh %5 : vector<4x256xf32>
    %c0_5 = arith.constant 0 : index
    %c0_6 = arith.constant 0 : index
    %7 = vector.load %arg4[%c0_5, %c0_6] : memref<4x256xf32, #tpu.memory_space<vmem>>, vector<4x256xf32>
    tpu.vector_store %arg4[%c0_5, %c0_6], %6 {strides = array<i32>} : memref<4x256xf32, #tpu.memory_space<vmem>>, vector<4x256xf32>,
    return
  }
  func.func @transform_0(%arg0: i32) -> (i32, i32) {
    %c0_i32 = arith.constant 0 : i32
    %c0_i32_0 = arith.constant 0 : i32
    %c0_i32_1 = arith.constant 0 : i32
    return %c0_i32, %c0_i32_0 : i32, i32
  }
  func.func @transform_1(%arg0: i32) -> (i32, i32) {
    %c0_i32 = arith.constant 0 : i32
    %c0_i32_0 = arith.constant 0 : i32
    return %c0_i32, %arg0 : i32, i32
  }
  func.func @transform_2(%arg0: i32) -> (i32, i32) {
    %c0_i32 = arith.constant 0 : i32
    %c0_i32_0 = arith.constant 0 : i32
    %c0_i32_1 = arith.constant 0 : i32
    return %c0_i32, %c0_i32_0 : i32, i32
  }
  func.func @transform_3(%arg0: i32) -> (i32, i32) {
    %c0_i32 = arith.constant 0 : i32
    %c0_i32_0 = arith.constant 0 : i32
    return %c0_i32, %arg0 : i32, i32
  }
}

module attributes {stable_mosaic.version = 11 : i64} {
  func.func @_mm_nm_bias_act_kernel(%arg0: i32, %arg1: memref<2x36xbf16, #tpu.memory_space<vmem>>, %arg2: memref<36x512xbf16, #tpu.memory_space<vmem>>, %arg3: memref<2x1xf32, #tpu.memory_space<vmem>>, %arg4: memref<2x512xf32, #tpu.memory_space<vmem>>) attributes {dimension_semantics = [#tpu.dimension_semantics<parallel>], iteration_bounds = array<i64: 1>, scalar_prefetch = 0 : i64, scratch_operands = 0 : i64, tpu.core_type = #tpu.core_type<tc>, window_params = [{pipeline_mode = #tpu.pipeline_mode<synchronous>, transform_indices = @transform_0, window_bounds = array<i64: 2, 36>}, {transform_indices = @transform_1, window_bounds = array<i64: 36, 512>}, {pipeline_mode = #tpu.pipeline_mode<synchronous>, transform_indices = @transform_2, window_bounds = array<i64: 2, 1>}, {transform_indices = @transform_3, window_bounds = array<i64: 2, 512>}]} {
    %c0 = arith.constant 0 : index
    %c0_0 = arith.constant 0 : index
    %0 = vector.load %arg1[%c0, %c0_0] : memref<2x36xbf16, #tpu.memory_space<vmem>>, vector<2x36xbf16>
    %c0_1 = arith.constant 0 : index
    %c0_2 = arith.constant 0 : index
    %1 = vector.load %arg2[%c0_1, %c0_2] : memref<36x512xbf16, #tpu.memory_space<vmem>>, vector<36x512xbf16>
    %cst = arith.constant dense<0.000000e+00> : vector<2x512xf32>
    %2 = tpu.matmul %0, %1, %cst {dimension_numbers = #tpu.dot_dimension_numbers<[1], [0], [0], [1], [0, 0, 1, 1], [], []>} : vector<2x36xbf16>, vector<36x512xbf16>, vector<2x512xf32> -> vector<2x512xf32>
    %c0_3 = arith.constant 0 : index
    %c0_4 = arith.constant 0 : index
    %3 = vector.load %arg3[%c0_3, %c0_4] : memref<2x1xf32, #tpu.memory_space<vmem>>, vector<2x1xf32>
    %4 = vector.broadcast %3 : vector<2x1xf32> to vector<2x512xf32>
    %5 = arith.addf %2, %4 : vector<2x512xf32>
    %6 = math.tanh %5 : vector<2x512xf32>
    %c0_5 = arith.constant 0 : index
    %c0_6 = arith.constant 0 : index
    %7 = vector.load %arg4[%c0_5, %c0_6] : memref<2x512xf32, #tpu.memory_space<vmem>>, vector<2x512xf32>
    tpu.vector_store %arg4[%c0_5, %c0_6], %6 {strides = array<i32>} : memref<2x512xf32, #tpu.memory_space<vmem>>, vector<2x512xf32>,
    return
  }
  func.func @transform_0(%arg0: i32) -> (i32, i32) {
    %c0_i32 = arith.constant 0 : i32
    %c0_i32_0 = arith.constant 0 : i32
    %c0_i32_1 = arith.constant 0 : i32
    return %c0_i32, %c0_i32_0 : i32, i32
  }
  func.func @transform_1(%arg0: i32) -> (i32, i32) {
    %c0_i32 = arith.constant 0 : i32
    %c0_i32_0 = arith.constant 0 : i32
    return %c0_i32, %arg0 : i32, i32
  }
  func.func @transform_2(%arg0: i32) -> (i32, i32) {
    %c0_i32 = arith.constant 0 : i32
    %c0_i32_0 = arith.constant 0 : i32
    %c0_i32_1 = arith.constant 0 : i32
    return %c0_i32, %c0_i32_0 : i32, i32
  }
  func.func @transform_3(%arg0: i32) -> (i32, i32) {
    %c0_i32 = arith.constant 0 : i32
    %c0_i32_0 = arith.constant 0 : i32
    return %c0_i32, %arg0 : i32, i32
  }
}

module attributes {stable_mosaic.version = 11 : i64} {
  func.func @_mm_nm_bias_act_kernel(%arg0: i32, %arg1: memref<1x18xbf16, #tpu.memory_space<vmem>>, %arg2: memref<18x1024xbf16, #tpu.memory_space<vmem>>, %arg3: memref<1x1xf32, #tpu.memory_space<vmem>>, %arg4: memref<1x1024xf32, #tpu.memory_space<vmem>>) attributes {dimension_semantics = [#tpu.dimension_semantics<parallel>], iteration_bounds = array<i64: 1>, scalar_prefetch = 0 : i64, scratch_operands = 0 : i64, tpu.core_type = #tpu.core_type<tc>, window_params = [{pipeline_mode = #tpu.pipeline_mode<synchronous>, transform_indices = @transform_0, window_bounds = array<i64: 1, 18>}, {transform_indices = @transform_1, window_bounds = array<i64: 18, 1024>}, {pipeline_mode = #tpu.pipeline_mode<synchronous>, transform_indices = @transform_2, window_bounds = array<i64: 1, 1>}, {transform_indices = @transform_3, window_bounds = array<i64: 1, 1024>}]} {
    %c0 = arith.constant 0 : index
    %c0_0 = arith.constant 0 : index
    %0 = vector.load %arg1[%c0, %c0_0] : memref<1x18xbf16, #tpu.memory_space<vmem>>, vector<1x18xbf16>
    %c0_1 = arith.constant 0 : index
    %c0_2 = arith.constant 0 : index
    %1 = vector.load %arg2[%c0_1, %c0_2] : memref<18x1024xbf16, #tpu.memory_space<vmem>>, vector<18x1024xbf16>
    %cst = arith.constant dense<0.000000e+00> : vector<1x1024xf32>
    %2 = tpu.matmul %0, %1, %cst {dimension_numbers = #tpu.dot_dimension_numbers<[1], [0], [0], [1], [0, 0, 1, 1], [], []>} : vector<1x18xbf16>, vector<18x1024xbf16>, vector<1x1024xf32> -> vector<1x1024xf32>
    %c0_3 = arith.constant 0 : index
    %c0_4 = arith.constant 0 : index
    %3 = vector.load %arg3[%c0_3, %c0_4] : memref<1x1xf32, #tpu.memory_space<vmem>>, vector<1x1xf32>
    %4 = vector.broadcast %3 : vector<1x1xf32> to vector<1x1024xf32>
    %5 = arith.addf %2, %4 : vector<1x1024xf32>
    %c0_5 = arith.constant 0 : index
    %c0_6 = arith.constant 0 : index
    %6 = vector.load %arg4[%c0_5, %c0_6] : memref<1x1024xf32, #tpu.memory_space<vmem>>, vector<1x1024xf32>
    tpu.vector_store %arg4[%c0_5, %c0_6], %5 {strides = array<i32>} : memref<1x1024xf32, #tpu.memory_space<vmem>>, vector<1x1024xf32>,
    return
  }
  func.func @transform_0(%arg0: i32) -> (i32, i32) {
    %c0_i32 = arith.constant 0 : i32
    %c0_i32_0 = arith.constant 0 : i32
    %c0_i32_1 = arith.constant 0 : i32
    return %c0_i32, %c0_i32_0 : i32, i32
  }
  func.func @transform_1(%arg0: i32) -> (i32, i32) {
    %c0_i32 = arith.constant 0 : i32
    %c0_i32_0 = arith.constant 0 : i32
    return %c0_i32, %arg0 : i32, i32
  }
  func.func @transform_2(%arg0: i32) -> (i32, i32) {
    %c0_i32 = arith.constant 0 : i32
    %c0_i32_0 = arith.constant 0 : i32
    %c0_i32_1 = arith.constant 0 : i32
    return %c0_i32, %c0_i32_0 : i32, i32
  }
  func.func @transform_3(%arg0: i32) -> (i32, i32) {
    %c0_i32 = arith.constant 0 : i32
    %c0_i32_0 = arith.constant 0 : i32
    return %c0_i32, %arg0 : i32, i32
  }
}

module attributes {stable_mosaic.version = 11 : i64} {
  func.func @_mm_nm_bias_act_kernel(%arg0: i32, %arg1: memref<2x216xbf16, #tpu.memory_space<vmem>>, %arg2: memref<216x512xbf16, #tpu.memory_space<vmem>>, %arg3: memref<2x1xf32, #tpu.memory_space<vmem>>, %arg4: memref<2x512xf32, #tpu.memory_space<vmem>>) attributes {dimension_semantics = [#tpu.dimension_semantics<parallel>], iteration_bounds = array<i64: 1>, scalar_prefetch = 0 : i64, scratch_operands = 0 : i64, tpu.core_type = #tpu.core_type<tc>, window_params = [{pipeline_mode = #tpu.pipeline_mode<synchronous>, transform_indices = @transform_0, window_bounds = array<i64: 2, 216>}, {transform_indices = @transform_1, window_bounds = array<i64: 216, 512>}, {pipeline_mode = #tpu.pipeline_mode<synchronous>, transform_indices = @transform_2, window_bounds = array<i64: 2, 1>}, {transform_indices = @transform_3, window_bounds = array<i64: 2, 512>}]} {
    %c0 = arith.constant 0 : index
    %c0_0 = arith.constant 0 : index
    %0 = vector.load %arg1[%c0, %c0_0] : memref<2x216xbf16, #tpu.memory_space<vmem>>, vector<2x216xbf16>
    %c0_1 = arith.constant 0 : index
    %c0_2 = arith.constant 0 : index
    %1 = vector.load %arg2[%c0_1, %c0_2] : memref<216x512xbf16, #tpu.memory_space<vmem>>, vector<216x512xbf16>
    %cst = arith.constant dense<0.000000e+00> : vector<2x512xf32>
    %2 = tpu.matmul %0, %1, %cst {dimension_numbers = #tpu.dot_dimension_numbers<[1], [0], [0], [1], [0, 0, 1, 1], [], []>} : vector<2x216xbf16>, vector<216x512xbf16>, vector<2x512xf32> -> vector<2x512xf32>
    %c0_3 = arith.constant 0 : index
    %c0_4 = arith.constant 0 : index
    %3 = vector.load %arg3[%c0_3, %c0_4] : memref<2x1xf32, #tpu.memory_space<vmem>>, vector<2x1xf32>
    %4 = vector.broadcast %3 : vector<2x1xf32> to vector<2x512xf32>
    %5 = arith.addf %2, %4 : vector<2x512xf32>
    %c0_5 = arith.constant 0 : index
    %c0_6 = arith.constant 0 : index
    %6 = vector.load %arg4[%c0_5, %c0_6] : memref<2x512xf32, #tpu.memory_space<vmem>>, vector<2x512xf32>
    tpu.vector_store %arg4[%c0_5, %c0_6], %5 {strides = array<i32>} : memref<2x512xf32, #tpu.memory_space<vmem>>, vector<2x512xf32>,
    return
  }
  func.func @transform_0(%arg0: i32) -> (i32, i32) {
    %c0_i32 = arith.constant 0 : i32
    %c0_i32_0 = arith.constant 0 : i32
    %c0_i32_1 = arith.constant 0 : i32
    return %c0_i32, %c0_i32_0 : i32, i32
  }
  func.func @transform_1(%arg0: i32) -> (i32, i32) {
    %c0_i32 = arith.constant 0 : i32
    %c0_i32_0 = arith.constant 0 : i32
    return %c0_i32, %arg0 : i32, i32
  }
  func.func @transform_2(%arg0: i32) -> (i32, i32) {
    %c0_i32 = arith.constant 0 : i32
    %c0_i32_0 = arith.constant 0 : i32
    %c0_i32_1 = arith.constant 0 : i32
    return %c0_i32, %c0_i32_0 : i32, i32
  }
  func.func @transform_3(%arg0: i32) -> (i32, i32) {
    %c0_i32 = arith.constant 0 : i32
    %c0_i32_0 = arith.constant 0 : i32
    return %c0_i32, %arg0 : i32, i32
  }
}

</mosaic_0001>

<bundles_post_ra>
// kernel: _lambda_.13
= control target key start
LH: loop header
LB: loop body
LE: loop exit
PB: predicated region body
PF: predicated region fallthrough
CT: control target
= control target key end

     0   :  { %8 = vsyncpa [#allocation3], 0  ;;  %s317_s0 = inlined_call_operand.hbm [shape: bf16[2,9], index: 0, kind: input, shape index: {}]   ;;  %s318_s1 = inlined_call_operand.vmem [shape: bf16[9,512], index: 1, kind: input, shape index: {}]   ;;  %s319_s2 = inlined_call_operand.hbm [shape: f32[2,1], index: 2, kind: input, shape index: {}]   ;;  %s320_s3 = inlined_call_operand.vmem [shape: f32[2,512], index: 3, kind: output, shape index: {}]  }
   0x1   :  { %9 = vsyncpa [#allocation5], 0  ;;  %s271_s12 = smov [#allocation2]   ;;  %s272_s14 = smov [#allocation4]  }
   0x2   :  { %s16_s13 = sshll.u32 %s271_s12, 4  ;;  %s28_s15 = sshll.u32 %s272_s14, 4  ;;  %s17_s13 = int_to_ptr.vmem [resolvable:$true] %s16_s13  ;;  %s29_s15 = int_to_ptr.vmem [resolvable:$true] %s28_s15 }
   0x3   :  { %s235_s16 = scalar_lea.vmem %s17_s13, 16  ;;  %s239_s17 = scalar_lea.vmem %s17_s13, 32 }
   0x4   :  { %p236_p0 = scmp.ne.s32.totalorder %s17_s13, %s235_s16  ;;  %p240_p1 = scmp.lt.s32.totalorder %s17_s13, %s17_s13 }
   0x5   :  { %p241_p2 = scmp.lt.s32.totalorder %s239_s17, %s235_s16 }
   0x7   :  { %p242_p3 = por %p241_p2, %p240_p1 }
   0x9   :  { %p243_p4 = pnand %p242_p3, %p236_p0 }
   0xb   :  { %246 = shalt.err (!%p243_p4)
}
   0xc   :  { %19 = dma.hbm_to_vmem [thread:$0]  %s317_s0, 16, %s17_s13, [#allocation3]  }
   0xd   :  { %s255_s20 = scalar_lea.vmem %s29_s15, 32  ;;  %p260_p6 = scmp.lt.s32.totalorder %s29_s15, %s29_s15 }
   0xe   :  { %p256_p5 = scmp.ne.s32.totalorder %s29_s15, %s255_s20  ;;  %p261_p7 = scmp.lt.s32.totalorder %s255_s20, %s255_s20 }
  0x10   :  { %p262_p8 = por %p261_p7, %p260_p6 }
  0x12   :  { %p263_p9 = pnand %p262_p8, %p256_p5 }
  0x14   :  { %266 = shalt.err (!%p263_p9)
}
  0x15   :  { %31 = dma.hbm_to_vmem [thread:$0]  %s319_s2, 32, %s29_s15, [#allocation5]  }
  0x16   :  { %267 = dma.done.wait [#allocation3], 16  }
  0x17   :  { %268 = vsyncadd [#allocation3], 4294967280 }
  0x18   :  { %269 = dma.done.wait [#allocation5], 32  }
  0x19   :  { %270 = vsyncadd [#allocation5], 4294967264  ;;  %vm70_vm0 = vcmask 1043456   ;;  %v273_v0 = vmov 0   ;;  %vm71_vm1 = vcmask 1044480   ;;  %v274_v1 = vmov 65535  }
  0x1a   :  { %118 = vmatprep.mubr.bf16.mxu0 %v273_v0  ;;  %159 = vmatprep.mubr.bf16.mxu1 %v273_v0  ;;  %v72_v2 = vsel %vm70_vm0, 4294967295, %v274_v1  ;;  %v213_v4 = vld [vmem:[%s318_s1 + $0x4] ss:$16 sps:$4 sm:$0x1f]   ;;  %v44_v10 = vld [vmem:[#allocation4] sm:$0x3]  ;;  %v181_v29 = vlaneseq }
  0x1b   :  { %212 = vset.pattern.permute.xlu0 %v273_v0  ;;  %v73_v3 = vsel %vm71_vm1, %v72_v2, 0  ;;  %v215_v5 = vld [vmem:[%s318_s1 + $0xc] ss:$16 sps:$4 sm:$0x1f]   ;;  %v39_v13 = vld [vmem:[#allocation2] sm:$0x1] }
  0x1c   :  { %v78_v6 = vand.u32 %v213_v4, %v73_v3  ;;  %v217_v7 = vld [vmem:[%s318_s1] ss:$16 sps:$4 sm:$0x1f]   ;;  %v218_v8 = vld [vmem:[%s318_s1 + $0x8] ss:$16 sps:$4 sm:$0x1f]   ;;  %v84_v9 = vand.u32 %v215_v5, %v73_v3  ;;  %47 = vperm.xlu0 %212, %v44_v10  }
  0x1d   :  { %v75_v11 = vand.u32 %v217_v7, %v73_v3  ;;  %v81_v12 = vand.u32 %v218_v8, %v73_v3  ;;  %vm66_vm2 = vcmask 72704   ;;  %v275_v27 = vmov 1983009808  }
  0x1e   :  { %100 = vmatprep.subr.bf16.mxu0 %v78_v6  ;;  %141 = vmatprep.subr.bf16.mxu1 %v84_v9  ;;  %v179_v28 = vunpack.c.l.s4 %v275_v27  ;;  %v182_v31 = vshrl.u32 %v181_v29, 7 }
  0x1f   :  { %101 = vmatpush1.bf16.msra.mxu0 %v75_v11  ;;  %142 = vmatpush1.bf16.msra.mxu1 %v81_v12 }
  0x20   :  { %v180_v30 = vunpack.c.0.s8 %v179_v28 }
  0x22   :  { %205 = vmatmul.mubr.msk.bf16.vlgmr.msra.gmra.mxu0 %vm66_vm2, %v39_v13  ;;  %206 = vmatmul.mubr.msk.bf16.vlgmr.msra.gmra.mxu1 %vm66_vm2, %v39_v13  ;;  %v183_v34 = vsub.s32 %v180_v30, %v182_v31 }
  0x97   :  { %v48_v14 = vpop.permute.xlu0 %47 }
  0xe2   :  { %v120_v15 = vpop.f32.mrf.mxu0  ;;  %v161_v16 = vpop.f32.mrf.mxu1 }
  0xe3   :  { %v121_v17 = vadd.f32 %v120_v15, %v48_v14  ;;  %v162_v18 = vadd.f32 %v161_v16, %v48_v14 }
  0xe4   :  { %v122_v19 = vpop.f32.mrf.mxu0  ;;  %v163_v20 = vpop.f32.mrf.mxu1 }
  0xe5   :  { %219 = vtanh.f32 %v121_v17  ;;  %v123_v21 = vadd.f32 %v122_v19, %v48_v14  ;;  %v164_v22 = vadd.f32 %v163_v20, %v48_v14 }
  0xe6   :  { %221 = vtanh.f32 %v162_v18  ;;  %v124_v23 = vpop.f32.mrf.mxu0  ;;  %v165_v24 = vpop.f32.mrf.mxu1 }
  0xe7   :  { %223 = vtanh.f32 %v123_v21 }
  0xe8   :  { %225 = vtanh.f32 %v164_v22  ;;  %v125_v25 = vpop.f32.mrf.mxu0  ;;  %v166_v26 = vpop.f32.mrf.mxu1 }
  0xf2   :  { %v220_v32 = vpop.eup %219 }
  0xf3   :  { %v222_v33 = vpop.eup %221 }
  0xf4   :  { %v224_v35 = vpop.eup %223 }
  0xf5   :  { %v226_v36 = vpop.eup %225  ;;  %v176_v37 = vcombine.low %v220_v32, %v224_v35 }
  0xf6   :  { %v177_v38 = vcombine.low %v222_v33, %v226_v36 }
  0xf7   :  { %v184_v39 = vrot.slane %v176_v37, %v183_v34 }
  0xf8   :  { %v191_v40 = vrot.slane %v177_v38, %v183_v34 }
  0xfa   :  { %v192_v41 = vcombine.low %v184_v39, %v191_v40 }
  0xfc   :  { %194 = vst [vmem:[%s320_s3] sm:$0xff] %v192_v41 }
  0xfd   :  { %199 = vsyncpa [#allocation3], 1 }
  0xfe   :  { %200 = vsyncpa [#allocation5], 1 }

// kernel: _lambda_.14
= control target key start
LH: loop header
LB: loop body
LE: loop exit
PB: predicated region body
PF: predicated region fallthrough
CT: control target
= control target key end

     0   :  { %8 = vsyncpa [#allocation3], 0  ;;  %s233_s0 = inlined_call_operand.hbm [shape: bf16[4,18], index: 0, kind: input, shape index: {}]   ;;  %s234_s1 = inlined_call_operand.vmem [shape: bf16[18,256], index: 1, kind: input, shape index: {}]   ;;  %s235_s2 = inlined_call_operand.hbm [shape: f32[4,1], index: 2, kind: input, shape index: {}]   ;;  %s236_s3 = inlined_call_operand.vmem [shape: f32[4,256], index: 3, kind: output, shape index: {}]  }
   0x1   :  { %9 = vsyncpa [#allocation5], 0  ;;  %s192_s12 = smov [#allocation2]   ;;  %s193_s14 = smov [#allocation4]  }
   0x2   :  { %s16_s13 = sshll.u32 %s192_s12, 4  ;;  %s28_s15 = sshll.u32 %s193_s14, 4  ;;  %s17_s13 = int_to_ptr.vmem [resolvable:$true] %s16_s13  ;;  %s29_s15 = int_to_ptr.vmem [resolvable:$true] %s28_s15 }
   0x3   :  { %s156_s16 = scalar_lea.vmem %s17_s13, 32  ;;  %p161_p1 = scmp.lt.s32.totalorder %s17_s13, %s17_s13 }
   0x4   :  { %p157_p0 = scmp.ne.s32.totalorder %s17_s13, %s156_s16  ;;  %p162_p2 = scmp.lt.s32.totalorder %s156_s16, %s156_s16 }
   0x6   :  { %p163_p3 = por %p162_p2, %p161_p1 }
   0x8   :  { %p164_p4 = pnand %p163_p3, %p157_p0 }
   0xa   :  { %167 = shalt.err (!%p164_p4)
}
   0xb   :  { %19 = dma.hbm_to_vmem [thread:$0]  %s233_s0, 32, %s17_s13, [#allocation3]  }
   0xc   :  { %s176_s19 = scalar_lea.vmem %s29_s15, 64  ;;  %p181_p6 = scmp.lt.s32.totalorder %s29_s15, %s29_s15 }
   0xd   :  { %p177_p5 = scmp.ne.s32.totalorder %s29_s15, %s176_s19  ;;  %p182_p7 = scmp.lt.s32.totalorder %s176_s19, %s176_s19 }
   0xf   :  { %p183_p8 = por %p182_p7, %p181_p6 }
  0x11   :  { %p184_p9 = pnand %p183_p8, %p177_p5 }
  0x13   :  { %187 = shalt.err (!%p184_p9)
}
  0x14   :  { %31 = dma.hbm_to_vmem [thread:$0]  %s235_s2, 64, %s29_s15, [#allocation5]  }
  0x15   :  { %188 = dma.done.wait [#allocation3], 32  }
  0x16   :  { %189 = vsyncadd [#allocation3], 4294967264 }
  0x17   :  { %190 = dma.done.wait [#allocation5], 64  }
  0x18   :  { %191 = vsyncadd [#allocation5], 4294967232  ;;  %v194_v0 = vmov 0   ;;  %v42_v1 = vld [vmem:[%s234_s1 + $0x10] sm:$0x11]  ;;  %vm68_vm0 = vcmask 1040384  }
  0x19   :  { %107 = vmatprep.mubr.bf16.mxu0 %v194_v0  ;;  %138 = vset.pattern.permute.xlu0 %v194_v0  ;;  %v132_v2 = vcombine.high %v42_v1, %v42_v1  ;;  %v131_v3 = vcombine.low %v42_v1, %v42_v1  ;;  %v141_v4 = vld [vmem:[%s234_s1 + $0x4] ss:$8 sps:$4 sm:$0xff]   ;;  %v143_v7 = vld [vmem:[%s234_s1] ss:$8 sps:$4 sm:$0xff]   ;;  %vm64_vm1 = vcmask 146432  }
  0x1a   :  { %v43_v5 = vld [vmem:[#allocation4] sm:$0xf]  ;;  %v39_v8 = vld [vmem:[#allocation2] sm:$0x3] }
  0x1b   :  { %133 = vmatprep.subr.msk.bf16.mxu0 %vm68_vm0, %v132_v2  ;;  %v70_v6 = vsel %vm68_vm0, %v131_v3, 0  ;;  %46 = vperm.xlu0 %138, %v43_v5  }
  0x1c   :  { %88 = vmatpush1.bf16.msra.mxu0 %v70_v6 }
  0x1d   :  { %89 = vmatprep.subr.bf16.mxu0 %v141_v4 }
  0x20   :  { %90 = vmatpush1.bf16.msra.mxu0 %v143_v7 }
  0x23   :  { %134 = vmatmul.mubr.msk.bf16.vlgmr.msra.gmra.mxu0 %vm64_vm1, %v39_v8 }
  0x96   :  { %v47_v9 = vpop.permute.xlu0 %46 }
  0xe3   :  { %v109_v10 = vpop.f32.mrf.mxu0 }
  0xe4   :  { %v110_v11 = vadd.f32 %v109_v10, %v47_v9 }
  0xe5   :  { %v111_v12 = vpop.f32.mrf.mxu0 }
  0xe6   :  { %v112_v13 = vadd.f32 %v111_v12, %v47_v9  ;;  %144 = vtanh.f32 %v110_v11 }
  0xe7   :  { %v113_v14 = vpop.f32.mrf.mxu0 }
  0xe8   :  { %146 = vtanh.f32 %v112_v13 }
  0xe9   :  { %v114_v15 = vpop.f32.mrf.mxu0 }
  0xf3   :  { %v145_v16 = vpop.eup %144 }
  0xf5   :  { %v147_v17 = vpop.eup %146 }
  0xf6   :  { %v120_v18 = vcombine.low %v145_v16, %v147_v17 }
  0xf8   :  { %122 = vst [vmem:[%s236_s3] sm:$0xff] %v120_v18 }
  0xf9   :  { %127 = vsyncpa [#allocation3], 1 }
  0xfa   :  { %128 = vsyncpa [#allocation5], 1 }

// kernel: _lambda_.15
= control target key start
LH: loop header
LB: loop body
LE: loop exit
PB: predicated region body
PF: predicated region fallthrough
CT: control target
= control target key end

     0   :  { %8 = vsyncpa [#allocation3], 0  ;;  %s567_s0 = inlined_call_operand.vmem [shape: bf16[128,36], index: 0, kind: input, shape index: {}]   ;;  %s568_s1 = inlined_call_operand.hbm [shape: bf16[36,8], index: 1, kind: input, shape index: {}]   ;;  %s569_s2 = inlined_call_operand.hbm [shape: f32[1,8], index: 2, kind: input, shape index: {}]   ;;  %s570_s3 = inlined_call_operand.vmem [shape: f32[128,8], index: 3, kind: output, shape index: {}]  }
   0x1   :  { %9 = vsyncpa [#allocation5], 0  ;;  %s441_s12 = smov [#allocation2]  }
   0x2   :  { %s17_s13 = sshll.u32 %s441_s12, 4  ;;  %s18_s13 = int_to_ptr.vmem [resolvable:$true] %s17_s13 }
   0x3   :  { %s405_s14 = scalar_lea.vmem %s18_s13, 320  ;;  %p410_p1 = scmp.lt.s32.totalorder %s18_s13, %s18_s13 }
   0x4   :  { %p406_p0 = scmp.ne.s32.totalorder %s18_s13, %s405_s14  ;;  %p411_p2 = scmp.lt.s32.totalorder %s405_s14, %s405_s14 }
   0x6   :  { %p412_p3 = por %p411_p2, %p410_p1 }
   0x8   :  { %p413_p4 = pnand %p412_p3, %p406_p0 }
   0xa   :  { %416 = shalt.err (!%p413_p4)
}
   0xb   :  { %s442_s15 = smov 64   ;;  %s443_s16 = smov 4  }
   0xc   :  { %23 = dma.hbm_to_vmem [thread:$0]  %s568_s1, 320, %s18_s13, [#allocation3], %s442_s15, %s442_s15, %s443_s16  }
   0xd   :  { %s444_s19 = smov [#allocation4]  }
   0xe   :  { %s30_s20 = sshll.u32 %s444_s19, 4  ;;  %s31_s20 = int_to_ptr.vmem [resolvable:$true] %s30_s20 }
   0xf   :  { %s425_s21 = scalar_lea.vmem %s31_s20, 16  ;;  %s429_s22 = scalar_lea.vmem %s31_s20, 32 }
  0x10   :  { %p426_p5 = scmp.ne.s32.totalorder %s31_s20, %s425_s21  ;;  %p430_p6 = scmp.lt.s32.totalorder %s31_s20, %s31_s20 }
  0x11   :  { %p431_p7 = scmp.lt.s32.totalorder %s429_s22, %s425_s21 }
  0x13   :  { %p432_p8 = por %p431_p7, %p430_p6 }
  0x15   :  { %p433_p9 = pnand %p432_p8, %p426_p5 }
  0x17   :  { %436 = shalt.err (!%p433_p9)
}
  0x18   :  { %33 = dma.hbm_to_vmem [thread:$0]  %s569_s2, 16, %s31_s20, [#allocation5]  }
  0x19   :  { %437 = dma.done.wait [#allocation3], 320  }
  0x1a   :  { %438 = vsyncadd [#allocation3], 4294966976 }
  0x1b   :  { %439 = dma.done.wait [#allocation5], 16  }
  0x1c   :  { %440 = vsyncadd [#allocation5], 4294967280  ;;  %vm149_vm0 = vcmask 1041408   ;;  %vm124_vm1 = vcmask 293888   ;;  %v355_v1 = vld [vmem:[#allocation2 + $0x8] sm:$0xff]   ;;  %v356_v3 = vld [vmem:[#allocation2] sm:$0xff]  }
  0x1d   :  { %v354_v0 = vld [vmem:[#allocation2 + $0x10] ss:$0 sps:$4 sm:$0x33]   ;;  %v357_v4 = vld [vmem:[%s567_s0] sm:$0xff]   ;;  %v359_v6 = vld [vmem:[%s567_s0 + $0x8] sm:$0xff]   ;;  %vm266_vm2 = vcmask 64512  }
  0x1e   :  { %348 = vmatprep.subr.msk.bf16.mxu0 %vm149_vm0, %v354_v0  ;;  %349 = vmatprep.subr.msk.bf16.mxu1 %vm149_vm0, %v354_v0  ;;  %v151_v2 = vsel %vm149_vm0, %v354_v0, 0  ;;  %v358_v5 = vld [vmem:[%s567_s0 + $0x20] sm:$0xff]   ;;  %v360_v7 = vld [vmem:[%s567_s0 + $0x28] sm:$0xff]   ;;  %v361_v8 = vld [vmem:[%s567_s0 + $0x10] sm:$0xff]  }
  0x1f   :  { %321 = vmatpush3.bf16.msra.mxu0 %v151_v2  ;;  %345 = vmatpush3.bf16.msra.mxu1 %v151_v2  ;;  %v362_v9 = vld [vmem:[%s567_s0 + $0x30] sm:$0xff]   ;;  %v363_v10 = vld [vmem:[%s567_s0 + $0x18] sm:$0xff]  }
  0x20   :  { %322 = vmatprep.subr.bf16.mxu0 %v355_v1  ;;  %343 = vmatprep.subr.bf16.mxu1 %v355_v1  ;;  %v364_v11 = vld [vmem:[%s567_s0 + $0x38] sm:$0xff]   ;;  %v289_v12 = vld [vmem:[#allocation4] ss:$0 sm:$0xff] }
  0x21   :  { %326 = vmatprep.mubr.msk.bf16.mxu0 %vm124_vm1, %v357_v4  ;;  %334 = vmatprep.mubr.msk.bf16.mxu1 %vm124_vm1, %v358_v5 }
  0x23   :  { %323 = vmatpush3.bf16.msra.mxu0 %v355_v1  ;;  %346 = vmatpush3.bf16.msra.mxu1 %v355_v1 }
  0x24   :  { %324 = vmatprep.subr.bf16.mxu0 %v356_v3  ;;  %344 = vmatprep.subr.bf16.mxu1 %v356_v3 }
  0x27   :  { %325 = vmatpush3.bf16.msra.mxu0 %v356_v3  ;;  %347 = vmatpush3.bf16.msra.mxu1 %v356_v3 }
  0x2a   :  { %327 = vmatmul.mubr.msk.bf16.vlgmr.msra.gmra.mxu0 %vm124_vm1, %v359_v6  ;;  %335 = vmatmul.mubr.msk.bf16.vlgmr.msra.gmra.mxu1 %vm124_vm1, %v360_v7 }
  0x2b   :  { %330 = vmatprep.mubr.msk.bf16.mxu0 %vm124_vm1, %v361_v8  ;;  %338 = vmatprep.mubr.msk.bf16.mxu1 %vm124_vm1, %v362_v9 }
  0x32   :  { %331 = vmatmul.mubr.msk.bf16.gmra.mxu0 %vm124_vm1, %v363_v10  ;;  %339 = vmatmul.mubr.msk.bf16.gmra.mxu1 %vm124_vm1, %v364_v11 }
  0xea   :  { %v328_v13 = vpop.f32.mrf.mxu0  ;;  %v336_v14 = vpop.f32.mrf.mxu1 }
  0xeb   :  { %v196_v15 = vadd.f32 %v328_v13, %v289_v12  ;;  %v228_v16 = vadd.f32 %v336_v14, %v289_v12 }
  0xec   :  { %v187_v17 = vpop.f32.mrf.mxu0  ;;  %v219_v18 = vpop.f32.mrf.mxu1 }
  0xed   :  { %365 = vtanh.f32 %v196_v15  ;;  %v188_v19 = vadd.f32 %v289_v12, %v187_v17  ;;  %v220_v20 = vadd.f32 %v289_v12, %v219_v18 }
  0xee   :  { %367 = vtanh.f32 %v228_v16  ;;  %v329_v21 = vpop.f32.mrf.mxu0  ;;  %v337_v22 = vpop.f32.mrf.mxu1 }
  0xef   :  { %369 = vtanh.f32 %v188_v19  ;;  %v199_v23 = vadd.f32 %v329_v21, %v289_v12  ;;  %v231_v24 = vadd.f32 %v337_v22, %v289_v12 }
  0xf0   :  { %371 = vtanh.f32 %v220_v20  ;;  %v190_v25 = vpop.f32.mrf.mxu0  ;;  %v222_v26 = vpop.f32.mrf.mxu1 }
  0xf1   :  { %373 = vtanh.f32 %v199_v23  ;;  %v191_v27 = vadd.f32 %v289_v12, %v190_v25  ;;  %v223_v28 = vadd.f32 %v289_v12, %v222_v26 }
  0xf2   :  { %375 = vtanh.f32 %v231_v24  ;;  %v332_v29 = vpop.f32.mrf.mxu0  ;;  %v340_v30 = vpop.f32.mrf.mxu1 }
  0xf3   :  { %377 = vtanh.f32 %v191_v27  ;;  %v212_v31 = vadd.f32 %v332_v29, %v289_v12  ;;  %v244_v32 = vadd.f32 %v340_v30, %v289_v12 }
  0xf4   :  { %379 = vtanh.f32 %v223_v28  ;;  %v203_v33 = vpop.f32.mrf.mxu0  ;;  %v235_v34 = vpop.f32.mrf.mxu1 }
  0xf5   :  { %381 = vtanh.f32 %v212_v31  ;;  %v204_v35 = vadd.f32 %v289_v12, %v203_v33  ;;  %v236_v36 = vadd.f32 %v289_v12, %v235_v34 }
  0xf6   :  { %383 = vtanh.f32 %v244_v32  ;;  %v333_v37 = vpop.f32.mrf.mxu0  ;;  %v341_v38 = vpop.f32.mrf.mxu1 }
  0xf7   :  { %385 = vtanh.f32 %v204_v35  ;;  %v215_v39 = vadd.f32 %v333_v37, %v289_v12  ;;  %v247_v40 = vadd.f32 %v341_v38, %v289_v12 }
  0xf8   :  { %387 = vtanh.f32 %v236_v36  ;;  %v206_v41 = vpop.f32.mrf.mxu0  ;;  %v238_v42 = vpop.f32.mrf.mxu1 }
  0xf9   :  { %389 = vtanh.f32 %v215_v39  ;;  %v207_v43 = vadd.f32 %v289_v12, %v206_v41  ;;  %v239_v44 = vadd.f32 %v289_v12, %v238_v42 }
  0xfa   :  { %v366_v45 = vpop.eup %365  ;;  %391 = vtanh.f32 %v247_v40 }
  0xfb   :  { %v368_v46 = vpop.eup %367  ;;  %269 = vst.msk [vmem:[%s570_s3 + $0x10] sm:$0xff] %vm266_vm2, %v366_v45  ;;  %393 = vtanh.f32 %v207_v43 }
  0xfc   :  { %v370_v47 = vpop.eup %369  ;;  %277 = vst.msk [vmem:[%s570_s3 + $0x50] sm:$0xff] %vm266_vm2, %v368_v46  ;;  %395 = vtanh.f32 %v239_v44 }
  0xfd   :  { %v372_v48 = vpop.eup %371  ;;  %267 = vst.msk [vmem:[%s570_s3] sm:$0xff] %vm266_vm2, %v370_v47 }
  0xfe   :  { %v374_v49 = vpop.eup %373  ;;  %275 = vst.msk [vmem:[%s570_s3 + $0x40] sm:$0xff] %vm266_vm2, %v372_v48 }
  0xff   :  { %v376_v50 = vpop.eup %375  ;;  %270 = vst.msk [vmem:[%s570_s3 + $0x18] sm:$0xff] %vm266_vm2, %v374_v49 }
 0x100   :  { %v378_v51 = vpop.eup %377  ;;  %278 = vst.msk [vmem:[%s570_s3 + $0x58] sm:$0xff] %vm266_vm2, %v376_v50 }
 0x101   :  { %v380_v52 = vpop.eup %379  ;;  %268 = vst.msk [vmem:[%s570_s3 + $0x8] sm:$0xff] %vm266_vm2, %v378_v51 }
 0x102   :  { %v382_v53 = vpop.eup %381  ;;  %276 = vst.msk [vmem:[%s570_s3 + $0x48] sm:$0xff] %vm266_vm2, %v380_v52 }
 0x103   :  { %v384_v54 = vpop.eup %383  ;;  %273 = vst.msk [vmem:[%s570_s3 + $0x30] sm:$0xff] %vm266_vm2, %v382_v53 }
 0x104   :  { %v386_v55 = vpop.eup %385  ;;  %281 = vst.msk [vmem:[%s570_s3 + $0x70] sm:$0xff] %vm266_vm2, %v384_v54 }
 0x105   :  { %v388_v56 = vpop.eup %387  ;;  %271 = vst.msk [vmem:[%s570_s3 + $0x20] sm:$0xff] %vm266_vm2, %v386_v55 }
 0x106   :  { %v390_v57 = vpop.eup %389  ;;  %279 = vst.msk [vmem:[%s570_s3 + $0x60] sm:$0xff] %vm266_vm2, %v388_v56 }
 0x107   :  { %v392_v58 = vpop.eup %391  ;;  %274 = vst.msk [vmem:[%s570_s3 + $0x38] sm:$0xff] %vm266_vm2, %v390_v57 }
 0x108   :  { %v394_v59 = vpop.eup %393  ;;  %282 = vst.msk [vmem:[%s570_s3 + $0x78] sm:$0xff] %vm266_vm2, %v392_v58 }
 0x109   :  { %v396_v60 = vpop.eup %395  ;;  %272 = vst.msk [vmem:[%s570_s3 + $0x28] sm:$0xff] %vm266_vm2, %v394_v59 }
 0x10a   :  { %280 = vst.msk [vmem:[%s570_s3 + $0x68] sm:$0xff] %vm266_vm2, %v396_v60 }
 0x10b   :  { %287 = vsyncpa [#allocation3], 1 }
 0x10c   :  { %288 = vsyncpa [#allocation5], 1 }

// kernel: _lambda_.12
= control target key start
LH: loop header
LB: loop body
LE: loop exit
PB: predicated region body
PF: predicated region fallthrough
CT: control target
= control target key end

     0   :  { %8 = vsyncpa [#allocation3], 0  ;;  %s582_s0 = inlined_call_operand.vmem [shape: bf16[128,54], index: 0, kind: input, shape index: {}]   ;;  %s583_s1 = inlined_call_operand.hbm [shape: bf16[54,8], index: 1, kind: input, shape index: {}]   ;;  %s584_s2 = inlined_call_operand.hbm [shape: f32[1,8], index: 2, kind: input, shape index: {}]   ;;  %s585_s3 = inlined_call_operand.vmem [shape: f32[128,8], index: 3, kind: output, shape index: {}]  }
   0x1   :  { %9 = vsyncpa [#allocation5], 0  ;;  %s456_s12 = smov [#allocation2]  }
   0x2   :  { %s17_s13 = sshll.u32 %s456_s12, 4  ;;  %s18_s13 = int_to_ptr.vmem [resolvable:$true] %s17_s13 }
   0x3   :  { %s420_s14 = scalar_lea.vmem %s18_s13, 448  ;;  %p425_p1 = scmp.lt.s32.totalorder %s18_s13, %s18_s13 }
   0x4   :  { %p421_p0 = scmp.ne.s32.totalorder %s18_s13, %s420_s14  ;;  %p426_p2 = scmp.lt.s32.totalorder %s420_s14, %s420_s14 }
   0x6   :  { %p427_p3 = por %p426_p2, %p425_p1 }
   0x8   :  { %p428_p4 = pnand %p427_p3, %p421_p0 }
   0xa   :  { %431 = shalt.err (!%p428_p4)
}
   0xb   :  { %s457_s15 = smov 64   ;;  %s458_s16 = smov 4  }
   0xc   :  { %23 = dma.hbm_to_vmem [thread:$0]  %s583_s1, 448, %s18_s13, [#allocation3], %s457_s15, %s457_s15, %s458_s16  }
   0xd   :  { %s459_s19 = smov [#allocation4]  }
   0xe   :  { %s30_s20 = sshll.u32 %s459_s19, 4  ;;  %s31_s20 = int_to_ptr.vmem [resolvable:$true] %s30_s20 }
   0xf   :  { %s440_s21 = scalar_lea.vmem %s31_s20, 16  ;;  %s444_s22 = scalar_lea.vmem %s31_s20, 32 }
  0x10   :  { %p441_p5 = scmp.ne.s32.totalorder %s31_s20, %s440_s21  ;;  %p445_p6 = scmp.lt.s32.totalorder %s31_s20, %s31_s20 }
  0x11   :  { %p446_p7 = scmp.lt.s32.totalorder %s444_s22, %s440_s21 }
  0x13   :  { %p447_p8 = por %p446_p7, %p445_p6 }
  0x15   :  { %p448_p9 = pnand %p447_p8, %p441_p5 }
  0x17   :  { %451 = shalt.err (!%p448_p9)
}
  0x18   :  { %33 = dma.hbm_to_vmem [thread:$0]  %s584_s2, 16, %s31_s20, [#allocation5]  }
  0x19   :  { %452 = dma.done.wait [#allocation3], 448  }
  0x1a   :  { %453 = vsyncadd [#allocation3], 4294966848 }
  0x1b   :  { %454 = dma.done.wait [#allocation5], 16  }
  0x1c   :  { %455 = vsyncadd [#allocation5], 4294967280  ;;  %vm157_vm0 = vcmask 1042432   ;;  %v368_v0 = vld [vmem:[#allocation2 + $0x18] ss:$0 sps:$4 sm:$0x77]  }
  0x1d   :  { %v369_v1 = vld [vmem:[#allocation2 + $0x10] sm:$0xff]   ;;  %362 = vmatprep.subr.msk.bf16.mxu0 %vm157_vm0, %v368_v0  ;;  %363 = vmatprep.subr.msk.bf16.mxu1 %vm157_vm0, %v368_v0  ;;  %v159_v2 = vsel %vm157_vm0, %v368_v0, 0  ;;  %v370_v3 = vld [vmem:[#allocation2 + $0x8] sm:$0xff]   ;;  %vm132_vm1 = vcmask 441344   ;;  %v372_v4 = vld [vmem:[%s582_s0] sm:$0xff]   ;;  %vm274_vm2 = vcmask 64512  }
  0x1e   :  { %331 = vmatpush3.bf16.msra.mxu0 %v159_v2  ;;  %358 = vmatpush3.bf16.msra.mxu1 %v159_v2  ;;  %v373_v5 = vld [vmem:[%s582_s0 + $0x20] sm:$0xff]   ;;  %v374_v7 = vld [vmem:[%s582_s0 + $0x8] sm:$0xff]   ;;  %v376_v9 = vld [vmem:[%s582_s0 + $0x10] sm:$0xff]  }
  0x1f   :  { %332 = vmatprep.subr.bf16.mxu0 %v369_v1  ;;  %355 = vmatprep.subr.bf16.mxu1 %v369_v1  ;;  %v371_v6 = vld [vmem:[#allocation2] sm:$0xff]   ;;  %v375_v8 = vld [vmem:[%s582_s0 + $0x28] sm:$0xff]   ;;  %v377_v10 = vld [vmem:[%s582_s0 + $0x30] sm:$0xff]  }
  0x20   :  { %338 = vmatprep.mubr.msk.bf16.mxu0 %vm132_vm1, %v372_v4  ;;  %346 = vmatprep.mubr.msk.bf16.mxu1 %vm132_vm1, %v373_v5  ;;  %v378_v11 = vld [vmem:[%s582_s0 + $0x18] sm:$0xff]  }
  0x21   :  { %v379_v12 = vld [vmem:[%s582_s0 + $0x38] sm:$0xff]  }
  0x22   :  { %333 = vmatpush3.bf16.msra.mxu0 %v369_v1  ;;  %359 = vmatpush3.bf16.msra.mxu1 %v369_v1  ;;  %v297_v13 = vld [vmem:[#allocation4] ss:$0 sm:$0xff] }
  0x23   :  { %334 = vmatprep.subr.bf16.mxu0 %v370_v3  ;;  %356 = vmatprep.subr.bf16.mxu1 %v370_v3 }
  0x26   :  { %335 = vmatpush3.bf16.msra.mxu0 %v370_v3  ;;  %360 = vmatpush3.bf16.msra.mxu1 %v370_v3 }
  0x27   :  { %336 = vmatprep.subr.bf16.mxu0 %v371_v6  ;;  %357 = vmatprep.subr.bf16.mxu1 %v371_v6 }
  0x2a   :  { %337 = vmatpush3.bf16.msra.mxu0 %v371_v6  ;;  %361 = vmatpush3.bf16.msra.mxu1 %v371_v6 }
  0x2d   :  { %339 = vmatmul.mubr.msk.bf16.vlgmr.msra.gmra.mxu0 %vm132_vm1, %v374_v7  ;;  %347 = vmatmul.mubr.msk.bf16.vlgmr.msra.gmra.mxu1 %vm132_vm1, %v375_v8 }
  0x2e   :  { %342 = vmatprep.mubr.msk.bf16.mxu0 %vm132_vm1, %v376_v9  ;;  %350 = vmatprep.mubr.msk.bf16.mxu1 %vm132_vm1, %v377_v10 }
  0x35   :  { %343 = vmatmul.mubr.msk.bf16.gmra.mxu0 %vm132_vm1, %v378_v11  ;;  %351 = vmatmul.mubr.msk.bf16.gmra.mxu1 %vm132_vm1, %v379_v12 }
  0xed   :  { %v340_v14 = vpop.f32.mrf.mxu0  ;;  %v348_v15 = vpop.f32.mrf.mxu1 }
  0xee   :  { %v204_v16 = vadd.f32 %v340_v14, %v297_v13  ;;  %v236_v17 = vadd.f32 %v348_v15, %v297_v13 }
  0xef   :  { %v195_v18 = vpop.f32.mrf.mxu0  ;;  %v227_v19 = vpop.f32.mrf.mxu1 }
  0xf0   :  { %380 = vtanh.f32 %v204_v16  ;;  %v196_v20 = vadd.f32 %v297_v13, %v195_v18  ;;  %v228_v21 = vadd.f32 %v297_v13, %v227_v19 }
  0xf1   :  { %382 = vtanh.f32 %v236_v17  ;;  %v341_v22 = vpop.f32.mrf.mxu0  ;;  %v349_v23 = vpop.f32.mrf.mxu1 }
  0xf2   :  { %384 = vtanh.f32 %v196_v20  ;;  %v207_v24 = vadd.f32 %v341_v22, %v297_v13  ;;  %v239_v25 = vadd.f32 %v349_v23, %v297_v13 }
  0xf3   :  { %386 = vtanh.f32 %v228_v21  ;;  %v198_v26 = vpop.f32.mrf.mxu0  ;;  %v230_v27 = vpop.f32.mrf.mxu1 }
  0xf4   :  { %388 = vtanh.f32 %v207_v24  ;;  %v199_v28 = vadd.f32 %v297_v13, %v198_v26  ;;  %v231_v29 = vadd.f32 %v297_v13, %v230_v27 }
  0xf5   :  { %390 = vtanh.f32 %v239_v25  ;;  %v344_v30 = vpop.f32.mrf.mxu0  ;;  %v352_v31 = vpop.f32.mrf.mxu1 }
  0xf6   :  { %392 = vtanh.f32 %v199_v28  ;;  %v220_v32 = vadd.f32 %v344_v30, %v297_v13  ;;  %v252_v33 = vadd.f32 %v352_v31, %v297_v13 }
  0xf7   :  { %394 = vtanh.f32 %v231_v29  ;;  %v211_v34 = vpop.f32.mrf.mxu0  ;;  %v243_v35 = vpop.f32.mrf.mxu1 }
  0xf8   :  { %396 = vtanh.f32 %v220_v32  ;;  %v212_v36 = vadd.f32 %v297_v13, %v211_v34  ;;  %v244_v37 = vadd.f32 %v297_v13, %v243_v35 }
  0xf9   :  { %398 = vtanh.f32 %v252_v33  ;;  %v345_v38 = vpop.f32.mrf.mxu0  ;;  %v353_v39 = vpop.f32.mrf.mxu1 }
  0xfa   :  { %400 = vtanh.f32 %v212_v36  ;;  %v223_v40 = vadd.f32 %v345_v38, %v297_v13  ;;  %v255_v41 = vadd.f32 %v353_v39, %v297_v13 }
  0xfb   :  { %402 = vtanh.f32 %v244_v37  ;;  %v214_v42 = vpop.f32.mrf.mxu0  ;;  %v246_v43 = vpop.f32.mrf.mxu1 }
  0xfc   :  { %404 = vtanh.f32 %v223_v40  ;;  %v215_v44 = vadd.f32 %v297_v13, %v214_v42  ;;  %v247_v45 = vadd.f32 %v297_v13, %v246_v43 }
  0xfd   :  { %v381_v46 = vpop.eup %380  ;;  %406 = vtanh.f32 %v255_v41 }
  0xfe   :  { %v383_v47 = vpop.eup %382  ;;  %277 = vst.msk [vmem:[%s585_s3 + $0x10] sm:$0xff] %vm274_vm2, %v381_v46  ;;  %408 = vtanh.f32 %v215_v44 }
  0xff   :  { %v385_v48 = vpop.eup %384  ;;  %285 = vst.msk [vmem:[%s585_s3 + $0x50] sm:$0xff] %vm274_vm2, %v383_v47  ;;  %410 = vtanh.f32 %v247_v45 }
 0x100   :  { %v387_v49 = vpop.eup %386  ;;  %275 = vst.msk [vmem:[%s585_s3] sm:$0xff] %vm274_vm2, %v385_v48 }
 0x101   :  { %v389_v50 = vpop.eup %388  ;;  %283 = vst.msk [vmem:[%s585_s3 + $0x40] sm:$0xff] %vm274_vm2, %v387_v49 }
 0x102   :  { %v391_v51 = vpop.eup %390  ;;  %278 = vst.msk [vmem:[%s585_s3 + $0x18] sm:$0xff] %vm274_vm2, %v389_v50 }
 0x103   :  { %v393_v52 = vpop.eup %392  ;;  %286 = vst.msk [vmem:[%s585_s3 + $0x58] sm:$0xff] %vm274_vm2, %v391_v51 }
 0x104   :  { %v395_v53 = vpop.eup %394  ;;  %276 = vst.msk [vmem:[%s585_s3 + $0x8] sm:$0xff] %vm274_vm2, %v393_v52 }
 0x105   :  { %v397_v54 = vpop.eup %396  ;;  %284 = vst.msk [vmem:[%s585_s3 + $0x48] sm:$0xff] %vm274_vm2, %v395_v53 }
 0x106   :  { %v399_v55 = vpop.eup %398  ;;  %281 = vst.msk [vmem:[%s585_s3 + $0x30] sm:$0xff] %vm274_vm2, %v397_v54 }
 0x107   :  { %v401_v56 = vpop.eup %400  ;;  %289 = vst.msk [vmem:[%s585_s3 + $0x70] sm:$0xff] %vm274_vm2, %v399_v55 }
 0x108   :  { %v403_v57 = vpop.eup %402  ;;  %279 = vst.msk [vmem:[%s585_s3 + $0x20] sm:$0xff] %vm274_vm2, %v401_v56 }
 0x109   :  { %v405_v58 = vpop.eup %404  ;;  %287 = vst.msk [vmem:[%s585_s3 + $0x60] sm:$0xff] %vm274_vm2, %v403_v57 }
 0x10a   :  { %v407_v59 = vpop.eup %406  ;;  %282 = vst.msk [vmem:[%s585_s3 + $0x38] sm:$0xff] %vm274_vm2, %v405_v58 }
 0x10b   :  { %v409_v60 = vpop.eup %408  ;;  %290 = vst.msk [vmem:[%s585_s3 + $0x78] sm:$0xff] %vm274_vm2, %v407_v59 }
 0x10c   :  { %v411_v61 = vpop.eup %410  ;;  %280 = vst.msk [vmem:[%s585_s3 + $0x28] sm:$0xff] %vm274_vm2, %v409_v60 }
 0x10d   :  { %288 = vst.msk [vmem:[%s585_s3 + $0x68] sm:$0xff] %vm274_vm2, %v411_v61 }
 0x10e   :  { %295 = vsyncpa [#allocation3], 1 }
 0x10f   :  { %296 = vsyncpa [#allocation5], 1 }

// kernel: _lambda_.19
= control target key start
LH: loop header
LB: loop body
LE: loop exit
PB: predicated region body
PF: predicated region fallthrough
CT: control target
= control target key end

     0   :  { %v152_v39 = vlaneseq  ;;  %v1555_v40 = vmov 1966171168   ;;  %s1995_s0 = inlined_call_operand.vmem [shape: bf16[2,512], index: 0, kind: input, shape index: {}]   ;;  %s1996_s1 = inlined_call_operand.vmem [shape: bf16[512,512], index: 1, kind: input, shape index: {}]   ;;  %s1997_s2 = inlined_call_operand.vmem [shape: f32[1,512], index: 2, kind: input, shape index: {}]   ;;  %s1998_s3 = inlined_call_operand.vmem [shape: f32[2,512], index: 3, kind: output, shape index: {}]  }
   0x1   :  { %v1355_v0 = vld [vmem:[%s1996_s1 + $0xe4] ss:$16 sps:$4 sm:$0xff]   ;;  %v1359_v2 = vld [vmem:[%s1996_s1 + $0xe0] ss:$16 sps:$4 sm:$0xff]   ;;  %v185_v41 = vunpack.c.l.s4 %v1555_v40  ;;  %v1479_v40 = vld [vmem:[%s1996_s1 + $0x68] ss:$16 sps:$4 sm:$0xff]  }
   0x2   :  { %v1357_v1 = vld [vmem:[%s1996_s1 + $0x2e4] ss:$16 sps:$4 sm:$0xff]   ;;  %892 = vmatprep.subr.bf16.mxu0 %v1355_v0  ;;  %v1360_v3 = vld [vmem:[%s1996_s1 + $0x2e0] ss:$16 sps:$4 sm:$0xff]   ;;  %v1709_v47 = vshrl.u32 %v152_v39, 7 }
   0x3   :  { %935 = vmatprep.subr.bf16.mxu1 %v1357_v1  ;;  %v1361_v4 = vld [vmem:[%s1996_s1 + $0xc4] ss:$16 sps:$4 sm:$0xff]   ;;  %893 = vmatpush1.bf16.msra.mxu0 %v1359_v2  ;;  %v1365_v6 = vld [vmem:[%s1996_s1 + $0xc0] ss:$16 sps:$4 sm:$0xff]   ;;  %v186_v48 = vunpack.c.0.s8 %v185_v41  ;;  %v1484_v39 = vld [vmem:[%s1996_s1 + $0x26c] ss:$16 sps:$4 sm:$0xff]  }
   0x4   :  { %936 = vmatpush1.bf16.msra.mxu1 %v1360_v3  ;;  %v1363_v5 = vld [vmem:[%s1996_s1 + $0x2c4] ss:$16 sps:$4 sm:$0xff]   ;;  %894 = vmatprep.subr.bf16.mxu0 %v1361_v4  ;;  %v1366_v7 = vld [vmem:[%s1996_s1 + $0x2c0] ss:$16 sps:$4 sm:$0xff]   ;;  %v1482_v41 = vld [vmem:[%s1996_s1 + $0x268] ss:$16 sps:$4 sm:$0xff]  }
   0x5   :  { %937 = vmatprep.subr.bf16.mxu1 %v1363_v5  ;;  %v1367_v8 = vld [vmem:[%s1996_s1 + $0xa4] ss:$16 sps:$4 sm:$0xff]   ;;  %v1371_v10 = vld [vmem:[%s1996_s1 + $0xa0] ss:$16 sps:$4 sm:$0xff]   ;;  %v189_v55 = vsub.s32 %v186_v48, %v1709_v47  ;;  %v1496_v48 = vld [vmem:[%s1996_s1 + $0x22c] ss:$16 sps:$4 sm:$0xff]  }
   0x6   :  { %v1369_v9 = vld [vmem:[%s1996_s1 + $0x2a4] ss:$16 sps:$4 sm:$0xff]   ;;  %v1372_v11 = vld [vmem:[%s1996_s1 + $0x2a0] ss:$16 sps:$4 sm:$0xff]  }
   0x7   :  { %895 = vmatpush1.bf16.msra.mxu0 %v1365_v6  ;;  %v1373_v12 = vld [vmem:[%s1996_s1 + $0x84] ss:$16 sps:$4 sm:$0xff]   ;;  %v1377_v14 = vld [vmem:[%s1996_s1 + $0x80] ss:$16 sps:$4 sm:$0xff]  }
   0x8   :  { %938 = vmatpush1.bf16.msra.mxu1 %v1366_v7  ;;  %896 = vmatprep.subr.bf16.mxu0 %v1367_v8  ;;  %v1375_v13 = vld [vmem:[%s1996_s1 + $0x284] ss:$16 sps:$4 sm:$0xff]   ;;  %v1378_v15 = vld [vmem:[%s1996_s1 + $0x280] ss:$16 sps:$4 sm:$0xff]  }
   0x9   :  { %939 = vmatprep.subr.bf16.mxu1 %v1369_v9  ;;  %v1379_v16 = vld [vmem:[%s1996_s1 + $0x64] ss:$16 sps:$4 sm:$0xff]   ;;  %v1383_v18 = vld [vmem:[%s1996_s1 + $0x60] ss:$16 sps:$4 sm:$0xff]  }
   0xa   :  { %v1381_v17 = vld [vmem:[%s1996_s1 + $0x264] ss:$16 sps:$4 sm:$0xff]   ;;  %v1384_v19 = vld [vmem:[%s1996_s1 + $0x260] ss:$16 sps:$4 sm:$0xff]  }
   0xb   :  { %897 = vmatpush1.bf16.msra.mxu0 %v1371_v10  ;;  %v1385_v20 = vld [vmem:[%s1996_s1 + $0x44] ss:$16 sps:$4 sm:$0xff]   ;;  %v1389_v22 = vld [vmem:[%s1996_s1 + $0x40] ss:$16 sps:$4 sm:$0xff]  }
   0xc   :  { %940 = vmatpush1.bf16.msra.mxu1 %v1372_v11  ;;  %898 = vmatprep.subr.bf16.mxu0 %v1373_v12  ;;  %v1387_v21 = vld [vmem:[%s1996_s1 + $0x244] ss:$16 sps:$4 sm:$0xff]   ;;  %v1390_v23 = vld [vmem:[%s1996_s1 + $0x240] ss:$16 sps:$4 sm:$0xff]  }
   0xd   :  { %941 = vmatprep.subr.bf16.mxu1 %v1375_v13  ;;  %v1391_v24 = vld [vmem:[%s1996_s1 + $0x24] ss:$16 sps:$4 sm:$0xff]   ;;  %v1395_v26 = vld [vmem:[%s1996_s1 + $0x20] ss:$16 sps:$4 sm:$0xff]  }
   0xe   :  { %v1393_v25 = vld [vmem:[%s1996_s1 + $0x224] ss:$16 sps:$4 sm:$0xff]   ;;  %v1396_v27 = vld [vmem:[%s1996_s1 + $0x220] ss:$16 sps:$4 sm:$0xff]  }
   0xf   :  { %899 = vmatpush1.bf16.msra.mxu0 %v1377_v14  ;;  %v1397_v28 = vld [vmem:[%s1996_s1 + $0x4] ss:$16 sps:$4 sm:$0xff]   ;;  %v1401_v30 = vld [vmem:[%s1996_s1] ss:$16 sps:$4 sm:$0xff]  }
  0x10   :  { %942 = vmatpush1.bf16.msra.mxu1 %v1378_v15  ;;  %900 = vmatprep.subr.bf16.mxu0 %v1379_v16  ;;  %v1399_v29 = vld [vmem:[%s1996_s1 + $0x204] ss:$16 sps:$4 sm:$0xff]   ;;  %v1402_v31 = vld [vmem:[%s1996_s1 + $0x200] ss:$16 sps:$4 sm:$0xff]  }
  0x11   :  { %943 = vmatprep.subr.bf16.mxu1 %v1381_v17  ;;  %v1403_v32 = vld [vmem:[%s1996_s1 + $0x1e4] ss:$16 sps:$4 sm:$0xff]   ;;  %v1407_v34 = vld [vmem:[%s1996_s1 + $0x1e0] ss:$16 sps:$4 sm:$0xff]  }
  0x12   :  { %v1405_v33 = vld [vmem:[%s1996_s1 + $0x3e4] ss:$16 sps:$4 sm:$0xff]   ;;  %v1408_v35 = vld [vmem:[%s1996_s1 + $0x3e0] ss:$16 sps:$4 sm:$0xff]  }
  0x13   :  { %901 = vmatpush1.bf16.msra.mxu0 %v1383_v18  ;;  %v1409_v36 = vld [vmem:[%s1996_s1 + $0x1c4] ss:$16 sps:$4 sm:$0xff]   ;;  %v1413_v38 = vld [vmem:[%s1996_s1 + $0x1c0] ss:$16 sps:$4 sm:$0xff]  }
  0x14   :  { %944 = vmatpush1.bf16.msra.mxu1 %v1384_v19  ;;  %902 = vmatprep.subr.bf16.mxu0 %v1385_v20  ;;  %v1411_v37 = vld [vmem:[%s1996_s1 + $0x3c4] ss:$16 sps:$4 sm:$0xff]   ;;  %v1414_v42 = vld [vmem:[%s1996_s1 + $0x3c0] ss:$16 sps:$4 sm:$0xff]   ;;  %v1457_v20 = vld [vmem:[%s1996_s1 + $0xec] ss:$16 sps:$4 sm:$0xff]  }
  0x15   :  { %945 = vmatprep.subr.bf16.mxu1 %v1387_v21  ;;  %v1415_v43 = vld [vmem:[%s1996_s1 + $0x1a4] ss:$16 sps:$4 sm:$0xff]   ;;  %v1419_v45 = vld [vmem:[%s1996_s1 + $0x1a0] ss:$16 sps:$4 sm:$0xff]   ;;  %v1460_v21 = vld [vmem:[%s1996_s1 + $0x2ec] ss:$16 sps:$4 sm:$0xff]  }
  0x16   :  { %v1417_v44 = vld [vmem:[%s1996_s1 + $0x3a4] ss:$16 sps:$4 sm:$0xff]   ;;  %v1420_v46 = vld [vmem:[%s1996_s1 + $0x3a0] ss:$16 sps:$4 sm:$0xff]  }
  0x17   :  { %903 = vmatpush1.bf16.msra.mxu0 %v1389_v22  ;;  %v1421_v49 = vld [vmem:[%s1996_s1 + $0x184] ss:$16 sps:$4 sm:$0xff]   ;;  %v1425_v51 = vld [vmem:[%s1996_s1 + $0x180] ss:$16 sps:$4 sm:$0xff]  }
  0x18   :  { %946 = vmatpush1.bf16.msra.mxu1 %v1390_v23  ;;  %904 = vmatprep.subr.bf16.mxu0 %v1391_v24  ;;  %v1423_v50 = vld [vmem:[%s1996_s1 + $0x384] ss:$16 sps:$4 sm:$0xff]   ;;  %v1426_v52 = vld [vmem:[%s1996_s1 + $0x380] ss:$16 sps:$4 sm:$0xff]   ;;  %v1455_v24 = vld [vmem:[%s1996_s1 + $0xe8] ss:$16 sps:$4 sm:$0xff]  }
  0x19   :  { %947 = vmatprep.subr.bf16.mxu1 %v1393_v25  ;;  %v1427_v53 = vld [vmem:[%s1996_s1 + $0x164] ss:$16 sps:$4 sm:$0xff]   ;;  %v1552_v57 = vld.sshfl [vmem:[%s1995_s0 + $0x8] sm:$0xff pattern:$0x75316420] }
  0x1a   :  { %v1429_v54 = vld [vmem:[%s1996_s1 + $0x364] ss:$16 sps:$4 sm:$0xff]   ;;  %v1554_v59 = vld.sshfl [vmem:[%s1995_s0 + $0x18] sm:$0xff pattern:$0x75316420] }
  0x1b   :  { %905 = vmatpush1.bf16.msra.mxu0 %v1395_v26  ;;  %v1551_v56 = vld.sshfl [vmem:[%s1995_s0] sm:$0xff pattern:$0x75316420]  ;;  %v1553_v58 = vld.sshfl [vmem:[%s1995_s0 + $0x10] sm:$0xff pattern:$0x75316420] }
  0x1c   :  { %948 = vmatpush1.bf16.msra.mxu1 %v1396_v27  ;;  %906 = vmatprep.subr.bf16.mxu0 %v1397_v28  ;;  %v1431_v60 = vld [vmem:[%s1996_s1 + $0x160] ss:$16 sps:$4 sm:$0xff]   ;;  %v1433_v62 = vld [vmem:[%s1996_s1 + $0x144] ss:$16 sps:$4 sm:$0xff]   ;;  %v213_v0 = vcombine.high %v1551_v56, %v1552_v57  ;;  %v215_v1 = vcombine.high %v1553_v58, %v1554_v59  ;;  %v212_v12 = vcombine.low %v1551_v56, %v1552_v57  ;;  %v1458_v25 = vld [vmem:[%s1996_s1 + $0x2e8] ss:$16 sps:$4 sm:$0xff]  }
  0x1d   :  { %949 = vmatprep.subr.bf16.mxu1 %v1399_v29  ;;  %v1432_v61 = vld [vmem:[%s1996_s1 + $0x360] ss:$16 sps:$4 sm:$0xff]   ;;  %v1435_v63 = vld [vmem:[%s1996_s1 + $0x344] ss:$16 sps:$4 sm:$0xff]   ;;  %v214_v13 = vcombine.low %v1553_v58, %v1554_v59  ;;  %v1463_v26 = vld [vmem:[%s1996_s1 + $0xcc] ss:$16 sps:$4 sm:$0xff]  }
  0x1e   :  { %v1437_v2 = vld [vmem:[%s1996_s1 + $0x140] ss:$16 sps:$4 sm:$0xff]   ;;  %v229_v4 = vrot.slane %v213_v0, %v189_v55  ;;  %v1439_v5 = vld [vmem:[%s1996_s1 + $0x124] ss:$16 sps:$4 sm:$0xff]   ;;  %v243_v6 = vrot.slane %v215_v1, %v189_v55  ;;  %v222_v18 = vrot.slane %v212_v12, %v189_v55  ;;  %v1466_v27 = vld [vmem:[%s1996_s1 + $0x2cc] ss:$16 sps:$4 sm:$0xff]  }
  0x1f   :  { %907 = vmatpush1.bf16.msra.mxu0 %v1401_v30  ;;  %v1438_v3 = vld [vmem:[%s1996_s1 + $0x340] ss:$16 sps:$4 sm:$0xff]   ;;  %v1441_v7 = vld [vmem:[%s1996_s1 + $0x324] ss:$16 sps:$4 sm:$0xff]   ;;  %v236_v19 = vrot.slane %v214_v13, %v189_v55  ;;  %v1461_v28 = vld [vmem:[%s1996_s1 + $0xc8] ss:$16 sps:$4 sm:$0xff]  }
  0x20   :  { %950 = vmatpush1.bf16.msra.mxu1 %v1402_v31  ;;  %908 = vmatprep.subr.bf16.mxu0 %v1403_v32  ;;  %v246_v8 = vcombine.low %v229_v4, %v243_v6  ;;  %v247_v9 = vcombine.high %v229_v4, %v243_v6  ;;  %v1443_v10 = vld [vmem:[%s1996_s1 + $0x120] ss:$16 sps:$4 sm:$0xff]   ;;  %v1445_v14 = vld [vmem:[%s1996_s1 + $0x104] ss:$16 sps:$4 sm:$0xff]   ;;  %v1464_v29 = vld [vmem:[%s1996_s1 + $0x2c8] ss:$16 sps:$4 sm:$0xff]  }
  0x21   :  { %951 = vmatprep.subr.bf16.mxu1 %v1405_v33  ;;  %v1444_v11 = vld [vmem:[%s1996_s1 + $0x320] ss:$16 sps:$4 sm:$0xff]   ;;  %v1447_v15 = vld [vmem:[%s1996_s1 + $0x304] ss:$16 sps:$4 sm:$0xff]   ;;  %v1790_v22 = vcombine.low %v222_v18, %v236_v19  ;;  %v1792_v23 = vcombine.high %v222_v18, %v236_v19  ;;  %v1469_v30 = vld [vmem:[%s1996_s1 + $0xac] ss:$16 sps:$4 sm:$0xff]  }
  0x22   :  { %924 = vmatprep.mubr.bf16.mxu0 %v246_v8  ;;  %967 = vmatprep.mubr.bf16.mxu1 %v247_v9  ;;  %v1449_v16 = vld [vmem:[%s1996_s1 + $0x100] ss:$16 sps:$4 sm:$0xff]   ;;  %v1472_v31 = vld [vmem:[%s1996_s1 + $0x2ac] ss:$16 sps:$4 sm:$0xff]   ;;  %v1467_v32 = vld [vmem:[%s1996_s1 + $0xa8] ss:$16 sps:$4 sm:$0xff]  }
  0x23   :  { %909 = vmatpush2.bf16.msra.mxu0 %v1407_v34  ;;  %v1450_v17 = vld [vmem:[%s1996_s1 + $0x300] ss:$16 sps:$4 sm:$0xff]   ;;  %v1470_v33 = vld [vmem:[%s1996_s1 + $0x2a8] ss:$16 sps:$4 sm:$0xff]   ;;  %v1475_v34 = vld [vmem:[%s1996_s1 + $0x8c] ss:$16 sps:$4 sm:$0xff]  }
  0x24   :  { %952 = vmatpush2.bf16.msra.mxu1 %v1408_v35  ;;  %910 = vmatprep.subr.bf16.mxu0 %v1409_v36  ;;  %v1478_v35 = vld [vmem:[%s1996_s1 + $0x28c] ss:$16 sps:$4 sm:$0xff]   ;;  %v1473_v36 = vld [vmem:[%s1996_s1 + $0x88] ss:$16 sps:$4 sm:$0xff]  }
  0x25   :  { %953 = vmatprep.subr.bf16.mxu1 %v1411_v37  ;;  %v1476_v37 = vld [vmem:[%s1996_s1 + $0x288] ss:$16 sps:$4 sm:$0xff]   ;;  %v1505_v55 = vld [vmem:[%s1996_s1 + $0x1ec] ss:$16 sps:$4 sm:$0xff]  }
  0x26   :  { %v1508_v56 = vld [vmem:[%s1996_s1 + $0x3ec] ss:$16 sps:$4 sm:$0xff]   ;;  %v1503_v57 = vld [vmem:[%s1996_s1 + $0x1e8] ss:$16 sps:$4 sm:$0xff]  }
  0x27   :  { %911 = vmatpush2.bf16.msra.mxu0 %v1413_v38  ;;  %v1481_v38 = vld [vmem:[%s1996_s1 + $0x6c] ss:$16 sps:$4 sm:$0xff]   ;;  %v1506_v58 = vld [vmem:[%s1996_s1 + $0x3e8] ss:$16 sps:$4 sm:$0xff]  }
  0x28   :  { %954 = vmatpush2.bf16.msra.mxu1 %v1414_v42  ;;  %912 = vmatprep.subr.bf16.mxu0 %v1415_v43  ;;  %v1487_v42 = vld [vmem:[%s1996_s1 + $0x4c] ss:$16 sps:$4 sm:$0xff]   ;;  %v1515_v1 = vld [vmem:[%s1996_s1 + $0x1a8] ss:$16 sps:$4 sm:$0xff]  }
  0x29   :  { %955 = vmatprep.subr.bf16.mxu1 %v1417_v44  ;;  %v1490_v43 = vld [vmem:[%s1996_s1 + $0x24c] ss:$16 sps:$4 sm:$0xff]   ;;  %v1485_v44 = vld [vmem:[%s1996_s1 + $0x48] ss:$16 sps:$4 sm:$0xff]  }
  0x2a   :  { %v1511_v59 = vld [vmem:[%s1996_s1 + $0x1cc] ss:$16 sps:$4 sm:$0xff]   ;;  %v1524_v6 = vld [vmem:[%s1996_s1 + $0x388] ss:$16 sps:$4 sm:$0xff]  }
  0x2b   :  { %913 = vmatpush2.bf16.msra.mxu0 %v1419_v45  ;;  %v1488_v45 = vld [vmem:[%s1996_s1 + $0x248] ss:$16 sps:$4 sm:$0xff]   ;;  %v1520_v0 = vld [vmem:[%s1996_s1 + $0x3ac] ss:$16 sps:$4 sm:$0xff]  }
  0x2c   :  { %956 = vmatpush2.bf16.msra.mxu1 %v1420_v46  ;;  %914 = vmatprep.subr.bf16.mxu0 %v1421_v49  ;;  %v1493_v46 = vld [vmem:[%s1996_s1 + $0x2c] ss:$16 sps:$4 sm:$0xff]   ;;  %v1491_v49 = vld [vmem:[%s1996_s1 + $0x28] ss:$16 sps:$4 sm:$0xff]  }
  0x2d   :  { %957 = vmatprep.subr.bf16.mxu1 %v1423_v50  ;;  %v1494_v50 = vld [vmem:[%s1996_s1 + $0x228] ss:$16 sps:$4 sm:$0xff]   ;;  %v1526_v4 = vld [vmem:[%s1996_s1 + $0x38c] ss:$16 sps:$4 sm:$0xff]  }
  0x2e   :  { %v1538_v12 = vld [vmem:[%s1996_s1 + $0x34c] ss:$16 sps:$4 sm:$0xff]   ;;  %v1533_v13 = vld [vmem:[%s1996_s1 + $0x148] ss:$16 sps:$4 sm:$0xff]  }
  0x2f   :  { %915 = vmatpush2.bf16.msra.mxu0 %v1425_v51  ;;  %v1499_v51 = vld [vmem:[%s1996_s1 + $0xc] ss:$16 sps:$4 sm:$0xff]   ;;  %v1542_v18 = vld [vmem:[%s1996_s1 + $0x328] ss:$16 sps:$4 sm:$0xff]  }
  0x30   :  { %958 = vmatpush2.bf16.msra.mxu1 %v1426_v52  ;;  %916 = vmatprep.subr.bf16.mxu0 %v1427_v53  ;;  %v1502_v52 = vld [vmem:[%s1996_s1 + $0x20c] ss:$16 sps:$4 sm:$0xff]   ;;  %v1497_v53 = vld [vmem:[%s1996_s1 + $0x8] ss:$16 sps:$4 sm:$0xff]  }
  0x31   :  { %959 = vmatprep.subr.bf16.mxu1 %v1429_v54  ;;  %v1500_v54 = vld [vmem:[%s1996_s1 + $0x208] ss:$16 sps:$4 sm:$0xff]   ;;  %v1547_v19 = vld [vmem:[%s1996_s1 + $0x10c] ss:$16 sps:$4 sm:$0xff]  }
  0x33   :  { %917 = vmatpush2.bf16.msra.mxu0 %v1431_v60  ;;  %v1514_v60 = vld [vmem:[%s1996_s1 + $0x3cc] ss:$16 sps:$4 sm:$0xff]  }
  0x34   :  { %960 = vmatpush2.bf16.msra.mxu1 %v1432_v61  ;;  %918 = vmatprep.subr.bf16.mxu0 %v1433_v62  ;;  %v1509_v61 = vld [vmem:[%s1996_s1 + $0x1c8] ss:$16 sps:$4 sm:$0xff]  }
  0x35   :  { %961 = vmatprep.subr.bf16.mxu1 %v1435_v63  ;;  %v1512_v62 = vld [vmem:[%s1996_s1 + $0x3c8] ss:$16 sps:$4 sm:$0xff]   ;;  %v1517_v63 = vld [vmem:[%s1996_s1 + $0x1ac] ss:$16 sps:$4 sm:$0xff]  }
  0x37   :  { %919 = vmatpush2.bf16.msra.mxu0 %v1437_v2  ;;  %v1518_v2 = vld [vmem:[%s1996_s1 + $0x3a8] ss:$16 sps:$4 sm:$0xff]  }
  0x38   :  { %962 = vmatpush2.bf16.msra.mxu1 %v1438_v3  ;;  %920 = vmatprep.subr.bf16.mxu0 %v1439_v5  ;;  %v1523_v3 = vld [vmem:[%s1996_s1 + $0x18c] ss:$16 sps:$4 sm:$0xff]   ;;  %v1521_v5 = vld [vmem:[%s1996_s1 + $0x188] ss:$16 sps:$4 sm:$0xff]  }
  0x39   :  { %963 = vmatprep.subr.bf16.mxu1 %v1441_v7  ;;  %v1529_v7 = vld [vmem:[%s1996_s1 + $0x16c] ss:$16 sps:$4 sm:$0xff]  }
  0x3b   :  { %921 = vmatpush2.bf16.msra.mxu0 %v1443_v10  ;;  %v1530_v10 = vld [vmem:[%s1996_s1 + $0x368] ss:$16 sps:$4 sm:$0xff]  }
  0x3c   :  { %964 = vmatpush2.bf16.msra.mxu1 %v1444_v11  ;;  %922 = vmatprep.subr.bf16.mxu0 %v1445_v14  ;;  %v1535_v11 = vld [vmem:[%s1996_s1 + $0x14c] ss:$16 sps:$4 sm:$0xff]   ;;  %v1536_v14 = vld [vmem:[%s1996_s1 + $0x348] ss:$16 sps:$4 sm:$0xff]  }
  0x3d   :  { %965 = vmatprep.subr.bf16.mxu1 %v1447_v15  ;;  %v1541_v15 = vld [vmem:[%s1996_s1 + $0x12c] ss:$16 sps:$4 sm:$0xff]  }
  0x3f   :  { %923 = vmatpush2.bf16.msra.mxu0 %v1449_v16  ;;  %v1544_v16 = vld [vmem:[%s1996_s1 + $0x32c] ss:$16 sps:$4 sm:$0xff]  }
  0x40   :  { %966 = vmatpush2.bf16.msra.mxu1 %v1450_v17  ;;  %978 = vmatprep.subr.bf16.mxu0 %v1457_v20  ;;  %v1539_v17 = vld [vmem:[%s1996_s1 + $0x128] ss:$16 sps:$4 sm:$0xff]   ;;  %v1550_v20 = vld [vmem:[%s1996_s1 + $0x30c] ss:$16 sps:$4 sm:$0xff]  }
  0x41   :  { %1021 = vmatprep.subr.bf16.mxu1 %v1460_v21  ;;  %v1545_v21 = vld [vmem:[%s1996_s1 + $0x108] ss:$16 sps:$4 sm:$0xff]  }
  0x42   :  { %925 = vmatmul.mubr.bf16.vlgmr.msra.gmra.mxu0 %v1790_v22 }
  0x43   :  { %968 = vmatmul.mubr.bf16.vlgmr.msra.gmra.mxu1 %v1792_v23  ;;  %979 = vmatpush1.bf16.msra.mxu0 %v1455_v24  ;;  %v1548_v24 = vld [vmem:[%s1996_s1 + $0x308] ss:$16 sps:$4 sm:$0xff]  }
  0x44   :  { %1022 = vmatpush1.bf16.msra.mxu1 %v1458_v25  ;;  %980 = vmatprep.subr.bf16.mxu0 %v1463_v26  ;;  %v154_v25 = vsub.s32 0, %v1709_v47  ;;  %v150_v26 = vld [vmem:[%s1997_s2] sm:$0xf] }
  0x45   :  { %1023 = vmatprep.subr.bf16.mxu1 %v1466_v27  ;;  %1010 = vmatprep.mubr.bf16.mxu0 %v246_v8  ;;  %v1532_v8 = vld [vmem:[%s1996_s1 + $0x36c] ss:$16 sps:$4 sm:$0xff]   ;;  %v158_v27 = vsub.s32 1, %v1709_v47 }
  0x46   :  { %1053 = vmatprep.mubr.bf16.mxu1 %v247_v9  ;;  %v1527_v9 = vld [vmem:[%s1996_s1 + $0x168] ss:$16 sps:$4 sm:$0xff]  }
  0x47   :  { %981 = vmatpush1.bf16.msra.mxu0 %v1461_v28  ;;  %v155_v28 = vrot.slane %v150_v26, %v154_v25 }
  0x48   :  { %1024 = vmatpush1.bf16.msra.mxu1 %v1464_v29  ;;  %982 = vmatprep.subr.bf16.mxu0 %v1469_v30  ;;  %v159_v29 = vrot.slane %v150_v26, %v158_v27 }
  0x49   :  { %1025 = vmatprep.subr.bf16.mxu1 %v1472_v31 }
  0x4b   :  { %983 = vmatpush1.bf16.msra.mxu0 %v1467_v32 }
  0x4c   :  { %1026 = vmatpush1.bf16.msra.mxu1 %v1470_v33  ;;  %984 = vmatprep.subr.bf16.mxu0 %v1475_v34 }
  0x4d   :  { %1027 = vmatprep.subr.bf16.mxu1 %v1478_v35 }
  0x4f   :  { %985 = vmatpush1.bf16.msra.mxu0 %v1473_v36 }
  0x50   :  { %1028 = vmatpush1.bf16.msra.mxu1 %v1476_v37  ;;  %986 = vmatprep.subr.bf16.mxu0 %v1481_v38 }
  0x51   :  { %1029 = vmatprep.subr.bf16.mxu1 %v1484_v39 }
  0x53   :  { %987 = vmatpush1.bf16.msra.mxu0 %v1479_v40 }
  0x54   :  { %1030 = vmatpush1.bf16.msra.mxu1 %v1482_v41  ;;  %988 = vmatprep.subr.bf16.mxu0 %v1487_v42 }
  0x55   :  { %1031 = vmatprep.subr.bf16.mxu1 %v1490_v43 }
  0x57   :  { %989 = vmatpush1.bf16.msra.mxu0 %v1485_v44 }
  0x58   :  { %1032 = vmatpush1.bf16.msra.mxu1 %v1488_v45  ;;  %990 = vmatprep.subr.bf16.mxu0 %v1493_v46  ;;  %v162_v45 = vsub.s32 2, %v1709_v47  ;;  %v166_v46 = vsub.s32 3, %v1709_v47 }
  0x59   :  { %1033 = vmatprep.subr.bf16.mxu1 %v1496_v48 }
  0x5a   :  { %v163_v48 = vrot.slane %v150_v26, %v162_v45 }
  0x5b   :  { %991 = vmatpush1.bf16.msra.mxu0 %v1491_v49  ;;  %v167_v49 = vrot.slane %v150_v26, %v166_v46 }
  0x5c   :  { %1034 = vmatpush1.bf16.msra.mxu1 %v1494_v50  ;;  %992 = vmatprep.subr.bf16.mxu0 %v1499_v51  ;;  %v1556_v50 = vmov 1983009808  }
  0x5d   :  { %1035 = vmatprep.subr.bf16.mxu1 %v1502_v52  ;;  %v1101_v51 = vunpack.c.l.s4 %v1556_v50 }
  0x5f   :  { %993 = vmatpush1.bf16.msra.mxu0 %v1497_v53 }
  0x60   :  { %1036 = vmatpush1.bf16.msra.mxu1 %v1500_v54  ;;  %994 = vmatprep.subr.bf16.mxu0 %v1505_v55 }
  0x61   :  { %1037 = vmatprep.subr.bf16.mxu1 %v1508_v56 }
  0x63   :  { %995 = vmatpush2.bf16.msra.mxu0 %v1503_v57 }
  0x64   :  { %1038 = vmatpush2.bf16.msra.mxu1 %v1506_v58  ;;  %996 = vmatprep.subr.bf16.mxu0 %v1511_v59  ;;  %v1102_v59 = vunpack.c.0.s8 %v1101_v51 }
  0x65   :  { %1039 = vmatprep.subr.bf16.mxu1 %v1514_v60 }
  0x67   :  { %997 = vmatpush2.bf16.msra.mxu0 %v1509_v61 }
  0x68   :  { %1040 = vmatpush2.bf16.msra.mxu1 %v1512_v62  ;;  %998 = vmatprep.subr.bf16.mxu0 %v1517_v63 }
  0x69   :  { %1041 = vmatprep.subr.bf16.mxu1 %v1520_v0 }
  0x6b   :  { %999 = vmatpush2.bf16.msra.mxu0 %v1515_v1 }
  0x6c   :  { %1042 = vmatpush2.bf16.msra.mxu1 %v1518_v2  ;;  %1000 = vmatprep.subr.bf16.mxu0 %v1523_v3  ;;  %v1105_v3 = vsub.s32 %v1102_v59, %v1709_v47 }
  0x6d   :  { %1043 = vmatprep.subr.bf16.mxu1 %v1526_v4 }
  0x6f   :  { %1001 = vmatpush2.bf16.msra.mxu0 %v1521_v5 }
  0x70   :  { %1044 = vmatpush2.bf16.msra.mxu1 %v1524_v6  ;;  %1002 = vmatprep.subr.bf16.mxu0 %v1529_v7 }
  0x71   :  { %1045 = vmatprep.subr.bf16.mxu1 %v1532_v8 }
  0x73   :  { %1003 = vmatpush2.bf16.msra.mxu0 %v1527_v9 }
  0x74   :  { %1046 = vmatpush2.bf16.msra.mxu1 %v1530_v10  ;;  %1004 = vmatprep.subr.bf16.mxu0 %v1535_v11 }
  0x75   :  { %1047 = vmatprep.subr.bf16.mxu1 %v1538_v12 }
  0x77   :  { %1005 = vmatpush2.bf16.msra.mxu0 %v1533_v13 }
  0x78   :  { %1048 = vmatpush2.bf16.msra.mxu1 %v1536_v14  ;;  %1006 = vmatprep.subr.bf16.mxu0 %v1541_v15 }
  0x79   :  { %1049 = vmatprep.subr.bf16.mxu1 %v1544_v16 }
  0x7b   :  { %1007 = vmatpush2.bf16.msra.mxu0 %v1539_v17 }
  0x7c   :  { %1050 = vmatpush2.bf16.msra.mxu1 %v1542_v18  ;;  %1008 = vmatprep.subr.bf16.mxu0 %v1547_v19 }
  0x7d   :  { %1051 = vmatprep.subr.bf16.mxu1 %v1550_v20 }
  0x7f   :  { %1009 = vmatpush2.bf16.msra.mxu0 %v1545_v21 }
  0x80   :  { %1052 = vmatpush2.bf16.msra.mxu1 %v1548_v24 }
  0x82   :  { %1011 = vmatmul.mubr.bf16.vlgmr.msra.gmra.mxu0 %v1790_v22 }
  0x83   :  { %1054 = vmatmul.mubr.bf16.vlgmr.msra.gmra.mxu1 %v1792_v23 }
 0x102   :  { %v926_v30 = vpop.f32.mrf.mxu0 }
 0x103   :  { %v969_v31 = vpop.f32.mrf.mxu1  ;;  %v927_v32 = vadd.f32 %v926_v30, %v155_v28 }
 0x104   :  { %v928_v33 = vpop.f32.mrf.mxu0 }
 0x105   :  { %v971_v34 = vpop.f32.mrf.mxu1  ;;  %v970_v35 = vadd.f32 %v969_v31, %v927_v32  ;;  %v929_v36 = vadd.f32 %v928_v33, %v159_v29 }
 0x106   :  { %v930_v22 = vpop.f32.mrf.mxu0 }
 0x107   :  { %v973_v37 = vpop.f32.mrf.mxu1  ;;  %v1072_v23 = vmul.f32 0.3, %v970_v35  ;;  %v972_v38 = vadd.f32 %v971_v34, %v929_v36  ;;  %vm1064_vm0 = vcmp.ge.f32.partialorder %v970_v35, 0.0 }
 0x108   :  { %v932_v39 = vpop.f32.mrf.mxu0 }
 0x109   :  { %v975_v40 = vpop.f32.mrf.mxu1  ;;  %vm1065_vm1 = vcmp.ge.f32.partialorder %v972_v38, 0.0  ;;  %v1073_v41 = vmul.f32 0.3, %v972_v38  ;;  %v1080_v42 = vsel %vm1064_vm0, %v970_v35, %v1072_v23 }
 0x10b   :  { %v1081_v43 = vsel %vm1065_vm1, %v972_v38, %v1073_v41 }
 0x10c   :  { %v1096_v44 = vcombine.low %v1080_v42, %v1081_v43 }
 0x10e   :  { %v1106_v7 = vrot.slane %v1096_v44, %v1105_v3 }
 0x142   :  { %v1012_v52 = vpop.f32.mrf.mxu0 }
 0x143   :  { %v1055_v53 = vpop.f32.mrf.mxu1  ;;  %v1013_v54 = vadd.f32 %v1012_v52, %v163_v48 }
 0x144   :  { %v1014_v55 = vpop.f32.mrf.mxu0 }
 0x145   :  { %v1057_v56 = vpop.f32.mrf.mxu1  ;;  %v1056_v57 = vadd.f32 %v1055_v53, %v1013_v54  ;;  %v1015_v58 = vadd.f32 %v1014_v55, %v167_v49 }
 0x146   :  { %v1016_v60 = vpop.f32.mrf.mxu0 }
 0x147   :  { %v1059_v61 = vpop.f32.mrf.mxu1  ;;  %v1074_v62 = vmul.f32 0.3, %v1056_v57  ;;  %v1058_v63 = vadd.f32 %v1057_v56, %v1015_v58  ;;  %vm1066_vm2 = vcmp.ge.f32.partialorder %v1056_v57, 0.0 }
 0x148   :  { %v1018_v0 = vpop.f32.mrf.mxu0 }
 0x149   :  { %v1061_v1 = vpop.f32.mrf.mxu1  ;;  %vm1067_vm3 = vcmp.ge.f32.partialorder %v1058_v63, 0.0  ;;  %v1075_v2 = vmul.f32 0.3, %v1058_v63  ;;  %v1082_v4 = vsel %vm1066_vm2, %v1056_v57, %v1074_v62 }
 0x14b   :  { %v1083_v5 = vsel %vm1067_vm3, %v1058_v63, %v1075_v2 }
 0x14c   :  { %v1098_v6 = vcombine.low %v1082_v4, %v1083_v5 }
 0x14e   :  { %v1120_v8 = vrot.slane %v1098_v6, %v1105_v3 }
 0x150   :  { %v1128_v9 = vcombine.low %v1106_v7, %v1120_v8 }
 0x152   :  { %1215 = vst [vmem:[%s1998_s3] sm:$0xff] %v1128_v9 }

// kernel: _lambda_.17
= control target key start
LH: loop header
LB: loop body
LE: loop exit
PB: predicated region body
PF: predicated region fallthrough
CT: control target
= control target key end

     0   :  { %s3844_s23 = smov 0   ;;  %s4461_s0 = inlined_call_operand.vmem [shape: f32[2,2,2048], index: 0, kind: input, shape index: {}]   ;;  %s4462_s1 = inlined_call_operand.vmem [shape: bf16[256,1024], index: 1, kind: input, shape index: {}]   ;;  %s4463_s3 = inlined_call_operand.vmem [shape: f32[2,2,256], index: 3, kind: output, shape index: {0}]   ;;  %s4464_s4 = inlined_call_operand.vmem [shape: f32[2,2,256], index: 4, kind: output, shape index: {1}]   ;;  %s4465_s2 = inlined_call_operand.vmem [shape: bf16[256,1024], index: 2, kind: input, shape index: {}]  }
   0x1   :  { %v2563_v0 = vld [vmem:[%s4462_s1] sm:$0xff]  ;;  %v2568_v1 = vld [vmem:[%s4462_s1 + $0x8] sm:$0xff]  ;;  %v2573_v2 = vld [vmem:[%s4462_s1 + $0x10] sm:$0xff] }
   0x2   :  { %4838 = vst [vmem:[#allocation2_spill] sm:$0xff] %v2563_v0  ;;  %4839 = vst [vmem:[#allocation3_spill] sm:$0xff] %v2568_v1  ;;  %v2578_v3 = vld [vmem:[%s4462_s1 + $0x18] sm:$0xff]  ;;  %v2583_v4 = vld [vmem:[%s4462_s1 + $0x20] sm:$0xff] }
   0x3   :  { %4840 = vst [vmem:[#allocation4_spill] sm:$0xff] %v2573_v2  ;;  %4841 = vst [vmem:[#allocation5_spill] sm:$0xff] %v2578_v3  ;;  %v2588_v5 = vld [vmem:[%s4462_s1 + $0x28] sm:$0xff]  ;;  %v2593_v6 = vld [vmem:[%s4462_s1 + $0x30] sm:$0xff] }
   0x4   :  { %4842 = vst [vmem:[#allocation6_spill] sm:$0xff] %v2583_v4  ;;  %4843 = vst [vmem:[#allocation7_spill] sm:$0xff] %v2588_v5  ;;  %v2598_v7 = vld [vmem:[%s4462_s1 + $0x38] sm:$0xff]  ;;  %v2603_v8 = vld [vmem:[%s4462_s1 + $0x40] sm:$0xff] }
   0x5   :  { %4844 = vst [vmem:[#allocation8_spill] sm:$0xff] %v2593_v6  ;;  %4845 = vst [vmem:[#allocation9_spill] sm:$0xff] %v2598_v7  ;;  %v2608_v9 = vld [vmem:[%s4462_s1 + $0x48] sm:$0xff]  ;;  %v2613_v10 = vld [vmem:[%s4462_s1 + $0x50] sm:$0xff] }
   0x6   :  { %4846 = vst [vmem:[#allocation10_spill] sm:$0xff] %v2603_v8  ;;  %4847 = vst [vmem:[#allocation11_spill] sm:$0xff] %v2608_v9  ;;  %v2618_v11 = vld [vmem:[%s4462_s1 + $0x58] sm:$0xff]  ;;  %v2623_v12 = vld [vmem:[%s4462_s1 + $0x60] sm:$0xff] }
   0x7   :  { %4848 = vst [vmem:[#allocation12_spill] sm:$0xff] %v2613_v10  ;;  %4849 = vst [vmem:[#allocation13_spill] sm:$0xff] %v2618_v11  ;;  %v2628_v13 = vld [vmem:[%s4462_s1 + $0x68] sm:$0xff]  ;;  %v2633_v14 = vld [vmem:[%s4462_s1 + $0x70] sm:$0xff] }
   0x8   :  { %4850 = vst [vmem:[#allocation14_spill] sm:$0xff] %v2623_v12  ;;  %4851 = vst [vmem:[#allocation15_spill] sm:$0xff] %v2628_v13  ;;  %v2638_v15 = vld [vmem:[%s4462_s1 + $0x78] sm:$0xff]  ;;  %v2643_v16 = vld [vmem:[%s4462_s1 + $0x80] sm:$0xff] }
   0x9   :  { %4852 = vst [vmem:[#allocation16_spill] sm:$0xff] %v2633_v14  ;;  %4853 = vst [vmem:[#allocation17_spill] sm:$0xff] %v2638_v15  ;;  %v2648_v17 = vld [vmem:[%s4462_s1 + $0x88] sm:$0xff]  ;;  %v2653_v18 = vld [vmem:[%s4462_s1 + $0x90] sm:$0xff] }
   0xa   :  { %4854 = vst [vmem:[#allocation18_spill] sm:$0xff] %v2643_v16  ;;  %4855 = vst [vmem:[#allocation19_spill] sm:$0xff] %v2648_v17  ;;  %v2658_v19 = vld [vmem:[%s4462_s1 + $0x98] sm:$0xff]  ;;  %v2663_v20 = vld [vmem:[%s4462_s1 + $0xa0] sm:$0xff] }
   0xb   :  { %4856 = vst [vmem:[#allocation20_spill] sm:$0xff] %v2653_v18  ;;  %4857 = vst [vmem:[#allocation21_spill] sm:$0xff] %v2658_v19  ;;  %v2668_v21 = vld [vmem:[%s4462_s1 + $0xa8] sm:$0xff]  ;;  %v2673_v22 = vld [vmem:[%s4462_s1 + $0xb0] sm:$0xff] }
   0xc   :  { %4858 = vst [vmem:[#allocation22_spill] sm:$0xff] %v2673_v22  ;;  %v2678_v23 = vld [vmem:[%s4462_s1 + $0xb8] sm:$0xff]  ;;  %v2683_v24 = vld [vmem:[%s4462_s1 + $0xc0] sm:$0xff]  ;;  %v2688_v25 = vld [vmem:[%s4462_s1 + $0xc8] sm:$0xff] }
   0xd   :  { %4859 = vst [vmem:[#allocation23_spill] sm:$0xff] %v2678_v23  ;;  %v2693_v26 = vld [vmem:[%s4462_s1 + $0xd0] sm:$0xff]  ;;  %v2698_v27 = vld [vmem:[%s4462_s1 + $0xd8] sm:$0xff]  ;;  %v2703_v28 = vld [vmem:[%s4462_s1 + $0xe0] sm:$0xff] }
   0xe   :  { %4860 = vst [vmem:[#allocation24_spill] sm:$0xff] %v2693_v26  ;;  %4861 = vst [vmem:[#allocation25_spill] sm:$0xff] %v2698_v27  ;;  %v2708_v29 = vld [vmem:[%s4462_s1 + $0xe8] sm:$0xff]  ;;  %v2713_v30 = vld [vmem:[%s4462_s1 + $0xf0] sm:$0xff] }
   0xf   :  { %4862 = vst [vmem:[#allocation26_spill] sm:$0xff] %v2713_v30  ;;  %v2718_v31 = vld [vmem:[%s4462_s1 + $0xf8] sm:$0xff]  ;;  %v2723_v32 = vld [vmem:[%s4462_s1 + $0x100] sm:$0xff]  ;;  %v2728_v33 = vld [vmem:[%s4462_s1 + $0x108] sm:$0xff] }
  0x10   :  { %4863 = vst [vmem:[#allocation27_spill] sm:$0xff] %v2718_v31  ;;  %v2733_v34 = vld [vmem:[%s4462_s1 + $0x110] sm:$0xff]  ;;  %v2738_v35 = vld [vmem:[%s4462_s1 + $0x118] sm:$0xff]  ;;  %v2743_v36 = vld [vmem:[%s4462_s1 + $0x120] sm:$0xff] }
  0x11   :  { %4864 = vst [vmem:[#allocation28_spill] sm:$0xff] %v2733_v34  ;;  %4865 = vst [vmem:[#allocation29_spill] sm:$0xff] %v2738_v35  ;;  %v2748_v37 = vld [vmem:[%s4462_s1 + $0x128] sm:$0xff]  ;;  %v2753_v38 = vld [vmem:[%s4462_s1 + $0x130] sm:$0xff] }
  0x12   :  { %4866 = vst [vmem:[#allocation30_spill] sm:$0xff] %v2753_v38  ;;  %v2758_v39 = vld [vmem:[%s4462_s1 + $0x138] sm:$0xff]  ;;  %v2763_v40 = vld [vmem:[%s4462_s1 + $0x140] sm:$0xff]  ;;  %v2768_v41 = vld [vmem:[%s4462_s1 + $0x148] sm:$0xff] }
  0x13   :  { %4867 = vst [vmem:[#allocation31_spill] sm:$0xff] %v2758_v39  ;;  %4868 = vst [vmem:[#allocation32_spill] sm:$0xff] %v2763_v40  ;;  %v2773_v42 = vld [vmem:[%s4462_s1 + $0x150] sm:$0xff]  ;;  %v2778_v43 = vld [vmem:[%s4462_s1 + $0x158] sm:$0xff] }
  0x14   :  { %4869 = vst [vmem:[#allocation33_spill] sm:$0xff] %v2768_v41  ;;  %4870 = vst [vmem:[#allocation34_spill] sm:$0xff] %v2773_v42  ;;  %v2783_v44 = vld [vmem:[%s4462_s1 + $0x160] sm:$0xff]  ;;  %v2788_v45 = vld [vmem:[%s4462_s1 + $0x168] sm:$0xff] }
  0x15   :  { %4871 = vst [vmem:[#allocation35_spill] sm:$0xff] %v2778_v43  ;;  %v2793_v46 = vld [vmem:[%s4462_s1 + $0x170] sm:$0xff]  ;;  %v2798_v47 = vld [vmem:[%s4462_s1 + $0x178] sm:$0xff]  ;;  %v2803_v48 = vld [vmem:[%s4462_s1 + $0x180] sm:$0xff] }
  0x16   :  { %4872 = vst [vmem:[#allocation36_spill] sm:$0xff] %v2793_v46  ;;  %4873 = vst [vmem:[#allocation37_spill] sm:$0xff] %v2798_v47  ;;  %v2808_v49 = vld [vmem:[%s4462_s1 + $0x188] sm:$0xff]  ;;  %v2813_v50 = vld [vmem:[%s4462_s1 + $0x190] sm:$0xff] }
  0x17   :  { %4874 = vst [vmem:[#allocation38_spill] sm:$0xff] %v2803_v48  ;;  %4875 = vst [vmem:[#allocation39_spill] sm:$0xff] %v2813_v50  ;;  %v2818_v51 = vld [vmem:[%s4462_s1 + $0x198] sm:$0xff]  ;;  %v2823_v52 = vld [vmem:[%s4462_s1 + $0x1a0] sm:$0xff] }
  0x18   :  { %4876 = vst [vmem:[#allocation40_spill] sm:$0xff] %v2818_v51  ;;  %v2828_v53 = vld [vmem:[%s4462_s1 + $0x1a8] sm:$0xff]  ;;  %v2833_v54 = vld [vmem:[%s4462_s1 + $0x1b0] sm:$0xff]  ;;  %v2838_v55 = vld [vmem:[%s4462_s1 + $0x1b8] sm:$0xff] }
  0x19   :  { %4877 = vst [vmem:[#allocation41_spill] sm:$0xff] %v2833_v54  ;;  %4878 = vst [vmem:[#allocation42_spill] sm:$0xff] %v2838_v55  ;;  %v2843_v56 = vld [vmem:[%s4462_s1 + $0x1c0] sm:$0xff]  ;;  %v2848_v57 = vld [vmem:[%s4462_s1 + $0x1c8] sm:$0xff] }
  0x1a   :  { %4879 = vst [vmem:[#allocation43_spill] sm:$0xff] %v2843_v56  ;;  %4880 = vst [vmem:[#allocation44_spill] sm:$0xff] %v2848_v57  ;;  %v2853_v58 = vld [vmem:[%s4462_s1 + $0x1d0] sm:$0xff]  ;;  %v2858_v59 = vld [vmem:[%s4462_s1 + $0x1d8] sm:$0xff] }
  0x1b   :  { %4881 = vst [vmem:[#allocation45_spill] sm:$0xff] %v2853_v58  ;;  %4882 = vst [vmem:[#allocation46_spill] sm:$0xff] %v2858_v59  ;;  %v2863_v60 = vld [vmem:[%s4462_s1 + $0x1e0] sm:$0xff]  ;;  %v2868_v61 = vld [vmem:[%s4462_s1 + $0x1e8] sm:$0xff] }
  0x1c   :  { %v2873_v62 = vld [vmem:[%s4462_s1 + $0x1f0] sm:$0xff]  ;;  %v2878_v63 = vld [vmem:[%s4462_s1 + $0x1f8] sm:$0xff]  ;;  %v2883_v3 = vld [vmem:[%s4462_s1 + $0x200] sm:$0xff] }
  0x1d   :  { %4883 = vst [vmem:[#allocation47_spill] sm:$0xff] %v2873_v62  ;;  %4884 = vst [vmem:[#allocation48_spill] sm:$0xff] %v2878_v63  ;;  %v2888_v7 = vld [vmem:[%s4462_s1 + $0x208] sm:$0xff]  ;;  %v2893_v2 = vld [vmem:[%s4462_s1 + $0x210] sm:$0xff] }
  0x1e   :  { %4885 = vst [vmem:[#allocation49_spill] sm:$0xff] %v2883_v3  ;;  %4886 = vst [vmem:[#allocation50_spill] sm:$0xff] %v2888_v7  ;;  %v2898_v6 = vld [vmem:[%s4462_s1 + $0x218] sm:$0xff]  ;;  %v2903_v11 = vld [vmem:[%s4462_s1 + $0x220] sm:$0xff] }
  0x1f   :  { %4887 = vst [vmem:[#allocation51_spill] sm:$0xff] %v2893_v2  ;;  %4888 = vst [vmem:[#allocation52_spill] sm:$0xff] %v2898_v6  ;;  %v2908_v15 = vld [vmem:[%s4462_s1 + $0x228] sm:$0xff]  ;;  %v2913_v10 = vld [vmem:[%s4462_s1 + $0x230] sm:$0xff] }
  0x20   :  { %4889 = vst [vmem:[#allocation53_spill] sm:$0xff] %v2903_v11  ;;  %4890 = vst [vmem:[#allocation54_spill] sm:$0xff] %v2908_v15  ;;  %v2918_v2 = vld [vmem:[%s4462_s1 + $0x238] sm:$0xff]  ;;  %v2923_v6 = vld [vmem:[%s4462_s1 + $0x240] sm:$0xff] }
  0x21   :  { %4891 = vst [vmem:[#allocation55_spill] sm:$0xff] %v2913_v10  ;;  %4892 = vst [vmem:[#allocation56_spill] sm:$0xff] %v2918_v2  ;;  %v2928_v14 = vld [vmem:[%s4462_s1 + $0x248] sm:$0xff]  ;;  %v2933_v19 = vld [vmem:[%s4462_s1 + $0x250] sm:$0xff] }
  0x22   :  { %4893 = vst [vmem:[#allocation57_spill] sm:$0xff] %v2923_v6  ;;  %4894 = vst [vmem:[#allocation58_spill] sm:$0xff] %v2928_v14  ;;  %v2938_v10 = vld [vmem:[%s4462_s1 + $0x258] sm:$0xff]  ;;  %v2943_v2 = vld [vmem:[%s4462_s1 + $0x260] sm:$0xff] }
  0x23   :  { %4895 = vst [vmem:[#allocation59_spill] sm:$0xff] %v2933_v19  ;;  %4896 = vst [vmem:[#allocation60_spill] sm:$0xff] %v2938_v10  ;;  %v2948_v23 = vld [vmem:[%s4462_s1 + $0x268] sm:$0xff]  ;;  %v2953_v18 = vld [vmem:[%s4462_s1 + $0x270] sm:$0xff] }
  0x24   :  { %4897 = vst [vmem:[#allocation61_spill] sm:$0xff] %v2943_v2  ;;  %4898 = vst [vmem:[#allocation62_spill] sm:$0xff] %v2948_v23  ;;  %v2958_v19 = vld [vmem:[%s4462_s1 + $0x278] sm:$0xff]  ;;  %v2963_v10 = vld [vmem:[%s4462_s1 + $0x280] sm:$0xff]  ;;  %v3842_v23 = vmov 0.0  }
  0x25   :  { %4899 = vst [vmem:[#allocation63_spill] sm:$0xff] %v2953_v18  ;;  %4900 = vst [vmem:[#allocation64_spill] sm:$0xff] %v2958_v19  ;;  %v2968_v22 = vld [vmem:[%s4462_s1 + $0x288] sm:$0xff]  ;;  %v2973_v27 = vld [vmem:[%s4462_s1 + $0x290] sm:$0xff] }
  0x26   :  { %4901 = vst [vmem:[#allocation65_spill] sm:$0xff] %v2963_v10  ;;  %4902 = vst [vmem:[#allocation66_spill] sm:$0xff] %v2968_v22  ;;  %v2978_v18 = vld [vmem:[%s4462_s1 + $0x298] sm:$0xff]  ;;  %v2983_v19 = vld [vmem:[%s4462_s1 + $0x2a0] sm:$0xff] }
  0x27   :  { %4903 = vst [vmem:[#allocation67_spill] sm:$0xff] %v2973_v27  ;;  %4904 = vst [vmem:[#allocation68_spill] sm:$0xff] %v2978_v18  ;;  %v2988_v31 = vld [vmem:[%s4462_s1 + $0x2a8] sm:$0xff]  ;;  %v2993_v26 = vld [vmem:[%s4462_s1 + $0x2b0] sm:$0xff] }
  0x28   :  { %4905 = vst [vmem:[#allocation69_spill] sm:$0xff] %v2993_v26  ;;  %v2998_v27 = vld [vmem:[%s4462_s1 + $0x2b8] sm:$0xff]  ;;  %v3003_v18 = vld [vmem:[%s4462_s1 + $0x2c0] sm:$0xff]  ;;  %v3008_v30 = vld [vmem:[%s4462_s1 + $0x2c8] sm:$0xff] }
  0x29   :  { %4906 = vst [vmem:[#allocation70_spill] sm:$0xff] %v2998_v27  ;;  %v3013_v35 = vld [vmem:[%s4462_s1 + $0x2d0] sm:$0xff]  ;;  %v3018_v26 = vld [vmem:[%s4462_s1 + $0x2d8] sm:$0xff]  ;;  %v3023_v27 = vld [vmem:[%s4462_s1 + $0x2e0] sm:$0xff] }
  0x2a   :  { %4907 = vst [vmem:[#allocation71_spill] sm:$0xff] %v3013_v35  ;;  %4908 = vst [vmem:[#allocation72_spill] sm:$0xff] %v3018_v26  ;;  %v3028_v39 = vld [vmem:[%s4462_s1 + $0x2e8] sm:$0xff]  ;;  %v3033_v34 = vld [vmem:[%s4462_s1 + $0x2f0] sm:$0xff] }
  0x2b   :  { %4909 = vst [vmem:[#allocation73_spill] sm:$0xff] %v3033_v34  ;;  %v3038_v35 = vld [vmem:[%s4462_s1 + $0x2f8] sm:$0xff]  ;;  %v3043_v26 = vld [vmem:[%s4462_s1 + $0x300] sm:$0xff]  ;;  %v3048_v38 = vld [vmem:[%s4462_s1 + $0x308] sm:$0xff] }
  0x2c   :  { %4910 = vst [vmem:[#allocation74_spill] sm:$0xff] %v3038_v35  ;;  %v3053_v43 = vld [vmem:[%s4462_s1 + $0x310] sm:$0xff]  ;;  %v3058_v34 = vld [vmem:[%s4462_s1 + $0x318] sm:$0xff]  ;;  %v3063_v35 = vld [vmem:[%s4462_s1 + $0x320] sm:$0xff] }
  0x2d   :  { %4911 = vst [vmem:[#allocation75_spill] sm:$0xff] %v3053_v43  ;;  %4912 = vst [vmem:[#allocation76_spill] sm:$0xff] %v3058_v34  ;;  %v3068_v47 = vld [vmem:[%s4462_s1 + $0x328] sm:$0xff]  ;;  %v3073_v42 = vld [vmem:[%s4462_s1 + $0x330] sm:$0xff] }
  0x2e   :  { %4913 = vst [vmem:[#allocation77_spill] sm:$0xff] %v3073_v42  ;;  %v3078_v43 = vld [vmem:[%s4462_s1 + $0x338] sm:$0xff]  ;;  %v3083_v34 = vld [vmem:[%s4462_s1 + $0x340] sm:$0xff]  ;;  %v3088_v46 = vld [vmem:[%s4462_s1 + $0x348] sm:$0xff] }
  0x2f   :  { %4914 = vst [vmem:[#allocation78_spill] sm:$0xff] %v3078_v43  ;;  %v3093_v51 = vld [vmem:[%s4462_s1 + $0x350] sm:$0xff]  ;;  %v3098_v42 = vld [vmem:[%s4462_s1 + $0x358] sm:$0xff]  ;;  %v3103_v43 = vld [vmem:[%s4462_s1 + $0x360] sm:$0xff] }
  0x30   :  { %4915 = vst [vmem:[#allocation79_spill] sm:$0xff] %v3093_v51  ;;  %4916 = vst [vmem:[#allocation80_spill] sm:$0xff] %v3098_v42  ;;  %v3108_v55 = vld [vmem:[%s4462_s1 + $0x368] sm:$0xff]  ;;  %v3113_v50 = vld [vmem:[%s4462_s1 + $0x370] sm:$0xff] }
  0x31   :  { %4917 = vst [vmem:[#allocation81_spill] sm:$0xff] %v3113_v50  ;;  %v3118_v51 = vld [vmem:[%s4462_s1 + $0x378] sm:$0xff]  ;;  %v3123_v42 = vld [vmem:[%s4462_s1 + $0x380] sm:$0xff]  ;;  %v3128_v54 = vld [vmem:[%s4462_s1 + $0x388] sm:$0xff] }
  0x32   :  { %4918 = vst [vmem:[#allocation82_spill] sm:$0xff] %v3118_v51  ;;  %v3133_v59 = vld [vmem:[%s4462_s1 + $0x390] sm:$0xff]  ;;  %v3138_v50 = vld [vmem:[%s4462_s1 + $0x398] sm:$0xff]  ;;  %v3143_v51 = vld [vmem:[%s4462_s1 + $0x3a0] sm:$0xff] }
  0x33   :  { %4919 = vst [vmem:[#allocation83_spill] sm:$0xff] %v3133_v59  ;;  %4920 = vst [vmem:[#allocation84_spill] sm:$0xff] %v3138_v50  ;;  %v3148_v63 = vld [vmem:[%s4462_s1 + $0x3a8] sm:$0xff]  ;;  %v3153_v58 = vld [vmem:[%s4462_s1 + $0x3b0] sm:$0xff] }
  0x34   :  { %4921 = vst [vmem:[#allocation85_spill] sm:$0xff] %v3153_v58  ;;  %v3158_v59 = vld [vmem:[%s4462_s1 + $0x3b8] sm:$0xff]  ;;  %v3163_v50 = vld [vmem:[%s4462_s1 + $0x3c0] sm:$0xff]  ;;  %v3168_v62 = vld [vmem:[%s4462_s1 + $0x3c8] sm:$0xff] }
  0x35   :  { %4922 = vst [vmem:[#allocation86_spill] sm:$0xff] %v3158_v59  ;;  %v3173_v7 = vld [vmem:[%s4462_s1 + $0x3d0] sm:$0xff]  ;;  %v3178_v58 = vld [vmem:[%s4462_s1 + $0x3d8] sm:$0xff]  ;;  %v3183_v59 = vld [vmem:[%s4462_s1 + $0x3e0] sm:$0xff] }
  0x36   :  { %4923 = vst [vmem:[#allocation87_spill] sm:$0xff] %v3173_v7  ;;  %4924 = vst [vmem:[#allocation88_spill] sm:$0xff] %v3178_v58  ;;  %v3188_v15 = vld [vmem:[%s4462_s1 + $0x3e8] sm:$0xff]  ;;  %v3193_v3 = vld [vmem:[%s4462_s1 + $0x3f0] sm:$0xff] }
  0x37   :  { %4925 = vst [vmem:[#allocation89_spill] sm:$0xff] %v3188_v15  ;;  %4926 = vst [vmem:[#allocation90_spill] sm:$0xff] %v3193_v3  ;;  %v3198_v7 = vld [vmem:[%s4462_s1 + $0x3f8] sm:$0xff]  ;;  %v3203_v58 = vld [vmem:[%s4465_s2] sm:$0xff] }
  0x38   :  { %4927 = vst [vmem:[#allocation91_spill] sm:$0xff] %v3198_v7  ;;  %4928 = vst [vmem:[#allocation92_spill] sm:$0xff] %v3203_v58  ;;  %v3208_v11 = vld [vmem:[%s4465_s2 + $0x8] sm:$0xff]  ;;  %v3213_v14 = vld [vmem:[%s4465_s2 + $0x10] sm:$0xff] }
  0x39   :  { %4929 = vst [vmem:[#allocation93_spill] sm:$0xff] %v3208_v11  ;;  %4930 = vst [vmem:[#allocation94_spill] sm:$0xff] %v3213_v14  ;;  %v3218_v3 = vld [vmem:[%s4465_s2 + $0x18] sm:$0xff]  ;;  %v3223_v7 = vld [vmem:[%s4465_s2 + $0x20] sm:$0xff] }
  0x3a   :  { %4931 = vst [vmem:[#allocation95_spill] sm:$0xff] %v3218_v3  ;;  %4932 = vst [vmem:[#allocation96_spill] sm:$0xff] %v3223_v7  ;;  %v3228_v58 = vld [vmem:[%s4465_s2 + $0x28] sm:$0xff]  ;;  %v3233_v11 = vld [vmem:[%s4465_s2 + $0x30] sm:$0xff] }
  0x3b   :  { %4933 = vst [vmem:[#allocation97_spill] sm:$0xff] %v3228_v58  ;;  %4934 = vst [vmem:[#allocation98_spill] sm:$0xff] %v3233_v11  ;;  %v3238_v14 = vld [vmem:[%s4465_s2 + $0x38] sm:$0xff]  ;;  %v3243_v3 = vld [vmem:[%s4465_s2 + $0x40] sm:$0xff] }
  0x3c   :  { %4935 = vst [vmem:[#allocation99_spill] sm:$0xff] %v3238_v14  ;;  %4936 = vst [vmem:[#allocation100_spill] sm:$0xff] %v3243_v3  ;;  %v3248_v7 = vld [vmem:[%s4465_s2 + $0x48] sm:$0xff]  ;;  %v3253_v58 = vld [vmem:[%s4465_s2 + $0x50] sm:$0xff] }
  0x3d   :  { %4937 = vst [vmem:[#allocation101_spill] sm:$0xff] %v3248_v7  ;;  %4938 = vst [vmem:[#allocation102_spill] sm:$0xff] %v3253_v58  ;;  %v3258_v11 = vld [vmem:[%s4465_s2 + $0x58] sm:$0xff]  ;;  %v3263_v14 = vld [vmem:[%s4465_s2 + $0x60] sm:$0xff] }
  0x3e   :  { %4939 = vst [vmem:[#allocation103_spill] sm:$0xff] %v3258_v11  ;;  %4940 = vst [vmem:[#allocation104_spill] sm:$0xff] %v3263_v14  ;;  %v3268_v3 = vld [vmem:[%s4465_s2 + $0x68] sm:$0xff]  ;;  %v3273_v7 = vld [vmem:[%s4465_s2 + $0x70] sm:$0xff] }
  0x3f   :  { %4941 = vst [vmem:[#allocation105_spill] sm:$0xff] %v3268_v3  ;;  %4942 = vst [vmem:[#allocation106_spill] sm:$0xff] %v3273_v7  ;;  %v3278_v58 = vld [vmem:[%s4465_s2 + $0x78] sm:$0xff]  ;;  %v3283_v11 = vld [vmem:[%s4465_s2 + $0x80] sm:$0xff] }
  0x40   :  { %4943 = vst [vmem:[#allocation107_spill] sm:$0xff] %v3278_v58  ;;  %4944 = vst [vmem:[#allocation108_spill] sm:$0xff] %v3283_v11  ;;  %v3288_v14 = vld [vmem:[%s4465_s2 + $0x88] sm:$0xff]  ;;  %v3293_v3 = vld [vmem:[%s4465_s2 + $0x90] sm:$0xff] }
  0x41   :  { %4945 = vst [vmem:[#allocation109_spill] sm:$0xff] %v3288_v14  ;;  %4946 = vst [vmem:[#allocation110_spill] sm:$0xff] %v3293_v3  ;;  %v3298_v7 = vld [vmem:[%s4465_s2 + $0x98] sm:$0xff]  ;;  %v3303_v58 = vld [vmem:[%s4465_s2 + $0xa0] sm:$0xff] }
  0x42   :  { %4947 = vst [vmem:[#allocation111_spill] sm:$0xff] %v3298_v7  ;;  %4948 = vst [vmem:[#allocation112_spill] sm:$0xff] %v3303_v58  ;;  %v3308_v11 = vld [vmem:[%s4465_s2 + $0xa8] sm:$0xff]  ;;  %v3313_v14 = vld [vmem:[%s4465_s2 + $0xb0] sm:$0xff] }
  0x43   :  { %4949 = vst [vmem:[#allocation113_spill] sm:$0xff] %v3308_v11  ;;  %4950 = vst [vmem:[#allocation114_spill] sm:$0xff] %v3313_v14  ;;  %v3318_v3 = vld [vmem:[%s4465_s2 + $0xb8] sm:$0xff]  ;;  %v3323_v7 = vld [vmem:[%s4465_s2 + $0xc0] sm:$0xff] }
  0x44   :  { %4951 = vst [vmem:[#allocation115_spill] sm:$0xff] %v3318_v3  ;;  %4952 = vst [vmem:[#allocation116_spill] sm:$0xff] %v3323_v7  ;;  %v3328_v58 = vld [vmem:[%s4465_s2 + $0xc8] sm:$0xff]  ;;  %v3333_v11 = vld [vmem:[%s4465_s2 + $0xd0] sm:$0xff] }
  0x45   :  { %4953 = vst [vmem:[#allocation117_spill] sm:$0xff] %v3328_v58  ;;  %4954 = vst [vmem:[#allocation118_spill] sm:$0xff] %v3333_v11  ;;  %v3338_v14 = vld [vmem:[%s4465_s2 + $0xd8] sm:$0xff]  ;;  %v3343_v3 = vld [vmem:[%s4465_s2 + $0xe0] sm:$0xff] }
  0x46   :  { %4955 = vst [vmem:[#allocation119_spill] sm:$0xff] %v3338_v14  ;;  %4956 = vst [vmem:[#allocation120_spill] sm:$0xff] %v3343_v3  ;;  %v3348_v7 = vld [vmem:[%s4465_s2 + $0xe8] sm:$0xff]  ;;  %v3353_v58 = vld [vmem:[%s4465_s2 + $0xf0] sm:$0xff] }
  0x47   :  { %4957 = vst [vmem:[#allocation121_spill] sm:$0xff] %v3348_v7  ;;  %4958 = vst [vmem:[#allocation122_spill] sm:$0xff] %v3353_v58  ;;  %v3358_v11 = vld [vmem:[%s4465_s2 + $0xf8] sm:$0xff]  ;;  %v3363_v14 = vld [vmem:[%s4465_s2 + $0x100] sm:$0xff] }
  0x48   :  { %4959 = vst [vmem:[#allocation123_spill] sm:$0xff] %v3358_v11  ;;  %4960 = vst [vmem:[#allocation124_spill] sm:$0xff] %v3363_v14  ;;  %v3368_v3 = vld [vmem:[%s4465_s2 + $0x108] sm:$0xff]  ;;  %v3373_v7 = vld [vmem:[%s4465_s2 + $0x110] sm:$0xff] }
  0x49   :  { %4961 = vst [vmem:[#allocation125_spill] sm:$0xff] %v3368_v3  ;;  %4962 = vst [vmem:[#allocation126_spill] sm:$0xff] %v3373_v7  ;;  %v3378_v58 = vld [vmem:[%s4465_s2 + $0x118] sm:$0xff]  ;;  %v3383_v11 = vld [vmem:[%s4465_s2 + $0x120] sm:$0xff] }
  0x4a   :  { %4963 = vst [vmem:[#allocation127_spill] sm:$0xff] %v3378_v58  ;;  %4964 = vst [vmem:[#allocation128_spill] sm:$0xff] %v3383_v11  ;;  %v3388_v14 = vld [vmem:[%s4465_s2 + $0x128] sm:$0xff]  ;;  %v3393_v3 = vld [vmem:[%s4465_s2 + $0x130] sm:$0xff] }
  0x4b   :  { %4965 = vst [vmem:[#allocation129_spill] sm:$0xff] %v3388_v14  ;;  %4966 = vst [vmem:[#allocation130_spill] sm:$0xff] %v3393_v3  ;;  %v3398_v7 = vld [vmem:[%s4465_s2 + $0x138] sm:$0xff]  ;;  %v3403_v58 = vld [vmem:[%s4465_s2 + $0x140] sm:$0xff] }
  0x4c   :  { %4967 = vst [vmem:[#allocation131_spill] sm:$0xff] %v3398_v7  ;;  %4968 = vst [vmem:[#allocation132_spill] sm:$0xff] %v3403_v58  ;;  %v3408_v11 = vld [vmem:[%s4465_s2 + $0x148] sm:$0xff]  ;;  %v3413_v14 = vld [vmem:[%s4465_s2 + $0x150] sm:$0xff] }
  0x4d   :  { %4969 = vst [vmem:[#allocation133_spill] sm:$0xff] %v3408_v11  ;;  %4970 = vst [vmem:[#allocation134_spill] sm:$0xff] %v3413_v14  ;;  %v3418_v3 = vld [vmem:[%s4465_s2 + $0x158] sm:$0xff]  ;;  %v3423_v7 = vld [vmem:[%s4465_s2 + $0x160] sm:$0xff] }
  0x4e   :  { %4971 = vst [vmem:[#allocation135_spill] sm:$0xff] %v3418_v3  ;;  %4972 = vst [vmem:[#allocation136_spill] sm:$0xff] %v3423_v7  ;;  %v3428_v58 = vld [vmem:[%s4465_s2 + $0x168] sm:$0xff]  ;;  %v3433_v11 = vld [vmem:[%s4465_s2 + $0x170] sm:$0xff] }
  0x4f   :  { %4973 = vst [vmem:[#allocation137_spill] sm:$0xff] %v3428_v58  ;;  %4974 = vst [vmem:[#allocation138_spill] sm:$0xff] %v3433_v11  ;;  %v3438_v14 = vld [vmem:[%s4465_s2 + $0x178] sm:$0xff]  ;;  %v3443_v3 = vld [vmem:[%s4465_s2 + $0x180] sm:$0xff] }
  0x50   :  { %4975 = vst [vmem:[#allocation139_spill] sm:$0xff] %v3438_v14  ;;  %4976 = vst [vmem:[#allocation140_spill] sm:$0xff] %v3443_v3  ;;  %v3448_v7 = vld [vmem:[%s4465_s2 + $0x188] sm:$0xff]  ;;  %v3453_v58 = vld [vmem:[%s4465_s2 + $0x190] sm:$0xff] }
  0x51   :  { %4977 = vst [vmem:[#allocation141_spill] sm:$0xff] %v3448_v7  ;;  %4978 = vst [vmem:[#allocation142_spill] sm:$0xff] %v3453_v58  ;;  %v3458_v11 = vld [vmem:[%s4465_s2 + $0x198] sm:$0xff]  ;;  %v3463_v14 = vld [vmem:[%s4465_s2 + $0x1a0] sm:$0xff] }
  0x52   :  { %4979 = vst [vmem:[#allocation143_spill] sm:$0xff] %v3458_v11  ;;  %4980 = vst [vmem:[#allocation144_spill] sm:$0xff] %v3463_v14  ;;  %v3468_v3 = vld [vmem:[%s4465_s2 + $0x1a8] sm:$0xff]  ;;  %v3473_v7 = vld [vmem:[%s4465_s2 + $0x1b0] sm:$0xff] }
  0x53   :  { %4981 = vst [vmem:[#allocation145_spill] sm:$0xff] %v3468_v3  ;;  %4982 = vst [vmem:[#allocation146_spill] sm:$0xff] %v3473_v7  ;;  %v3478_v58 = vld [vmem:[%s4465_s2 + $0x1b8] sm:$0xff]  ;;  %v3483_v11 = vld [vmem:[%s4465_s2 + $0x1c0] sm:$0xff] }
  0x54   :  { %4983 = vst [vmem:[#allocation147_spill] sm:$0xff] %v3478_v58  ;;  %4984 = vst [vmem:[#allocation148_spill] sm:$0xff] %v3483_v11  ;;  %v3488_v14 = vld [vmem:[%s4465_s2 + $0x1c8] sm:$0xff]  ;;  %v3493_v3 = vld [vmem:[%s4465_s2 + $0x1d0] sm:$0xff] }
  0x55   :  { %4985 = vst [vmem:[#allocation149_spill] sm:$0xff] %v3488_v14  ;;  %4986 = vst [vmem:[#allocation150_spill] sm:$0xff] %v3493_v3  ;;  %v3498_v7 = vld [vmem:[%s4465_s2 + $0x1d8] sm:$0xff]  ;;  %v3503_v58 = vld [vmem:[%s4465_s2 + $0x1e0] sm:$0xff] }
  0x56   :  { %4987 = vst [vmem:[#allocation151_spill] sm:$0xff] %v3498_v7  ;;  %4988 = vst [vmem:[#allocation152_spill] sm:$0xff] %v3503_v58  ;;  %v3508_v11 = vld [vmem:[%s4465_s2 + $0x1e8] sm:$0xff]  ;;  %v3513_v14 = vld [vmem:[%s4465_s2 + $0x1f0] sm:$0xff] }
  0x57   :  { %4989 = vst [vmem:[#allocation153_spill] sm:$0xff] %v3508_v11  ;;  %4990 = vst [vmem:[#allocation154_spill] sm:$0xff] %v3513_v14  ;;  %v3518_v3 = vld [vmem:[%s4465_s2 + $0x1f8] sm:$0xff]  ;;  %v3523_v7 = vld [vmem:[%s4465_s2 + $0x200] sm:$0xff] }
  0x58   :  { %4991 = vst [vmem:[#allocation155_spill] sm:$0xff] %v3518_v3  ;;  %4992 = vst [vmem:[#allocation156_spill] sm:$0xff] %v3523_v7  ;;  %v3528_v58 = vld [vmem:[%s4465_s2 + $0x208] sm:$0xff]  ;;  %v3533_v11 = vld [vmem:[%s4465_s2 + $0x210] sm:$0xff] }
  0x59   :  { %4993 = vst [vmem:[#allocation157_spill] sm:$0xff] %v3528_v58  ;;  %4994 = vst [vmem:[#allocation158_spill] sm:$0xff] %v3533_v11  ;;  %v3538_v14 = vld [vmem:[%s4465_s2 + $0x218] sm:$0xff]  ;;  %v3543_v3 = vld [vmem:[%s4465_s2 + $0x220] sm:$0xff] }
  0x5a   :  { %4995 = vst [vmem:[#allocation159_spill] sm:$0xff] %v3538_v14  ;;  %4996 = vst [vmem:[#allocation160_spill] sm:$0xff] %v3543_v3  ;;  %v3548_v7 = vld [vmem:[%s4465_s2 + $0x228] sm:$0xff]  ;;  %v3553_v58 = vld [vmem:[%s4465_s2 + $0x230] sm:$0xff] }
  0x5b   :  { %4997 = vst [vmem:[#allocation161_spill] sm:$0xff] %v3548_v7  ;;  %4998 = vst [vmem:[#allocation162_spill] sm:$0xff] %v3553_v58  ;;  %v3558_v11 = vld [vmem:[%s4465_s2 + $0x238] sm:$0xff]  ;;  %v3563_v14 = vld [vmem:[%s4465_s2 + $0x240] sm:$0xff] }
  0x5c   :  { %4999 = vst [vmem:[#allocation163_spill] sm:$0xff] %v3558_v11  ;;  %5000 = vst [vmem:[#allocation164_spill] sm:$0xff] %v3563_v14  ;;  %v3568_v3 = vld [vmem:[%s4465_s2 + $0x248] sm:$0xff]  ;;  %v3573_v7 = vld [vmem:[%s4465_s2 + $0x250] sm:$0xff] }
  0x5d   :  { %5001 = vst [vmem:[#allocation165_spill] sm:$0xff] %v3568_v3  ;;  %5002 = vst [vmem:[#allocation166_spill] sm:$0xff] %v3573_v7  ;;  %v3578_v58 = vld [vmem:[%s4465_s2 + $0x258] sm:$0xff]  ;;  %v3583_v11 = vld [vmem:[%s4465_s2 + $0x260] sm:$0xff] }
  0x5e   :  { %5003 = vst [vmem:[#allocation167_spill] sm:$0xff] %v3578_v58  ;;  %5004 = vst [vmem:[#allocation168_spill] sm:$0xff] %v3583_v11  ;;  %v3588_v14 = vld [vmem:[%s4465_s2 + $0x268] sm:$0xff]  ;;  %v3593_v3 = vld [vmem:[%s4465_s2 + $0x270] sm:$0xff] }
  0x5f   :  { %5005 = vst [vmem:[#allocation169_spill] sm:$0xff] %v3588_v14  ;;  %5006 = vst [vmem:[#allocation170_spill] sm:$0xff] %v3593_v3  ;;  %v3598_v7 = vld [vmem:[%s4465_s2 + $0x278] sm:$0xff]  ;;  %v3603_v58 = vld [vmem:[%s4465_s2 + $0x280] sm:$0xff] }
  0x60   :  { %5007 = vst [vmem:[#allocation171_spill] sm:$0xff] %v3598_v7  ;;  %5008 = vst [vmem:[#allocation172_spill] sm:$0xff] %v3603_v58  ;;  %v3608_v11 = vld [vmem:[%s4465_s2 + $0x288] sm:$0xff]  ;;  %v3613_v14 = vld [vmem:[%s4465_s2 + $0x290] sm:$0xff] }
  0x61   :  { %5009 = vst [vmem:[#allocation173_spill] sm:$0xff] %v3608_v11  ;;  %5010 = vst [vmem:[#allocation174_spill] sm:$0xff] %v3613_v14  ;;  %v3618_v3 = vld [vmem:[%s4465_s2 + $0x298] sm:$0xff]  ;;  %v3623_v7 = vld [vmem:[%s4465_s2 + $0x2a0] sm:$0xff] }
  0x62   :  { %5011 = vst [vmem:[#allocation175_spill] sm:$0xff] %v3618_v3  ;;  %5012 = vst [vmem:[#allocation176_spill] sm:$0xff] %v3623_v7  ;;  %v3628_v58 = vld [vmem:[%s4465_s2 + $0x2a8] sm:$0xff]  ;;  %v3633_v11 = vld [vmem:[%s4465_s2 + $0x2b0] sm:$0xff] }
  0x63   :  { %5013 = vst [vmem:[#allocation177_spill] sm:$0xff] %v3628_v58  ;;  %5014 = vst [vmem:[#allocation178_spill] sm:$0xff] %v3633_v11  ;;  %v3638_v14 = vld [vmem:[%s4465_s2 + $0x2b8] sm:$0xff]  ;;  %v3643_v3 = vld [vmem:[%s4465_s2 + $0x2c0] sm:$0xff] }
  0x64   :  { %5015 = vst [vmem:[#allocation179_spill] sm:$0xff] %v3638_v14  ;;  %5016 = vst [vmem:[#allocation180_spill] sm:$0xff] %v3643_v3  ;;  %v3648_v7 = vld [vmem:[%s4465_s2 + $0x2c8] sm:$0xff]  ;;  %v3653_v58 = vld [vmem:[%s4465_s2 + $0x2d0] sm:$0xff] }
  0x65   :  { %5017 = vst [vmem:[#allocation181_spill] sm:$0xff] %v3648_v7  ;;  %5018 = vst [vmem:[#allocation182_spill] sm:$0xff] %v3653_v58  ;;  %v3658_v11 = vld [vmem:[%s4465_s2 + $0x2d8] sm:$0xff]  ;;  %v3663_v14 = vld [vmem:[%s4465_s2 + $0x2e0] sm:$0xff] }
  0x66   :  { %5019 = vst [vmem:[#allocation183_spill] sm:$0xff] %v3658_v11  ;;  %5020 = vst [vmem:[#allocation184_spill] sm:$0xff] %v3663_v14  ;;  %v3668_v3 = vld [vmem:[%s4465_s2 + $0x2e8] sm:$0xff]  ;;  %v3673_v7 = vld [vmem:[%s4465_s2 + $0x2f0] sm:$0xff] }
  0x67   :  { %5021 = vst [vmem:[#allocation185_spill] sm:$0xff] %v3668_v3  ;;  %5022 = vst [vmem:[#allocation186_spill] sm:$0xff] %v3673_v7  ;;  %v3678_v58 = vld [vmem:[%s4465_s2 + $0x2f8] sm:$0xff]  ;;  %v3683_v11 = vld [vmem:[%s4465_s2 + $0x300] sm:$0xff] }
  0x68   :  { %5023 = vst [vmem:[#allocation187_spill] sm:$0xff] %v3678_v58  ;;  %5024 = vst [vmem:[#allocation188_spill] sm:$0xff] %v3683_v11  ;;  %v3688_v14 = vld [vmem:[%s4465_s2 + $0x308] sm:$0xff]  ;;  %v3693_v3 = vld [vmem:[%s4465_s2 + $0x310] sm:$0xff] }
  0x69   :  { %5025 = vst [vmem:[#allocation189_spill] sm:$0xff] %v3688_v14  ;;  %5026 = vst [vmem:[#allocation190_spill] sm:$0xff] %v3693_v3  ;;  %v3698_v7 = vld [vmem:[%s4465_s2 + $0x318] sm:$0xff]  ;;  %v3703_v58 = vld [vmem:[%s4465_s2 + $0x320] sm:$0xff] }
  0x6a   :  { %5027 = vst [vmem:[#allocation191_spill] sm:$0xff] %v3698_v7  ;;  %5028 = vst [vmem:[#allocation192_spill] sm:$0xff] %v3703_v58  ;;  %v3708_v11 = vld [vmem:[%s4465_s2 + $0x328] sm:$0xff]  ;;  %v3713_v14 = vld [vmem:[%s4465_s2 + $0x330] sm:$0xff] }
  0x6b   :  { %5029 = vst [vmem:[#allocation193_spill] sm:$0xff] %v3708_v11  ;;  %5030 = vst [vmem:[#allocation194_spill] sm:$0xff] %v3713_v14  ;;  %v3718_v3 = vld [vmem:[%s4465_s2 + $0x338] sm:$0xff]  ;;  %v3723_v7 = vld [vmem:[%s4465_s2 + $0x340] sm:$0xff] }
  0x6c   :  { %5031 = vst [vmem:[#allocation195_spill] sm:$0xff] %v3718_v3  ;;  %5032 = vst [vmem:[#allocation196_spill] sm:$0xff] %v3723_v7  ;;  %v3728_v58 = vld [vmem:[%s4465_s2 + $0x348] sm:$0xff]  ;;  %v3733_v11 = vld [vmem:[%s4465_s2 + $0x350] sm:$0xff] }
  0x6d   :  { %5033 = vst [vmem:[#allocation197_spill] sm:$0xff] %v3728_v58  ;;  %5034 = vst [vmem:[#allocation198_spill] sm:$0xff] %v3733_v11  ;;  %v3738_v14 = vld [vmem:[%s4465_s2 + $0x358] sm:$0xff]  ;;  %v3743_v3 = vld [vmem:[%s4465_s2 + $0x360] sm:$0xff] }
  0x6e   :  { %5035 = vst [vmem:[#allocation199_spill] sm:$0xff] %v3738_v14  ;;  %5036 = vst [vmem:[#allocation200_spill] sm:$0xff] %v3743_v3  ;;  %v3748_v7 = vld [vmem:[%s4465_s2 + $0x368] sm:$0xff]  ;;  %v3753_v58 = vld [vmem:[%s4465_s2 + $0x370] sm:$0xff] }
  0x6f   :  { %5037 = vst [vmem:[#allocation201_spill] sm:$0xff] %v3748_v7  ;;  %5038 = vst [vmem:[#allocation202_spill] sm:$0xff] %v3753_v58  ;;  %v3758_v11 = vld [vmem:[%s4465_s2 + $0x378] sm:$0xff]  ;;  %v3763_v14 = vld [vmem:[%s4465_s2 + $0x380] sm:$0xff] }
  0x70   :  { %5039 = vst [vmem:[#allocation203_spill] sm:$0xff] %v3758_v11  ;;  %5040 = vst [vmem:[#allocation204_spill] sm:$0xff] %v3763_v14  ;;  %v3768_v3 = vld [vmem:[%s4465_s2 + $0x388] sm:$0xff]  ;;  %v3773_v7 = vld [vmem:[%s4465_s2 + $0x390] sm:$0xff] }
  0x71   :  { %5041 = vst [vmem:[#allocation205_spill] sm:$0xff] %v3768_v3  ;;  %5042 = vst [vmem:[#allocation206_spill] sm:$0xff] %v3773_v7  ;;  %v3778_v58 = vld [vmem:[%s4465_s2 + $0x398] sm:$0xff]  ;;  %v3783_v11 = vld [vmem:[%s4465_s2 + $0x3a0] sm:$0xff] }
  0x72   :  { %5043 = vst [vmem:[#allocation207_spill] sm:$0xff] %v3778_v58  ;;  %5044 = vst [vmem:[#allocation208_spill] sm:$0xff] %v3783_v11  ;;  %v3788_v14 = vld [vmem:[%s4465_s2 + $0x3a8] sm:$0xff]  ;;  %v3793_v3 = vld [vmem:[%s4465_s2 + $0x3b0] sm:$0xff] }
  0x73   :  { %5045 = vst [vmem:[#allocation209_spill] sm:$0xff] %v3788_v14  ;;  %5046 = vst [vmem:[#allocation210_spill] sm:$0xff] %v3793_v3  ;;  %v3798_v7 = vld [vmem:[%s4465_s2 + $0x3b8] sm:$0xff]  ;;  %v3803_v58 = vld [vmem:[%s4465_s2 + $0x3c0] sm:$0xff] }
  0x74   :  { %5047 = vst [vmem:[#allocation211_spill] sm:$0xff] %v3798_v7  ;;  %5048 = vst [vmem:[#allocation212_spill] sm:$0xff] %v3803_v58  ;;  %v3808_v11 = vld [vmem:[%s4465_s2 + $0x3c8] sm:$0xff]  ;;  %v3813_v14 = vld [vmem:[%s4465_s2 + $0x3d0] sm:$0xff] }
  0x75   :  { %5049 = vst [vmem:[#allocation213_spill] sm:$0xff] %v3808_v11  ;;  %5050 = vst [vmem:[#allocation214_spill] sm:$0xff] %v3813_v14  ;;  %v3818_v3 = vld [vmem:[%s4465_s2 + $0x3d8] sm:$0xff]  ;;  %v3823_v7 = vld [vmem:[%s4465_s2 + $0x3e0] sm:$0xff] }
  0x76   :  { %5051 = vst [vmem:[#allocation215_spill] sm:$0xff] %v3818_v3  ;;  %5052 = vst [vmem:[#allocation216_spill] sm:$0xff] %v3823_v7  ;;  %v3828_v58 = vld [vmem:[%s4465_s2 + $0x3e8] sm:$0xff]  ;;  %v3833_v11 = vld [vmem:[%s4465_s2 + $0x3f0] sm:$0xff]  ;;  %v3840_v3 = vmov 0.0  }
  0x77   :  { %5053 = vst [vmem:[#allocation217_spill] sm:$0xff] %v3828_v58  ;;  %5054 = vst [vmem:[#allocation218_spill] sm:$0xff] %v3833_v11  ;;  %v3838_v14 = vld [vmem:[%s4465_s2 + $0x3f8] sm:$0xff] }
  0x78   :  { %5055 = vst [vmem:[#allocation219_spill] sm:$0xff] %v3838_v14 }
  0x79 LB: > { %v5056_v17 = vld [vmem:[#allocation19_spill] sm:$0xff]  ;;  %v5057_v16 = vld [vmem:[#allocation18_spill] sm:$0xff]  ;;  %v5058_v15 = vld [vmem:[#allocation89_spill] sm:$0xff]  ;;  %5073 = vst [vmem:[#allocation220_spill] sm:$0xff] %v2512_v3  ;;  %v2184_v3 = vcombine.high %v2808_v49, %v2828_v53  ;;  %v2183_v22 = vcombine.low %v2808_v49, %v2828_v53  ;;  %s2401_s2 = sshll.u32 %s2520_s23, 5  ;;  %s2402_s27 = sshll.u32 %s2520_s23, 2  ;;  %v2516_v23 = vphi %v3842_v23, %v1177_v23   ;;  %v2512_v3 = vphi %v3840_v3, %v1175_v3   ;;  %s2520_s23 = sphi %s3844_s23, %s277_s23  }
  0x7a   : > { %v5059_v13 = vld [vmem:[#allocation15_spill] sm:$0xff]  ;;  %v5060_v12 = vld [vmem:[#allocation14_spill] sm:$0xff]  ;;  %v5061_v10 = vld [vmem:[#allocation65_spill] sm:$0xff]  ;;  %s282_s26 = scalar_lea.vmem %s4461_s0, %s2401_s2  ;;  %s1180_s30 = scalar_lea.vmem %s4463_s3, %s2402_s27 }
  0x7b   : > { %v5062_v9 = vld [vmem:[#allocation11_spill] sm:$0xff]  ;;  %v5063_v8 = vld [vmem:[#allocation10_spill] sm:$0xff]  ;;  %v5068_v41 = vld [vmem:[#allocation33_spill] sm:$0xff]  ;;  %s277_s23 = sadd.s32 1, %s2520_s23  }
  0x7c   : > { %v5064_v5 = vld [vmem:[#allocation7_spill] sm:$0xff]  ;;  %v5065_v4 = vld [vmem:[#allocation6_spill] sm:$0xff]  ;;  %v5069_v40 = vld [vmem:[#allocation32_spill] sm:$0xff]  ;;  %p274_p0 = scmp.ge.s32.totalorder %s277_s23, 2  }
  0x7d   : > { %v5066_v1 = vld [vmem:[#allocation3_spill] sm:$0xff]  ;;  %v5067_v0 = vld [vmem:[#allocation2_spill] sm:$0xff]  ;;  %v5071_v57 = vld [vmem:[#allocation44_spill] sm:$0xff]  ;;  %s4154_s5 = smov (%p274_p0), 0  }
  0x7e   : > { %v5070_v48 = vld [vmem:[#allocation38_spill] sm:$0xff]  ;;  %v5072_v56 = vld [vmem:[#allocation43_spill] sm:$0xff]  ;;  %v2192_v14 = vcombine.high %v5071_v57, %v2868_v61  ;;  %v2191_v7 = vcombine.low %v5071_v57, %v2868_v61  ;;  %v2176_v57 = vcombine.high %v5068_v41, %v2788_v45 }
  0x7f   : > { %v2190_v11 = vcombine.high %v5072_v56, %v2863_v60  ;;  %v2189_v58 = vcombine.low %v5072_v56, %v2863_v60  ;;  %v2182_v6 = vcombine.high %v5070_v48, %v2823_v52  ;;  %v2181_v2 = vcombine.low %v5070_v48, %v2823_v52 }
  0x80   : > { %979 = vmatprep.subr.bf16.mxu1 %v2192_v14  ;;  %v2174_v56 = vcombine.high %v5069_v40, %v2783_v44  ;;  %v2534_v14 = vmov 1983009808   ;;  %v289_v48 = vlaneseq }
  0x81   : > { %938 = vmatprep.subr.bf16.mxu0 %v2190_v11  ;;  %980 = vmatpush1.bf16.msra.mxu1 %v2191_v7  ;;  %v2173_v11 = vcombine.low %v5069_v40, %v2783_v44  ;;  %v2175_v7 = vcombine.low %v5068_v41, %v2788_v45 }
  0x82   : > { %939 = vmatpush1.bf16.msra.mxu0 %v2189_v58  ;;  %981 = vmatprep.subr.bf16.mxu1 %v2184_v3  ;;  %v2168_v3 = vcombine.high %v2728_v33, %v2748_v37  ;;  %v287_v58 = vunpack.c.l.s4 %v2534_v14  ;;  %v290_v41 = vshrl.u32 %v289_v48, 7  ;;  %v2149_v48 = vcombine.low %v5057_v16, %v2663_v20 }
  0x83   : > { %940 = vmatprep.subr.bf16.mxu0 %v2182_v6  ;;  %v2166_v6 = vcombine.high %v2723_v32, %v2743_v36 }
  0x84   : > { %v288_v40 = vunpack.c.0.s8 %v287_v58  ;;  %v2151_v58 = vcombine.low %v5056_v17, %v2668_v21 }
  0x85   : > { %982 = vmatpush1.bf16.msra.mxu1 %v2183_v22  ;;  %v2167_v22 = vcombine.low %v2728_v33, %v2748_v37 }
  0x86   : > { %941 = vmatpush1.bf16.msra.mxu0 %v2181_v2  ;;  %983 = vmatprep.subr.bf16.mxu1 %v2176_v57  ;;  %v2165_v2 = vcombine.low %v2723_v32, %v2743_v36  ;;  %v2160_v57 = vcombine.high %v2688_v25, %v2708_v29  ;;  %v3897_v14 = vsub.s32 %v288_v40, %v290_v41 }
  0x87   : > { %942 = vmatprep.subr.bf16.mxu0 %v2174_v56  ;;  %v2158_v56 = vcombine.high %v2683_v24, %v2703_v28  ;;  %v2141_v41 = vcombine.low %v5063_v8, %v5060_v12 }
  0x89   : > { %984 = vmatpush1.bf16.msra.mxu1 %v2175_v7  ;;  %v2159_v7 = vcombine.low %v2688_v25, %v2708_v29 }
  0x8a   : > { %943 = vmatpush1.bf16.msra.mxu0 %v2173_v11  ;;  %985 = vmatprep.subr.bf16.mxu1 %v2168_v3  ;;  %v2157_v11 = vcombine.low %v2683_v24, %v2703_v28  ;;  %v2152_v3 = vcombine.high %v5056_v17, %v2668_v21 }
  0x8b   : > { %944 = vmatprep.subr.bf16.mxu0 %v2166_v6  ;;  %v2150_v6 = vcombine.high %v5057_v16, %v2663_v20 }
  0x8d   : > { %986 = vmatpush1.bf16.msra.mxu1 %v2167_v22  ;;  %v2144_v22 = vcombine.high %v5062_v9, %v5059_v13 }
  0x8e   : > { %945 = vmatpush1.bf16.msra.mxu0 %v2165_v2  ;;  %987 = vmatprep.subr.bf16.mxu1 %v2160_v57  ;;  %v2142_v2 = vcombine.high %v5063_v8, %v5060_v12  ;;  %v2143_v57 = vcombine.low %v5062_v9, %v5059_v13  ;;  %v5082_v8 = vld [vmem:[#allocation49_spill] sm:$0xff]  ;;  %v5084_v9 = vld [vmem:[#allocation50_spill] sm:$0xff] }
  0x8f   : > { %946 = vmatprep.subr.bf16.mxu0 %v2158_v56  ;;  %v3908_v56 = vrot.slane %v2516_v23, %v3897_v14  ;;  %v2136_v23 = vcombine.high %v5066_v1, %v5064_v5  ;;  %v5088_v12 = vld [vmem:[#allocation46_spill] sm:$0xff] }
  0x91   : > { %988 = vmatpush1.bf16.msra.mxu1 %v2159_v7  ;;  %v293_v40 = vcombine.high %v3908_v56, %v3908_v56 }
  0x92   : > { %947 = vmatpush1.bf16.msra.mxu0 %v2157_v11  ;;  %989 = vmatprep.subr.bf16.mxu1 %v2152_v3  ;;  %v2134_v11 = vcombine.high %v5067_v0, %v5065_v4  ;;  %v2135_v3 = vcombine.low %v5066_v1, %v5064_v5  ;;  %v5079_v1 = vld [vmem:[#allocation58_spill] sm:$0xff] }
  0x93   : > { %948 = vmatprep.subr.bf16.mxu0 %v2150_v6  ;;  %v3920_v7 = vpack.c.bf16 %v293_v40, %v293_v40  ;;  %v2133_v6 = vcombine.low %v5067_v0, %v5065_v4  ;;  %v2246_v40 = vcombine.high %v3123_v42, %v3143_v51  ;;  %v5077_v0 = vld [vmem:[#allocation57_spill] sm:$0xff] }
  0x95   : > { %990 = vmatpush1.bf16.msra.mxu1 %v2151_v58  ;;  %970 = vmatprep.mubr.bf16.mxu0 %v3920_v7  ;;  %v2256_v58 = vcombine.high %v3168_v62, %v5058_v15 }
  0x96   : > { %949 = vmatpush1.bf16.msra.mxu0 %v2149_v48  ;;  %991 = vmatprep.subr.bf16.mxu1 %v2144_v22  ;;  %v2254_v48 = vcombine.high %v3163_v50, %v3183_v59  ;;  %v2255_v22 = vcombine.low %v3168_v62, %v5058_v15 }
  0x97   : > { %950 = vmatprep.subr.bf16.mxu0 %v2142_v2  ;;  %1011 = vmatprep.mubr.bf16.mxu1 %v3920_v7  ;;  %v2253_v2 = vcombine.low %v3163_v50, %v3183_v59 }
  0x99   : > { %992 = vmatpush1.bf16.msra.mxu1 %v2143_v57  ;;  %v2245_v57 = vcombine.low %v3123_v42, %v3143_v51 }
  0x9a   : > { %951 = vmatpush1.bf16.msra.mxu0 %v2141_v41  ;;  %993 = vmatprep.subr.bf16.mxu1 %v2136_v23  ;;  %v2248_v41 = vcombine.high %v3128_v54, %v3148_v63  ;;  %v2238_v23 = vcombine.high %v3083_v34, %v3103_v43 }
  0x9b   : > { %952 = vmatprep.subr.bf16.mxu0 %v2134_v11  ;;  %v2247_v11 = vcombine.low %v3128_v54, %v3148_v63 }
  0x9d   : > { %994 = vmatpush1.bf16.msra.mxu1 %v2135_v3  ;;  %v2237_v3 = vcombine.low %v3083_v34, %v3103_v43 }
  0x9e   : > { %953 = vmatpush1.bf16.msra.mxu0 %v2133_v6  ;;  %995 = vmatprep.subr.bf16.mxu1 %v2256_v58  ;;  %v2240_v6 = vcombine.high %v3088_v46, %v3108_v55  ;;  %v2230_v58 = vcombine.high %v3043_v26, %v3063_v35 }
  0x9f   : > { %954 = vmatprep.subr.bf16.mxu0 %v2254_v48  ;;  %v2239_v48 = vcombine.low %v3088_v46, %v3108_v55 }
  0xa1   : > { %996 = vmatpush2.bf16.msra.mxu1 %v2255_v22  ;;  %v2229_v22 = vcombine.low %v3043_v26, %v3063_v35 }
  0xa2   : > { %955 = vmatpush2.bf16.msra.mxu0 %v2253_v2  ;;  %997 = vmatprep.subr.bf16.mxu1 %v2248_v41  ;;  %v2232_v2 = vcombine.high %v3048_v38, %v3068_v47  ;;  %v2222_v41 = vcombine.high %v3003_v18, %v3023_v27 }
  0xa3   : > { %956 = vmatprep.subr.bf16.mxu0 %v2246_v40  ;;  %v2231_v40 = vcombine.low %v3048_v38, %v3068_v47 }
  0xa5   : > { %998 = vmatpush2.bf16.msra.mxu1 %v2247_v11  ;;  %v2221_v11 = vcombine.low %v3003_v18, %v3023_v27 }
  0xa6   : > { %957 = vmatpush2.bf16.msra.mxu0 %v2245_v57  ;;  %999 = vmatprep.subr.bf16.mxu1 %v2240_v6  ;;  %v2224_v57 = vcombine.high %v3008_v30, %v3028_v39  ;;  %v2214_v6 = vcombine.high %v5061_v10, %v2983_v19 }
  0xa7   : > { %958 = vmatprep.subr.bf16.mxu0 %v2238_v23  ;;  %v2223_v23 = vcombine.low %v3008_v30, %v3028_v39 }
  0xa9   : > { %1000 = vmatpush2.bf16.msra.mxu1 %v2239_v48 }
  0xaa   : > { %959 = vmatpush2.bf16.msra.mxu0 %v2237_v3  ;;  %1001 = vmatprep.subr.bf16.mxu1 %v2232_v2  ;;  %v5074_v3 = vld [vmem:[#allocation66_spill] sm:$0xff]  ;;  %v2213_v2 = vcombine.low %v5061_v10, %v2983_v19 }
  0xab   : > { %960 = vmatprep.subr.bf16.mxu0 %v2230_v58  ;;  %v5075_v48 = vmov %v5074_v3  ;;  %v2216_v58 = vcombine.high %v5074_v3, %v2988_v31  ;;  %v5080_v3 = vld [vmem:[#allocation53_spill] sm:$0xff] }
  0xac   : > { %v5081_v5 = vmov %v5080_v3 }
  0xad   : > { %1002 = vmatpush2.bf16.msra.mxu1 %v2231_v40  ;;  %v5076_v40 = vld [vmem:[#allocation61_spill] sm:$0xff] }
  0xae   : > { %961 = vmatpush2.bf16.msra.mxu0 %v2229_v22  ;;  %1003 = vmatprep.subr.bf16.mxu1 %v2224_v57  ;;  %v2215_v22 = vcombine.low %v5075_v48, %v2988_v31  ;;  %v5078_v57 = vld [vmem:[#allocation62_spill] sm:$0xff] }
  0xaf   : > { %962 = vmatprep.subr.bf16.mxu0 %v2222_v41  ;;  %v2206_v41 = vcombine.high %v5077_v0, %v5076_v40  ;;  %v2208_v4 = vcombine.high %v5079_v1, %v5078_v57 }
  0xb1   : > { %1004 = vmatpush2.bf16.msra.mxu1 %v2223_v23  ;;  %v2207_v23 = vcombine.low %v5079_v1, %v5078_v57  ;;  %v5086_v1 = vld [vmem:[#allocation45_spill] sm:$0xff] }
  0xb2   : > { %963 = vmatpush2.bf16.msra.mxu0 %v2221_v11  ;;  %1005 = vmatprep.subr.bf16.mxu1 %v2216_v58  ;;  %v2205_v11 = vcombine.low %v5077_v0, %v5076_v40  ;;  %v5083_v58 = vld [vmem:[#allocation54_spill] sm:$0xff]  ;;  %v5085_v0 = vld [vmem:[#allocation47_spill] sm:$0xff] }
  0xb3   : > { %964 = vmatprep.subr.bf16.mxu0 %v2214_v6  ;;  %v2198_v6 = vcombine.high %v5082_v8, %v5080_v3  ;;  %v2200_v10 = vcombine.high %v5084_v9, %v5083_v58  ;;  %v3998_v3 = vpack.c.bf16 %v3908_v56, %v3908_v56 }
  0xb5   : > { %1006 = vmatpush2.bf16.msra.mxu1 %v2215_v22  ;;  %v2199_v22 = vcombine.low %v5084_v9, %v5083_v58  ;;  %v5092_v9 = vld [vmem:[#allocation40_spill] sm:$0xff] }
  0xb6   : > { %965 = vmatpush2.bf16.msra.mxu0 %v2213_v2  ;;  %1007 = vmatprep.subr.bf16.mxu1 %v2208_v4  ;;  %v2197_v2 = vcombine.low %v5082_v8, %v5081_v5  ;;  %v5087_v4 = vld [vmem:[#allocation48_spill] sm:$0xff]  ;;  %v5091_v8 = vld [vmem:[#allocation42_spill] sm:$0xff] }
  0xb7   : > { %966 = vmatprep.subr.bf16.mxu0 %v2206_v41  ;;  %v2194_v41 = vcombine.high %v5086_v1, %v5085_v0  ;;  %v2196_v13 = vcombine.high %v5088_v12, %v5087_v4  ;;  %v2188_v15 = vcombine.high %v5092_v9, %v5091_v8 }
  0xb9   : > { %1008 = vmatpush2.bf16.msra.mxu1 %v2207_v23  ;;  %v2195_v23 = vcombine.low %v5088_v12, %v5087_v4 }
  0xba   : > { %967 = vmatpush2.bf16.msra.mxu0 %v2205_v11  ;;  %1009 = vmatprep.subr.bf16.mxu1 %v2200_v10  ;;  %v2193_v11 = vcombine.low %v5086_v1, %v5085_v0  ;;  %v5089_v10 = vld [vmem:[#allocation41_spill] sm:$0xff]  ;;  %v5096_v1 = vld [vmem:[#allocation35_spill] sm:$0xff] }
  0xbb   : > { %968 = vmatprep.subr.bf16.mxu0 %v2198_v6  ;;  %v5090_v6 = vld [vmem:[#allocation39_spill] sm:$0xff]  ;;  %v5095_v0 = vld [vmem:[#allocation37_spill] sm:$0xff] }
  0xbc   : > { %v2186_v5 = vcombine.high %v5090_v6, %v5089_v10  ;;  %v2185_v56 = vcombine.low %v5090_v6, %v5089_v10  ;;  %v2180_v4 = vcombine.high %v5096_v1, %v5095_v0 }
  0xbd   : > { %1010 = vmatpush2.bf16.msra.mxu1 %v2199_v22  ;;  %v5094_v22 = vld [vmem:[#allocation34_spill] sm:$0xff] }
  0xbe   : > { %969 = vmatpush2.bf16.msra.mxu0 %v2197_v2  ;;  %1061 = vmatprep.subr.bf16.mxu1 %v2196_v13  ;;  %v2187_v2 = vcombine.low %v5092_v9, %v5091_v8  ;;  %v5093_v13 = vld [vmem:[#allocation36_spill] sm:$0xff]  ;;  %v5099_v8 = vld [vmem:[#allocation31_spill] sm:$0xff]  ;;  %v5100_v9 = vld [vmem:[#allocation29_spill] sm:$0xff] }
  0xbf   : > { %1020 = vmatprep.subr.bf16.mxu0 %v2194_v41  ;;  %v2178_v41 = vcombine.high %v5094_v22, %v5093_v13  ;;  %v2172_v10 = vcombine.high %v5100_v9, %v5099_v8 }
  0xc0   : > { %1012 = vmatmul.mubr.bf16.vlgmr.msra.gmra.mxu1 %v3998_v3 }
  0xc1   : > { %971 = vmatmul.mubr.bf16.vlgmr.msra.gmra.mxu0 %v3998_v3  ;;  %1062 = vmatpush1.bf16.msra.mxu1 %v2195_v23  ;;  %v2179_v23 = vcombine.low %v5096_v1, %v5095_v0  ;;  %v5102_v0 = vld [vmem:[#allocation24_spill] sm:$0xff]  ;;  %v5104_v1 = vld [vmem:[#allocation25_spill] sm:$0xff] }
  0xc2   : > { %1021 = vmatpush1.bf16.msra.mxu0 %v2193_v11  ;;  %1063 = vmatprep.subr.bf16.mxu1 %v2188_v15  ;;  %v2177_v11 = vcombine.low %v5094_v22, %v5093_v13  ;;  %v5098_v15 = vld [vmem:[#allocation28_spill] sm:$0xff] }
  0xc3   : > { %1022 = vmatprep.subr.bf16.mxu0 %v2186_v5  ;;  %1052 = vmatprep.mubr.bf16.mxu0 %v3920_v7  ;;  %v5097_v5 = vld [vmem:[#allocation30_spill] sm:$0xff] }
  0xc4   : > { %1093 = vmatprep.mubr.bf16.mxu1 %v3920_v7  ;;  %v2170_v6 = vcombine.high %v5098_v15, %v5097_v5  ;;  %v2169_v7 = vcombine.low %v5098_v15, %v5097_v5  ;;  %v5105_v5 = vld [vmem:[#allocation22_spill] sm:$0xff] }
  0xc5   : > { %1064 = vmatpush1.bf16.msra.mxu1 %v2187_v2  ;;  %v5101_v2 = vld [vmem:[#allocation26_spill] sm:$0xff] }
  0xc6   : > { %1023 = vmatpush1.bf16.msra.mxu0 %v2185_v56  ;;  %1065 = vmatprep.subr.bf16.mxu1 %v2180_v4  ;;  %v2171_v56 = vcombine.low %v5100_v9, %v5099_v8  ;;  %v5103_v4 = vld [vmem:[#allocation27_spill] sm:$0xff]  ;;  %v5106_v8 = vld [vmem:[#allocation20_spill] sm:$0xff]  ;;  %v5108_v9 = vld [vmem:[#allocation21_spill] sm:$0xff] }
  0xc7   : > { %1024 = vmatprep.subr.bf16.mxu0 %v2178_v41  ;;  %v2162_v41 = vcombine.high %v5102_v0, %v5101_v2  ;;  %v2164_v12 = vcombine.high %v5104_v1, %v5103_v4 }
  0xc9   : > { %1066 = vmatpush1.bf16.msra.mxu1 %v2179_v23  ;;  %v2163_v23 = vcombine.low %v5104_v1, %v5103_v4  ;;  %v5110_v1 = vld [vmem:[#allocation12_spill] sm:$0xff] }
  0xca   : > { %1025 = vmatpush1.bf16.msra.mxu0 %v2177_v11  ;;  %1067 = vmatprep.subr.bf16.mxu1 %v2172_v10  ;;  %v2161_v11 = vcombine.low %v5102_v0, %v5101_v2  ;;  %v5107_v10 = vld [vmem:[#allocation23_spill] sm:$0xff]  ;;  %v5109_v0 = vld [vmem:[#allocation16_spill] sm:$0xff]  ;;  %v5112_v2 = vld [vmem:[#allocation13_spill] sm:$0xff] }
  0xcb   : > { %1026 = vmatprep.subr.bf16.mxu0 %v2170_v6  ;;  %v2154_v6 = vcombine.high %v5106_v8, %v5105_v5  ;;  %v2156_v13 = vcombine.high %v5108_v9, %v5107_v10 }
  0xcd   : > { %1068 = vmatpush1.bf16.msra.mxu1 %v2171_v56  ;;  %v2155_v56 = vcombine.low %v5108_v9, %v5107_v10  ;;  %v5116_v9 = vld [vmem:[#allocation5_spill] sm:$0xff] }
  0xce   : > { %1027 = vmatpush1.bf16.msra.mxu0 %v2169_v7  ;;  %1069 = vmatprep.subr.bf16.mxu1 %v2164_v12  ;;  %v2153_v7 = vcombine.low %v5106_v8, %v5105_v5  ;;  %v5111_v12 = vld [vmem:[#allocation17_spill] sm:$0xff]  ;;  %v5113_v5 = vld [vmem:[#allocation8_spill] sm:$0xff] }
  0xcf   : > { %1028 = vmatprep.subr.bf16.mxu0 %v2162_v41  ;;  %v2146_v41 = vcombine.high %v5110_v1, %v5109_v0  ;;  %v2148_v4 = vcombine.high %v5112_v2, %v5111_v12  ;;  %v5114_v8 = vld [vmem:[#allocation4_spill] sm:$0xff] }
  0xd1   : > { %1070 = vmatpush1.bf16.msra.mxu1 %v2163_v23  ;;  %v2147_v23 = vcombine.low %v5112_v2, %v5111_v12  ;;  %v5120_v2 = vld [vmem:[#allocation88_spill] sm:$0xff] }
  0xd2   : > { %1029 = vmatpush1.bf16.msra.mxu0 %v2161_v11  ;;  %1071 = vmatprep.subr.bf16.mxu1 %v2156_v13  ;;  %v2145_v11 = vcombine.low %v5110_v1, %v5109_v0  ;;  %v5115_v13 = vld [vmem:[#allocation9_spill] sm:$0xff]  ;;  %v5117_v0 = vld [vmem:[#allocation90_spill] sm:$0xff]  ;;  %v5118_v1 = vld [vmem:[#allocation87_spill] sm:$0xff] }
  0xd3   : > { %1030 = vmatprep.subr.bf16.mxu0 %v2154_v6  ;;  %v2138_v6 = vcombine.high %v5114_v8, %v5113_v5  ;;  %v2140_v10 = vcombine.high %v5116_v9, %v5115_v13 }
  0xd5   : > { %1072 = vmatpush1.bf16.msra.mxu1 %v2155_v56  ;;  %v2139_v56 = vcombine.low %v5116_v9, %v5115_v13  ;;  %v5124_v9 = vld [vmem:[#allocation84_spill] sm:$0xff] }
  0xd6   : > { %1031 = vmatpush1.bf16.msra.mxu0 %v2153_v7  ;;  %1073 = vmatprep.subr.bf16.mxu1 %v2148_v4  ;;  %v2137_v7 = vcombine.low %v5114_v8, %v5113_v5  ;;  %v5119_v4 = vld [vmem:[#allocation91_spill] sm:$0xff]  ;;  %v5121_v5 = vld [vmem:[#allocation85_spill] sm:$0xff] }
  0xd7   : > { %1032 = vmatprep.subr.bf16.mxu0 %v2146_v41  ;;  %v2258_v41 = vcombine.high %v5118_v1, %v5117_v0  ;;  %v2260_v12 = vcombine.high %v5120_v2, %v5119_v4  ;;  %v5122_v8 = vld [vmem:[#allocation83_spill] sm:$0xff] }
  0xd9   : > { %1074 = vmatpush1.bf16.msra.mxu1 %v2147_v23  ;;  %v2259_v23 = vcombine.low %v5120_v2, %v5119_v4  ;;  %v5128_v2 = vld [vmem:[#allocation80_spill] sm:$0xff] }
  0xda   : > { %1033 = vmatpush1.bf16.msra.mxu0 %v2145_v11  ;;  %1075 = vmatprep.subr.bf16.mxu1 %v2140_v10  ;;  %v2257_v11 = vcombine.low %v5118_v1, %v5117_v0  ;;  %v5123_v10 = vld [vmem:[#allocation86_spill] sm:$0xff]  ;;  %v5125_v0 = vld [vmem:[#allocation81_spill] sm:$0xff]  ;;  %v5126_v1 = vld [vmem:[#allocation79_spill] sm:$0xff] }
  0xdb   : > { %1034 = vmatprep.subr.bf16.mxu0 %v2138_v6  ;;  %v2250_v6 = vcombine.high %v5122_v8, %v5121_v5  ;;  %v2252_v13 = vcombine.high %v5124_v9, %v5123_v10 }
  0xdd   : > { %1076 = vmatpush1.bf16.msra.mxu1 %v2139_v56  ;;  %v2251_v56 = vcombine.low %v5124_v9, %v5123_v10  ;;  %v5132_v9 = vld [vmem:[#allocation76_spill] sm:$0xff] }
  0xde   : > { %1035 = vmatpush1.bf16.msra.mxu0 %v2137_v7  ;;  %1077 = vmatprep.subr.bf16.mxu1 %v2260_v12  ;;  %v2249_v7 = vcombine.low %v5122_v8, %v5121_v5  ;;  %v5127_v12 = vld [vmem:[#allocation82_spill] sm:$0xff]  ;;  %v5129_v5 = vld [vmem:[#allocation77_spill] sm:$0xff]  ;;  %v5130_v8 = vld [vmem:[#allocation75_spill] sm:$0xff] }
  0xdf   : > { %1036 = vmatprep.subr.bf16.mxu0 %v2258_v41  ;;  %v2242_v41 = vcombine.high %v5126_v1, %v5125_v0  ;;  %v2244_v4 = vcombine.high %v5128_v2, %v5127_v12 }
  0xe1   : > { %1078 = vmatpush2.bf16.msra.mxu1 %v2259_v23  ;;  %v2243_v23 = vcombine.low %v5128_v2, %v5127_v12  ;;  %v5136_v2 = vld [vmem:[#allocation72_spill] sm:$0xff] }
  0xe2   : > { %1037 = vmatpush2.bf16.msra.mxu0 %v2257_v11  ;;  %1079 = vmatprep.subr.bf16.mxu1 %v2252_v13  ;;  %v2241_v11 = vcombine.low %v5126_v1, %v5125_v0  ;;  %v5131_v13 = vld [vmem:[#allocation78_spill] sm:$0xff]  ;;  %v5133_v0 = vld [vmem:[#allocation73_spill] sm:$0xff]  ;;  %v5134_v1 = vld [vmem:[#allocation71_spill] sm:$0xff] }
  0xe3   : > { %1038 = vmatprep.subr.bf16.mxu0 %v2250_v6  ;;  %v2234_v6 = vcombine.high %v5130_v8, %v5129_v5  ;;  %v2236_v10 = vcombine.high %v5132_v9, %v5131_v13 }
  0xe5   : > { %1080 = vmatpush2.bf16.msra.mxu1 %v2251_v56  ;;  %v2235_v56 = vcombine.low %v5132_v9, %v5131_v13  ;;  %v5140_v9 = vld [vmem:[#allocation68_spill] sm:$0xff] }
  0xe6   : > { %1039 = vmatpush2.bf16.msra.mxu0 %v2249_v7  ;;  %1081 = vmatprep.subr.bf16.mxu1 %v2244_v4  ;;  %v2233_v7 = vcombine.low %v5130_v8, %v5129_v5  ;;  %v5135_v4 = vld [vmem:[#allocation74_spill] sm:$0xff]  ;;  %v5137_v5 = vld [vmem:[#allocation69_spill] sm:$0xff]  ;;  %v5138_v8 = vld [vmem:[#allocation67_spill] sm:$0xff] }
  0xe7   : > { %1040 = vmatprep.subr.bf16.mxu0 %v2242_v41  ;;  %v2226_v41 = vcombine.high %v5134_v1, %v5133_v0  ;;  %v2228_v12 = vcombine.high %v5136_v2, %v5135_v4 }
  0xe9   : > { %1082 = vmatpush2.bf16.msra.mxu1 %v2243_v23  ;;  %v2227_v23 = vcombine.low %v5136_v2, %v5135_v4  ;;  %v5144_v2 = vld [vmem:[#allocation60_spill] sm:$0xff] }
  0xea   : > { %1041 = vmatpush2.bf16.msra.mxu0 %v2241_v11  ;;  %1083 = vmatprep.subr.bf16.mxu1 %v2236_v10  ;;  %v2225_v11 = vcombine.low %v5134_v1, %v5133_v0  ;;  %v5139_v10 = vld [vmem:[#allocation70_spill] sm:$0xff]  ;;  %v5141_v0 = vld [vmem:[#allocation63_spill] sm:$0xff] }
  0xeb   : > { %1042 = vmatprep.subr.bf16.mxu0 %v2234_v6  ;;  %v2218_v6 = vcombine.high %v5138_v8, %v5137_v5  ;;  %v2220_v13 = vcombine.high %v5140_v9, %v5139_v10  ;;  %v5142_v1 = vld [vmem:[#allocation59_spill] sm:$0xff] }
  0xed   : > { %1084 = vmatpush2.bf16.msra.mxu1 %v2235_v56  ;;  %v2219_v56 = vcombine.low %v5140_v9, %v5139_v10  ;;  %v5148_v9 = vld [vmem:[#allocation52_spill] sm:$0xff] }
  0xee   : > { %1043 = vmatpush2.bf16.msra.mxu0 %v2233_v7  ;;  %1085 = vmatprep.subr.bf16.mxu1 %v2228_v12  ;;  %v2217_v7 = vcombine.low %v5138_v8, %v5137_v5  ;;  %v5143_v12 = vld [vmem:[#allocation64_spill] sm:$0xff]  ;;  %v5145_v5 = vld [vmem:[#allocation55_spill] sm:$0xff] }
  0xef   : > { %1044 = vmatprep.subr.bf16.mxu0 %v2226_v41  ;;  %v2210_v41 = vcombine.high %v5142_v1, %v5141_v0  ;;  %v2212_v4 = vcombine.high %v5144_v2, %v5143_v12  ;;  %v5146_v8 = vld [vmem:[#allocation51_spill] sm:$0xff] }
  0xf1   : > { %1086 = vmatpush2.bf16.msra.mxu1 %v2227_v23  ;;  %v2211_v23 = vcombine.low %v5144_v2, %v5143_v12 }
  0xf2   : > { %1045 = vmatpush2.bf16.msra.mxu0 %v2225_v11  ;;  %1087 = vmatprep.subr.bf16.mxu1 %v2220_v13  ;;  %v2209_v11 = vcombine.low %v5142_v1, %v5141_v0  ;;  %v5147_v13 = vld [vmem:[#allocation56_spill] sm:$0xff] }
  0xf3   : > { %1046 = vmatprep.subr.bf16.mxu0 %v2218_v6  ;;  %v2202_v6 = vcombine.high %v5146_v8, %v5145_v5  ;;  %v2204_v10 = vcombine.high %v5148_v9, %v5147_v13 }
  0xf5   : > { %1088 = vmatpush2.bf16.msra.mxu1 %v2219_v56  ;;  %v2203_v56 = vcombine.low %v5148_v9, %v5147_v13 }
  0xf6   : > { %1047 = vmatpush2.bf16.msra.mxu0 %v2217_v7  ;;  %1089 = vmatprep.subr.bf16.mxu1 %v2212_v4  ;;  %v2201_v7 = vcombine.low %v5146_v8, %v5145_v5 }
  0xf7   : > { %1048 = vmatprep.subr.bf16.mxu0 %v2210_v41 }
  0xf9   : > { %1090 = vmatpush2.bf16.msra.mxu1 %v2211_v23 }
  0xfa   : > { %1049 = vmatpush2.bf16.msra.mxu0 %v2209_v11  ;;  %1091 = vmatprep.subr.bf16.mxu1 %v2204_v10 }
  0xfb   : > { %1050 = vmatprep.subr.bf16.mxu0 %v2202_v6 }
  0xfd   : > { %1092 = vmatpush2.bf16.msra.mxu1 %v2203_v56 }
  0xfe   : > { %1051 = vmatpush2.bf16.msra.mxu0 %v2201_v7  ;;  %v283_v7 = vld [vmem:[%s282_s26] sm:$0xff] }
 0x100   : > { %1094 = vmatmul.mubr.bf16.vlgmr.msra.gmra.mxu1 %v3998_v3 }
 0x101   : > { %1053 = vmatmul.mubr.bf16.vlgmr.msra.gmra.mxu0 %v3998_v3 }
 0x180   : > { %v1013_v41 = vpop.f32.mrf.mxu1 }
 0x181   : > { %v972_v4 = vpop.f32.mrf.mxu0 }
 0x182   : > { %v1015_v11 = vpop.f32.mrf.mxu1 }
 0x183   : > { %v974_v0 = vpop.f32.mrf.mxu0  ;;  %v1111_v12 = vcombine.low %v1013_v41, %v1015_v11 }
 0x184   : > { %v1017_v1 = vpop.f32.mrf.mxu1  ;;  %v1110_v8 = vcombine.low %v972_v4, %v974_v0 }
 0x185   : > { %v976_v23 = vpop.f32.mrf.mxu0  ;;  %v1125_v10 = vrot.slane %v1111_v12, %v3897_v14 }
 0x186   : > { %v1018_v5 = vpop.f32.mrf.mxu1  ;;  %v1118_v6 = vrot.slane %v1110_v8, %v3897_v14 }
 0x187   : > { %v977_v2 = vpop.f32.mrf.mxu0 }
 0x188   : > { %v1126_v3 = vcombine.low %v1118_v6, %v1125_v10 }
 0x18a   : > { %v1146_v56 = vadd.f32 %v1126_v3, %v283_v7 }
 0x18c   : > { %v1155_v9 = vrot.slane %v1146_v56, 4  ;;  %v2261_v23 = vmul.f32 -1.442695, %v1146_v56 }
 0x18e   : > { %v2262_v13 = vmul.f32 -1.442695, %v1155_v9  ;;  %v284_v9 = vld [vmem:[%s282_s26 + $0x8] sm:$0xff] }
 0x190   : > { %2454 = vpow2.f32 %v2262_v13 }
 0x191   : > { %2456 = vpow2.f32 %v2261_v23 }
 0x19d   : > { %v2455_v5 = vpop.eup %2454 }
 0x19e   : > { %v2457_v8 = vpop.eup %2456  ;;  %v1160_v16 = vadd.f32 1.0, %v2455_v5 }
 0x19f   : > { %v1151_v3 = vadd.f32 1.0, %v2457_v8 }
 0x1a0   : > { %2458 = vrcp.f32 %v1160_v16 }
 0x1a1   : > { %2460 = vrcp.f32 %v1151_v3 }
 0x1c0   : > { %v1095_v0 = vpop.f32.mrf.mxu1 }
 0x1c1   : > { %v1054_v1 = vpop.f32.mrf.mxu0 }
 0x1c2   : > { %v1097_v4 = vpop.f32.mrf.mxu1 }
 0x1c3   : > { %v1056_v2 = vpop.f32.mrf.mxu0  ;;  %v1128_v12 = vcombine.low %v1095_v0, %v1097_v4  ;;  %v2459_v0 = vpop.eup %2458 }
 0x1c4   : > { %v1127_v41 = vcombine.low %v1054_v1, %v1056_v2  ;;  %v1099_v15 = vpop.f32.mrf.mxu1  ;;  %v5149_v2 = vld [vmem:[#allocation220_spill] sm:$0xff] }
 0x1c5   : > { %v1058_v11 = vpop.f32.mrf.mxu0  ;;  %v1142_v10 = vrot.slane %v1128_v12, %v3897_v14  ;;  %v2461_v15 = vpop.eup %2460  ;;  %v1173_v4 = vmul.f32 %v5149_v2, %v2459_v0 }
 0x1c6   : > { %v1135_v6 = vrot.slane %v1127_v41, %v3897_v14  ;;  %v1100_v13 = vpop.f32.mrf.mxu1 }
 0x1c7   : > { %v1059_v7 = vpop.f32.mrf.mxu0 }
 0x1c8   : > { %v1143_v56 = vcombine.low %v1135_v6, %v1142_v10  ;;  %v4152_v6 = vmov (%p274_p0), 0.0  }
 0x1ca   : > { %v1147_v23 = vadd.f32 %v1143_v56, %v284_v9 }
 0x1cc   : > { %2462 = vtanh.f32 %v1147_v23  ;;  %v1165_v17 = vrot.slane %v1147_v23, 4 }
 0x1ce   : > { %v2263_v1 = vmul.f32 -1.442695, %v1165_v17  ;;  %v4150_v17 = vmov (%p274_p0), 0.0  }
 0x1d0   : > { %2464 = vpow2.f32 %v2263_v1 }
 0x1d9   : > { %v2463_v5 = vpop.eup %2462 }
 0x1da   : > { %v1174_v41 = vmul.f32 %v2463_v5, %v2461_v15 }
 0x1dc   : > { %v1175_v3 = vadd.f32 %v1174_v41, %v1173_v4  }
 0x1dd   : > { %v2465_v8 = vpop.eup %2464 }
 0x1de   : > { %v1170_v12 = vadd.f32 1.0, %v2465_v8  ;;  %2466 = vtanh.f32 %v1175_v3 }
 0x1e0   : > { %2468 = vrcp.f32 %v1170_v12 }
 0x1eb   : > { %v2467_v16 = vpop.eup %2466 }
 0x1ec   :  { %276 = sbr.rel (!%p274_p0) target bundleno = 121 (0x79), region = 58 }
 0x1ed   : > { %v2469_v11 = vpop.eup %2468 }
 0x1ee   : > { %v1177_v23 = vmul.f32 %v2469_v11, %v2467_v16  }
 0x1f0   : > { %1181 = vst [vmem:[%s1180_s30] sm:$0xf] %v1177_v23 }
 0x1f1 LB: > { %v5150_v10 = vld [vmem:[#allocation152_spill] sm:$0xff]  ;;  %v5152_v13 = vld [vmem:[#allocation153_spill] sm:$0xff]  ;;  %v4208_v22 = vrot.slane %v2528_v6, %v3897_v14  ;;  %s1190_s3 = ssub.s32 1, %s2532_s5  ;;  %s1187_s5 = sadd.s32 1, %s2532_s5   ;;  %s2532_s5 = sphi %s4154_s5, %s1187_s5   ;;  %v2528_v6 = vphi %v4152_v6, %v2088_v6   ;;  %v2524_v17 = vphi %v4150_v17, %v2086_v17  }
 0x1f2   : > { %v5151_v9 = vld [vmem:[#allocation148_spill] sm:$0xff]  ;;  %v5153_v18 = vld [vmem:[#allocation149_spill] sm:$0xff]  ;;  %s2403_s6 = sshll.u32 %s1190_s3, 5  ;;  %s2404_s10 = sshll.u32 %s1190_s3, 2 }
 0x1f3   : > { %v2325_v7 = vcombine.high %v5151_v9, %v5150_v10  ;;  %v2327_v19 = vcombine.high %v5153_v18, %v5152_v13  ;;  %v2324_v20 = vcombine.low %v5151_v9, %v5150_v10  ;;  %v2326_v21 = vcombine.low %v5153_v18, %v5152_v13  ;;  %v5154_v24 = vld [vmem:[#allocation144_spill] sm:$0xff]  ;;  %v5156_v27 = vld [vmem:[#allocation145_spill] sm:$0xff]  ;;  %s1193_s9 = scalar_lea.vmem %s4461_s0, %s2403_s6  ;;  %s2091_s13 = scalar_lea.vmem %s4464_s4, %s2404_s10 }
 0x1f4   : > { %v5155_v25 = vld [vmem:[#allocation140_spill] sm:$0xff]  ;;  %v5157_v28 = vld [vmem:[#allocation141_spill] sm:$0xff]  ;;  %v1204_v4 = vcombine.high %v4208_v22, %v4208_v22  ;;  %p1184_p1 = scmp.ge.s32.totalorder %s1187_s5, 2  }
 0x1f5   : > { %v2317_v26 = vcombine.high %v5155_v25, %v5154_v24  ;;  %v2319_v29 = vcombine.high %v5157_v28, %v5156_v27  ;;  %1849 = vmatprep.subr.bf16.mxu0 %v2325_v7  ;;  %1890 = vmatprep.subr.bf16.mxu1 %v2327_v19  ;;  %v2316_v30 = vcombine.low %v5155_v25, %v5154_v24  ;;  %v5158_v32 = vld [vmem:[#allocation136_spill] sm:$0xff]  ;;  %v5160_v35 = vld [vmem:[#allocation137_spill] sm:$0xff] }
 0x1f6   : > { %1850 = vmatpush1.bf16.msra.mxu0 %v2324_v20  ;;  %1891 = vmatpush1.bf16.msra.mxu1 %v2326_v21  ;;  %v2318_v31 = vcombine.low %v5157_v28, %v5156_v27  ;;  %v5159_v33 = vld [vmem:[#allocation132_spill] sm:$0xff]  ;;  %v5161_v36 = vld [vmem:[#allocation133_spill] sm:$0xff]  ;;  %v4220_v41 = vpack.c.bf16 %v1204_v4, %v1204_v4 }
 0x1f7   : > { %1851 = vmatprep.subr.bf16.mxu0 %v2317_v26  ;;  %1892 = vmatprep.subr.bf16.mxu1 %v2319_v29  ;;  %v2309_v34 = vcombine.high %v5159_v33, %v5158_v32  ;;  %v2311_v37 = vcombine.high %v5161_v36, %v5160_v35  ;;  %v2308_v38 = vcombine.low %v5159_v33, %v5158_v32  ;;  %v5162_v42 = vld [vmem:[#allocation128_spill] sm:$0xff]  ;;  %v5164_v45 = vld [vmem:[#allocation129_spill] sm:$0xff] }
 0x1f8   : > { %v2310_v39 = vcombine.low %v5161_v36, %v5160_v35  ;;  %v5163_v43 = vld [vmem:[#allocation124_spill] sm:$0xff]  ;;  %v5165_v46 = vld [vmem:[#allocation125_spill] sm:$0xff]  ;;  %1881 = vmatprep.mubr.bf16.mxu0 %v4220_v41  ;;  %1922 = vmatprep.mubr.bf16.mxu1 %v4220_v41 }
 0x1f9   : > { %v2301_v44 = vcombine.high %v5163_v43, %v5162_v42  ;;  %v2303_v47 = vcombine.high %v5165_v46, %v5164_v45  ;;  %v2300_v49 = vcombine.low %v5163_v43, %v5162_v42  ;;  %v2302_v50 = vcombine.low %v5165_v46, %v5164_v45  ;;  %v5166_v51 = vld [vmem:[#allocation120_spill] sm:$0xff]  ;;  %v5168_v54 = vld [vmem:[#allocation121_spill] sm:$0xff] }
 0x1fa   : > { %1852 = vmatpush1.bf16.msra.mxu0 %v2316_v30  ;;  %1893 = vmatpush1.bf16.msra.mxu1 %v2318_v31  ;;  %v5167_v52 = vld [vmem:[#allocation116_spill] sm:$0xff]  ;;  %v5169_v55 = vld [vmem:[#allocation117_spill] sm:$0xff] }
 0x1fb   : > { %1853 = vmatprep.subr.bf16.mxu0 %v2309_v34  ;;  %1894 = vmatprep.subr.bf16.mxu1 %v2311_v37  ;;  %v2293_v53 = vcombine.high %v5167_v52, %v5166_v51  ;;  %v2295_v59 = vcombine.high %v5169_v55, %v5168_v54  ;;  %v2292_v60 = vcombine.low %v5167_v52, %v5166_v51  ;;  %v5170_v62 = vld [vmem:[#allocation112_spill] sm:$0xff]  ;;  %v5172_v40 = vld [vmem:[#allocation113_spill] sm:$0xff] }
 0x1fc   : > { %v2294_v61 = vcombine.low %v5169_v55, %v5168_v54  ;;  %v5171_v63 = vld [vmem:[#allocation108_spill] sm:$0xff]  ;;  %v5173_v57 = vld [vmem:[#allocation109_spill] sm:$0xff] }
 0x1fd   : > { %v2285_v48 = vcombine.high %v5171_v63, %v5170_v62  ;;  %v2287_v58 = vcombine.high %v5173_v57, %v5172_v40  ;;  %v2284_v3 = vcombine.low %v5171_v63, %v5170_v62  ;;  %v2286_v56 = vcombine.low %v5173_v57, %v5172_v40  ;;  %v5174_v23 = vld [vmem:[#allocation104_spill] sm:$0xff]  ;;  %v5176_v15 = vld [vmem:[#allocation105_spill] sm:$0xff] }
 0x1fe   : > { %1854 = vmatpush1.bf16.msra.mxu0 %v2308_v38  ;;  %1895 = vmatpush1.bf16.msra.mxu1 %v2310_v39  ;;  %v5175_v1 = vld [vmem:[#allocation100_spill] sm:$0xff]  ;;  %v5177_v5 = vld [vmem:[#allocation101_spill] sm:$0xff] }
 0x1ff   : > { %1855 = vmatprep.subr.bf16.mxu0 %v2301_v44  ;;  %1896 = vmatprep.subr.bf16.mxu1 %v2303_v47  ;;  %v2277_v0 = vcombine.high %v5175_v1, %v5174_v23  ;;  %v2279_v2 = vcombine.high %v5177_v5, %v5176_v15  ;;  %v2276_v8 = vcombine.low %v5175_v1, %v5174_v23  ;;  %v5178_v16 = vld [vmem:[#allocation96_spill] sm:$0xff]  ;;  %v5180_v7 = vld [vmem:[#allocation97_spill] sm:$0xff] }
 0x200   : > { %v2278_v12 = vcombine.low %v5177_v5, %v5176_v15  ;;  %v5179_v11 = vld [vmem:[#allocation92_spill] sm:$0xff]  ;;  %v5181_v19 = vld [vmem:[#allocation93_spill] sm:$0xff] }
 0x201   : > { %v2269_v6 = vcombine.high %v5179_v11, %v5178_v16  ;;  %v2271_v20 = vcombine.high %v5181_v19, %v5180_v7  ;;  %v2268_v21 = vcombine.low %v5179_v11, %v5178_v16  ;;  %v2270_v26 = vcombine.low %v5181_v19, %v5180_v7  ;;  %v5182_v29 = vld [vmem:[#allocation216_spill] sm:$0xff]  ;;  %v5184_v34 = vld [vmem:[#allocation217_spill] sm:$0xff] }
 0x202   : > { %1856 = vmatpush1.bf16.msra.mxu0 %v2300_v49  ;;  %1897 = vmatpush1.bf16.msra.mxu1 %v2302_v50  ;;  %v5183_v30 = vld [vmem:[#allocation212_spill] sm:$0xff]  ;;  %v5185_v37 = vld [vmem:[#allocation213_spill] sm:$0xff] }
 0x203   : > { %1857 = vmatprep.subr.bf16.mxu0 %v2293_v53  ;;  %1898 = vmatprep.subr.bf16.mxu1 %v2295_v59  ;;  %v2389_v31 = vcombine.high %v5183_v30, %v5182_v29  ;;  %v2391_v38 = vcombine.high %v5185_v37, %v5184_v34  ;;  %v2388_v39 = vcombine.low %v5183_v30, %v5182_v29  ;;  %v5186_v47 = vld [vmem:[#allocation208_spill] sm:$0xff]  ;;  %v5188_v53 = vld [vmem:[#allocation209_spill] sm:$0xff] }
 0x204   : > { %v2390_v44 = vcombine.low %v5185_v37, %v5184_v34  ;;  %v5187_v49 = vld [vmem:[#allocation204_spill] sm:$0xff]  ;;  %v5189_v59 = vld [vmem:[#allocation205_spill] sm:$0xff] }
 0x205   : > { %v2381_v50 = vcombine.high %v5187_v49, %v5186_v47  ;;  %v5208_v7 = vld [vmem:[#allocation168_spill] sm:$0xff]  ;;  %v5211_v9 = vld [vmem:[#allocation165_spill] sm:$0xff] }
 0x206   : > { %1858 = vmatpush1.bf16.msra.mxu0 %v2292_v60  ;;  %1899 = vmatpush1.bf16.msra.mxu1 %v2294_v61  ;;  %v2383_v60 = vcombine.high %v5189_v59, %v5188_v53  ;;  %v2380_v61 = vcombine.low %v5187_v49, %v5186_v47 }
 0x207   : > { %1859 = vmatprep.subr.bf16.mxu0 %v2285_v48  ;;  %1900 = vmatprep.subr.bf16.mxu1 %v2287_v58  ;;  %v2382_v48 = vcombine.low %v5189_v59, %v5188_v53  ;;  %v5190_v58 = vld [vmem:[#allocation200_spill] sm:$0xff] }
 0x20a   : > { %1860 = vmatpush1.bf16.msra.mxu0 %v2284_v3  ;;  %1901 = vmatpush1.bf16.msra.mxu1 %v2286_v56  ;;  %v5191_v3 = vld [vmem:[#allocation196_spill] sm:$0xff] }
 0x20b   : > { %1861 = vmatprep.subr.bf16.mxu0 %v2277_v0  ;;  %1902 = vmatprep.subr.bf16.mxu1 %v2279_v2  ;;  %v2373_v56 = vcombine.high %v5191_v3, %v5190_v58  ;;  %v5192_v0 = vld [vmem:[#allocation201_spill] sm:$0xff] }
 0x20c   : > { %v5193_v2 = vld [vmem:[#allocation197_spill] sm:$0xff] }
 0x20d   : > { %v2375_v4 = vcombine.high %v5193_v2, %v5192_v0 }
 0x20e   : > { %1862 = vmatpush1.bf16.msra.mxu0 %v2276_v8  ;;  %1903 = vmatpush1.bf16.msra.mxu1 %v2278_v12  ;;  %v2372_v8 = vcombine.low %v5191_v3, %v5190_v58  ;;  %v2374_v12 = vcombine.low %v5193_v2, %v5192_v0  ;;  %v5205_v2 = vld [vmem:[#allocation172_spill] sm:$0xff]  ;;  %v5207_v3 = vld [vmem:[#allocation173_spill] sm:$0xff] }
 0x20f   : > { %1863 = vmatprep.subr.bf16.mxu0 %v2269_v6  ;;  %1904 = vmatprep.subr.bf16.mxu1 %v2271_v20  ;;  %v5194_v6 = vld [vmem:[#allocation192_spill] sm:$0xff] }
 0x210   : > { %v5195_v20 = vmov %v5194_v6 }
 0x212   : > { %1864 = vmatpush1.bf16.msra.mxu0 %v2268_v21  ;;  %1905 = vmatpush1.bf16.msra.mxu1 %v2270_v26  ;;  %v5196_v21 = vld [vmem:[#allocation188_spill] sm:$0xff] }
 0x213   : > { %1865 = vmatprep.subr.bf16.mxu0 %v2389_v31  ;;  %1906 = vmatprep.subr.bf16.mxu1 %v2391_v38  ;;  %v2365_v26 = vcombine.high %v5196_v21, %v5194_v6  ;;  %v5197_v31 = vld [vmem:[#allocation193_spill] sm:$0xff]  ;;  %v5203_v6 = vld [vmem:[#allocation176_spill] sm:$0xff] }
 0x214   : > { %v5198_v38 = vld [vmem:[#allocation189_spill] sm:$0xff]  ;;  %v5204_v1 = vmov %v5203_v6 }
 0x216   : > { %1866 = vmatpush2.bf16.msra.mxu0 %v2388_v39  ;;  %1907 = vmatpush2.bf16.msra.mxu1 %v2390_v44  ;;  %v2367_v39 = vcombine.high %v5198_v38, %v5197_v31  ;;  %v2364_v44 = vcombine.low %v5196_v21, %v5195_v20 }
 0x217   : > { %1867 = vmatprep.subr.bf16.mxu0 %v2381_v50  ;;  %1908 = vmatprep.subr.bf16.mxu1 %v2383_v60  ;;  %v2366_v50 = vcombine.low %v5198_v38, %v5197_v31  ;;  %v5199_v60 = vld [vmem:[#allocation184_spill] sm:$0xff] }
 0x21a   : > { %1868 = vmatpush2.bf16.msra.mxu0 %v2380_v61  ;;  %1909 = vmatpush2.bf16.msra.mxu1 %v2382_v48  ;;  %v5200_v61 = vld [vmem:[#allocation180_spill] sm:$0xff] }
 0x21b   : > { %1869 = vmatprep.subr.bf16.mxu0 %v2373_v56  ;;  %1910 = vmatprep.subr.bf16.mxu1 %v2375_v4  ;;  %v2357_v48 = vcombine.high %v5200_v61, %v5199_v60  ;;  %v5201_v56 = vld [vmem:[#allocation185_spill] sm:$0xff] }
 0x21c   : > { %v5202_v4 = vld [vmem:[#allocation181_spill] sm:$0xff] }
 0x21d   : > { %v2359_v0 = vcombine.high %v5202_v4, %v5201_v56 }
 0x21e   : > { %1870 = vmatpush2.bf16.msra.mxu0 %v2372_v8  ;;  %1911 = vmatpush2.bf16.msra.mxu1 %v2374_v12  ;;  %v2356_v8 = vcombine.low %v5200_v61, %v5199_v60  ;;  %v2358_v12 = vcombine.low %v5202_v4, %v5201_v56  ;;  %v5209_v4 = vld [vmem:[#allocation164_spill] sm:$0xff] }
 0x21f   : > { %1871 = vmatprep.subr.bf16.mxu0 %v2365_v26  ;;  %1912 = vmatprep.subr.bf16.mxu1 %v2367_v39  ;;  %v2349_v26 = vcombine.high %v5205_v2, %v5203_v6  ;;  %v5206_v39 = vld [vmem:[#allocation177_spill] sm:$0xff]  ;;  %v5212_v6 = vld [vmem:[#allocation160_spill] sm:$0xff] }
 0x220   : > { %v2351_v5 = vcombine.high %v5207_v3, %v5206_v39 }
 0x222   : > { %1872 = vmatpush2.bf16.msra.mxu0 %v2364_v44  ;;  %1913 = vmatpush2.bf16.msra.mxu1 %v2366_v50  ;;  %v2348_v44 = vcombine.low %v5205_v2, %v5204_v1  ;;  %v2350_v50 = vcombine.low %v5207_v3, %v5206_v39  ;;  %v5213_v1 = vmov %v5212_v6  ;;  %v5214_v2 = vld [vmem:[#allocation156_spill] sm:$0xff]  ;;  %v5216_v3 = vld [vmem:[#allocation157_spill] sm:$0xff] }
 0x223   : > { %1873 = vmatprep.subr.bf16.mxu0 %v2357_v48  ;;  %1914 = vmatprep.subr.bf16.mxu1 %v2359_v0  ;;  %v2341_v48 = vcombine.high %v5209_v4, %v5208_v7  ;;  %v5210_v0 = vld [vmem:[#allocation169_spill] sm:$0xff] }
 0x224   : > { %v2343_v10 = vcombine.high %v5211_v9, %v5210_v0 }
 0x226   : > { %1874 = vmatpush2.bf16.msra.mxu0 %v2356_v8  ;;  %1915 = vmatpush2.bf16.msra.mxu1 %v2358_v12  ;;  %v2340_v8 = vcombine.low %v5209_v4, %v5208_v7  ;;  %v2342_v12 = vcombine.low %v5211_v9, %v5210_v0  ;;  %v5217_v4 = vld [vmem:[#allocation154_spill] sm:$0xff]  ;;  %v5220_v7 = vld [vmem:[#allocation151_spill] sm:$0xff] }
 0x227   : > { %1875 = vmatprep.subr.bf16.mxu0 %v2349_v26  ;;  %1916 = vmatprep.subr.bf16.mxu1 %v2351_v5  ;;  %v2333_v26 = vcombine.high %v5214_v2, %v5212_v6  ;;  %v5215_v5 = vld [vmem:[#allocation161_spill] sm:$0xff]  ;;  %v5218_v0 = vld [vmem:[#allocation150_spill] sm:$0xff]  ;;  %v4306_v6 = vpack.c.bf16 %v4208_v22, %v4208_v22 }
 0x228   : > { %v2335_v11 = vcombine.high %v5216_v3, %v5215_v5 }
 0x22a   : > { %1876 = vmatpush2.bf16.msra.mxu0 %v2348_v44  ;;  %1917 = vmatpush2.bf16.msra.mxu1 %v2350_v50  ;;  %v2332_v44 = vcombine.low %v5214_v2, %v5213_v1  ;;  %v2334_v50 = vcombine.low %v5216_v3, %v5215_v5  ;;  %v5223_v2 = vld [vmem:[#allocation147_spill] sm:$0xff] }
 0x22b   : > { %1877 = vmatprep.subr.bf16.mxu0 %v2341_v48  ;;  %1918 = vmatprep.subr.bf16.mxu1 %v2343_v10  ;;  %v2329_v48 = vcombine.high %v5218_v0, %v5217_v4  ;;  %v5219_v10 = vld [vmem:[#allocation155_spill] sm:$0xff] }
 0x22c   : > { %v2331_v9 = vcombine.high %v5220_v7, %v5219_v10  ;;  %v5224_v3 = vld [vmem:[#allocation143_spill] sm:$0xff] }
 0x22d   : > { %v2323_v5 = vcombine.high %v5224_v3, %v5223_v2 }
 0x22e   : > { %1878 = vmatpush2.bf16.msra.mxu0 %v2340_v8  ;;  %1919 = vmatpush2.bf16.msra.mxu1 %v2342_v12  ;;  %v2328_v8 = vcombine.low %v5218_v0, %v5217_v4  ;;  %v2330_v12 = vcombine.low %v5220_v7, %v5219_v10  ;;  %v5227_v0 = vld [vmem:[#allocation139_spill] sm:$0xff] }
 0x22f   : > { %1879 = vmatprep.subr.bf16.mxu0 %v2333_v26  ;;  %1920 = vmatprep.subr.bf16.mxu1 %v2335_v11  ;;  %v5221_v11 = vld [vmem:[#allocation146_spill] sm:$0xff]  ;;  %v5228_v4 = vld [vmem:[#allocation135_spill] sm:$0xff] }
 0x230   : > { %v5222_v26 = vld [vmem:[#allocation142_spill] sm:$0xff]  ;;  %v2315_v7 = vcombine.high %v5228_v4, %v5227_v0  ;;  %v5232_v10 = vld [vmem:[#allocation127_spill] sm:$0xff] }
 0x231   : > { %v2321_v1 = vcombine.high %v5222_v26, %v5221_v11  ;;  %v2320_v22 = vcombine.low %v5222_v26, %v5221_v11 }
 0x232   : > { %1880 = vmatpush2.bf16.msra.mxu0 %v2332_v44  ;;  %1921 = vmatpush2.bf16.msra.mxu1 %v2334_v50  ;;  %v2322_v44 = vcombine.low %v5224_v3, %v5223_v2  ;;  %v5226_v50 = vld [vmem:[#allocation134_spill] sm:$0xff]  ;;  %v5231_v3 = vld [vmem:[#allocation131_spill] sm:$0xff] }
 0x233   : > { %1931 = vmatprep.subr.bf16.mxu0 %v2329_v48  ;;  %1972 = vmatprep.subr.bf16.mxu1 %v2331_v9  ;;  %v5225_v9 = vld [vmem:[#allocation138_spill] sm:$0xff]  ;;  %v2307_v11 = vcombine.high %v5232_v10, %v5231_v3 }
 0x234   : > { %v2313_v48 = vcombine.high %v5226_v50, %v5225_v9 }
 0x235   : > { %1882 = vmatmul.mubr.bf16.vlgmr.msra.gmra.mxu0 %v4306_v6  ;;  %1923 = vmatmul.mubr.bf16.vlgmr.msra.gmra.mxu1 %v4306_v6 }
 0x236   : > { %1932 = vmatpush1.bf16.msra.mxu0 %v2328_v8  ;;  %1973 = vmatpush1.bf16.msra.mxu1 %v2330_v12  ;;  %v2312_v8 = vcombine.low %v5226_v50, %v5225_v9  ;;  %v2314_v12 = vcombine.low %v5228_v4, %v5227_v0  ;;  %v5234_v0 = vld [vmem:[#allocation118_spill] sm:$0xff]  ;;  %v5236_v4 = vld [vmem:[#allocation119_spill] sm:$0xff] }
 0x237   : > { %1933 = vmatprep.subr.bf16.mxu0 %v2321_v1  ;;  %1974 = vmatprep.subr.bf16.mxu1 %v2323_v5  ;;  %v5229_v1 = vld [vmem:[#allocation130_spill] sm:$0xff] }
 0x238   : > { %1963 = vmatprep.mubr.bf16.mxu0 %v4220_v41  ;;  %2004 = vmatprep.mubr.bf16.mxu1 %v4220_v41  ;;  %v5230_v5 = vld [vmem:[#allocation126_spill] sm:$0xff] }
 0x239   : > { %v2305_v2 = vcombine.high %v5230_v5, %v5229_v1  ;;  %v2304_v41 = vcombine.low %v5230_v5, %v5229_v1  ;;  %v5237_v1 = vld [vmem:[#allocation114_spill] sm:$0xff]  ;;  %v5240_v5 = vld [vmem:[#allocation111_spill] sm:$0xff] }
 0x23a   : > { %1934 = vmatpush1.bf16.msra.mxu0 %v2320_v22  ;;  %1975 = vmatpush1.bf16.msra.mxu1 %v2322_v44  ;;  %v2306_v22 = vcombine.low %v5232_v10, %v5231_v3  ;;  %v5233_v44 = vld [vmem:[#allocation122_spill] sm:$0xff] }
 0x23b   : > { %1935 = vmatprep.subr.bf16.mxu0 %v2313_v48  ;;  %1976 = vmatprep.subr.bf16.mxu1 %v2315_v7  ;;  %v2297_v48 = vcombine.high %v5234_v0, %v5233_v44  ;;  %v5235_v7 = vld [vmem:[#allocation123_spill] sm:$0xff]  ;;  %v5238_v3 = vld [vmem:[#allocation110_spill] sm:$0xff] }
 0x23c   : > { %v2299_v9 = vcombine.high %v5236_v4, %v5235_v7 }
 0x23e   : > { %1936 = vmatpush1.bf16.msra.mxu0 %v2312_v8  ;;  %1977 = vmatpush1.bf16.msra.mxu1 %v2314_v12  ;;  %v2296_v8 = vcombine.low %v5234_v0, %v5233_v44  ;;  %v2298_v12 = vcombine.low %v5236_v4, %v5235_v7  ;;  %v5241_v0 = vld [vmem:[#allocation106_spill] sm:$0xff]  ;;  %v5244_v7 = vld [vmem:[#allocation103_spill] sm:$0xff] }
 0x23f   : > { %1937 = vmatprep.subr.bf16.mxu0 %v2305_v2  ;;  %1978 = vmatprep.subr.bf16.mxu1 %v2307_v11  ;;  %v2289_v2 = vcombine.high %v5238_v3, %v5237_v1  ;;  %v5239_v11 = vld [vmem:[#allocation115_spill] sm:$0xff]  ;;  %v5242_v4 = vld [vmem:[#allocation102_spill] sm:$0xff] }
 0x240   : > { %v2291_v10 = vcombine.high %v5240_v5, %v5239_v11 }
 0x242   : > { %1938 = vmatpush1.bf16.msra.mxu0 %v2304_v41  ;;  %1979 = vmatpush1.bf16.msra.mxu1 %v2306_v22  ;;  %v2288_v41 = vcombine.low %v5238_v3, %v5237_v1  ;;  %v2290_v22 = vcombine.low %v5240_v5, %v5239_v11  ;;  %v5245_v1 = vld [vmem:[#allocation98_spill] sm:$0xff]  ;;  %v5248_v5 = vld [vmem:[#allocation95_spill] sm:$0xff] }
 0x243   : > { %1939 = vmatprep.subr.bf16.mxu0 %v2297_v48  ;;  %1980 = vmatprep.subr.bf16.mxu1 %v2299_v9  ;;  %v2281_v48 = vcombine.high %v5242_v4, %v5241_v0  ;;  %v5243_v9 = vld [vmem:[#allocation107_spill] sm:$0xff]  ;;  %v5246_v3 = vld [vmem:[#allocation94_spill] sm:$0xff] }
 0x244   : > { %v2283_v13 = vcombine.high %v5244_v7, %v5243_v9 }
 0x246   : > { %1940 = vmatpush1.bf16.msra.mxu0 %v2296_v8  ;;  %1981 = vmatpush1.bf16.msra.mxu1 %v2298_v12  ;;  %v2280_v8 = vcombine.low %v5242_v4, %v5241_v0  ;;  %v2282_v12 = vcombine.low %v5244_v7, %v5243_v9  ;;  %v5249_v0 = vld [vmem:[#allocation218_spill] sm:$0xff]  ;;  %v5252_v7 = vld [vmem:[#allocation215_spill] sm:$0xff] }
 0x247   : > { %1941 = vmatprep.subr.bf16.mxu0 %v2289_v2  ;;  %1982 = vmatprep.subr.bf16.mxu1 %v2291_v10  ;;  %v2273_v2 = vcombine.high %v5246_v3, %v5245_v1  ;;  %v5247_v10 = vld [vmem:[#allocation99_spill] sm:$0xff]  ;;  %v5250_v4 = vld [vmem:[#allocation214_spill] sm:$0xff] }
 0x248   : > { %v2275_v11 = vcombine.high %v5248_v5, %v5247_v10 }
 0x24a   : > { %1942 = vmatpush1.bf16.msra.mxu0 %v2288_v41  ;;  %1983 = vmatpush1.bf16.msra.mxu1 %v2290_v22  ;;  %v2272_v41 = vcombine.low %v5246_v3, %v5245_v1  ;;  %v2274_v22 = vcombine.low %v5248_v5, %v5247_v10  ;;  %v5253_v1 = vld [vmem:[#allocation210_spill] sm:$0xff]  ;;  %v5256_v5 = vld [vmem:[#allocation207_spill] sm:$0xff] }
 0x24b   : > { %1943 = vmatprep.subr.bf16.mxu0 %v2281_v48  ;;  %1984 = vmatprep.subr.bf16.mxu1 %v2283_v13  ;;  %v2393_v48 = vcombine.high %v5250_v4, %v5249_v0  ;;  %v5251_v13 = vld [vmem:[#allocation219_spill] sm:$0xff]  ;;  %v5254_v3 = vld [vmem:[#allocation206_spill] sm:$0xff] }
 0x24c   : > { %v2395_v9 = vcombine.high %v5252_v7, %v5251_v13 }
 0x24e   : > { %1944 = vmatpush1.bf16.msra.mxu0 %v2280_v8  ;;  %1985 = vmatpush1.bf16.msra.mxu1 %v2282_v12  ;;  %v2392_v8 = vcombine.low %v5250_v4, %v5249_v0  ;;  %v2394_v12 = vcombine.low %v5252_v7, %v5251_v13  ;;  %v5257_v0 = vld [vmem:[#allocation202_spill] sm:$0xff]  ;;  %v5260_v7 = vld [vmem:[#allocation199_spill] sm:$0xff] }
 0x24f   : > { %1945 = vmatprep.subr.bf16.mxu0 %v2273_v2  ;;  %1986 = vmatprep.subr.bf16.mxu1 %v2275_v11  ;;  %v2385_v2 = vcombine.high %v5254_v3, %v5253_v1  ;;  %v5255_v11 = vld [vmem:[#allocation211_spill] sm:$0xff]  ;;  %v5258_v4 = vld [vmem:[#allocation198_spill] sm:$0xff] }
 0x250   : > { %v2387_v10 = vcombine.high %v5256_v5, %v5255_v11 }
 0x252   : > { %1946 = vmatpush1.bf16.msra.mxu0 %v2272_v41  ;;  %1987 = vmatpush1.bf16.msra.mxu1 %v2274_v22  ;;  %v2384_v41 = vcombine.low %v5254_v3, %v5253_v1  ;;  %v2386_v22 = vcombine.low %v5256_v5, %v5255_v11  ;;  %v5261_v1 = vld [vmem:[#allocation194_spill] sm:$0xff]  ;;  %v5264_v5 = vld [vmem:[#allocation191_spill] sm:$0xff] }
 0x253   : > { %1947 = vmatprep.subr.bf16.mxu0 %v2393_v48  ;;  %1988 = vmatprep.subr.bf16.mxu1 %v2395_v9  ;;  %v2377_v48 = vcombine.high %v5258_v4, %v5257_v0  ;;  %v5259_v9 = vld [vmem:[#allocation203_spill] sm:$0xff]  ;;  %v5262_v3 = vld [vmem:[#allocation190_spill] sm:$0xff] }
 0x254   : > { %v2379_v13 = vcombine.high %v5260_v7, %v5259_v9 }
 0x256   : > { %1948 = vmatpush2.bf16.msra.mxu0 %v2392_v8  ;;  %1989 = vmatpush2.bf16.msra.mxu1 %v2394_v12  ;;  %v2376_v8 = vcombine.low %v5258_v4, %v5257_v0  ;;  %v2378_v12 = vcombine.low %v5260_v7, %v5259_v9  ;;  %v5265_v0 = vld [vmem:[#allocation186_spill] sm:$0xff]  ;;  %v5268_v7 = vld [vmem:[#allocation183_spill] sm:$0xff] }
 0x257   : > { %1949 = vmatprep.subr.bf16.mxu0 %v2385_v2  ;;  %1990 = vmatprep.subr.bf16.mxu1 %v2387_v10  ;;  %v2369_v2 = vcombine.high %v5262_v3, %v5261_v1  ;;  %v5263_v10 = vld [vmem:[#allocation195_spill] sm:$0xff]  ;;  %v5266_v4 = vld [vmem:[#allocation182_spill] sm:$0xff] }
 0x258   : > { %v2371_v11 = vcombine.high %v5264_v5, %v5263_v10 }
 0x25a   : > { %1950 = vmatpush2.bf16.msra.mxu0 %v2384_v41  ;;  %1991 = vmatpush2.bf16.msra.mxu1 %v2386_v22  ;;  %v2368_v41 = vcombine.low %v5262_v3, %v5261_v1  ;;  %v2370_v22 = vcombine.low %v5264_v5, %v5263_v10  ;;  %v5269_v1 = vld [vmem:[#allocation178_spill] sm:$0xff]  ;;  %v5272_v5 = vld [vmem:[#allocation175_spill] sm:$0xff] }
 0x25b   : > { %1951 = vmatprep.subr.bf16.mxu0 %v2377_v48  ;;  %1992 = vmatprep.subr.bf16.mxu1 %v2379_v13  ;;  %v2361_v48 = vcombine.high %v5266_v4, %v5265_v0  ;;  %v5267_v13 = vld [vmem:[#allocation187_spill] sm:$0xff]  ;;  %v5270_v3 = vld [vmem:[#allocation174_spill] sm:$0xff] }
 0x25c   : > { %v2363_v9 = vcombine.high %v5268_v7, %v5267_v13 }
 0x25e   : > { %1952 = vmatpush2.bf16.msra.mxu0 %v2376_v8  ;;  %1993 = vmatpush2.bf16.msra.mxu1 %v2378_v12  ;;  %v2360_v8 = vcombine.low %v5266_v4, %v5265_v0  ;;  %v2362_v12 = vcombine.low %v5268_v7, %v5267_v13  ;;  %v5273_v0 = vld [vmem:[#allocation170_spill] sm:$0xff]  ;;  %v5276_v7 = vld [vmem:[#allocation167_spill] sm:$0xff] }
 0x25f   : > { %1953 = vmatprep.subr.bf16.mxu0 %v2369_v2  ;;  %1994 = vmatprep.subr.bf16.mxu1 %v2371_v11  ;;  %v2353_v2 = vcombine.high %v5270_v3, %v5269_v1  ;;  %v5271_v11 = vld [vmem:[#allocation179_spill] sm:$0xff]  ;;  %v5274_v4 = vld [vmem:[#allocation166_spill] sm:$0xff] }
 0x260   : > { %v2355_v10 = vcombine.high %v5272_v5, %v5271_v11 }
 0x262   : > { %1954 = vmatpush2.bf16.msra.mxu0 %v2368_v41  ;;  %1995 = vmatpush2.bf16.msra.mxu1 %v2370_v22  ;;  %v2352_v41 = vcombine.low %v5270_v3, %v5269_v1  ;;  %v2354_v22 = vcombine.low %v5272_v5, %v5271_v11  ;;  %v5277_v1 = vld [vmem:[#allocation162_spill] sm:$0xff]  ;;  %v5280_v5 = vld [vmem:[#allocation159_spill] sm:$0xff] }
 0x263   : > { %1955 = vmatprep.subr.bf16.mxu0 %v2361_v48  ;;  %1996 = vmatprep.subr.bf16.mxu1 %v2363_v9  ;;  %v2345_v48 = vcombine.high %v5274_v4, %v5273_v0  ;;  %v5275_v9 = vld [vmem:[#allocation171_spill] sm:$0xff]  ;;  %v5278_v3 = vld [vmem:[#allocation158_spill] sm:$0xff] }
 0x264   : > { %v2347_v13 = vcombine.high %v5276_v7, %v5275_v9 }
 0x266   : > { %1956 = vmatpush2.bf16.msra.mxu0 %v2360_v8  ;;  %1997 = vmatpush2.bf16.msra.mxu1 %v2362_v12  ;;  %v2344_v8 = vcombine.low %v5274_v4, %v5273_v0  ;;  %v2346_v12 = vcombine.low %v5276_v7, %v5275_v9 }
 0x267   : > { %1957 = vmatprep.subr.bf16.mxu0 %v2353_v2  ;;  %1998 = vmatprep.subr.bf16.mxu1 %v2355_v10  ;;  %v2337_v2 = vcombine.high %v5278_v3, %v5277_v1  ;;  %v5279_v10 = vld [vmem:[#allocation163_spill] sm:$0xff] }
 0x268   : > { %v2339_v11 = vcombine.high %v5280_v5, %v5279_v10 }
 0x26a   : > { %1958 = vmatpush2.bf16.msra.mxu0 %v2352_v41  ;;  %1999 = vmatpush2.bf16.msra.mxu1 %v2354_v22  ;;  %v2336_v41 = vcombine.low %v5278_v3, %v5277_v1  ;;  %v2338_v22 = vcombine.low %v5280_v5, %v5279_v10 }
 0x26b   : > { %1959 = vmatprep.subr.bf16.mxu0 %v2345_v48  ;;  %2000 = vmatprep.subr.bf16.mxu1 %v2347_v13 }
 0x26e   : > { %1960 = vmatpush2.bf16.msra.mxu0 %v2344_v8  ;;  %2001 = vmatpush2.bf16.msra.mxu1 %v2346_v12 }
 0x26f   : > { %1961 = vmatprep.subr.bf16.mxu0 %v2337_v2  ;;  %2002 = vmatprep.subr.bf16.mxu1 %v2339_v11 }
 0x272   : > { %1962 = vmatpush2.bf16.msra.mxu0 %v2336_v41  ;;  %2003 = vmatpush2.bf16.msra.mxu1 %v2338_v22  ;;  %v1194_v41 = vld [vmem:[%s1193_s9 + $0x10] sm:$0xff] }
 0x275   : > { %1964 = vmatmul.mubr.bf16.vlgmr.msra.gmra.mxu0 %v4306_v6  ;;  %2005 = vmatmul.mubr.bf16.vlgmr.msra.gmra.mxu1 %v4306_v6 }
 0x2f5   : > { %v1883_v13 = vpop.f32.mrf.mxu0  ;;  %v1924_v48 = vpop.f32.mrf.mxu1 }
 0x2f7   : > { %v1885_v8 = vpop.f32.mrf.mxu0  ;;  %v1926_v12 = vpop.f32.mrf.mxu1 }
 0x2f8   : > { %v2021_v7 = vcombine.low %v1883_v13, %v1885_v8  ;;  %v2022_v5 = vcombine.low %v1924_v48, %v1926_v12 }
 0x2f9   : > { %v1887_v0 = vpop.f32.mrf.mxu0  ;;  %v1928_v4 = vpop.f32.mrf.mxu1 }
 0x2fa   : > { %v2029_v11 = vrot.slane %v2021_v7, %v3897_v14  ;;  %v2036_v2 = vrot.slane %v2022_v5, %v3897_v14 }
 0x2fb   : > { %v1888_v1 = vpop.f32.mrf.mxu0  ;;  %v1929_v3 = vpop.f32.mrf.mxu1 }
 0x2fc   : > { %v2037_v6 = vcombine.low %v2029_v11, %v2036_v2 }
 0x2fe   : > { %v2057_v22 = vadd.f32 %v2037_v6, %v1194_v41  ;;  %v1195_v41 = vld [vmem:[%s1193_s9 + $0x18] sm:$0xff] }
 0x300   : > { %v2066_v0 = vrot.slane %v2057_v22, 4  ;;  %v2396_v1 = vmul.f32 -1.442695, %v2057_v22 }
 0x302   : > { %v2397_v4 = vmul.f32 -1.442695, %v2066_v0 }
 0x304   : > { %2470 = vpow2.f32 %v2397_v4 }
 0x305   : > { %2472 = vpow2.f32 %v2396_v1 }
 0x311   : > { %v2471_v48 = vpop.eup %2470 }
 0x312   : > { %v2473_v7 = vpop.eup %2472  ;;  %v2071_v16 = vadd.f32 1.0, %v2471_v48 }
 0x313   : > { %v2062_v6 = vadd.f32 1.0, %v2473_v7 }
 0x314   : > { %2474 = vrcp.f32 %v2071_v16 }
 0x315   : > { %2476 = vrcp.f32 %v2062_v6 }
 0x335   : > { %v1965_v3 = vpop.f32.mrf.mxu0  ;;  %v2006_v13 = vpop.f32.mrf.mxu1 }
 0x337   : > { %v1967_v8 = vpop.f32.mrf.mxu0  ;;  %v2008_v12 = vpop.f32.mrf.mxu1 }
 0x338   : > { %v2038_v9 = vcombine.low %v1965_v3, %v1967_v8  ;;  %v2039_v5 = vcombine.low %v2006_v13, %v2008_v12 }
 0x339   : > { %v1969_v10 = vpop.f32.mrf.mxu0  ;;  %v2010_v15 = vpop.f32.mrf.mxu1 }
 0x33a   : > { %v2046_v11 = vrot.slane %v2038_v9, %v3897_v14  ;;  %v2053_v2 = vrot.slane %v2039_v5, %v3897_v14  ;;  %v2475_v10 = vpop.eup %2474 }
 0x33b   : > { %v1970_v22 = vpop.f32.mrf.mxu0  ;;  %v2011_v0 = vpop.f32.mrf.mxu1  ;;  %v2084_v9 = vmul.f32 %v2524_v17, %v2475_v10 }
 0x33c   : > { %v2054_v4 = vcombine.low %v2046_v11, %v2053_v2  ;;  %v2477_v15 = vpop.eup %2476 }
 0x33e   : > { %v2058_v1 = vadd.f32 %v2054_v4, %v1195_v41 }
 0x340   : > { %2478 = vtanh.f32 %v2058_v1  ;;  %v2076_v18 = vrot.slane %v2058_v1, 4 }
 0x342   : > { %v2398_v3 = vmul.f32 -1.442695, %v2076_v18 }
 0x344   : > { %2480 = vpow2.f32 %v2398_v3 }
 0x34d   : > { %v2479_v13 = vpop.eup %2478 }
 0x34e   : > { %v2085_v48 = vmul.f32 %v2479_v13, %v2477_v15 }
 0x350   : > { %v2086_v17 = vadd.f32 %v2085_v48, %v2084_v9  }
 0x351   : > { %v2481_v8 = vpop.eup %2480 }
 0x352   : > { %v2081_v12 = vadd.f32 1.0, %v2481_v8  ;;  %2482 = vtanh.f32 %v2086_v17 }
 0x354   : > { %2484 = vrcp.f32 %v2081_v12 }
 0x35f   : > { %v2483_v16 = vpop.eup %2482 }
 0x360   :  { %1186 = sbr.rel (!%p1184_p1) target bundleno = 497 (0x1f1), region = 69 }
 0x361   : > { %v2485_v7 = vpop.eup %2484 }
 0x362   : > { %v2088_v6 = vmul.f32 %v2485_v7, %v2483_v16  }
 0x364   : > { %2092 = vst [vmem:[%s2091_s13] sm:$0xf] %v2088_v6 }

// kernel: _lambda_.18
= control target key start
LH: loop header
LB: loop body
LE: loop exit
PB: predicated region body
PF: predicated region fallthrough
CT: control target
= control target key end

     0   :  { %v280_v39 = vlaneseq  ;;  %v2891_v40 = vmov 1966171168   ;;  %s3785_s0 = inlined_call_operand.vmem [shape: bf16[2,1024], index: 0, kind: input, shape index: {}]   ;;  %s3786_s1 = inlined_call_operand.vmem [shape: bf16[1024,512], index: 1, kind: input, shape index: {}]   ;;  %s3787_s2 = inlined_call_operand.vmem [shape: f32[1,512], index: 2, kind: input, shape index: {}]   ;;  %s3788_s3 = inlined_call_operand.vmem [shape: f32[2,512], index: 3, kind: output, shape index: {}]  }
   0x1   :  { %v2495_v0 = vld [vmem:[%s3786_s1 + $0xe4] ss:$16 sps:$4 sm:$0xff]   ;;  %v2499_v2 = vld [vmem:[%s3786_s1 + $0xe0] ss:$16 sps:$4 sm:$0xff]   ;;  %v317_v41 = vunpack.c.l.s4 %v2891_v40 }
   0x2   :  { %v2497_v1 = vld [vmem:[%s3786_s1 + $0x2e4] ss:$16 sps:$4 sm:$0xff]   ;;  %1732 = vmatprep.subr.bf16.mxu0 %v2495_v0  ;;  %v2500_v3 = vld [vmem:[%s3786_s1 + $0x2e0] ss:$16 sps:$4 sm:$0xff]   ;;  %v3045_v47 = vshrl.u32 %v280_v39, 7 }
   0x3   :  { %1775 = vmatprep.subr.bf16.mxu1 %v2497_v1  ;;  %v2501_v4 = vld [vmem:[%s3786_s1 + $0xc4] ss:$16 sps:$4 sm:$0xff]   ;;  %1733 = vmatpush1.bf16.msra.mxu0 %v2499_v2  ;;  %v2505_v6 = vld [vmem:[%s3786_s1 + $0xc0] ss:$16 sps:$4 sm:$0xff]   ;;  %v318_v48 = vunpack.c.0.s8 %v317_v41 }
   0x4   :  { %1776 = vmatpush1.bf16.msra.mxu1 %v2500_v3  ;;  %v2503_v5 = vld [vmem:[%s3786_s1 + $0x2c4] ss:$16 sps:$4 sm:$0xff]   ;;  %1734 = vmatprep.subr.bf16.mxu0 %v2501_v4  ;;  %v2506_v7 = vld [vmem:[%s3786_s1 + $0x2c0] ss:$16 sps:$4 sm:$0xff]  }
   0x5   :  { %1777 = vmatprep.subr.bf16.mxu1 %v2503_v5  ;;  %v2507_v8 = vld [vmem:[%s3786_s1 + $0xa4] ss:$16 sps:$4 sm:$0xff]   ;;  %v2511_v10 = vld [vmem:[%s3786_s1 + $0xa0] ss:$16 sps:$4 sm:$0xff]   ;;  %v3063_v54 = vsub.s32 %v318_v48, %v3045_v47 }
   0x6   :  { %v2509_v9 = vld [vmem:[%s3786_s1 + $0x2a4] ss:$16 sps:$4 sm:$0xff]   ;;  %v2512_v11 = vld [vmem:[%s3786_s1 + $0x2a0] ss:$16 sps:$4 sm:$0xff]  }
   0x7   :  { %1735 = vmatpush1.bf16.msra.mxu0 %v2505_v6  ;;  %v2513_v12 = vld [vmem:[%s3786_s1 + $0x84] ss:$16 sps:$4 sm:$0xff]   ;;  %v2517_v14 = vld [vmem:[%s3786_s1 + $0x80] ss:$16 sps:$4 sm:$0xff]  }
   0x8   :  { %1778 = vmatpush1.bf16.msra.mxu1 %v2506_v7  ;;  %1736 = vmatprep.subr.bf16.mxu0 %v2507_v8  ;;  %v2515_v13 = vld [vmem:[%s3786_s1 + $0x284] ss:$16 sps:$4 sm:$0xff]   ;;  %v2518_v15 = vld [vmem:[%s3786_s1 + $0x280] ss:$16 sps:$4 sm:$0xff]  }
   0x9   :  { %1779 = vmatprep.subr.bf16.mxu1 %v2509_v9  ;;  %v2519_v16 = vld [vmem:[%s3786_s1 + $0x64] ss:$16 sps:$4 sm:$0xff]   ;;  %v2523_v18 = vld [vmem:[%s3786_s1 + $0x60] ss:$16 sps:$4 sm:$0xff]  }
   0xa   :  { %v2521_v17 = vld [vmem:[%s3786_s1 + $0x264] ss:$16 sps:$4 sm:$0xff]   ;;  %v2524_v19 = vld [vmem:[%s3786_s1 + $0x260] ss:$16 sps:$4 sm:$0xff]  }
   0xb   :  { %1737 = vmatpush1.bf16.msra.mxu0 %v2511_v10  ;;  %v2525_v20 = vld [vmem:[%s3786_s1 + $0x44] ss:$16 sps:$4 sm:$0xff]   ;;  %v2529_v22 = vld [vmem:[%s3786_s1 + $0x40] ss:$16 sps:$4 sm:$0xff]  }
   0xc   :  { %1780 = vmatpush1.bf16.msra.mxu1 %v2512_v11  ;;  %1738 = vmatprep.subr.bf16.mxu0 %v2513_v12  ;;  %v2527_v21 = vld [vmem:[%s3786_s1 + $0x244] ss:$16 sps:$4 sm:$0xff]   ;;  %v2530_v23 = vld [vmem:[%s3786_s1 + $0x240] ss:$16 sps:$4 sm:$0xff]  }
   0xd   :  { %1781 = vmatprep.subr.bf16.mxu1 %v2515_v13  ;;  %v2531_v24 = vld [vmem:[%s3786_s1 + $0x24] ss:$16 sps:$4 sm:$0xff]   ;;  %v2535_v26 = vld [vmem:[%s3786_s1 + $0x20] ss:$16 sps:$4 sm:$0xff]  }
   0xe   :  { %v2533_v25 = vld [vmem:[%s3786_s1 + $0x224] ss:$16 sps:$4 sm:$0xff]   ;;  %v2536_v27 = vld [vmem:[%s3786_s1 + $0x220] ss:$16 sps:$4 sm:$0xff]  }
   0xf   :  { %1739 = vmatpush1.bf16.msra.mxu0 %v2517_v14  ;;  %v2537_v28 = vld [vmem:[%s3786_s1 + $0x4] ss:$16 sps:$4 sm:$0xff]   ;;  %v2541_v30 = vld [vmem:[%s3786_s1] ss:$16 sps:$4 sm:$0xff]  }
  0x10   :  { %1782 = vmatpush1.bf16.msra.mxu1 %v2518_v15  ;;  %1740 = vmatprep.subr.bf16.mxu0 %v2519_v16  ;;  %v2539_v29 = vld [vmem:[%s3786_s1 + $0x204] ss:$16 sps:$4 sm:$0xff]   ;;  %v2542_v31 = vld [vmem:[%s3786_s1 + $0x200] ss:$16 sps:$4 sm:$0xff]  }
  0x11   :  { %1783 = vmatprep.subr.bf16.mxu1 %v2521_v17  ;;  %v2543_v32 = vld [vmem:[%s3786_s1 + $0x1e4] ss:$16 sps:$4 sm:$0xff]   ;;  %v2547_v34 = vld [vmem:[%s3786_s1 + $0x1e0] ss:$16 sps:$4 sm:$0xff]  }
  0x12   :  { %v2545_v33 = vld [vmem:[%s3786_s1 + $0x3e4] ss:$16 sps:$4 sm:$0xff]   ;;  %v2548_v35 = vld [vmem:[%s3786_s1 + $0x3e0] ss:$16 sps:$4 sm:$0xff]  }
  0x13   :  { %1741 = vmatpush1.bf16.msra.mxu0 %v2523_v18  ;;  %v2549_v36 = vld [vmem:[%s3786_s1 + $0x1c4] ss:$16 sps:$4 sm:$0xff]   ;;  %v2553_v38 = vld [vmem:[%s3786_s1 + $0x1c0] ss:$16 sps:$4 sm:$0xff]  }
  0x14   :  { %1784 = vmatpush1.bf16.msra.mxu1 %v2524_v19  ;;  %1742 = vmatprep.subr.bf16.mxu0 %v2525_v20  ;;  %v2551_v37 = vld [vmem:[%s3786_s1 + $0x3c4] ss:$16 sps:$4 sm:$0xff]   ;;  %v2554_v42 = vld [vmem:[%s3786_s1 + $0x3c0] ss:$16 sps:$4 sm:$0xff]  }
  0x15   :  { %1785 = vmatprep.subr.bf16.mxu1 %v2527_v21  ;;  %v2555_v43 = vld [vmem:[%s3786_s1 + $0x1a4] ss:$16 sps:$4 sm:$0xff]   ;;  %v2559_v45 = vld [vmem:[%s3786_s1 + $0x1a0] ss:$16 sps:$4 sm:$0xff]  }
  0x16   :  { %v2557_v44 = vld [vmem:[%s3786_s1 + $0x3a4] ss:$16 sps:$4 sm:$0xff]   ;;  %v2560_v46 = vld [vmem:[%s3786_s1 + $0x3a0] ss:$16 sps:$4 sm:$0xff]  }
  0x17   :  { %1743 = vmatpush1.bf16.msra.mxu0 %v2529_v22  ;;  %v2561_v49 = vld [vmem:[%s3786_s1 + $0x184] ss:$16 sps:$4 sm:$0xff]   ;;  %v2565_v51 = vld [vmem:[%s3786_s1 + $0x180] ss:$16 sps:$4 sm:$0xff]  }
  0x18   :  { %1786 = vmatpush1.bf16.msra.mxu1 %v2530_v23  ;;  %1744 = vmatprep.subr.bf16.mxu0 %v2531_v24  ;;  %v2563_v50 = vld [vmem:[%s3786_s1 + $0x384] ss:$16 sps:$4 sm:$0xff]   ;;  %v2566_v52 = vld [vmem:[%s3786_s1 + $0x380] ss:$16 sps:$4 sm:$0xff]  }
  0x19   :  { %1787 = vmatprep.subr.bf16.mxu1 %v2533_v25  ;;  %v2567_v53 = vld [vmem:[%s3786_s1 + $0x164] ss:$16 sps:$4 sm:$0xff]   ;;  %v2591_v56 = vld [vmem:[%s3785_s0] ss:$8 sps:$4 sm:$0xff]   ;;  %v2594_v59 = vld [vmem:[%s3785_s0 + $0x10] ss:$8 sps:$4 sm:$0xff]  }
  0x1a   :  { %v2569_v55 = vld [vmem:[%s3786_s1 + $0x364] ss:$16 sps:$4 sm:$0xff]   ;;  %v2571_v57 = vld [vmem:[%s3786_s1 + $0x160] ss:$16 sps:$4 sm:$0xff]   ;;  %v322_v0 = vrot.slane %v2591_v56, %v3063_v54  ;;  %v336_v2 = vrot.slane %v2594_v59, %v3063_v54 }
  0x1b   :  { %1745 = vmatpush1.bf16.msra.mxu0 %v2535_v26  ;;  %v2572_v58 = vld [vmem:[%s3786_s1 + $0x360] ss:$16 sps:$4 sm:$0xff]   ;;  %v2573_v61 = vld [vmem:[%s3786_s1 + $0x144] ss:$16 sps:$4 sm:$0xff]  }
  0x1c   :  { %1788 = vmatpush1.bf16.msra.mxu1 %v2536_v27  ;;  %1746 = vmatprep.subr.bf16.mxu0 %v2537_v28  ;;  %v2597_v60 = vld [vmem:[%s3785_s0 + $0x20] ss:$8 sps:$4 sm:$0xff]   ;;  %v2575_v62 = vld [vmem:[%s3786_s1 + $0x344] ss:$16 sps:$4 sm:$0xff]   ;;  %v2600_v63 = vld [vmem:[%s3785_s0 + $0x30] ss:$8 sps:$4 sm:$0xff]   ;;  %v373_v8 = vcombine.high %v322_v0, %v336_v2  ;;  %v372_v24 = vcombine.low %v322_v0, %v336_v2 }
  0x1d   :  { %1789 = vmatprep.subr.bf16.mxu1 %v2539_v29  ;;  %v2593_v1 = vld [vmem:[%s3785_s0 + $0x4] ss:$8 sps:$4 sm:$0xff]   ;;  %v350_v3 = vrot.slane %v2597_v60, %v3063_v54  ;;  %v2596_v4 = vld [vmem:[%s3785_s0 + $0x14] ss:$8 sps:$4 sm:$0xff]   ;;  %v364_v5 = vrot.slane %v2600_v63, %v3063_v54  ;;  %v2577_v9 = vld [vmem:[%s3786_s1 + $0x140] ss:$16 sps:$4 sm:$0xff]  }
  0x1e   :  { %v2599_v6 = vld [vmem:[%s3785_s0 + $0x24] ss:$8 sps:$4 sm:$0xff]   ;;  %v2602_v7 = vld [vmem:[%s3785_s0 + $0x34] ss:$8 sps:$4 sm:$0xff]   ;;  %v2578_v10 = vld [vmem:[%s3786_s1 + $0x340] ss:$16 sps:$4 sm:$0xff]   ;;  %v400_v13 = vrot.slane %v373_v8, %v3063_v54  ;;  %v3123_v16 = vrot.slane %v2593_v1, %v3063_v54  ;;  %v3126_v17 = vrot.slane %v2596_v4, %v3063_v54 }
  0x1f   :  { %1747 = vmatpush1.bf16.msra.mxu0 %v2541_v30  ;;  %v377_v11 = vcombine.high %v350_v3, %v364_v5  ;;  %v2579_v12 = vld [vmem:[%s3786_s1 + $0x124] ss:$16 sps:$4 sm:$0xff]   ;;  %v3129_v18 = vrot.slane %v2599_v6, %v3063_v54  ;;  %v3132_v19 = vrot.slane %v2602_v7, %v3063_v54  ;;  %v2583_v20 = vld [vmem:[%s3786_s1 + $0x120] ss:$16 sps:$4 sm:$0xff]   ;;  %v376_v25 = vcombine.low %v350_v3, %v364_v5 }
  0x20   :  { %1790 = vmatpush1.bf16.msra.mxu1 %v2542_v31  ;;  %1748 = vmatprep.subr.bf16.mxu0 %v2543_v32  ;;  %v2581_v14 = vld [vmem:[%s3786_s1 + $0x324] ss:$16 sps:$4 sm:$0xff]   ;;  %v2584_v21 = vld [vmem:[%s3786_s1 + $0x320] ss:$16 sps:$4 sm:$0xff]   ;;  %v375_v28 = vcombine.high %v3123_v16, %v3126_v17  ;;  %v386_v32 = vrot.slane %v372_v24, %v3063_v54 }
  0x21   :  { %1791 = vmatprep.subr.bf16.mxu1 %v2545_v33  ;;  %v428_v15 = vrot.slane %v377_v11, %v3063_v54  ;;  %v2585_v26 = vld [vmem:[%s3786_s1 + $0x104] ss:$16 sps:$4 sm:$0xff]   ;;  %v379_v29 = vcombine.high %v3129_v18, %v3132_v19  ;;  %v2589_v30 = vld [vmem:[%s3786_s1 + $0x100] ss:$16 sps:$4 sm:$0xff]   ;;  %v414_v33 = vrot.slane %v376_v25, %v3063_v54 }
  0x22   :  { %v2587_v27 = vld [vmem:[%s3786_s1 + $0x304] ss:$16 sps:$4 sm:$0xff]   ;;  %v2590_v31 = vld [vmem:[%s3786_s1 + $0x300] ss:$16 sps:$4 sm:$0xff]  }
  0x23   :  { %1749 = vmatpush2.bf16.msra.mxu0 %v2547_v34  ;;  %v3140_v22 = vcombine.low %v400_v13, %v428_v15  ;;  %v3142_v23 = vcombine.high %v400_v13, %v428_v15  ;;  %v2605_v34 = vld [vmem:[%s3786_s1 + $0x4e4] ss:$16 sps:$4 sm:$0xff]   ;;  %v3174_v39 = vcombine.high %v386_v32, %v414_v33  ;;  %v2603_v40 = vld [vmem:[%s3786_s1 + $0x4e0] ss:$16 sps:$4 sm:$0xff]  }
  0x24   :  { %1792 = vmatpush2.bf16.msra.mxu1 %v2548_v35  ;;  %1750 = vmatprep.subr.bf16.mxu0 %v2549_v36  ;;  %v2608_v35 = vld [vmem:[%s3786_s1 + $0x6e4] ss:$16 sps:$4 sm:$0xff]   ;;  %v407_v36 = vrot.slane %v375_v28, %v3063_v54  ;;  %v2606_v41 = vld [vmem:[%s3786_s1 + $0x6e0] ss:$16 sps:$4 sm:$0xff]  }
  0x25   :  { %1793 = vmatprep.subr.bf16.mxu1 %v2551_v37  ;;  %1764 = vmatprep.mubr.bf16.mxu0 %v3140_v22  ;;  %v435_v37 = vrot.slane %v379_v29, %v3063_v54  ;;  %v2612_v48 = vld [vmem:[%s3786_s1 + $0x6c0] ss:$16 sps:$4 sm:$0xff]   ;;  %v2632_v59 = vld [vmem:[%s3786_s1 + $0x664] ss:$16 sps:$4 sm:$0xff]  }
  0x26   :  { %1807 = vmatprep.mubr.bf16.mxu1 %v3142_v23  ;;  %v2621_v56 = vld [vmem:[%s3786_s1 + $0x480] ss:$16 sps:$4 sm:$0xff]   ;;  %v2638_v63 = vld [vmem:[%s3786_s1 + $0x644] ss:$16 sps:$4 sm:$0xff]  }
  0x27   :  { %1751 = vmatpush2.bf16.msra.mxu0 %v2553_v38  ;;  %v3172_v38 = vcombine.low %v386_v32, %v414_v33  ;;  %v2627_v60 = vld [vmem:[%s3786_s1 + $0x460] ss:$16 sps:$4 sm:$0xff]   ;;  %v2641_v2 = vld [vmem:[%s3786_s1 + $0x424] ss:$16 sps:$4 sm:$0xff]  }
  0x28   :  { %1794 = vmatpush2.bf16.msra.mxu1 %v2554_v42  ;;  %1752 = vmatprep.subr.bf16.mxu0 %v2555_v43  ;;  %v2611_v42 = vld [vmem:[%s3786_s1 + $0x4c4] ss:$16 sps:$4 sm:$0xff]   ;;  %v2633_v0 = vld [vmem:[%s3786_s1 + $0x440] ss:$16 sps:$4 sm:$0xff]  }
  0x29   :  { %1795 = vmatprep.subr.bf16.mxu1 %v2557_v44  ;;  %v2614_v43 = vld [vmem:[%s3786_s1 + $0x6c4] ss:$16 sps:$4 sm:$0xff]   ;;  %v3188_v44 = vcombine.low %v407_v36, %v435_v37  ;;  %v2636_v1 = vld [vmem:[%s3786_s1 + $0x640] ss:$16 sps:$4 sm:$0xff]  }
  0x2a   :  { %v2644_v3 = vld [vmem:[%s3786_s1 + $0x624] ss:$16 sps:$4 sm:$0xff]   ;;  %v2639_v4 = vld [vmem:[%s3786_s1 + $0x420] ss:$16 sps:$4 sm:$0xff]  }
  0x2b   :  { %1753 = vmatpush2.bf16.msra.mxu0 %v2559_v45  ;;  %v3190_v45 = vcombine.high %v407_v36, %v435_v37  ;;  %v2642_v5 = vld [vmem:[%s3786_s1 + $0x620] ss:$16 sps:$4 sm:$0xff]   ;;  %v2647_v6 = vld [vmem:[%s3786_s1 + $0x404] ss:$16 sps:$4 sm:$0xff]  }
  0x2c   :  { %1796 = vmatpush2.bf16.msra.mxu1 %v2560_v46  ;;  %1754 = vmatprep.subr.bf16.mxu0 %v2561_v49  ;;  %v2609_v46 = vld [vmem:[%s3786_s1 + $0x4c0] ss:$16 sps:$4 sm:$0xff]   ;;  %v2617_v49 = vld [vmem:[%s3786_s1 + $0x4a4] ss:$16 sps:$4 sm:$0xff]  }
  0x2d   :  { %1797 = vmatprep.subr.bf16.mxu1 %v2563_v50  ;;  %v2620_v50 = vld [vmem:[%s3786_s1 + $0x6a4] ss:$16 sps:$4 sm:$0xff]   ;;  %v2645_v8 = vld [vmem:[%s3786_s1 + $0x400] ss:$16 sps:$4 sm:$0xff]  }
  0x2e   :  { %v2650_v7 = vld [vmem:[%s3786_s1 + $0x604] ss:$16 sps:$4 sm:$0xff]   ;;  %v2654_v13 = vld [vmem:[%s3786_s1 + $0x7e0] ss:$16 sps:$4 sm:$0xff]  }
  0x2f   :  { %1755 = vmatpush2.bf16.msra.mxu0 %v2565_v51  ;;  %v2615_v51 = vld [vmem:[%s3786_s1 + $0x4a0] ss:$16 sps:$4 sm:$0xff]   ;;  %v2656_v11 = vld [vmem:[%s3786_s1 + $0x7e4] ss:$16 sps:$4 sm:$0xff]  }
  0x30   :  { %1798 = vmatpush2.bf16.msra.mxu1 %v2566_v52  ;;  %1756 = vmatprep.subr.bf16.mxu0 %v2567_v53  ;;  %v2618_v52 = vld [vmem:[%s3786_s1 + $0x6a0] ss:$16 sps:$4 sm:$0xff]   ;;  %v2623_v53 = vld [vmem:[%s3786_s1 + $0x484] ss:$16 sps:$4 sm:$0xff]  }
  0x31   :  { %1799 = vmatprep.subr.bf16.mxu1 %v2569_v55  ;;  %v2626_v55 = vld [vmem:[%s3786_s1 + $0x684] ss:$16 sps:$4 sm:$0xff]  }
  0x32   :  { %v2662_v15 = vld [vmem:[%s3786_s1 + $0x7c4] ss:$16 sps:$4 sm:$0xff]  }
  0x33   :  { %1757 = vmatpush2.bf16.msra.mxu0 %v2571_v57  ;;  %v2624_v57 = vld [vmem:[%s3786_s1 + $0x680] ss:$16 sps:$4 sm:$0xff]   ;;  %v2665_v24 = vld [vmem:[%s3786_s1 + $0x5a4] ss:$16 sps:$4 sm:$0xff]  }
  0x34   :  { %1800 = vmatpush2.bf16.msra.mxu1 %v2572_v58  ;;  %1758 = vmatprep.subr.bf16.mxu0 %v2573_v61  ;;  %v2629_v58 = vld [vmem:[%s3786_s1 + $0x464] ss:$16 sps:$4 sm:$0xff]   ;;  %v2630_v61 = vld [vmem:[%s3786_s1 + $0x660] ss:$16 sps:$4 sm:$0xff]  }
  0x35   :  { %1801 = vmatprep.subr.bf16.mxu1 %v2575_v62  ;;  %v2635_v62 = vld [vmem:[%s3786_s1 + $0x444] ss:$16 sps:$4 sm:$0xff]  }
  0x36   :  { %v2668_v25 = vld [vmem:[%s3786_s1 + $0x7a4] ss:$16 sps:$4 sm:$0xff]  }
  0x37   :  { %1759 = vmatpush2.bf16.msra.mxu0 %v2577_v9  ;;  %v2648_v9 = vld [vmem:[%s3786_s1 + $0x600] ss:$16 sps:$4 sm:$0xff]   ;;  %v2671_v28 = vld [vmem:[%s3786_s1 + $0x584] ss:$16 sps:$4 sm:$0xff]  }
  0x38   :  { %1802 = vmatpush2.bf16.msra.mxu1 %v2578_v10  ;;  %1760 = vmatprep.subr.bf16.mxu0 %v2579_v12  ;;  %v2653_v10 = vld [vmem:[%s3786_s1 + $0x5e4] ss:$16 sps:$4 sm:$0xff]   ;;  %v2651_v12 = vld [vmem:[%s3786_s1 + $0x5e0] ss:$16 sps:$4 sm:$0xff]  }
  0x39   :  { %1803 = vmatprep.subr.bf16.mxu1 %v2581_v14  ;;  %v2659_v14 = vld [vmem:[%s3786_s1 + $0x5c4] ss:$16 sps:$4 sm:$0xff]  }
  0x3a   :  { %v2674_v29 = vld [vmem:[%s3786_s1 + $0x784] ss:$16 sps:$4 sm:$0xff]  }
  0x3b   :  { %1761 = vmatpush2.bf16.msra.mxu0 %v2583_v20  ;;  %v2657_v20 = vld [vmem:[%s3786_s1 + $0x5c0] ss:$16 sps:$4 sm:$0xff]   ;;  %v2677_v32 = vld [vmem:[%s3786_s1 + $0x564] ss:$16 sps:$4 sm:$0xff]  }
  0x3c   :  { %1804 = vmatpush2.bf16.msra.mxu1 %v2584_v21  ;;  %1762 = vmatprep.subr.bf16.mxu0 %v2585_v26  ;;  %v2660_v21 = vld [vmem:[%s3786_s1 + $0x7c0] ss:$16 sps:$4 sm:$0xff]   ;;  %v2680_v33 = vld [vmem:[%s3786_s1 + $0x764] ss:$16 sps:$4 sm:$0xff]  }
  0x3d   :  { %1805 = vmatprep.subr.bf16.mxu1 %v2587_v27  ;;  %v2663_v26 = vld [vmem:[%s3786_s1 + $0x5a0] ss:$16 sps:$4 sm:$0xff]   ;;  %v2683_v36 = vld [vmem:[%s3786_s1 + $0x544] ss:$16 sps:$4 sm:$0xff]  }
  0x3e   :  { %v2666_v27 = vld [vmem:[%s3786_s1 + $0x7a0] ss:$16 sps:$4 sm:$0xff]   ;;  %v2686_v37 = vld [vmem:[%s3786_s1 + $0x744] ss:$16 sps:$4 sm:$0xff]  }
  0x3f   :  { %1763 = vmatpush2.bf16.msra.mxu0 %v2589_v30  ;;  %v2669_v30 = vld [vmem:[%s3786_s1 + $0x580] ss:$16 sps:$4 sm:$0xff]  }
  0x40   :  { %1806 = vmatpush2.bf16.msra.mxu1 %v2590_v31  ;;  %1818 = vmatprep.subr.bf16.mxu0 %v2605_v34  ;;  %v2672_v31 = vld [vmem:[%s3786_s1 + $0x780] ss:$16 sps:$4 sm:$0xff]  }
  0x41   :  { %1861 = vmatprep.subr.bf16.mxu1 %v2608_v35  ;;  %v2675_v34 = vld [vmem:[%s3786_s1 + $0x560] ss:$16 sps:$4 sm:$0xff]  }
  0x42   :  { %1765 = vmatmul.mubr.bf16.vlgmr.msra.gmra.mxu0 %v3172_v38  ;;  %v2678_v35 = vld [vmem:[%s3786_s1 + $0x760] ss:$16 sps:$4 sm:$0xff]  }
  0x43   :  { %1808 = vmatmul.mubr.bf16.vlgmr.msra.gmra.mxu1 %v3174_v39  ;;  %1819 = vmatpush1.bf16.msra.mxu0 %v2603_v40  ;;  %v2681_v40 = vld [vmem:[%s3786_s1 + $0x540] ss:$16 sps:$4 sm:$0xff]  }
  0x44   :  { %1862 = vmatpush1.bf16.msra.mxu1 %v2606_v41  ;;  %1820 = vmatprep.subr.bf16.mxu0 %v2611_v42  ;;  %v2684_v41 = vld [vmem:[%s3786_s1 + $0x740] ss:$16 sps:$4 sm:$0xff]   ;;  %v2689_v42 = vld [vmem:[%s3786_s1 + $0x524] ss:$16 sps:$4 sm:$0xff]  }
  0x45   :  { %1863 = vmatprep.subr.bf16.mxu1 %v2614_v43  ;;  %1850 = vmatprep.mubr.bf16.mxu0 %v3188_v44  ;;  %v2692_v43 = vld [vmem:[%s3786_s1 + $0x724] ss:$16 sps:$4 sm:$0xff]  }
  0x46   :  { %1893 = vmatprep.mubr.bf16.mxu1 %v3190_v45 }
  0x47   :  { %1821 = vmatpush1.bf16.msra.mxu0 %v2609_v46  ;;  %v2687_v46 = vld [vmem:[%s3786_s1 + $0x520] ss:$16 sps:$4 sm:$0xff]  }
  0x48   :  { %1864 = vmatpush1.bf16.msra.mxu1 %v2612_v48  ;;  %1822 = vmatprep.subr.bf16.mxu0 %v2617_v49  ;;  %v2690_v48 = vld [vmem:[%s3786_s1 + $0x720] ss:$16 sps:$4 sm:$0xff]   ;;  %v374_v49 = vcombine.low %v3123_v16, %v3126_v17 }
  0x49   :  { %1865 = vmatprep.subr.bf16.mxu1 %v2620_v50  ;;  %v378_v50 = vcombine.low %v3129_v18, %v3132_v19  ;;  %v2696_v16 = vld [vmem:[%s3786_s1 + $0x700] ss:$16 sps:$4 sm:$0xff]   ;;  %v2701_v19 = vld [vmem:[%s3786_s1 + $0xec] ss:$16 sps:$4 sm:$0xff]  }
  0x4a   :  { %v393_v17 = vrot.slane %v374_v49, %v3063_v54  ;;  %v2776_v49 = vld [vmem:[%s3786_s1 + $0x36c] ss:$16 sps:$4 sm:$0xff]  }
  0x4b   :  { %1823 = vmatpush1.bf16.msra.mxu0 %v2615_v51  ;;  %v2695_v51 = vld [vmem:[%s3786_s1 + $0x504] ss:$16 sps:$4 sm:$0xff]   ;;  %v421_v18 = vrot.slane %v378_v50, %v3063_v54  ;;  %v2699_v54 = vld [vmem:[%s3786_s1 + $0xe8] ss:$16 sps:$4 sm:$0xff]  }
  0x4c   :  { %1866 = vmatpush1.bf16.msra.mxu1 %v2618_v52  ;;  %1824 = vmatprep.subr.bf16.mxu0 %v2623_v53  ;;  %v2698_v52 = vld [vmem:[%s3786_s1 + $0x704] ss:$16 sps:$4 sm:$0xff]   ;;  %v2693_v53 = vld [vmem:[%s3786_s1 + $0x500] ss:$16 sps:$4 sm:$0xff]   ;;  %v2771_v50 = vld [vmem:[%s3786_s1 + $0x168] ss:$16 sps:$4 sm:$0xff]  }
  0x4d   :  { %1867 = vmatprep.subr.bf16.mxu1 %v2626_v55  ;;  %v2704_v55 = vld [vmem:[%s3786_s1 + $0x2ec] ss:$16 sps:$4 sm:$0xff]  }
  0x4f   :  { %1825 = vmatpush1.bf16.msra.mxu0 %v2621_v56  ;;  %v3382_v56 = vcombine.low %v393_v17, %v421_v18 }
  0x50   :  { %1868 = vmatpush1.bf16.msra.mxu1 %v2624_v57  ;;  %1826 = vmatprep.subr.bf16.mxu0 %v2629_v58  ;;  %v3384_v57 = vcombine.high %v393_v17, %v421_v18  ;;  %v2702_v58 = vld [vmem:[%s3786_s1 + $0x2e8] ss:$16 sps:$4 sm:$0xff]   ;;  %v2785_v18 = vld [vmem:[%s3786_s1 + $0x12c] ss:$16 sps:$4 sm:$0xff]  }
  0x51   :  { %1869 = vmatprep.subr.bf16.mxu1 %v2632_v59  ;;  %v2707_v59 = vld [vmem:[%s3786_s1 + $0xcc] ss:$16 sps:$4 sm:$0xff]   ;;  %v2780_v17 = vld [vmem:[%s3786_s1 + $0x348] ss:$16 sps:$4 sm:$0xff]  }
  0x53   :  { %1827 = vmatpush1.bf16.msra.mxu0 %v2627_v60  ;;  %v2710_v60 = vld [vmem:[%s3786_s1 + $0x2cc] ss:$16 sps:$4 sm:$0xff]  }
  0x54   :  { %1870 = vmatpush1.bf16.msra.mxu1 %v2630_v61  ;;  %1828 = vmatprep.subr.bf16.mxu0 %v2635_v62  ;;  %v2705_v61 = vld [vmem:[%s3786_s1 + $0xc8] ss:$16 sps:$4 sm:$0xff]  }
  0x55   :  { %1871 = vmatprep.subr.bf16.mxu1 %v2638_v63  ;;  %v2708_v62 = vld [vmem:[%s3786_s1 + $0x2c8] ss:$16 sps:$4 sm:$0xff]   ;;  %v2713_v63 = vld [vmem:[%s3786_s1 + $0xac] ss:$16 sps:$4 sm:$0xff]  }
  0x57   :  { %1829 = vmatpush1.bf16.msra.mxu0 %v2633_v0  ;;  %v2716_v0 = vld [vmem:[%s3786_s1 + $0x2ac] ss:$16 sps:$4 sm:$0xff]  }
  0x58   :  { %1872 = vmatpush1.bf16.msra.mxu1 %v2636_v1  ;;  %1830 = vmatprep.subr.bf16.mxu0 %v2641_v2  ;;  %v2711_v1 = vld [vmem:[%s3786_s1 + $0xa8] ss:$16 sps:$4 sm:$0xff]  }
  0x59   :  { %1873 = vmatprep.subr.bf16.mxu1 %v2644_v3  ;;  %v2714_v2 = vld [vmem:[%s3786_s1 + $0x2a8] ss:$16 sps:$4 sm:$0xff]   ;;  %v2719_v3 = vld [vmem:[%s3786_s1 + $0x8c] ss:$16 sps:$4 sm:$0xff]  }
  0x5b   :  { %1831 = vmatpush1.bf16.msra.mxu0 %v2639_v4  ;;  %v2720_v4 = vld [vmem:[%s3786_s1 + $0x288] ss:$16 sps:$4 sm:$0xff]  }
  0x5c   :  { %1874 = vmatpush1.bf16.msra.mxu1 %v2642_v5  ;;  %1832 = vmatprep.subr.bf16.mxu0 %v2647_v6  ;;  %v2725_v5 = vld [vmem:[%s3786_s1 + $0x6c] ss:$16 sps:$4 sm:$0xff]  }
  0x5d   :  { %1875 = vmatprep.subr.bf16.mxu1 %v2650_v7  ;;  %v2728_v6 = vld [vmem:[%s3786_s1 + $0x26c] ss:$16 sps:$4 sm:$0xff]   ;;  %v2723_v7 = vld [vmem:[%s3786_s1 + $0x68] ss:$16 sps:$4 sm:$0xff]  }
  0x5f   :  { %1833 = vmatpush1.bf16.msra.mxu0 %v2645_v8  ;;  %v2726_v8 = vld [vmem:[%s3786_s1 + $0x268] ss:$16 sps:$4 sm:$0xff]  }
  0x60   :  { %1876 = vmatpush1.bf16.msra.mxu1 %v2648_v9  ;;  %1834 = vmatprep.subr.bf16.mxu0 %v2653_v10  ;;  %v2731_v9 = vld [vmem:[%s3786_s1 + $0x4c] ss:$16 sps:$4 sm:$0xff]  }
  0x61   :  { %1877 = vmatprep.subr.bf16.mxu1 %v2656_v11  ;;  %v2734_v10 = vld [vmem:[%s3786_s1 + $0x24c] ss:$16 sps:$4 sm:$0xff]   ;;  %v2729_v11 = vld [vmem:[%s3786_s1 + $0x48] ss:$16 sps:$4 sm:$0xff]  }
  0x63   :  { %1835 = vmatpush2.bf16.msra.mxu0 %v2651_v12  ;;  %v2732_v12 = vld [vmem:[%s3786_s1 + $0x248] ss:$16 sps:$4 sm:$0xff]  }
  0x64   :  { %1878 = vmatpush2.bf16.msra.mxu1 %v2654_v13  ;;  %1836 = vmatprep.subr.bf16.mxu0 %v2659_v14  ;;  %v2737_v13 = vld [vmem:[%s3786_s1 + $0x2c] ss:$16 sps:$4 sm:$0xff]  }
  0x65   :  { %1879 = vmatprep.subr.bf16.mxu1 %v2662_v15  ;;  %v2740_v14 = vld [vmem:[%s3786_s1 + $0x22c] ss:$16 sps:$4 sm:$0xff]   ;;  %v2735_v15 = vld [vmem:[%s3786_s1 + $0x28] ss:$16 sps:$4 sm:$0xff]  }
  0x67   :  { %1837 = vmatpush2.bf16.msra.mxu0 %v2657_v20  ;;  %v2738_v20 = vld [vmem:[%s3786_s1 + $0x228] ss:$16 sps:$4 sm:$0xff]  }
  0x68   :  { %1880 = vmatpush2.bf16.msra.mxu1 %v2660_v21  ;;  %1838 = vmatprep.subr.bf16.mxu0 %v2665_v24  ;;  %v2743_v21 = vld [vmem:[%s3786_s1 + $0xc] ss:$16 sps:$4 sm:$0xff]  }
  0x69   :  { %1881 = vmatprep.subr.bf16.mxu1 %v2668_v25  ;;  %v2746_v24 = vld [vmem:[%s3786_s1 + $0x20c] ss:$16 sps:$4 sm:$0xff]   ;;  %v2741_v25 = vld [vmem:[%s3786_s1 + $0x8] ss:$16 sps:$4 sm:$0xff]  }
  0x6b   :  { %1839 = vmatpush2.bf16.msra.mxu0 %v2663_v26  ;;  %v2744_v26 = vld [vmem:[%s3786_s1 + $0x208] ss:$16 sps:$4 sm:$0xff]  }
  0x6c   :  { %1882 = vmatpush2.bf16.msra.mxu1 %v2666_v27  ;;  %1840 = vmatprep.subr.bf16.mxu0 %v2671_v28  ;;  %v2749_v27 = vld [vmem:[%s3786_s1 + $0x1ec] ss:$16 sps:$4 sm:$0xff]  }
  0x6d   :  { %1883 = vmatprep.subr.bf16.mxu1 %v2674_v29  ;;  %v2752_v28 = vld [vmem:[%s3786_s1 + $0x3ec] ss:$16 sps:$4 sm:$0xff]   ;;  %v2747_v29 = vld [vmem:[%s3786_s1 + $0x1e8] ss:$16 sps:$4 sm:$0xff]  }
  0x6f   :  { %1841 = vmatpush2.bf16.msra.mxu0 %v2669_v30  ;;  %v2750_v30 = vld [vmem:[%s3786_s1 + $0x3e8] ss:$16 sps:$4 sm:$0xff]  }
  0x70   :  { %1884 = vmatpush2.bf16.msra.mxu1 %v2672_v31  ;;  %1842 = vmatprep.subr.bf16.mxu0 %v2677_v32  ;;  %v2755_v31 = vld [vmem:[%s3786_s1 + $0x1cc] ss:$16 sps:$4 sm:$0xff]  }
  0x71   :  { %1885 = vmatprep.subr.bf16.mxu1 %v2680_v33  ;;  %v2758_v32 = vld [vmem:[%s3786_s1 + $0x3cc] ss:$16 sps:$4 sm:$0xff]   ;;  %v2753_v33 = vld [vmem:[%s3786_s1 + $0x1c8] ss:$16 sps:$4 sm:$0xff]  }
  0x73   :  { %1843 = vmatpush2.bf16.msra.mxu0 %v2675_v34  ;;  %v2756_v34 = vld [vmem:[%s3786_s1 + $0x3c8] ss:$16 sps:$4 sm:$0xff]  }
  0x74   :  { %1886 = vmatpush2.bf16.msra.mxu1 %v2678_v35  ;;  %1844 = vmatprep.subr.bf16.mxu0 %v2683_v36  ;;  %v2761_v35 = vld [vmem:[%s3786_s1 + $0x1ac] ss:$16 sps:$4 sm:$0xff]  }
  0x75   :  { %1887 = vmatprep.subr.bf16.mxu1 %v2686_v37  ;;  %v2764_v36 = vld [vmem:[%s3786_s1 + $0x3ac] ss:$16 sps:$4 sm:$0xff]   ;;  %v2759_v37 = vld [vmem:[%s3786_s1 + $0x1a8] ss:$16 sps:$4 sm:$0xff]  }
  0x77   :  { %1845 = vmatpush2.bf16.msra.mxu0 %v2681_v40  ;;  %v2762_v40 = vld [vmem:[%s3786_s1 + $0x3a8] ss:$16 sps:$4 sm:$0xff]  }
  0x78   :  { %1888 = vmatpush2.bf16.msra.mxu1 %v2684_v41  ;;  %1846 = vmatprep.subr.bf16.mxu0 %v2689_v42  ;;  %v2767_v41 = vld [vmem:[%s3786_s1 + $0x18c] ss:$16 sps:$4 sm:$0xff]  }
  0x79   :  { %1889 = vmatprep.subr.bf16.mxu1 %v2692_v43  ;;  %v2770_v42 = vld [vmem:[%s3786_s1 + $0x38c] ss:$16 sps:$4 sm:$0xff]   ;;  %v2765_v43 = vld [vmem:[%s3786_s1 + $0x188] ss:$16 sps:$4 sm:$0xff]  }
  0x7b   :  { %1847 = vmatpush2.bf16.msra.mxu0 %v2687_v46  ;;  %v2768_v46 = vld [vmem:[%s3786_s1 + $0x388] ss:$16 sps:$4 sm:$0xff]  }
  0x7c   :  { %1890 = vmatpush2.bf16.msra.mxu1 %v2690_v48  ;;  %1848 = vmatprep.subr.bf16.mxu0 %v2695_v51  ;;  %v2773_v48 = vld [vmem:[%s3786_s1 + $0x16c] ss:$16 sps:$4 sm:$0xff]   ;;  %v2774_v51 = vld [vmem:[%s3786_s1 + $0x368] ss:$16 sps:$4 sm:$0xff]  }
  0x7d   :  { %1891 = vmatprep.subr.bf16.mxu1 %v2698_v52  ;;  %v2779_v52 = vld [vmem:[%s3786_s1 + $0x14c] ss:$16 sps:$4 sm:$0xff]  }
  0x7f   :  { %1849 = vmatpush2.bf16.msra.mxu0 %v2693_v53  ;;  %v2782_v53 = vld [vmem:[%s3786_s1 + $0x34c] ss:$16 sps:$4 sm:$0xff]  }
  0x80   :  { %1892 = vmatpush2.bf16.msra.mxu1 %v2696_v16  ;;  %1904 = vmatprep.subr.bf16.mxu0 %v2701_v19  ;;  %v2777_v16 = vld [vmem:[%s3786_s1 + $0x148] ss:$16 sps:$4 sm:$0xff]   ;;  %v2788_v19 = vld [vmem:[%s3786_s1 + $0x32c] ss:$16 sps:$4 sm:$0xff]  }
  0x81   :  { %1947 = vmatprep.subr.bf16.mxu1 %v2704_v55  ;;  %v2783_v55 = vld [vmem:[%s3786_s1 + $0x128] ss:$16 sps:$4 sm:$0xff]  }
  0x82   :  { %1851 = vmatmul.mubr.bf16.vlgmr.msra.gmra.mxu0 %v3382_v56 }
  0x83   :  { %1894 = vmatmul.mubr.bf16.vlgmr.msra.gmra.mxu1 %v3384_v57  ;;  %1905 = vmatpush1.bf16.msra.mxu0 %v2699_v54  ;;  %v2786_v54 = vld [vmem:[%s3786_s1 + $0x328] ss:$16 sps:$4 sm:$0xff]  }
  0x84   :  { %1948 = vmatpush1.bf16.msra.mxu1 %v2702_v58  ;;  %1906 = vmatprep.subr.bf16.mxu0 %v2707_v59  ;;  %v2791_v58 = vld [vmem:[%s3786_s1 + $0x10c] ss:$16 sps:$4 sm:$0xff]  }
  0x85   :  { %1949 = vmatprep.subr.bf16.mxu1 %v2710_v60  ;;  %1936 = vmatprep.mubr.bf16.mxu0 %v3140_v22  ;;  %v2722_v22 = vld [vmem:[%s3786_s1 + $0x28c] ss:$16 sps:$4 sm:$0xff]   ;;  %v2789_v60 = vld [vmem:[%s3786_s1 + $0x108] ss:$16 sps:$4 sm:$0xff]  }
  0x86   :  { %1979 = vmatprep.mubr.bf16.mxu1 %v3142_v23  ;;  %v2717_v23 = vld [vmem:[%s3786_s1 + $0x88] ss:$16 sps:$4 sm:$0xff]   ;;  %v2794_v59 = vld [vmem:[%s3786_s1 + $0x30c] ss:$16 sps:$4 sm:$0xff]  }
  0x87   :  { %1907 = vmatpush1.bf16.msra.mxu0 %v2705_v61  ;;  %v2792_v61 = vld [vmem:[%s3786_s1 + $0x308] ss:$16 sps:$4 sm:$0xff]  }
  0x88   :  { %1950 = vmatpush1.bf16.msra.mxu1 %v2708_v62  ;;  %1908 = vmatprep.subr.bf16.mxu0 %v2713_v63  ;;  %v2797_v62 = vld [vmem:[%s3786_s1 + $0x4ec] ss:$16 sps:$4 sm:$0xff]  }
  0x89   :  { %1951 = vmatprep.subr.bf16.mxu1 %v2716_v0  ;;  %v2800_v63 = vld [vmem:[%s3786_s1 + $0x6ec] ss:$16 sps:$4 sm:$0xff]   ;;  %v2795_v0 = vld [vmem:[%s3786_s1 + $0x4e8] ss:$16 sps:$4 sm:$0xff]  }
  0x8b   :  { %1909 = vmatpush1.bf16.msra.mxu0 %v2711_v1  ;;  %v2798_v1 = vld [vmem:[%s3786_s1 + $0x6e8] ss:$16 sps:$4 sm:$0xff]  }
  0x8c   :  { %1952 = vmatpush1.bf16.msra.mxu1 %v2714_v2  ;;  %1910 = vmatprep.subr.bf16.mxu0 %v2719_v3  ;;  %v2803_v2 = vld [vmem:[%s3786_s1 + $0x4cc] ss:$16 sps:$4 sm:$0xff]  }
  0x8d   :  { %1953 = vmatprep.subr.bf16.mxu1 %v2722_v22  ;;  %v2806_v3 = vld [vmem:[%s3786_s1 + $0x6cc] ss:$16 sps:$4 sm:$0xff]   ;;  %v2801_v22 = vld [vmem:[%s3786_s1 + $0x4c8] ss:$16 sps:$4 sm:$0xff]  }
  0x8f   :  { %1911 = vmatpush1.bf16.msra.mxu0 %v2717_v23  ;;  %v2804_v23 = vld [vmem:[%s3786_s1 + $0x6c8] ss:$16 sps:$4 sm:$0xff]  }
  0x90   :  { %1954 = vmatpush1.bf16.msra.mxu1 %v2720_v4  ;;  %1912 = vmatprep.subr.bf16.mxu0 %v2725_v5  ;;  %v2809_v4 = vld [vmem:[%s3786_s1 + $0x4ac] ss:$16 sps:$4 sm:$0xff]   ;;  %v2810_v5 = vld [vmem:[%s3786_s1 + $0x6a8] ss:$16 sps:$4 sm:$0xff]  }
  0x91   :  { %1955 = vmatprep.subr.bf16.mxu1 %v2728_v6  ;;  %v2815_v6 = vld [vmem:[%s3786_s1 + $0x48c] ss:$16 sps:$4 sm:$0xff]  }
  0x93   :  { %1913 = vmatpush1.bf16.msra.mxu0 %v2723_v7  ;;  %v2816_v7 = vld [vmem:[%s3786_s1 + $0x688] ss:$16 sps:$4 sm:$0xff]  }
  0x94   :  { %1956 = vmatpush1.bf16.msra.mxu1 %v2726_v8  ;;  %1914 = vmatprep.subr.bf16.mxu0 %v2731_v9  ;;  %v2821_v8 = vld [vmem:[%s3786_s1 + $0x46c] ss:$16 sps:$4 sm:$0xff]  }
  0x95   :  { %1957 = vmatprep.subr.bf16.mxu1 %v2734_v10  ;;  %v2824_v9 = vld [vmem:[%s3786_s1 + $0x66c] ss:$16 sps:$4 sm:$0xff]   ;;  %v2819_v10 = vld [vmem:[%s3786_s1 + $0x468] ss:$16 sps:$4 sm:$0xff]  }
  0x97   :  { %1915 = vmatpush1.bf16.msra.mxu0 %v2729_v11  ;;  %v2822_v11 = vld [vmem:[%s3786_s1 + $0x668] ss:$16 sps:$4 sm:$0xff]  }
  0x98   :  { %1958 = vmatpush1.bf16.msra.mxu1 %v2732_v12  ;;  %1916 = vmatprep.subr.bf16.mxu0 %v2737_v13  ;;  %v2827_v12 = vld [vmem:[%s3786_s1 + $0x44c] ss:$16 sps:$4 sm:$0xff]  }
  0x99   :  { %1959 = vmatprep.subr.bf16.mxu1 %v2740_v14  ;;  %v2830_v13 = vld [vmem:[%s3786_s1 + $0x64c] ss:$16 sps:$4 sm:$0xff]   ;;  %v2825_v14 = vld [vmem:[%s3786_s1 + $0x448] ss:$16 sps:$4 sm:$0xff]  }
  0x9b   :  { %1917 = vmatpush1.bf16.msra.mxu0 %v2735_v15  ;;  %v2828_v15 = vld [vmem:[%s3786_s1 + $0x648] ss:$16 sps:$4 sm:$0xff]  }
  0x9c   :  { %1960 = vmatpush1.bf16.msra.mxu1 %v2738_v20  ;;  %1918 = vmatprep.subr.bf16.mxu0 %v2743_v21  ;;  %v2833_v20 = vld [vmem:[%s3786_s1 + $0x42c] ss:$16 sps:$4 sm:$0xff]  }
  0x9d   :  { %1961 = vmatprep.subr.bf16.mxu1 %v2746_v24  ;;  %v2836_v21 = vld [vmem:[%s3786_s1 + $0x62c] ss:$16 sps:$4 sm:$0xff]   ;;  %v2831_v24 = vld [vmem:[%s3786_s1 + $0x428] ss:$16 sps:$4 sm:$0xff]  }
  0x9f   :  { %1919 = vmatpush1.bf16.msra.mxu0 %v2741_v25  ;;  %v2834_v25 = vld [vmem:[%s3786_s1 + $0x628] ss:$16 sps:$4 sm:$0xff]  }
  0xa0   :  { %1962 = vmatpush1.bf16.msra.mxu1 %v2744_v26  ;;  %1920 = vmatprep.subr.bf16.mxu0 %v2749_v27  ;;  %v2839_v26 = vld [vmem:[%s3786_s1 + $0x40c] ss:$16 sps:$4 sm:$0xff]  }
  0xa1   :  { %1963 = vmatprep.subr.bf16.mxu1 %v2752_v28  ;;  %v2842_v27 = vld [vmem:[%s3786_s1 + $0x60c] ss:$16 sps:$4 sm:$0xff]   ;;  %v2837_v28 = vld [vmem:[%s3786_s1 + $0x408] ss:$16 sps:$4 sm:$0xff]  }
  0xa3   :  { %1921 = vmatpush2.bf16.msra.mxu0 %v2747_v29  ;;  %v2840_v29 = vld [vmem:[%s3786_s1 + $0x608] ss:$16 sps:$4 sm:$0xff]  }
  0xa4   :  { %1964 = vmatpush2.bf16.msra.mxu1 %v2750_v30  ;;  %1922 = vmatprep.subr.bf16.mxu0 %v2755_v31  ;;  %v2845_v30 = vld [vmem:[%s3786_s1 + $0x5ec] ss:$16 sps:$4 sm:$0xff]  }
  0xa5   :  { %1965 = vmatprep.subr.bf16.mxu1 %v2758_v32  ;;  %v2848_v31 = vld [vmem:[%s3786_s1 + $0x7ec] ss:$16 sps:$4 sm:$0xff]   ;;  %v2843_v32 = vld [vmem:[%s3786_s1 + $0x5e8] ss:$16 sps:$4 sm:$0xff]  }
  0xa7   :  { %1923 = vmatpush2.bf16.msra.mxu0 %v2753_v33  ;;  %v2846_v33 = vld [vmem:[%s3786_s1 + $0x7e8] ss:$16 sps:$4 sm:$0xff]  }
  0xa8   :  { %1966 = vmatpush2.bf16.msra.mxu1 %v2756_v34  ;;  %1924 = vmatprep.subr.bf16.mxu0 %v2761_v35  ;;  %v2851_v34 = vld [vmem:[%s3786_s1 + $0x5cc] ss:$16 sps:$4 sm:$0xff]  }
  0xa9   :  { %1967 = vmatprep.subr.bf16.mxu1 %v2764_v36  ;;  %v2854_v35 = vld [vmem:[%s3786_s1 + $0x7cc] ss:$16 sps:$4 sm:$0xff]   ;;  %v2849_v36 = vld [vmem:[%s3786_s1 + $0x5c8] ss:$16 sps:$4 sm:$0xff]  }
  0xab   :  { %1925 = vmatpush2.bf16.msra.mxu0 %v2759_v37  ;;  %v2852_v37 = vld [vmem:[%s3786_s1 + $0x7c8] ss:$16 sps:$4 sm:$0xff]  }
  0xac   :  { %1968 = vmatpush2.bf16.msra.mxu1 %v2762_v40  ;;  %1926 = vmatprep.subr.bf16.mxu0 %v2767_v41  ;;  %v2857_v40 = vld [vmem:[%s3786_s1 + $0x5ac] ss:$16 sps:$4 sm:$0xff]  }
  0xad   :  { %1969 = vmatprep.subr.bf16.mxu1 %v2770_v42  ;;  %v2860_v41 = vld [vmem:[%s3786_s1 + $0x7ac] ss:$16 sps:$4 sm:$0xff]   ;;  %v2855_v42 = vld [vmem:[%s3786_s1 + $0x5a8] ss:$16 sps:$4 sm:$0xff]  }
  0xaf   :  { %1927 = vmatpush2.bf16.msra.mxu0 %v2765_v43  ;;  %v2858_v43 = vld [vmem:[%s3786_s1 + $0x7a8] ss:$16 sps:$4 sm:$0xff]  }
  0xb0   :  { %1970 = vmatpush2.bf16.msra.mxu1 %v2768_v46  ;;  %1928 = vmatprep.subr.bf16.mxu0 %v2773_v48  ;;  %v2863_v46 = vld [vmem:[%s3786_s1 + $0x58c] ss:$16 sps:$4 sm:$0xff]  }
  0xb1   :  { %1971 = vmatprep.subr.bf16.mxu1 %v2776_v49  ;;  %v2866_v48 = vld [vmem:[%s3786_s1 + $0x78c] ss:$16 sps:$4 sm:$0xff]   ;;  %v2861_v49 = vld [vmem:[%s3786_s1 + $0x588] ss:$16 sps:$4 sm:$0xff]  }
  0xb3   :  { %1929 = vmatpush2.bf16.msra.mxu0 %v2771_v50  ;;  %v2864_v50 = vld [vmem:[%s3786_s1 + $0x788] ss:$16 sps:$4 sm:$0xff]  }
  0xb4   :  { %1972 = vmatpush2.bf16.msra.mxu1 %v2774_v51  ;;  %1930 = vmatprep.subr.bf16.mxu0 %v2779_v52  ;;  %v2869_v51 = vld [vmem:[%s3786_s1 + $0x56c] ss:$16 sps:$4 sm:$0xff]  }
  0xb5   :  { %1973 = vmatprep.subr.bf16.mxu1 %v2782_v53  ;;  %v2872_v52 = vld [vmem:[%s3786_s1 + $0x76c] ss:$16 sps:$4 sm:$0xff]   ;;  %v2867_v53 = vld [vmem:[%s3786_s1 + $0x568] ss:$16 sps:$4 sm:$0xff]  }
  0xb7   :  { %1931 = vmatpush2.bf16.msra.mxu0 %v2777_v16  ;;  %v2870_v16 = vld [vmem:[%s3786_s1 + $0x768] ss:$16 sps:$4 sm:$0xff]  }
  0xb8   :  { %1974 = vmatpush2.bf16.msra.mxu1 %v2780_v17  ;;  %1932 = vmatprep.subr.bf16.mxu0 %v2785_v18  ;;  %v2875_v17 = vld [vmem:[%s3786_s1 + $0x54c] ss:$16 sps:$4 sm:$0xff]  }
  0xb9   :  { %1975 = vmatprep.subr.bf16.mxu1 %v2788_v19  ;;  %v2878_v18 = vld [vmem:[%s3786_s1 + $0x74c] ss:$16 sps:$4 sm:$0xff]   ;;  %v2873_v19 = vld [vmem:[%s3786_s1 + $0x548] ss:$16 sps:$4 sm:$0xff]  }
  0xbb   :  { %1933 = vmatpush2.bf16.msra.mxu0 %v2783_v55  ;;  %v2876_v55 = vld [vmem:[%s3786_s1 + $0x748] ss:$16 sps:$4 sm:$0xff]  }
  0xbc   :  { %1976 = vmatpush2.bf16.msra.mxu1 %v2786_v54  ;;  %1934 = vmatprep.subr.bf16.mxu0 %v2791_v58  ;;  %v2881_v54 = vld [vmem:[%s3786_s1 + $0x52c] ss:$16 sps:$4 sm:$0xff]  }
  0xbd   :  { %1977 = vmatprep.subr.bf16.mxu1 %v2794_v59  ;;  %v2884_v58 = vld [vmem:[%s3786_s1 + $0x72c] ss:$16 sps:$4 sm:$0xff]   ;;  %v2879_v59 = vld [vmem:[%s3786_s1 + $0x528] ss:$16 sps:$4 sm:$0xff]  }
  0xbf   :  { %1935 = vmatpush2.bf16.msra.mxu0 %v2789_v60  ;;  %v2882_v60 = vld [vmem:[%s3786_s1 + $0x728] ss:$16 sps:$4 sm:$0xff]  }
  0xc0   :  { %1978 = vmatpush2.bf16.msra.mxu1 %v2792_v61  ;;  %1990 = vmatprep.subr.bf16.mxu0 %v2797_v62  ;;  %v2887_v61 = vld [vmem:[%s3786_s1 + $0x50c] ss:$16 sps:$4 sm:$0xff]  }
  0xc1   :  { %2033 = vmatprep.subr.bf16.mxu1 %v2800_v63  ;;  %v2890_v62 = vld [vmem:[%s3786_s1 + $0x70c] ss:$16 sps:$4 sm:$0xff]   ;;  %v2885_v63 = vld [vmem:[%s3786_s1 + $0x508] ss:$16 sps:$4 sm:$0xff]  }
  0xc2   :  { %1937 = vmatmul.mubr.bf16.vlgmr.msra.gmra.mxu0 %v3172_v38  ;;  %v2812_v38 = vld [vmem:[%s3786_s1 + $0x6ac] ss:$16 sps:$4 sm:$0xff]  }
  0xc3   :  { %1980 = vmatmul.mubr.bf16.vlgmr.msra.gmra.mxu1 %v3174_v39  ;;  %1991 = vmatpush1.bf16.msra.mxu0 %v2795_v0  ;;  %v2807_v39 = vld [vmem:[%s3786_s1 + $0x4a8] ss:$16 sps:$4 sm:$0xff]  }
  0xc4   :  { %2034 = vmatpush1.bf16.msra.mxu1 %v2798_v1  ;;  %1992 = vmatprep.subr.bf16.mxu0 %v2803_v2  ;;  %v2888_v0 = vld [vmem:[%s3786_s1 + $0x708] ss:$16 sps:$4 sm:$0xff]   ;;  %v282_v1 = vsub.s32 0, %v3045_v47  ;;  %v278_v2 = vld [vmem:[%s3787_s2] sm:$0xf] }
  0xc5   :  { %2035 = vmatprep.subr.bf16.mxu1 %v2806_v3  ;;  %2022 = vmatprep.mubr.bf16.mxu0 %v3188_v44  ;;  %v2818_v44 = vld [vmem:[%s3786_s1 + $0x68c] ss:$16 sps:$4 sm:$0xff]   ;;  %v286_v3 = vsub.s32 1, %v3045_v47 }
  0xc6   :  { %2065 = vmatprep.mubr.bf16.mxu1 %v3190_v45  ;;  %v2813_v45 = vld [vmem:[%s3786_s1 + $0x488] ss:$16 sps:$4 sm:$0xff]  }
  0xc7   :  { %1993 = vmatpush1.bf16.msra.mxu0 %v2801_v22  ;;  %v283_v22 = vrot.slane %v278_v2, %v282_v1 }
  0xc8   :  { %2036 = vmatpush1.bf16.msra.mxu1 %v2804_v23  ;;  %1994 = vmatprep.subr.bf16.mxu0 %v2809_v4  ;;  %v287_v23 = vrot.slane %v278_v2, %v286_v3 }
  0xc9   :  { %2037 = vmatprep.subr.bf16.mxu1 %v2812_v38 }
  0xcb   :  { %1995 = vmatpush1.bf16.msra.mxu0 %v2807_v39 }
  0xcc   :  { %2038 = vmatpush1.bf16.msra.mxu1 %v2810_v5  ;;  %1996 = vmatprep.subr.bf16.mxu0 %v2815_v6 }
  0xcd   :  { %2039 = vmatprep.subr.bf16.mxu1 %v2818_v44 }
  0xcf   :  { %1997 = vmatpush1.bf16.msra.mxu0 %v2813_v45 }
  0xd0   :  { %2040 = vmatpush1.bf16.msra.mxu1 %v2816_v7  ;;  %1998 = vmatprep.subr.bf16.mxu0 %v2821_v8 }
  0xd1   :  { %2041 = vmatprep.subr.bf16.mxu1 %v2824_v9 }
  0xd3   :  { %1999 = vmatpush1.bf16.msra.mxu0 %v2819_v10 }
  0xd4   :  { %2042 = vmatpush1.bf16.msra.mxu1 %v2822_v11  ;;  %2000 = vmatprep.subr.bf16.mxu0 %v2827_v12 }
  0xd5   :  { %2043 = vmatprep.subr.bf16.mxu1 %v2830_v13 }
  0xd7   :  { %2001 = vmatpush1.bf16.msra.mxu0 %v2825_v14 }
  0xd8   :  { %2044 = vmatpush1.bf16.msra.mxu1 %v2828_v15  ;;  %2002 = vmatprep.subr.bf16.mxu0 %v2833_v20 }
  0xd9   :  { %2045 = vmatprep.subr.bf16.mxu1 %v2836_v21 }
  0xdb   :  { %2003 = vmatpush1.bf16.msra.mxu0 %v2831_v24 }
  0xdc   :  { %2046 = vmatpush1.bf16.msra.mxu1 %v2834_v25  ;;  %2004 = vmatprep.subr.bf16.mxu0 %v2839_v26 }
  0xdd   :  { %2047 = vmatprep.subr.bf16.mxu1 %v2842_v27 }
  0xdf   :  { %2005 = vmatpush1.bf16.msra.mxu0 %v2837_v28 }
  0xe0   :  { %2048 = vmatpush1.bf16.msra.mxu1 %v2840_v29  ;;  %2006 = vmatprep.subr.bf16.mxu0 %v2845_v30 }
  0xe1   :  { %2049 = vmatprep.subr.bf16.mxu1 %v2848_v31 }
  0xe3   :  { %2007 = vmatpush2.bf16.msra.mxu0 %v2843_v32 }
  0xe4   :  { %2050 = vmatpush2.bf16.msra.mxu1 %v2846_v33  ;;  %2008 = vmatprep.subr.bf16.mxu0 %v2851_v34 }
  0xe5   :  { %2051 = vmatprep.subr.bf16.mxu1 %v2854_v35 }
  0xe7   :  { %2009 = vmatpush2.bf16.msra.mxu0 %v2849_v36 }
  0xe8   :  { %2052 = vmatpush2.bf16.msra.mxu1 %v2852_v37  ;;  %2010 = vmatprep.subr.bf16.mxu0 %v2857_v40 }
  0xe9   :  { %2053 = vmatprep.subr.bf16.mxu1 %v2860_v41 }
  0xeb   :  { %2011 = vmatpush2.bf16.msra.mxu0 %v2855_v42 }
  0xec   :  { %2054 = vmatpush2.bf16.msra.mxu1 %v2858_v43  ;;  %2012 = vmatprep.subr.bf16.mxu0 %v2863_v46  ;;  %v290_v43 = vsub.s32 2, %v3045_v47  ;;  %v294_v46 = vsub.s32 3, %v3045_v47 }
  0xed   :  { %2055 = vmatprep.subr.bf16.mxu1 %v2866_v48 }
  0xee   :  { %v291_v48 = vrot.slane %v278_v2, %v290_v43 }
  0xef   :  { %2013 = vmatpush2.bf16.msra.mxu0 %v2861_v49  ;;  %v295_v49 = vrot.slane %v278_v2, %v294_v46 }
  0xf0   :  { %2056 = vmatpush2.bf16.msra.mxu1 %v2864_v50  ;;  %2014 = vmatprep.subr.bf16.mxu0 %v2869_v51 }
  0xf1   :  { %2057 = vmatprep.subr.bf16.mxu1 %v2872_v52 }
  0xf3   :  { %2015 = vmatpush2.bf16.msra.mxu0 %v2867_v53  ;;  %v2892_v53 = vmov 1983009808  }
  0xf4   :  { %2058 = vmatpush2.bf16.msra.mxu1 %v2870_v16  ;;  %2016 = vmatprep.subr.bf16.mxu0 %v2875_v17  ;;  %v2113_v16 = vunpack.c.l.s4 %v2892_v53 }
  0xf5   :  { %2059 = vmatprep.subr.bf16.mxu1 %v2878_v18 }
  0xf7   :  { %2017 = vmatpush2.bf16.msra.mxu0 %v2873_v19 }
  0xf8   :  { %2060 = vmatpush2.bf16.msra.mxu1 %v2876_v55  ;;  %2018 = vmatprep.subr.bf16.mxu0 %v2881_v54 }
  0xf9   :  { %2061 = vmatprep.subr.bf16.mxu1 %v2884_v58 }
  0xfb   :  { %2019 = vmatpush2.bf16.msra.mxu0 %v2879_v59 }
  0xfc   :  { %2062 = vmatpush2.bf16.msra.mxu1 %v2882_v60  ;;  %2020 = vmatprep.subr.bf16.mxu0 %v2887_v61  ;;  %v2114_v61 = vunpack.c.0.s8 %v2113_v16 }
  0xfd   :  { %2063 = vmatprep.subr.bf16.mxu1 %v2890_v62 }
  0xff   :  { %2021 = vmatpush2.bf16.msra.mxu0 %v2885_v63 }
 0x100   :  { %2064 = vmatpush2.bf16.msra.mxu1 %v2888_v0 }
 0x102   :  { %v1766_v4 = vpop.f32.mrf.mxu0  ;;  %2023 = vmatmul.mubr.bf16.vlgmr.msra.gmra.mxu0 %v3382_v56 }
 0x103   :  { %v1809_v38 = vpop.f32.mrf.mxu1  ;;  %2066 = vmatmul.mubr.bf16.vlgmr.msra.gmra.mxu1 %v3384_v57  ;;  %v1767_v39 = vadd.f32 %v1766_v4, %v283_v22 }
 0x104   :  { %v1768_v5 = vpop.f32.mrf.mxu0 }
 0x105   :  { %v1811_v6 = vpop.f32.mrf.mxu1  ;;  %v1810_v44 = vadd.f32 %v1809_v38, %v1767_v39  ;;  %v1769_v45 = vadd.f32 %v1768_v5, %v287_v23  ;;  %v2117_v23 = vsub.s32 %v2114_v61, %v3045_v47 }
 0x106   :  { %v1770_v7 = vpop.f32.mrf.mxu0 }
 0x107   :  { %v1813_v8 = vpop.f32.mrf.mxu1  ;;  %v1812_v9 = vadd.f32 %v1811_v6, %v1769_v45 }
 0x108   :  { %v1772_v10 = vpop.f32.mrf.mxu0 }
 0x109   :  { %v1815_v11 = vpop.f32.mrf.mxu1 }
 0x142   :  { %v1852_v12 = vpop.f32.mrf.mxu0 }
 0x143   :  { %v1895_v13 = vpop.f32.mrf.mxu1  ;;  %v1853_v14 = vadd.f32 %v1852_v12, %v1810_v44 }
 0x144   :  { %v1854_v15 = vpop.f32.mrf.mxu0 }
 0x145   :  { %v1897_v20 = vpop.f32.mrf.mxu1  ;;  %v1896_v21 = vadd.f32 %v1895_v13, %v1853_v14  ;;  %v1855_v24 = vadd.f32 %v1854_v15, %v1812_v9 }
 0x146   :  { %v1856_v56 = vpop.f32.mrf.mxu0 }
 0x147   :  { %v1899_v25 = vpop.f32.mrf.mxu1  ;;  %v2084_v57 = vmul.f32 0.3, %v1896_v21  ;;  %v1898_v26 = vadd.f32 %v1897_v20, %v1855_v24  ;;  %vm2076_vm0 = vcmp.ge.f32.partialorder %v1896_v21, 0.0 }
 0x148   :  { %v1858_v27 = vpop.f32.mrf.mxu0 }
 0x149   :  { %v1901_v28 = vpop.f32.mrf.mxu1  ;;  %vm2077_vm1 = vcmp.ge.f32.partialorder %v1898_v26, 0.0  ;;  %v2085_v29 = vmul.f32 0.3, %v1898_v26  ;;  %v2092_v30 = vsel %vm2076_vm0, %v1896_v21, %v2084_v57 }
 0x14b   :  { %v2093_v31 = vsel %vm2077_vm1, %v1898_v26, %v2085_v29 }
 0x14c   :  { %v2108_v32 = vcombine.low %v2092_v30, %v2093_v31 }
 0x14e   :  { %v2118_v5 = vrot.slane %v2108_v32, %v2117_v23 }
 0x182   :  { %v1938_v33 = vpop.f32.mrf.mxu0 }
 0x183   :  { %v1981_v34 = vpop.f32.mrf.mxu1  ;;  %v1939_v50 = vadd.f32 %v1938_v33, %v291_v48 }
 0x184   :  { %v1940_v35 = vpop.f32.mrf.mxu0 }
 0x185   :  { %v1983_v36 = vpop.f32.mrf.mxu1  ;;  %v1941_v51 = vadd.f32 %v1940_v35, %v295_v49  ;;  %v1982_v52 = vadd.f32 %v1981_v34, %v1939_v50 }
 0x186   :  { %v1942_v37 = vpop.f32.mrf.mxu0 }
 0x187   :  { %v1985_v40 = vpop.f32.mrf.mxu1  ;;  %v1984_v19 = vadd.f32 %v1983_v36, %v1941_v51 }
 0x188   :  { %v1944_v41 = vpop.f32.mrf.mxu0 }
 0x189   :  { %v1987_v42 = vpop.f32.mrf.mxu1 }
 0x1c2   :  { %v2024_v17 = vpop.f32.mrf.mxu0 }
 0x1c3   :  { %v2067_v18 = vpop.f32.mrf.mxu1  ;;  %v2025_v55 = vadd.f32 %v2024_v17, %v1982_v52 }
 0x1c4   :  { %v2026_v54 = vpop.f32.mrf.mxu0 }
 0x1c5   :  { %v2069_v58 = vpop.f32.mrf.mxu1  ;;  %v2068_v59 = vadd.f32 %v2067_v18, %v2025_v55  ;;  %v2027_v60 = vadd.f32 %v2026_v54, %v1984_v19 }
 0x1c6   :  { %v2028_v62 = vpop.f32.mrf.mxu0 }
 0x1c7   :  { %v2071_v63 = vpop.f32.mrf.mxu1  ;;  %v2086_v0 = vmul.f32 0.3, %v2068_v59  ;;  %v2070_v1 = vadd.f32 %v2069_v58, %v2027_v60  ;;  %vm2078_vm2 = vcmp.ge.f32.partialorder %v2068_v59, 0.0 }
 0x1c8   :  { %v2030_v2 = vpop.f32.mrf.mxu0 }
 0x1c9   :  { %v2073_v3 = vpop.f32.mrf.mxu1  ;;  %vm2079_vm3 = vcmp.ge.f32.partialorder %v2070_v1, 0.0  ;;  %v2087_v22 = vmul.f32 0.3, %v2070_v1  ;;  %v2094_v4 = vsel %vm2078_vm2, %v2068_v59, %v2086_v0 }
 0x1cb   :  { %v2095_v38 = vsel %vm2079_vm3, %v2070_v1, %v2087_v22 }
 0x1cc   :  { %v2110_v39 = vcombine.low %v2094_v4, %v2095_v38 }
 0x1ce   :  { %v2132_v6 = vrot.slane %v2110_v39, %v2117_v23 }
 0x1d0   :  { %v2140_v44 = vcombine.low %v2118_v5, %v2132_v6 }
 0x1d2   :  { %2227 = vst [vmem:[%s3788_s3] sm:$0xff] %v2140_v44 }

// kernel: _lambda_.16
= control target key start
LH: loop header
LB: loop body
LE: loop exit
PB: predicated region body
PF: predicated region fallthrough
CT: control target
= control target key end

     0   :  { %8 = vsyncpa [#allocation3], 0  ;;  %s4633_s12 = smov [#allocation2]   ;;  %s4812_s0 = inlined_call_operand.vmem [shape: bf16[4,512], index: 0, kind: input, shape index: {}]   ;;  %s4813_s1 = inlined_call_operand.hbm [shape: bf16[512,2048], index: 1, kind: input, shape index: {}]   ;;  %s4814_s2 = inlined_call_operand.vmem [shape: f32[1,2048], index: 2, kind: input, shape index: {}]   ;;  %s4815_s3 = inlined_call_operand.vmem [shape: f32[4,2048], index: 3, kind: output, shape index: {}]  }
   0x1   :  { %s16_s13 = sshll.u32 %s4633_s12, 4  ;;  %s17_s13 = int_to_ptr.vmem [resolvable:$true] %s16_s13 }
   0x2   :  { %s4619_s14 = scalar_lea.vmem %s17_s13, 65536  ;;  %p4624_p1 = scmp.lt.s32.totalorder %s17_s13, %s17_s13 }
   0x3   :  { %p4620_p0 = scmp.ne.s32.totalorder %s17_s13, %s4619_s14  ;;  %p4625_p2 = scmp.lt.s32.totalorder %s4619_s14, %s4619_s14 }
   0x5   :  { %p4626_p3 = por %p4625_p2, %p4624_p1 }
   0x7   :  { %p4627_p4 = pnand %p4626_p3, %p4620_p0 }
   0x9   :  { %4630 = shalt.err (!%p4627_p4)
}
   0xa   :  { %s4634_s15 = smov 1024   ;;  %s4635_s16 = smov 64  }
   0xb   :  { %22 = dma.hbm_to_vmem [thread:$0]  %s4813_s1, 65536, %s17_s13, [#allocation3], %s4634_s15, %s4634_s15, %s4635_s16  }
   0xc   :  { %4631 = dma.done.wait [#allocation3], 65536  }
   0xd   :  { %4632 = vsyncadd [#allocation3], 4294901760  ;;  %v144_v0 = vld [vmem:[#allocation2 + $0x380] sm:$0xff]  ;;  %v548_v35 = vlaneseq  ;;  %v4636_v36 = vmov 1983009808  }
   0xe   :  { %v152_v1 = vld [vmem:[#allocation2 + $0x3c0] sm:$0xff]  ;;  %v637_v37 = vunpack.c.l.s4 %v4636_v36 }
   0xf   :  { %v400_v2 = vld [vmem:[#allocation2 + $0xb80] sm:$0xff]  ;;  %v4201_v3 = vcombine.high %v144_v0, %v152_v1  ;;  %v4200_v5 = vcombine.low %v144_v0, %v152_v1  ;;  %v4660_v46 = vshrl.u32 %v548_v35, 7  ;;  %v4606_v1 = vld [vmem:[%s4812_s0 + $0x10] ss:$8 sps:$4 sm:$0xff]  }
  0x10   :  { %v408_v4 = vld [vmem:[#allocation2 + $0xbc0] sm:$0xff]  ;;  %v638_v47 = vunpack.c.0.s8 %v637_v37 }
  0x11   :  { %v128_v6 = vld [vmem:[#allocation2 + $0x300] sm:$0xff]  ;;  %v4457_v8 = vcombine.high %v400_v2, %v408_v4  ;;  %v4456_v9 = vcombine.low %v400_v2, %v408_v4  ;;  %3232 = vmatprep.subr.bf16.mxu0 %v4201_v3  ;;  %v4609_v3 = vld [vmem:[%s4812_s0 + $0x14] ss:$8 sps:$4 sm:$0xff]  }
  0x12   :  { %v136_v7 = vld [vmem:[#allocation2 + $0x340] sm:$0xff]  ;;  %3233 = vmatpush1.bf16.msra.mxu0 %v4200_v5  ;;  %v641_v58 = vsub.s32 %v638_v47, %v4660_v46 }
  0x13   :  { %v4185_v10 = vcombine.high %v128_v6, %v136_v7  ;;  %v384_v11 = vld [vmem:[#allocation2 + $0xb00] sm:$0xff]  ;;  %3275 = vmatprep.subr.bf16.mxu1 %v4457_v8  ;;  %v4184_v18 = vcombine.low %v128_v6, %v136_v7 }
  0x14   :  { %v392_v12 = vld [vmem:[#allocation2 + $0xb40] sm:$0xff]  ;;  %3276 = vmatpush1.bf16.msra.mxu1 %v4456_v9  ;;  %v4677_v8 = vrot.slane %v4606_v1, %v641_v58 }
  0x15   :  { %v112_v13 = vld [vmem:[#allocation2 + $0x280] sm:$0xff]  ;;  %v4441_v14 = vcombine.high %v384_v11, %v392_v12  ;;  %3234 = vmatprep.subr.bf16.mxu0 %v4185_v10  ;;  %v4440_v19 = vcombine.low %v384_v11, %v392_v12  ;;  %v4681_v10 = vrot.slane %v4609_v3, %v641_v58 }
  0x16   :  { %v120_v15 = vld [vmem:[#allocation2 + $0x2c0] sm:$0xff]  ;;  %3235 = vmatpush1.bf16.msra.mxu0 %v4184_v18 }
  0x17   :  { %v368_v16 = vld [vmem:[#allocation2 + $0xa80] sm:$0xff]  ;;  %v4169_v20 = vcombine.high %v112_v13, %v120_v15  ;;  %3277 = vmatprep.subr.bf16.mxu1 %v4441_v14  ;;  %v4168_v26 = vcombine.low %v112_v13, %v120_v15 }
  0x18   :  { %v376_v17 = vld [vmem:[#allocation2 + $0xac0] sm:$0xff]  ;;  %3278 = vmatpush1.bf16.msra.mxu1 %v4440_v19 }
  0x19   :  { %v4425_v21 = vcombine.high %v368_v16, %v376_v17  ;;  %v96_v22 = vld [vmem:[#allocation2 + $0x200] sm:$0xff]  ;;  %3236 = vmatprep.subr.bf16.mxu0 %v4169_v20  ;;  %v4424_v27 = vcombine.low %v368_v16, %v376_v17 }
  0x1a   :  { %v104_v23 = vld [vmem:[#allocation2 + $0x240] sm:$0xff]  ;;  %3237 = vmatpush1.bf16.msra.mxu0 %v4168_v26 }
  0x1b   :  { %v352_v24 = vld [vmem:[#allocation2 + $0xa00] sm:$0xff]  ;;  %v4153_v28 = vcombine.high %v96_v22, %v104_v23  ;;  %3279 = vmatprep.subr.bf16.mxu1 %v4425_v21  ;;  %v4152_v34 = vcombine.low %v96_v22, %v104_v23 }
  0x1c   :  { %v360_v25 = vld [vmem:[#allocation2 + $0xa40] sm:$0xff]  ;;  %3280 = vmatpush1.bf16.msra.mxu1 %v4424_v27 }
  0x1d   :  { %v4409_v29 = vcombine.high %v352_v24, %v360_v25  ;;  %v80_v30 = vld [vmem:[#allocation2 + $0x180] sm:$0xff]  ;;  %3238 = vmatprep.subr.bf16.mxu0 %v4153_v28  ;;  %v4408_v38 = vcombine.low %v352_v24, %v360_v25 }
  0x1e   :  { %v88_v31 = vld [vmem:[#allocation2 + $0x1c0] sm:$0xff]  ;;  %3239 = vmatpush1.bf16.msra.mxu0 %v4152_v34 }
  0x1f   :  { %v336_v32 = vld [vmem:[#allocation2 + $0x980] sm:$0xff]  ;;  %v4137_v39 = vcombine.high %v80_v30, %v88_v31  ;;  %3281 = vmatprep.subr.bf16.mxu1 %v4409_v29  ;;  %v4136_v45 = vcombine.low %v80_v30, %v88_v31 }
  0x20   :  { %v344_v33 = vld [vmem:[#allocation2 + $0x9c0] sm:$0xff]  ;;  %3282 = vmatpush1.bf16.msra.mxu1 %v4408_v38 }
  0x21   :  { %v4393_v40 = vcombine.high %v336_v32, %v344_v33  ;;  %v64_v41 = vld [vmem:[#allocation2 + $0x100] sm:$0xff]  ;;  %3240 = vmatprep.subr.bf16.mxu0 %v4137_v39  ;;  %v4392_v48 = vcombine.low %v336_v32, %v344_v33 }
  0x22   :  { %v72_v42 = vld [vmem:[#allocation2 + $0x140] sm:$0xff]  ;;  %3241 = vmatpush1.bf16.msra.mxu0 %v4136_v45 }
  0x23   :  { %v320_v43 = vld [vmem:[#allocation2 + $0x900] sm:$0xff]  ;;  %v4121_v49 = vcombine.high %v64_v41, %v72_v42  ;;  %3283 = vmatprep.subr.bf16.mxu1 %v4393_v40  ;;  %v4120_v55 = vcombine.low %v64_v41, %v72_v42 }
  0x24   :  { %v328_v44 = vld [vmem:[#allocation2 + $0x940] sm:$0xff]  ;;  %3284 = vmatpush1.bf16.msra.mxu1 %v4392_v48 }
  0x25   :  { %v4377_v50 = vcombine.high %v320_v43, %v328_v44  ;;  %v48_v51 = vld [vmem:[#allocation2 + $0x80] sm:$0xff]  ;;  %3242 = vmatprep.subr.bf16.mxu0 %v4121_v49  ;;  %v4376_v59 = vcombine.low %v320_v43, %v328_v44 }
  0x26   :  { %v56_v52 = vld [vmem:[#allocation2 + $0xc0] sm:$0xff]  ;;  %3243 = vmatpush1.bf16.msra.mxu0 %v4120_v55 }
  0x27   :  { %v304_v53 = vld [vmem:[#allocation2 + $0x880] sm:$0xff]  ;;  %v4105_v60 = vcombine.high %v48_v51, %v56_v52  ;;  %3285 = vmatprep.subr.bf16.mxu1 %v4377_v50  ;;  %v4104_v4 = vcombine.low %v48_v51, %v56_v52 }
  0x28   :  { %v312_v54 = vld [vmem:[#allocation2 + $0x8c0] sm:$0xff]  ;;  %3286 = vmatpush1.bf16.msra.mxu1 %v4376_v59 }
  0x29   :  { %v32_v56 = vld [vmem:[#allocation2] sm:$0xff]  ;;  %v4361_v63 = vcombine.high %v304_v53, %v312_v54  ;;  %v4360_v5 = vcombine.low %v304_v53, %v312_v54  ;;  %3244 = vmatprep.subr.bf16.mxu0 %v4105_v60 }
  0x2a   :  { %v40_v57 = vld [vmem:[#allocation2 + $0x40] sm:$0xff]  ;;  %3245 = vmatpush1.bf16.msra.mxu0 %v4104_v4 }
  0x2b   :  { %v288_v61 = vld [vmem:[#allocation2 + $0x800] sm:$0xff]  ;;  %v4089_v6 = vcombine.high %v32_v56, %v40_v57  ;;  %3287 = vmatprep.subr.bf16.mxu1 %v4361_v63  ;;  %v4088_v18 = vcombine.low %v32_v56, %v40_v57 }
  0x2c   :  { %v296_v62 = vld [vmem:[#allocation2 + $0x840] sm:$0xff]  ;;  %3288 = vmatpush1.bf16.msra.mxu1 %v4360_v5 }
  0x2d   :  { %v4604_v0 = vld [vmem:[%s4812_s0] ss:$8 sps:$4 sm:$0xff]   ;;  %v4608_v2 = vld [vmem:[%s4812_s0 + $0x4] ss:$8 sps:$4 sm:$0xff]   ;;  %v4345_v11 = vcombine.high %v288_v61, %v296_v62  ;;  %3246 = vmatprep.subr.bf16.mxu0 %v4089_v6  ;;  %v4344_v19 = vcombine.low %v288_v61, %v296_v62 }
  0x2e   :  { %v4675_v7 = vrot.slane %v4604_v0, %v641_v58  ;;  %v4679_v9 = vrot.slane %v4608_v2, %v641_v58  ;;  %v272_v12 = vld [vmem:[#allocation2 + $0x780] sm:$0xff]  ;;  %3247 = vmatpush1.bf16.msra.mxu0 %v4088_v18 }
  0x2f   :  { %v280_v13 = vld [vmem:[#allocation2 + $0x7c0] sm:$0xff]  ;;  %3289 = vmatprep.subr.bf16.mxu1 %v4345_v11 }
  0x30   :  { %v528_v14 = vld [vmem:[#allocation2 + $0xf80] sm:$0xff]  ;;  %v4685_v16 = vcombine.high %v4675_v7, %v4677_v8  ;;  %v4689_v17 = vcombine.high %v4679_v9, %v4681_v10  ;;  %v4329_v20 = vcombine.high %v272_v12, %v280_v13  ;;  %v4328_v26 = vcombine.low %v272_v12, %v280_v13  ;;  %3290 = vmatpush1.bf16.msra.mxu1 %v4344_v19 }
  0x31   :  { %v536_v15 = vld [vmem:[#allocation2 + $0xfc0] sm:$0xff] }
  0x32   :  { %v4585_v21 = vcombine.high %v528_v14, %v536_v15  ;;  %v256_v22 = vld [vmem:[#allocation2 + $0x700] sm:$0xff]  ;;  %3264 = vmatprep.mubr.bf16.mxu0 %v4685_v16  ;;  %3307 = vmatprep.mubr.bf16.mxu1 %v4689_v17  ;;  %v4584_v27 = vcombine.low %v528_v14, %v536_v15 }
  0x33   :  { %v264_v23 = vld [vmem:[#allocation2 + $0x740] sm:$0xff]  ;;  %3248 = vmatprep.subr.bf16.mxu0 %v4329_v20 }
  0x34   :  { %v512_v24 = vld [vmem:[#allocation2 + $0xf00] sm:$0xff]  ;;  %v4313_v28 = vcombine.high %v256_v22, %v264_v23  ;;  %3291 = vmatprep.subr.bf16.mxu1 %v4585_v21  ;;  %3249 = vmatpush2.bf16.msra.mxu0 %v4328_v26  ;;  %v4312_v34 = vcombine.low %v256_v22, %v264_v23  ;;  %v145_v21 = vld [vmem:[#allocation2 + $0x388] sm:$0xff] }
  0x35   :  { %v520_v25 = vld [vmem:[#allocation2 + $0xf40] sm:$0xff]  ;;  %3292 = vmatpush2.bf16.msra.mxu1 %v4584_v27  ;;  %v153_v22 = vld [vmem:[#allocation2 + $0x3c8] sm:$0xff] }
  0x36   :  { %v4569_v29 = vcombine.high %v512_v24, %v520_v25  ;;  %v240_v30 = vld [vmem:[#allocation2 + $0x680] sm:$0xff]  ;;  %3250 = vmatprep.subr.bf16.mxu0 %v4313_v28  ;;  %v4568_v35 = vcombine.low %v512_v24, %v520_v25  ;;  %v401_v23 = vld [vmem:[#allocation2 + $0xb88] sm:$0xff]  ;;  %v4203_v27 = vcombine.high %v145_v21, %v153_v22 }
  0x37   :  { %v248_v31 = vld [vmem:[#allocation2 + $0x6c0] sm:$0xff]  ;;  %v409_v24 = vld [vmem:[#allocation2 + $0xbc8] sm:$0xff] }
  0x38   :  { %v496_v32 = vld [vmem:[#allocation2 + $0xe80] sm:$0xff]  ;;  %v4297_v36 = vcombine.high %v240_v30, %v248_v31  ;;  %3293 = vmatprep.subr.bf16.mxu1 %v4569_v29  ;;  %3251 = vmatpush2.bf16.msra.mxu0 %v4312_v34  ;;  %v4296_v42 = vcombine.low %v240_v30, %v248_v31  ;;  %v4459_v28 = vcombine.high %v401_v23, %v409_v24  ;;  %v129_v29 = vld [vmem:[#allocation2 + $0x308] sm:$0xff] }
  0x39   :  { %v504_v33 = vld [vmem:[#allocation2 + $0xec0] sm:$0xff]  ;;  %3294 = vmatpush2.bf16.msra.mxu1 %v4568_v35  ;;  %v137_v30 = vld [vmem:[#allocation2 + $0x348] sm:$0xff]  ;;  %v4695_v31 = vcombine.low %v4675_v7, %v4677_v8  ;;  %v4699_v34 = vcombine.low %v4679_v9, %v4681_v10  ;;  %v4202_v35 = vcombine.low %v145_v21, %v153_v22 }
  0x3a   :  { %v4553_v37 = vcombine.high %v496_v32, %v504_v33  ;;  %v224_v38 = vld [vmem:[#allocation2 + $0x600] sm:$0xff]  ;;  %3252 = vmatprep.subr.bf16.mxu0 %v4297_v36  ;;  %v4552_v43 = vcombine.low %v496_v32, %v504_v33  ;;  %v385_v32 = vld [vmem:[#allocation2 + $0xb08] sm:$0xff]  ;;  %v4458_v36 = vcombine.low %v401_v23, %v409_v24 }
  0x3b   :  { %v232_v39 = vld [vmem:[#allocation2 + $0x640] sm:$0xff]  ;;  %v393_v33 = vld [vmem:[#allocation2 + $0xb48] sm:$0xff] }
  0x3c   :  { %v480_v40 = vld [vmem:[#allocation2 + $0xe00] sm:$0xff]  ;;  %v4281_v44 = vcombine.high %v224_v38, %v232_v39  ;;  %3295 = vmatprep.subr.bf16.mxu1 %v4553_v37  ;;  %3253 = vmatpush2.bf16.msra.mxu0 %v4296_v42  ;;  %v4280_v51 = vcombine.low %v224_v38, %v232_v39  ;;  %v4187_v37 = vcombine.high %v129_v29, %v137_v30  ;;  %v113_v39 = vld [vmem:[#allocation2 + $0x288] sm:$0xff] }
  0x3d   :  { %v488_v41 = vld [vmem:[#allocation2 + $0xe40] sm:$0xff]  ;;  %3296 = vmatpush2.bf16.msra.mxu1 %v4552_v43  ;;  %v4443_v38 = vcombine.high %v385_v32, %v393_v33  ;;  %v369_v7 = vld [vmem:[#allocation2 + $0xa88] sm:$0xff]  ;;  %v4442_v9 = vcombine.low %v385_v32, %v393_v33 }
  0x3e   :  { %v4537_v45 = vcombine.high %v480_v40, %v488_v41  ;;  %v208_v47 = vld [vmem:[#allocation2 + $0x580] sm:$0xff]  ;;  %3254 = vmatprep.subr.bf16.mxu0 %v4281_v44  ;;  %v4536_v52 = vcombine.low %v480_v40, %v488_v41  ;;  %v121_v40 = vld [vmem:[#allocation2 + $0x2c8] sm:$0xff]  ;;  %v4186_v41 = vcombine.low %v129_v29, %v137_v30 }
  0x3f   :  { %v216_v48 = vld [vmem:[#allocation2 + $0x5c0] sm:$0xff]  ;;  %v377_v8 = vld [vmem:[#allocation2 + $0xac8] sm:$0xff]  ;;  %v4171_v10 = vcombine.high %v113_v39, %v121_v40 }
  0x40   :  { %v464_v49 = vld [vmem:[#allocation2 + $0xd80] sm:$0xff]  ;;  %v4265_v53 = vcombine.high %v208_v47, %v216_v48  ;;  %3297 = vmatprep.subr.bf16.mxu1 %v4537_v45  ;;  %3255 = vmatpush2.bf16.msra.mxu0 %v4280_v51  ;;  %v4264_v59 = vcombine.low %v208_v47, %v216_v48  ;;  %v4427_v42 = vcombine.high %v369_v7, %v377_v8  ;;  %v97_v43 = vld [vmem:[#allocation2 + $0x208] sm:$0xff] }
  0x41   :  { %v472_v50 = vld [vmem:[#allocation2 + $0xdc0] sm:$0xff]  ;;  %3298 = vmatpush2.bf16.msra.mxu1 %v4536_v52  ;;  %v105_v44 = vld [vmem:[#allocation2 + $0x248] sm:$0xff]  ;;  %v4170_v48 = vcombine.low %v113_v39, %v121_v40 }
  0x42   :  { %v4521_v54 = vcombine.high %v464_v49, %v472_v50  ;;  %v192_v55 = vld [vmem:[#allocation2 + $0x500] sm:$0xff]  ;;  %3256 = vmatprep.subr.bf16.mxu0 %v4265_v53  ;;  %v4520_v60 = vcombine.low %v464_v49, %v472_v50  ;;  %v353_v45 = vld [vmem:[#allocation2 + $0xa08] sm:$0xff]  ;;  %v4426_v49 = vcombine.low %v369_v7, %v377_v8  ;;  %v4155_v50 = vcombine.high %v97_v43, %v105_v44 }
  0x43   :  { %v200_v56 = vld [vmem:[#allocation2 + $0x540] sm:$0xff]  ;;  %v361_v47 = vld [vmem:[#allocation2 + $0xa48] sm:$0xff] }
  0x44   :  { %v448_v57 = vld [vmem:[#allocation2 + $0xd00] sm:$0xff]  ;;  %v4249_v61 = vcombine.high %v192_v55, %v200_v56  ;;  %3299 = vmatprep.subr.bf16.mxu1 %v4521_v54  ;;  %3257 = vmatpush2.bf16.msra.mxu0 %v4264_v59  ;;  %v4248_v3 = vcombine.low %v192_v55, %v200_v56  ;;  %v4411_v51 = vcombine.high %v353_v45, %v361_v47  ;;  %v81_v52 = vld [vmem:[#allocation2 + $0x188] sm:$0xff] }
  0x45   :  { %v456_v58 = vld [vmem:[#allocation2 + $0xd40] sm:$0xff]  ;;  %3300 = vmatpush2.bf16.msra.mxu1 %v4520_v60  ;;  %v89_v53 = vld [vmem:[#allocation2 + $0x1c8] sm:$0xff]  ;;  %v4154_v56 = vcombine.low %v97_v43, %v105_v44 }
  0x46   :  { %v4505_v62 = vcombine.high %v448_v57, %v456_v58  ;;  %v176_v63 = vld [vmem:[#allocation2 + $0x480] sm:$0xff]  ;;  %3258 = vmatprep.subr.bf16.mxu0 %v4249_v61  ;;  %v4504_v4 = vcombine.low %v448_v57, %v456_v58  ;;  %v337_v54 = vld [vmem:[#allocation2 + $0x988] sm:$0xff]  ;;  %v4410_v57 = vcombine.low %v353_v45, %v361_v47  ;;  %v4139_v58 = vcombine.high %v81_v52, %v89_v53 }
  0x47   :  { %v184_v0 = vld [vmem:[#allocation2 + $0x4c0] sm:$0xff]  ;;  %v345_v55 = vld [vmem:[#allocation2 + $0x9c8] sm:$0xff] }
  0x48   :  { %v432_v1 = vld [vmem:[#allocation2 + $0xc80] sm:$0xff]  ;;  %v4233_v5 = vcombine.high %v176_v63, %v184_v0  ;;  %3301 = vmatprep.subr.bf16.mxu1 %v4505_v62  ;;  %3259 = vmatpush2.bf16.msra.mxu0 %v4248_v3  ;;  %v4232_v15 = vcombine.low %v176_v63, %v184_v0  ;;  %v4395_v59 = vcombine.high %v337_v54, %v345_v55  ;;  %v65_v60 = vld [vmem:[#allocation2 + $0x108] sm:$0xff] }
  0x49   :  { %v440_v2 = vld [vmem:[#allocation2 + $0xcc0] sm:$0xff]  ;;  %3302 = vmatpush2.bf16.msra.mxu1 %v4504_v4  ;;  %v73_v61 = vld [vmem:[#allocation2 + $0x148] sm:$0xff]  ;;  %v4138_v0 = vcombine.low %v81_v52, %v89_v53 }
  0x4a   :  { %v4489_v6 = vcombine.high %v432_v1, %v440_v2  ;;  %v160_v11 = vld [vmem:[#allocation2 + $0x400] sm:$0xff]  ;;  %3260 = vmatprep.subr.bf16.mxu0 %v4233_v5  ;;  %v4488_v18 = vcombine.low %v432_v1, %v440_v2  ;;  %v321_v62 = vld [vmem:[#allocation2 + $0x908] sm:$0xff]  ;;  %v4394_v1 = vcombine.low %v337_v54, %v345_v55  ;;  %v4123_v2 = vcombine.high %v65_v60, %v73_v61 }
  0x4b   :  { %v168_v12 = vld [vmem:[#allocation2 + $0x440] sm:$0xff]  ;;  %v329_v63 = vld [vmem:[#allocation2 + $0x948] sm:$0xff] }
  0x4c   :  { %v416_v13 = vld [vmem:[#allocation2 + $0xc00] sm:$0xff]  ;;  %v4217_v19 = vcombine.high %v160_v11, %v168_v12  ;;  %3303 = vmatprep.subr.bf16.mxu1 %v4489_v6  ;;  %3261 = vmatpush2.bf16.msra.mxu0 %v4232_v15  ;;  %v4216_v25 = vcombine.low %v160_v11, %v168_v12  ;;  %v4379_v3 = vcombine.high %v321_v62, %v329_v63  ;;  %v49_v4 = vld [vmem:[#allocation2 + $0x88] sm:$0xff] }
  0x4d   :  { %v424_v14 = vld [vmem:[#allocation2 + $0xc40] sm:$0xff]  ;;  %3304 = vmatpush2.bf16.msra.mxu1 %v4488_v18  ;;  %v57_v5 = vld [vmem:[#allocation2 + $0xc8] sm:$0xff]  ;;  %v4122_v12 = vcombine.low %v65_v60, %v73_v61 }
  0x4e   :  { %v4473_v20 = vcombine.high %v416_v13, %v424_v14  ;;  %3262 = vmatprep.subr.bf16.mxu0 %v4217_v19  ;;  %v4472_v26 = vcombine.low %v416_v13, %v424_v14  ;;  %v305_v6 = vld [vmem:[#allocation2 + $0x888] sm:$0xff]  ;;  %v4378_v13 = vcombine.low %v321_v62, %v329_v63  ;;  %v4107_v14 = vcombine.high %v49_v4, %v57_v5 }
  0x4f   :  { %v313_v11 = vld [vmem:[#allocation2 + $0x8c8] sm:$0xff]  ;;  %v4106_v22 = vcombine.low %v49_v4, %v57_v5 }
  0x50   :  { %3305 = vmatprep.subr.bf16.mxu1 %v4473_v20  ;;  %3263 = vmatpush2.bf16.msra.mxu0 %v4216_v25  ;;  %v4363_v15 = vcombine.high %v305_v6, %v313_v11  ;;  %v33_v18 = vld [vmem:[#allocation2 + $0x8] sm:$0xff]  ;;  %v4362_v23 = vcombine.low %v305_v6, %v313_v11 }
  0x51   :  { %3306 = vmatpush2.bf16.msra.mxu1 %v4472_v26  ;;  %3318 = vmatprep.subr.bf16.mxu0 %v4203_v27  ;;  %v41_v19 = vld [vmem:[#allocation2 + $0x48] sm:$0xff] }
  0x52   :  { %3361 = vmatprep.subr.bf16.mxu1 %v4459_v28  ;;  %v289_v20 = vld [vmem:[#allocation2 + $0x808] sm:$0xff]  ;;  %v4091_v24 = vcombine.high %v33_v18, %v41_v19  ;;  %v4090_v30 = vcombine.low %v33_v18, %v41_v19 }
  0x53   :  { %3265 = vmatmul.mubr.bf16.vlgmr.msra.gmra.mxu0 %v4695_v31  ;;  %v297_v21 = vld [vmem:[#allocation2 + $0x848] sm:$0xff] }
  0x54   :  { %3308 = vmatmul.mubr.bf16.vlgmr.msra.gmra.mxu1 %v4699_v34  ;;  %3319 = vmatpush1.bf16.msra.mxu0 %v4202_v35  ;;  %v4347_v25 = vcombine.high %v289_v20, %v297_v21  ;;  %v273_v26 = vld [vmem:[#allocation2 + $0x788] sm:$0xff]  ;;  %v4346_v32 = vcombine.low %v289_v20, %v297_v21 }
  0x55   :  { %3362 = vmatpush1.bf16.msra.mxu1 %v4458_v36  ;;  %3320 = vmatprep.subr.bf16.mxu0 %v4187_v37  ;;  %v281_v27 = vld [vmem:[#allocation2 + $0x7c8] sm:$0xff] }
  0x56   :  { %3363 = vmatprep.subr.bf16.mxu1 %v4443_v38  ;;  %3350 = vmatprep.mubr.bf16.mxu0 %v4685_v16  ;;  %v529_v28 = vld [vmem:[#allocation2 + $0xf88] sm:$0xff]  ;;  %v4331_v33 = vcombine.high %v273_v26, %v281_v27  ;;  %v4330_v40 = vcombine.low %v273_v26, %v281_v27 }
  0x57   :  { %3393 = vmatprep.mubr.bf16.mxu1 %v4689_v17  ;;  %v537_v29 = vld [vmem:[#allocation2 + $0xfc8] sm:$0xff] }
  0x58   :  { %3321 = vmatpush1.bf16.msra.mxu0 %v4186_v41  ;;  %v4587_v35 = vcombine.high %v529_v28, %v537_v29  ;;  %v257_v36 = vld [vmem:[#allocation2 + $0x708] sm:$0xff]  ;;  %v4586_v7 = vcombine.low %v529_v28, %v537_v29 }
  0x59   :  { %3364 = vmatpush1.bf16.msra.mxu1 %v4442_v9  ;;  %3322 = vmatprep.subr.bf16.mxu0 %v4171_v10  ;;  %v265_v37 = vld [vmem:[#allocation2 + $0x748] sm:$0xff] }
  0x5a   :  { %3365 = vmatprep.subr.bf16.mxu1 %v4427_v42  ;;  %v513_v38 = vld [vmem:[#allocation2 + $0xf08] sm:$0xff]  ;;  %v4315_v8 = vcombine.high %v257_v36, %v265_v37  ;;  %v4314_v44 = vcombine.low %v257_v36, %v265_v37  ;;  %v410_v36 = vld [vmem:[#allocation2 + $0xbd0] sm:$0xff] }
  0x5b   :  { %v521_v39 = vld [vmem:[#allocation2 + $0xf48] sm:$0xff] }
  0x5c   :  { %3323 = vmatpush1.bf16.msra.mxu0 %v4170_v48  ;;  %v4571_v41 = vcombine.high %v513_v38, %v521_v39  ;;  %v241_v9 = vld [vmem:[#allocation2 + $0x688] sm:$0xff]  ;;  %v4570_v45 = vcombine.low %v513_v38, %v521_v39 }
  0x5d   :  { %3366 = vmatpush1.bf16.msra.mxu1 %v4426_v49  ;;  %3324 = vmatprep.subr.bf16.mxu0 %v4155_v50  ;;  %v249_v10 = vld [vmem:[#allocation2 + $0x6c8] sm:$0xff] }
  0x5e   :  { %3367 = vmatprep.subr.bf16.mxu1 %v4411_v51  ;;  %v497_v42 = vld [vmem:[#allocation2 + $0xe88] sm:$0xff]  ;;  %v4299_v47 = vcombine.high %v241_v9, %v249_v10  ;;  %v4298_v53 = vcombine.low %v241_v9, %v249_v10  ;;  %v394_v9 = vld [vmem:[#allocation2 + $0xb50] sm:$0xff] }
  0x5f   :  { %v505_v43 = vld [vmem:[#allocation2 + $0xec8] sm:$0xff] }
  0x60   :  { %3325 = vmatpush1.bf16.msra.mxu0 %v4154_v56  ;;  %v4555_v48 = vcombine.high %v497_v42, %v505_v43  ;;  %v225_v49 = vld [vmem:[#allocation2 + $0x608] sm:$0xff]  ;;  %v4554_v54 = vcombine.low %v497_v42, %v505_v43 }
  0x61   :  { %3368 = vmatpush1.bf16.msra.mxu1 %v4410_v57  ;;  %3326 = vmatprep.subr.bf16.mxu0 %v4139_v58  ;;  %v233_v50 = vld [vmem:[#allocation2 + $0x648] sm:$0xff] }
  0x62   :  { %3369 = vmatprep.subr.bf16.mxu1 %v4395_v59  ;;  %v481_v51 = vld [vmem:[#allocation2 + $0xe08] sm:$0xff]  ;;  %v4283_v55 = vcombine.high %v225_v49, %v233_v50  ;;  %v4282_v61 = vcombine.low %v225_v49, %v233_v50  ;;  %v378_v49 = vld [vmem:[#allocation2 + $0xad0] sm:$0xff] }
  0x63   :  { %v489_v52 = vld [vmem:[#allocation2 + $0xe48] sm:$0xff] }
  0x64   :  { %3327 = vmatpush1.bf16.msra.mxu0 %v4138_v0  ;;  %v4539_v56 = vcombine.high %v481_v51, %v489_v52  ;;  %v209_v57 = vld [vmem:[#allocation2 + $0x588] sm:$0xff]  ;;  %v4538_v62 = vcombine.low %v481_v51, %v489_v52 }
  0x65   :  { %3370 = vmatpush1.bf16.msra.mxu1 %v4394_v1  ;;  %3328 = vmatprep.subr.bf16.mxu0 %v4123_v2  ;;  %v217_v58 = vld [vmem:[#allocation2 + $0x5c8] sm:$0xff] }
  0x66   :  { %3371 = vmatprep.subr.bf16.mxu1 %v4379_v3  ;;  %v465_v59 = vld [vmem:[#allocation2 + $0xd88] sm:$0xff]  ;;  %v4267_v63 = vcombine.high %v209_v57, %v217_v58  ;;  %v4266_v5 = vcombine.low %v209_v57, %v217_v58  ;;  %v362_v57 = vld [vmem:[#allocation2 + $0xa50] sm:$0xff] }
  0x67   :  { %v473_v60 = vld [vmem:[#allocation2 + $0xdc8] sm:$0xff] }
  0x68   :  { %3329 = vmatpush1.bf16.msra.mxu0 %v4122_v12  ;;  %v4523_v0 = vcombine.high %v465_v59, %v473_v60  ;;  %v193_v1 = vld [vmem:[#allocation2 + $0x508] sm:$0xff]  ;;  %v4522_v6 = vcombine.low %v465_v59, %v473_v60 }
  0x69   :  { %3372 = vmatpush1.bf16.msra.mxu1 %v4378_v13  ;;  %3330 = vmatprep.subr.bf16.mxu0 %v4107_v14  ;;  %v201_v2 = vld [vmem:[#allocation2 + $0x548] sm:$0xff] }
  0x6a   :  { %3373 = vmatprep.subr.bf16.mxu1 %v4363_v15  ;;  %v449_v3 = vld [vmem:[#allocation2 + $0xd08] sm:$0xff]  ;;  %v4251_v11 = vcombine.high %v193_v1, %v201_v2  ;;  %v4250_v19 = vcombine.low %v193_v1, %v201_v2  ;;  %v346_v1 = vld [vmem:[#allocation2 + $0x9d0] sm:$0xff] }
  0x6b   :  { %v457_v4 = vld [vmem:[#allocation2 + $0xd48] sm:$0xff] }
  0x6c   :  { %3331 = vmatpush1.bf16.msra.mxu0 %v4106_v22  ;;  %v4507_v12 = vcombine.high %v449_v3, %v457_v4  ;;  %v177_v13 = vld [vmem:[#allocation2 + $0x488] sm:$0xff]  ;;  %v4506_v20 = vcombine.low %v449_v3, %v457_v4 }
  0x6d   :  { %3374 = vmatpush1.bf16.msra.mxu1 %v4362_v23  ;;  %3332 = vmatprep.subr.bf16.mxu0 %v4091_v24  ;;  %v185_v14 = vld [vmem:[#allocation2 + $0x4c8] sm:$0xff] }
  0x6e   :  { %3375 = vmatprep.subr.bf16.mxu1 %v4347_v25  ;;  %v433_v15 = vld [vmem:[#allocation2 + $0xc88] sm:$0xff]  ;;  %v4235_v21 = vcombine.high %v177_v13, %v185_v14  ;;  %v4234_v27 = vcombine.low %v177_v13, %v185_v14  ;;  %v330_v13 = vld [vmem:[#allocation2 + $0x950] sm:$0xff] }
  0x6f   :  { %v441_v18 = vld [vmem:[#allocation2 + $0xcc8] sm:$0xff] }
  0x70   :  { %3333 = vmatpush1.bf16.msra.mxu0 %v4090_v30  ;;  %v4491_v22 = vcombine.high %v433_v15, %v441_v18  ;;  %v161_v23 = vld [vmem:[#allocation2 + $0x408] sm:$0xff]  ;;  %v4490_v28 = vcombine.low %v433_v15, %v441_v18 }
  0x71   :  { %3376 = vmatpush1.bf16.msra.mxu1 %v4346_v32  ;;  %3334 = vmatprep.subr.bf16.mxu0 %v4331_v33  ;;  %v169_v24 = vld [vmem:[#allocation2 + $0x448] sm:$0xff]  ;;  %v146_v32 = vld [vmem:[#allocation2 + $0x390] sm:$0xff] }
  0x72   :  { %3377 = vmatprep.subr.bf16.mxu1 %v4587_v35  ;;  %v417_v25 = vld [vmem:[#allocation2 + $0xc08] sm:$0xff]  ;;  %v4219_v29 = vcombine.high %v161_v23, %v169_v24  ;;  %v154_v33 = vld [vmem:[#allocation2 + $0x3d0] sm:$0xff]  ;;  %v4218_v37 = vcombine.low %v161_v23, %v169_v24 }
  0x73   :  { %v425_v26 = vld [vmem:[#allocation2 + $0xc48] sm:$0xff]  ;;  %v402_v35 = vld [vmem:[#allocation2 + $0xb90] sm:$0xff]  ;;  %v4205_v39 = vcombine.high %v146_v32, %v154_v33  ;;  %v4204_v10 = vcombine.low %v146_v32, %v154_v33 }
  0x74   :  { %3335 = vmatpush2.bf16.msra.mxu0 %v4330_v40  ;;  %v4475_v30 = vcombine.high %v417_v25, %v425_v26  ;;  %v4474_v38 = vcombine.low %v417_v25, %v425_v26  ;;  %v4461_v40 = vcombine.high %v402_v35, %v410_v36  ;;  %v4460_v42 = vcombine.low %v402_v35, %v410_v36  ;;  %v314_v23 = vld [vmem:[#allocation2 + $0x8d0] sm:$0xff] }
  0x75   :  { %3378 = vmatpush2.bf16.msra.mxu1 %v4586_v7  ;;  %3336 = vmatprep.subr.bf16.mxu0 %v4315_v8  ;;  %v130_v7 = vld [vmem:[#allocation2 + $0x310] sm:$0xff] }
  0x76   :  { %3379 = vmatprep.subr.bf16.mxu1 %v4571_v41  ;;  %v138_v8 = vld [vmem:[#allocation2 + $0x350] sm:$0xff] }
  0x77   :  { %v386_v41 = vld [vmem:[#allocation2 + $0xb10] sm:$0xff]  ;;  %v4189_v43 = vcombine.high %v130_v7, %v138_v8  ;;  %v4188_v50 = vcombine.low %v130_v7, %v138_v8 }
  0x78   :  { %3337 = vmatpush2.bf16.msra.mxu0 %v4314_v44  ;;  %v4445_v44 = vcombine.high %v386_v41, %v394_v9  ;;  %v4444_v51 = vcombine.low %v386_v41, %v394_v9  ;;  %v298_v32 = vld [vmem:[#allocation2 + $0x850] sm:$0xff] }
  0x79   :  { %3380 = vmatpush2.bf16.msra.mxu1 %v4570_v45  ;;  %3338 = vmatprep.subr.bf16.mxu0 %v4299_v47  ;;  %v114_v45 = vld [vmem:[#allocation2 + $0x290] sm:$0xff] }
  0x7a   :  { %3381 = vmatprep.subr.bf16.mxu1 %v4555_v48  ;;  %v122_v47 = vld [vmem:[#allocation2 + $0x2d0] sm:$0xff] }
  0x7b   :  { %v370_v48 = vld [vmem:[#allocation2 + $0xa90] sm:$0xff]  ;;  %v4173_v52 = vcombine.high %v114_v45, %v122_v47  ;;  %v4172_v58 = vcombine.low %v114_v45, %v122_v47 }
  0x7c   :  { %3339 = vmatpush2.bf16.msra.mxu0 %v4298_v53  ;;  %v4429_v53 = vcombine.high %v370_v48, %v378_v49  ;;  %v4428_v59 = vcombine.low %v370_v48, %v378_v49  ;;  %v538_v7 = vld [vmem:[#allocation2 + $0xfd0] sm:$0xff] }
  0x7d   :  { %3382 = vmatpush2.bf16.msra.mxu1 %v4554_v54  ;;  %3340 = vmatprep.subr.bf16.mxu0 %v4283_v55  ;;  %v98_v54 = vld [vmem:[#allocation2 + $0x210] sm:$0xff] }
  0x7e   :  { %3383 = vmatprep.subr.bf16.mxu1 %v4539_v56  ;;  %v106_v55 = vld [vmem:[#allocation2 + $0x250] sm:$0xff] }
  0x7f   :  { %v354_v56 = vld [vmem:[#allocation2 + $0xa10] sm:$0xff]  ;;  %v4157_v60 = vcombine.high %v98_v54, %v106_v55  ;;  %v4156_v2 = vcombine.low %v98_v54, %v106_v55 }
  0x80   :  { %3341 = vmatpush2.bf16.msra.mxu0 %v4282_v61  ;;  %v4413_v61 = vcombine.high %v354_v56, %v362_v57  ;;  %v4412_v3 = vcombine.low %v354_v56, %v362_v57  ;;  %v522_v45 = vld [vmem:[#allocation2 + $0xf50] sm:$0xff] }
  0x81   :  { %3384 = vmatpush2.bf16.msra.mxu1 %v4538_v62  ;;  %3342 = vmatprep.subr.bf16.mxu0 %v4267_v63  ;;  %v82_v62 = vld [vmem:[#allocation2 + $0x190] sm:$0xff] }
  0x82   :  { %3385 = vmatprep.subr.bf16.mxu1 %v4523_v0  ;;  %v90_v63 = vld [vmem:[#allocation2 + $0x1d0] sm:$0xff] }
  0x83   :  { %v338_v0 = vld [vmem:[#allocation2 + $0x990] sm:$0xff]  ;;  %v4141_v4 = vcombine.high %v82_v62, %v90_v63  ;;  %v4140_v14 = vcombine.low %v82_v62, %v90_v63 }
  0x84   :  { %3343 = vmatpush2.bf16.msra.mxu0 %v4266_v5  ;;  %v4397_v5 = vcombine.high %v338_v0, %v346_v1  ;;  %v4396_v15 = vcombine.low %v338_v0, %v346_v1  ;;  %v506_v54 = vld [vmem:[#allocation2 + $0xed0] sm:$0xff] }
  0x85   :  { %3386 = vmatpush2.bf16.msra.mxu1 %v4522_v6  ;;  %3344 = vmatprep.subr.bf16.mxu0 %v4251_v11  ;;  %v66_v6 = vld [vmem:[#allocation2 + $0x110] sm:$0xff] }
  0x86   :  { %3387 = vmatprep.subr.bf16.mxu1 %v4507_v12  ;;  %v74_v11 = vld [vmem:[#allocation2 + $0x150] sm:$0xff] }
  0x87   :  { %v322_v12 = vld [vmem:[#allocation2 + $0x910] sm:$0xff]  ;;  %v4125_v18 = vcombine.high %v66_v6, %v74_v11  ;;  %v4124_v24 = vcombine.low %v66_v6, %v74_v11 }
  0x88   :  { %3345 = vmatpush2.bf16.msra.mxu0 %v4250_v19  ;;  %v4381_v19 = vcombine.high %v322_v12, %v330_v13  ;;  %v4380_v25 = vcombine.low %v322_v12, %v330_v13  ;;  %v490_v62 = vld [vmem:[#allocation2 + $0xe50] sm:$0xff] }
  0x89   :  { %3388 = vmatpush2.bf16.msra.mxu1 %v4506_v20  ;;  %3346 = vmatprep.subr.bf16.mxu0 %v4235_v21  ;;  %v50_v20 = vld [vmem:[#allocation2 + $0x90] sm:$0xff] }
  0x8a   :  { %3389 = vmatprep.subr.bf16.mxu1 %v4491_v22  ;;  %v58_v21 = vld [vmem:[#allocation2 + $0xd0] sm:$0xff] }
  0x8b   :  { %v306_v22 = vld [vmem:[#allocation2 + $0x890] sm:$0xff]  ;;  %v4109_v26 = vcombine.high %v50_v20, %v58_v21  ;;  %v4108_v33 = vcombine.low %v50_v20, %v58_v21 }
  0x8c   :  { %3347 = vmatpush2.bf16.msra.mxu0 %v4234_v27  ;;  %v4365_v27 = vcombine.high %v306_v22, %v314_v23  ;;  %v4364_v35 = vcombine.low %v306_v22, %v314_v23  ;;  %v474_v6 = vld [vmem:[#allocation2 + $0xdd0] sm:$0xff] }
  0x8d   :  { %3390 = vmatpush2.bf16.msra.mxu1 %v4490_v28  ;;  %3348 = vmatprep.subr.bf16.mxu0 %v4219_v29  ;;  %v34_v28 = vld [vmem:[#allocation2 + $0x10] sm:$0xff] }
  0x8e   :  { %3391 = vmatprep.subr.bf16.mxu1 %v4475_v30  ;;  %v42_v29 = vld [vmem:[#allocation2 + $0x50] sm:$0xff] }
  0x8f   :  { %v290_v30 = vld [vmem:[#allocation2 + $0x810] sm:$0xff]  ;;  %v4093_v36 = vcombine.high %v34_v28, %v42_v29  ;;  %v4092_v8 = vcombine.low %v34_v28, %v42_v29 }
  0x90   :  { %3349 = vmatpush2.bf16.msra.mxu0 %v4218_v37  ;;  %v4349_v37 = vcombine.high %v290_v30, %v298_v32  ;;  %v4348_v41 = vcombine.low %v290_v30, %v298_v32  ;;  %v458_v20 = vld [vmem:[#allocation2 + $0xd50] sm:$0xff] }
  0x91   :  { %3392 = vmatpush2.bf16.msra.mxu1 %v4474_v38  ;;  %3404 = vmatprep.subr.bf16.mxu0 %v4205_v39  ;;  %v274_v38 = vld [vmem:[#allocation2 + $0x790] sm:$0xff] }
  0x92   :  { %3447 = vmatprep.subr.bf16.mxu1 %v4461_v40  ;;  %v282_v39 = vld [vmem:[#allocation2 + $0x7d0] sm:$0xff] }
  0x93   :  { %3351 = vmatmul.mubr.bf16.vlgmr.msra.gmra.mxu0 %v4695_v31  ;;  %v530_v40 = vld [vmem:[#allocation2 + $0xf90] sm:$0xff]  ;;  %v4333_v9 = vcombine.high %v274_v38, %v282_v39  ;;  %v4332_v47 = vcombine.low %v274_v38, %v282_v39 }
  0x94   :  { %3394 = vmatmul.mubr.bf16.vlgmr.msra.gmra.mxu1 %v4699_v34  ;;  %3405 = vmatpush1.bf16.msra.mxu0 %v4204_v10  ;;  %v4589_v10 = vcombine.high %v530_v40, %v538_v7  ;;  %v4588_v48 = vcombine.low %v530_v40, %v538_v7  ;;  %v442_v28 = vld [vmem:[#allocation2 + $0xcd0] sm:$0xff] }
  0x95   :  { %3448 = vmatpush1.bf16.msra.mxu1 %v4460_v42  ;;  %3406 = vmatprep.subr.bf16.mxu0 %v4189_v43  ;;  %v258_v42 = vld [vmem:[#allocation2 + $0x710] sm:$0xff] }
  0x96   :  { %3449 = vmatprep.subr.bf16.mxu1 %v4445_v44  ;;  %3436 = vmatprep.mubr.bf16.mxu0 %v4685_v16  ;;  %v266_v43 = vld [vmem:[#allocation2 + $0x750] sm:$0xff] }
  0x97   :  { %3479 = vmatprep.mubr.bf16.mxu1 %v4689_v17  ;;  %v514_v44 = vld [vmem:[#allocation2 + $0xf10] sm:$0xff]  ;;  %v4317_v49 = vcombine.high %v258_v42, %v266_v43  ;;  %v4316_v55 = vcombine.low %v258_v42, %v266_v43  ;;  %v411_v42 = vld [vmem:[#allocation2 + $0xbd8] sm:$0xff] }
  0x98   :  { %3407 = vmatpush1.bf16.msra.mxu0 %v4188_v50  ;;  %v4573_v50 = vcombine.high %v514_v44, %v522_v45  ;;  %v4572_v56 = vcombine.low %v514_v44, %v522_v45  ;;  %v426_v38 = vld [vmem:[#allocation2 + $0xc50] sm:$0xff] }
  0x99   :  { %3450 = vmatpush1.bf16.msra.mxu1 %v4444_v51  ;;  %3408 = vmatprep.subr.bf16.mxu0 %v4173_v52  ;;  %v242_v51 = vld [vmem:[#allocation2 + $0x690] sm:$0xff] }
  0x9a   :  { %3451 = vmatprep.subr.bf16.mxu1 %v4429_v53  ;;  %v250_v52 = vld [vmem:[#allocation2 + $0x6d0] sm:$0xff] }
  0x9b   :  { %v498_v53 = vld [vmem:[#allocation2 + $0xe90] sm:$0xff]  ;;  %v4301_v57 = vcombine.high %v242_v51, %v250_v52  ;;  %v4300_v63 = vcombine.low %v242_v51, %v250_v52  ;;  %v395_v51 = vld [vmem:[#allocation2 + $0xb58] sm:$0xff] }
  0x9c   :  { %3409 = vmatpush1.bf16.msra.mxu0 %v4172_v58  ;;  %v4557_v58 = vcombine.high %v498_v53, %v506_v54  ;;  %v4556_v0 = vcombine.low %v498_v53, %v506_v54 }
  0x9d   :  { %3452 = vmatpush1.bf16.msra.mxu1 %v4428_v59  ;;  %3410 = vmatprep.subr.bf16.mxu0 %v4157_v60  ;;  %v226_v59 = vld [vmem:[#allocation2 + $0x610] sm:$0xff] }
  0x9e   :  { %3453 = vmatprep.subr.bf16.mxu1 %v4413_v61  ;;  %v234_v60 = vld [vmem:[#allocation2 + $0x650] sm:$0xff] }
  0x9f   :  { %v482_v61 = vld [vmem:[#allocation2 + $0xe10] sm:$0xff]  ;;  %v4285_v1 = vcombine.high %v226_v59, %v234_v60  ;;  %v4284_v11 = vcombine.low %v226_v59, %v234_v60  ;;  %v379_v59 = vld [vmem:[#allocation2 + $0xad8] sm:$0xff] }
  0xa0   :  { %3411 = vmatpush1.bf16.msra.mxu0 %v4156_v2  ;;  %v4541_v2 = vcombine.high %v482_v61, %v490_v62  ;;  %v4540_v12 = vcombine.low %v482_v61, %v490_v62 }
  0xa1   :  { %3454 = vmatpush1.bf16.msra.mxu1 %v4412_v3  ;;  %3412 = vmatprep.subr.bf16.mxu0 %v4141_v4  ;;  %v210_v3 = vld [vmem:[#allocation2 + $0x590] sm:$0xff] }
  0xa2   :  { %3455 = vmatprep.subr.bf16.mxu1 %v4397_v5  ;;  %v218_v4 = vld [vmem:[#allocation2 + $0x5d0] sm:$0xff] }
  0xa3   :  { %v466_v5 = vld [vmem:[#allocation2 + $0xd90] sm:$0xff]  ;;  %v4269_v13 = vcombine.high %v210_v3, %v218_v4  ;;  %v4268_v21 = vcombine.low %v210_v3, %v218_v4  ;;  %v363_v3 = vld [vmem:[#allocation2 + $0xa58] sm:$0xff] }
  0xa4   :  { %3413 = vmatpush1.bf16.msra.mxu0 %v4140_v14  ;;  %v4525_v14 = vcombine.high %v466_v5, %v474_v6  ;;  %v4524_v22 = vcombine.low %v466_v5, %v474_v6 }
  0xa5   :  { %3456 = vmatpush1.bf16.msra.mxu1 %v4396_v15  ;;  %3414 = vmatprep.subr.bf16.mxu0 %v4125_v18  ;;  %v194_v15 = vld [vmem:[#allocation2 + $0x510] sm:$0xff] }
  0xa6   :  { %3457 = vmatprep.subr.bf16.mxu1 %v4381_v19  ;;  %v202_v18 = vld [vmem:[#allocation2 + $0x550] sm:$0xff] }
  0xa7   :  { %v450_v19 = vld [vmem:[#allocation2 + $0xd10] sm:$0xff]  ;;  %v4253_v23 = vcombine.high %v194_v15, %v202_v18  ;;  %v4252_v29 = vcombine.low %v194_v15, %v202_v18  ;;  %v347_v15 = vld [vmem:[#allocation2 + $0x9d8] sm:$0xff] }
  0xa8   :  { %3415 = vmatpush1.bf16.msra.mxu0 %v4124_v24  ;;  %v4509_v24 = vcombine.high %v450_v19, %v458_v20  ;;  %v4508_v30 = vcombine.low %v450_v19, %v458_v20 }
  0xa9   :  { %3458 = vmatpush1.bf16.msra.mxu1 %v4380_v25  ;;  %3416 = vmatprep.subr.bf16.mxu0 %v4109_v26  ;;  %v178_v25 = vld [vmem:[#allocation2 + $0x490] sm:$0xff] }
  0xaa   :  { %3459 = vmatprep.subr.bf16.mxu1 %v4365_v27  ;;  %v186_v26 = vld [vmem:[#allocation2 + $0x4d0] sm:$0xff] }
  0xab   :  { %v434_v27 = vld [vmem:[#allocation2 + $0xc90] sm:$0xff]  ;;  %v4237_v32 = vcombine.high %v178_v25, %v186_v26  ;;  %v4236_v39 = vcombine.low %v178_v25, %v186_v26  ;;  %v331_v25 = vld [vmem:[#allocation2 + $0x958] sm:$0xff] }
  0xac   :  { %3417 = vmatpush1.bf16.msra.mxu0 %v4108_v33  ;;  %v4493_v33 = vcombine.high %v434_v27, %v442_v28  ;;  %v4492_v40 = vcombine.low %v434_v27, %v442_v28 }
  0xad   :  { %3460 = vmatpush1.bf16.msra.mxu1 %v4364_v35  ;;  %3418 = vmatprep.subr.bf16.mxu0 %v4093_v36  ;;  %v162_v35 = vld [vmem:[#allocation2 + $0x410] sm:$0xff] }
  0xae   :  { %3461 = vmatprep.subr.bf16.mxu1 %v4349_v37  ;;  %v170_v36 = vld [vmem:[#allocation2 + $0x450] sm:$0xff] }
  0xaf   :  { %v418_v37 = vld [vmem:[#allocation2 + $0xc10] sm:$0xff]  ;;  %v4221_v7 = vcombine.high %v162_v35, %v170_v36  ;;  %v4220_v43 = vcombine.low %v162_v35, %v170_v36  ;;  %v315_v35 = vld [vmem:[#allocation2 + $0x8d8] sm:$0xff] }
  0xb0   :  { %3419 = vmatpush1.bf16.msra.mxu0 %v4092_v8  ;;  %v4477_v8 = vcombine.high %v418_v37, %v426_v38  ;;  %v4476_v44 = vcombine.low %v418_v37, %v426_v38 }
  0xb1   :  { %3462 = vmatpush1.bf16.msra.mxu1 %v4348_v41  ;;  %3420 = vmatprep.subr.bf16.mxu0 %v4333_v9  ;;  %v147_v41 = vld [vmem:[#allocation2 + $0x398] sm:$0xff] }
  0xb2   :  { %3463 = vmatprep.subr.bf16.mxu1 %v4589_v10  ;;  %v155_v9 = vld [vmem:[#allocation2 + $0x3d8] sm:$0xff] }
  0xb3   :  { %v403_v10 = vld [vmem:[#allocation2 + $0xb98] sm:$0xff]  ;;  %v4207_v45 = vcombine.high %v147_v41, %v155_v9  ;;  %v4206_v52 = vcombine.low %v147_v41, %v155_v9 }
  0xb4   :  { %3421 = vmatpush2.bf16.msra.mxu0 %v4332_v47  ;;  %v4463_v47 = vcombine.high %v403_v10, %v411_v42  ;;  %v4462_v53 = vcombine.low %v403_v10, %v411_v42  ;;  %v299_v41 = vld [vmem:[#allocation2 + $0x858] sm:$0xff] }
  0xb5   :  { %3464 = vmatpush2.bf16.msra.mxu1 %v4588_v48  ;;  %3422 = vmatprep.subr.bf16.mxu0 %v4317_v49  ;;  %v131_v48 = vld [vmem:[#allocation2 + $0x318] sm:$0xff] }
  0xb6   :  { %3465 = vmatprep.subr.bf16.mxu1 %v4573_v50  ;;  %v139_v49 = vld [vmem:[#allocation2 + $0x358] sm:$0xff] }
  0xb7   :  { %v387_v50 = vld [vmem:[#allocation2 + $0xb18] sm:$0xff]  ;;  %v4191_v54 = vcombine.high %v131_v48, %v139_v49  ;;  %v4190_v60 = vcombine.low %v131_v48, %v139_v49 }
  0xb8   :  { %3423 = vmatpush2.bf16.msra.mxu0 %v4316_v55  ;;  %v4447_v55 = vcombine.high %v387_v50, %v395_v51  ;;  %v4446_v61 = vcombine.low %v387_v50, %v395_v51  ;;  %v539_v48 = vld [vmem:[#allocation2 + $0xfd8] sm:$0xff] }
  0xb9   :  { %3466 = vmatpush2.bf16.msra.mxu1 %v4572_v56  ;;  %3424 = vmatprep.subr.bf16.mxu0 %v4301_v57  ;;  %v115_v56 = vld [vmem:[#allocation2 + $0x298] sm:$0xff] }
  0xba   :  { %3467 = vmatprep.subr.bf16.mxu1 %v4557_v58  ;;  %v123_v57 = vld [vmem:[#allocation2 + $0x2d8] sm:$0xff] }
  0xbb   :  { %v371_v58 = vld [vmem:[#allocation2 + $0xa98] sm:$0xff]  ;;  %v4175_v62 = vcombine.high %v115_v56, %v123_v57  ;;  %v4174_v4 = vcombine.low %v115_v56, %v123_v57 }
  0xbc   :  { %3425 = vmatpush2.bf16.msra.mxu0 %v4300_v63  ;;  %v4431_v63 = vcombine.high %v371_v58, %v379_v59  ;;  %v4430_v5 = vcombine.low %v371_v58, %v379_v59  ;;  %v523_v56 = vld [vmem:[#allocation2 + $0xf58] sm:$0xff] }
  0xbd   :  { %3468 = vmatpush2.bf16.msra.mxu1 %v4556_v0  ;;  %3426 = vmatprep.subr.bf16.mxu0 %v4285_v1  ;;  %v99_v0 = vld [vmem:[#allocation2 + $0x218] sm:$0xff] }
  0xbe   :  { %3469 = vmatprep.subr.bf16.mxu1 %v4541_v2  ;;  %v107_v1 = vld [vmem:[#allocation2 + $0x258] sm:$0xff] }
  0xbf   :  { %v355_v2 = vld [vmem:[#allocation2 + $0xa18] sm:$0xff]  ;;  %v4159_v6 = vcombine.high %v99_v0, %v107_v1  ;;  %v4158_v18 = vcombine.low %v99_v0, %v107_v1 }
  0xc0   :  { %3427 = vmatpush2.bf16.msra.mxu0 %v4284_v11  ;;  %v4415_v11 = vcombine.high %v355_v2, %v363_v3  ;;  %v4414_v19 = vcombine.low %v355_v2, %v363_v3  ;;  %v507_v0 = vld [vmem:[#allocation2 + $0xed8] sm:$0xff] }
  0xc1   :  { %3470 = vmatpush2.bf16.msra.mxu1 %v4540_v12  ;;  %3428 = vmatprep.subr.bf16.mxu0 %v4269_v13  ;;  %v83_v12 = vld [vmem:[#allocation2 + $0x198] sm:$0xff] }
  0xc2   :  { %3471 = vmatprep.subr.bf16.mxu1 %v4525_v14  ;;  %v91_v13 = vld [vmem:[#allocation2 + $0x1d8] sm:$0xff] }
  0xc3   :  { %v339_v14 = vld [vmem:[#allocation2 + $0x998] sm:$0xff]  ;;  %v4143_v20 = vcombine.high %v83_v12, %v91_v13  ;;  %v4142_v26 = vcombine.low %v83_v12, %v91_v13 }
  0xc4   :  { %3429 = vmatpush2.bf16.msra.mxu0 %v4268_v21  ;;  %v4399_v21 = vcombine.high %v339_v14, %v347_v15  ;;  %v4398_v27 = vcombine.low %v339_v14, %v347_v15  ;;  %v491_v12 = vld [vmem:[#allocation2 + $0xe58] sm:$0xff] }
  0xc5   :  { %3472 = vmatpush2.bf16.msra.mxu1 %v4524_v22  ;;  %3430 = vmatprep.subr.bf16.mxu0 %v4253_v23  ;;  %v67_v22 = vld [vmem:[#allocation2 + $0x118] sm:$0xff] }
  0xc6   :  { %3473 = vmatprep.subr.bf16.mxu1 %v4509_v24  ;;  %v75_v23 = vld [vmem:[#allocation2 + $0x158] sm:$0xff] }
  0xc7   :  { %v323_v24 = vld [vmem:[#allocation2 + $0x918] sm:$0xff]  ;;  %v4127_v28 = vcombine.high %v67_v22, %v75_v23  ;;  %v4126_v36 = vcombine.low %v67_v22, %v75_v23 }
  0xc8   :  { %3431 = vmatpush2.bf16.msra.mxu0 %v4252_v29  ;;  %v4383_v29 = vcombine.high %v323_v24, %v331_v25  ;;  %v4382_v37 = vcombine.low %v323_v24, %v331_v25  ;;  %v475_v22 = vld [vmem:[#allocation2 + $0xdd8] sm:$0xff] }
  0xc9   :  { %3474 = vmatpush2.bf16.msra.mxu1 %v4508_v30  ;;  %3432 = vmatprep.subr.bf16.mxu0 %v4237_v32  ;;  %v51_v30 = vld [vmem:[#allocation2 + $0x98] sm:$0xff] }
  0xca   :  { %3475 = vmatprep.subr.bf16.mxu1 %v4493_v33  ;;  %v59_v32 = vld [vmem:[#allocation2 + $0xd8] sm:$0xff] }
  0xcb   :  { %v307_v33 = vld [vmem:[#allocation2 + $0x898] sm:$0xff]  ;;  %v4111_v38 = vcombine.high %v51_v30, %v59_v32  ;;  %v4110_v9 = vcombine.low %v51_v30, %v59_v32 }
  0xcc   :  { %3433 = vmatpush2.bf16.msra.mxu0 %v4236_v39  ;;  %v4367_v39 = vcombine.high %v307_v33, %v315_v35  ;;  %v4366_v10 = vcombine.low %v307_v33, %v315_v35  ;;  %v459_v30 = vld [vmem:[#allocation2 + $0xd58] sm:$0xff] }
  0xcd   :  { %3476 = vmatpush2.bf16.msra.mxu1 %v4492_v40  ;;  %3434 = vmatprep.subr.bf16.mxu0 %v4221_v7  ;;  %v35_v40 = vld [vmem:[#allocation2 + $0x18] sm:$0xff] }
  0xce   :  { %3477 = vmatprep.subr.bf16.mxu1 %v4477_v8  ;;  %v43_v7 = vld [vmem:[#allocation2 + $0x58] sm:$0xff] }
  0xcf   :  { %v291_v8 = vld [vmem:[#allocation2 + $0x818] sm:$0xff]  ;;  %v4095_v42 = vcombine.high %v35_v40, %v43_v7  ;;  %v4094_v49 = vcombine.low %v35_v40, %v43_v7 }
  0xd0   :  { %3435 = vmatpush2.bf16.msra.mxu0 %v4220_v43  ;;  %v4351_v43 = vcombine.high %v291_v8, %v299_v41  ;;  %v4350_v50 = vcombine.low %v291_v8, %v299_v41  ;;  %v443_v40 = vld [vmem:[#allocation2 + $0xcd8] sm:$0xff] }
  0xd1   :  { %3478 = vmatpush2.bf16.msra.mxu1 %v4476_v44  ;;  %3490 = vmatprep.subr.bf16.mxu0 %v4207_v45  ;;  %v275_v44 = vld [vmem:[#allocation2 + $0x798] sm:$0xff] }
  0xd2   :  { %3533 = vmatprep.subr.bf16.mxu1 %v4463_v47  ;;  %v283_v45 = vld [vmem:[#allocation2 + $0x7d8] sm:$0xff] }
  0xd3   :  { %3437 = vmatmul.mubr.bf16.vlgmr.msra.gmra.mxu0 %v4695_v31  ;;  %v531_v47 = vld [vmem:[#allocation2 + $0xf98] sm:$0xff]  ;;  %v4335_v51 = vcombine.high %v275_v44, %v283_v45  ;;  %v4334_v57 = vcombine.low %v275_v44, %v283_v45 }
  0xd4   :  { %3480 = vmatmul.mubr.bf16.vlgmr.msra.gmra.mxu1 %v4699_v34  ;;  %3491 = vmatpush1.bf16.msra.mxu0 %v4206_v52  ;;  %v4591_v52 = vcombine.high %v531_v47, %v539_v48  ;;  %v4590_v58 = vcombine.low %v531_v47, %v539_v48  ;;  %v427_v44 = vld [vmem:[#allocation2 + $0xc58] sm:$0xff] }
  0xd5   :  { %3534 = vmatpush1.bf16.msra.mxu1 %v4462_v53  ;;  %3492 = vmatprep.subr.bf16.mxu0 %v4191_v54  ;;  %v259_v53 = vld [vmem:[#allocation2 + $0x718] sm:$0xff] }
  0xd6   :  { %3535 = vmatprep.subr.bf16.mxu1 %v4447_v55  ;;  %3522 = vmatprep.mubr.bf16.mxu0 %v4685_v16  ;;  %v267_v54 = vld [vmem:[#allocation2 + $0x758] sm:$0xff] }
  0xd7   :  { %3565 = vmatprep.mubr.bf16.mxu1 %v4689_v17  ;;  %v515_v55 = vld [vmem:[#allocation2 + $0xf18] sm:$0xff]  ;;  %v4319_v59 = vcombine.high %v259_v53, %v267_v54  ;;  %v4318_v1 = vcombine.low %v259_v53, %v267_v54  ;;  %v412_v53 = vld [vmem:[#allocation2 + $0xbe0] sm:$0xff] }
  0xd8   :  { %3493 = vmatpush1.bf16.msra.mxu0 %v4190_v60  ;;  %v4575_v60 = vcombine.high %v515_v55, %v523_v56  ;;  %v4574_v2 = vcombine.low %v515_v55, %v523_v56  ;;  %v550_v55 = vsub.s32 0, %v4660_v46 }
  0xd9   :  { %3536 = vmatpush1.bf16.msra.mxu1 %v4446_v61  ;;  %3494 = vmatprep.subr.bf16.mxu0 %v4175_v62  ;;  %v243_v61 = vld [vmem:[#allocation2 + $0x698] sm:$0xff] }
  0xda   :  { %3537 = vmatprep.subr.bf16.mxu1 %v4431_v63  ;;  %v251_v62 = vld [vmem:[#allocation2 + $0x6d8] sm:$0xff] }
  0xdb   :  { %v499_v63 = vld [vmem:[#allocation2 + $0xe98] sm:$0xff]  ;;  %v4303_v3 = vcombine.high %v243_v61, %v251_v62  ;;  %v4302_v13 = vcombine.low %v243_v61, %v251_v62  ;;  %v132_v61 = vld [vmem:[#allocation2 + $0x320] sm:$0xff] }
  0xdc   :  { %3495 = vmatpush1.bf16.msra.mxu0 %v4174_v4  ;;  %v4559_v4 = vcombine.high %v499_v63, %v507_v0  ;;  %v4558_v14 = vcombine.low %v499_v63, %v507_v0  ;;  %v140_v62 = vld [vmem:[#allocation2 + $0x360] sm:$0xff] }
  0xdd   :  { %3538 = vmatpush1.bf16.msra.mxu1 %v4430_v5  ;;  %3496 = vmatprep.subr.bf16.mxu0 %v4159_v6  ;;  %v227_v5 = vld [vmem:[#allocation2 + $0x618] sm:$0xff]  ;;  %v388_v63 = vld [vmem:[#allocation2 + $0xb20] sm:$0xff] }
  0xde   :  { %3539 = vmatprep.subr.bf16.mxu1 %v4415_v11  ;;  %v235_v6 = vld [vmem:[#allocation2 + $0x658] sm:$0xff]  ;;  %v396_v0 = vld [vmem:[#allocation2 + $0xb60] sm:$0xff] }
  0xdf   :  { %v483_v11 = vld [vmem:[#allocation2 + $0xe18] sm:$0xff]  ;;  %v4287_v15 = vcombine.high %v227_v5, %v235_v6  ;;  %v4286_v23 = vcombine.low %v227_v5, %v235_v6  ;;  %v4449_v6 = vcombine.high %v388_v63, %v396_v0 }
  0xe0   :  { %3497 = vmatpush1.bf16.msra.mxu0 %v4158_v18  ;;  %v4543_v18 = vcombine.high %v483_v11, %v491_v12  ;;  %v4542_v24 = vcombine.low %v483_v11, %v491_v12  ;;  %v116_v11 = vld [vmem:[#allocation2 + $0x2a0] sm:$0xff] }
  0xe1   :  { %3540 = vmatpush1.bf16.msra.mxu1 %v4414_v19  ;;  %3498 = vmatprep.subr.bf16.mxu0 %v4143_v20  ;;  %v211_v19 = vld [vmem:[#allocation2 + $0x598] sm:$0xff]  ;;  %v124_v12 = vld [vmem:[#allocation2 + $0x2e0] sm:$0xff] }
  0xe2   :  { %3541 = vmatprep.subr.bf16.mxu1 %v4399_v21  ;;  %v219_v20 = vld [vmem:[#allocation2 + $0x5d8] sm:$0xff] }
  0xe3   :  { %v467_v21 = vld [vmem:[#allocation2 + $0xd98] sm:$0xff]  ;;  %v4271_v25 = vcombine.high %v211_v19, %v219_v20  ;;  %v4270_v32 = vcombine.low %v211_v19, %v219_v20  ;;  %v4192_v20 = vcombine.low %v132_v61, %v140_v62 }
  0xe4   :  { %3499 = vmatpush1.bf16.msra.mxu0 %v4142_v26  ;;  %v4527_v26 = vcombine.high %v467_v21, %v475_v22  ;;  %v4526_v33 = vcombine.low %v467_v21, %v475_v22  ;;  %v4448_v22 = vcombine.low %v388_v63, %v396_v0  ;;  %v316_v63 = vld [vmem:[#allocation2 + $0x8e0] sm:$0xff] }
  0xe5   :  { %3542 = vmatpush1.bf16.msra.mxu1 %v4398_v27  ;;  %3500 = vmatprep.subr.bf16.mxu0 %v4127_v28  ;;  %v195_v27 = vld [vmem:[#allocation2 + $0x518] sm:$0xff] }
  0xe6   :  { %3543 = vmatprep.subr.bf16.mxu1 %v4383_v29  ;;  %v203_v28 = vld [vmem:[#allocation2 + $0x558] sm:$0xff] }
  0xe7   :  { %v451_v29 = vld [vmem:[#allocation2 + $0xd18] sm:$0xff]  ;;  %v4255_v35 = vcombine.high %v195_v27, %v203_v28  ;;  %v4254_v7 = vcombine.low %v195_v27, %v203_v28  ;;  %v100_v28 = vld [vmem:[#allocation2 + $0x220] sm:$0xff] }
  0xe8   :  { %3501 = vmatpush1.bf16.msra.mxu0 %v4126_v36  ;;  %v4511_v36 = vcombine.high %v451_v29, %v459_v30  ;;  %v4510_v8 = vcombine.low %v451_v29, %v459_v30  ;;  %v108_v29 = vld [vmem:[#allocation2 + $0x260] sm:$0xff] }
  0xe9   :  { %3544 = vmatpush1.bf16.msra.mxu1 %v4382_v37  ;;  %3502 = vmatprep.subr.bf16.mxu0 %v4111_v38  ;;  %v179_v37 = vld [vmem:[#allocation2 + $0x498] sm:$0xff] }
  0xea   :  { %3545 = vmatprep.subr.bf16.mxu1 %v4367_v39  ;;  %v187_v38 = vld [vmem:[#allocation2 + $0x4d8] sm:$0xff] }
  0xeb   :  { %v435_v39 = vld [vmem:[#allocation2 + $0xc98] sm:$0xff]  ;;  %v4239_v41 = vcombine.high %v179_v37, %v187_v38  ;;  %v4238_v45 = vcombine.low %v179_v37, %v187_v38  ;;  %v4176_v37 = vcombine.low %v116_v11, %v124_v12 }
  0xec   :  { %3503 = vmatpush1.bf16.msra.mxu0 %v4110_v9  ;;  %v4495_v9 = vcombine.high %v435_v39, %v443_v40  ;;  %v4494_v47 = vcombine.low %v435_v39, %v443_v40  ;;  %v4161_v40 = vcombine.high %v100_v28, %v108_v29 }
  0xed   :  { %3546 = vmatpush1.bf16.msra.mxu1 %v4366_v10  ;;  %3504 = vmatprep.subr.bf16.mxu0 %v4095_v42  ;;  %v163_v10 = vld [vmem:[#allocation2 + $0x418] sm:$0xff] }
  0xee   :  { %3547 = vmatprep.subr.bf16.mxu1 %v4351_v43  ;;  %v171_v42 = vld [vmem:[#allocation2 + $0x458] sm:$0xff] }
  0xef   :  { %v419_v43 = vld [vmem:[#allocation2 + $0xc18] sm:$0xff]  ;;  %v4223_v48 = vcombine.high %v163_v10, %v171_v42  ;;  %v4222_v54 = vcombine.low %v163_v10, %v171_v42  ;;  %v92_v10 = vld [vmem:[#allocation2 + $0x1e0] sm:$0xff] }
  0xf0   :  { %3505 = vmatpush1.bf16.msra.mxu0 %v4094_v49  ;;  %v4479_v49 = vcombine.high %v419_v43, %v427_v44  ;;  %v4478_v56 = vcombine.low %v419_v43, %v427_v44  ;;  %v340_v42 = vld [vmem:[#allocation2 + $0x9a0] sm:$0xff]  ;;  %v4160_v44 = vcombine.low %v100_v28, %v108_v29 }
  0xf1   :  { %3548 = vmatpush1.bf16.msra.mxu1 %v4350_v50  ;;  %3506 = vmatprep.subr.bf16.mxu0 %v4335_v51  ;;  %v148_v50 = vld [vmem:[#allocation2 + $0x3a0] sm:$0xff] }
  0xf2   :  { %3549 = vmatprep.subr.bf16.mxu1 %v4591_v52  ;;  %v156_v51 = vld [vmem:[#allocation2 + $0x3e0] sm:$0xff] }
  0xf3   :  { %v404_v52 = vld [vmem:[#allocation2 + $0xba0] sm:$0xff] }
  0xf4   :  { %3507 = vmatpush2.bf16.msra.mxu0 %v4334_v57  ;;  %v4717_v57 = vld [vmem:[%s4814_s2] sm:$0xff] }
  0xf5   :  { %3550 = vmatpush2.bf16.msra.mxu1 %v4590_v58  ;;  %3508 = vmatprep.subr.bf16.mxu0 %v4319_v59  ;;  %v4209_v58 = vcombine.high %v148_v50, %v156_v51  ;;  %v4465_v59 = vcombine.high %v404_v52, %v412_v53  ;;  %v348_v43 = vld [vmem:[#allocation2 + $0x9e0] sm:$0xff] }
  0xf6   :  { %3551 = vmatprep.subr.bf16.mxu1 %v4575_v60  ;;  %v554_v60 = vsub.s32 1, %v4660_v46  ;;  %v516_v28 = vld [vmem:[#allocation2 + $0xf20] sm:$0xff] }
  0xf7   :  { %v524_v29 = vld [vmem:[#allocation2 + $0xf60] sm:$0xff] }
  0xf8   :  { %3509 = vmatpush2.bf16.msra.mxu0 %v4318_v1  ;;  %v551_v1 = vrot.slane %v4717_v57, %v550_v55  ;;  %v555_v5 = vrot.slane %v4717_v57, %v554_v60 }
  0xf9   :  { %3552 = vmatpush2.bf16.msra.mxu1 %v4574_v2  ;;  %3510 = vmatprep.subr.bf16.mxu0 %v4303_v3  ;;  %v4208_v2 = vcombine.low %v148_v50, %v156_v51  ;;  %v4464_v3 = vcombine.low %v404_v52, %v412_v53  ;;  %v76_v50 = vld [vmem:[#allocation2 + $0x160] sm:$0xff] }
  0xfa   :  { %3553 = vmatprep.subr.bf16.mxu1 %v4559_v4  ;;  %v4193_v4 = vcombine.high %v132_v61, %v140_v62  ;;  %v324_v51 = vld [vmem:[#allocation2 + $0x920] sm:$0xff] }
  0xfb   :  { %v332_v52 = vld [vmem:[#allocation2 + $0x960] sm:$0xff] }
  0xfc   :  { %3511 = vmatpush2.bf16.msra.mxu0 %v4302_v13  ;;  %v60_v61 = vld [vmem:[#allocation2 + $0xe0] sm:$0xff] }
  0xfd   :  { %3554 = vmatpush2.bf16.msra.mxu1 %v4558_v14  ;;  %3512 = vmatprep.subr.bf16.mxu0 %v4287_v15  ;;  %v372_v14 = vld [vmem:[#allocation2 + $0xaa0] sm:$0xff] }
  0xfe   :  { %3555 = vmatprep.subr.bf16.mxu1 %v4543_v18  ;;  %v380_v15 = vld [vmem:[#allocation2 + $0xae0] sm:$0xff] }
  0xff   :  { %v4433_v27 = vcombine.high %v372_v14, %v380_v15  ;;  %v4432_v39 = vcombine.low %v372_v14, %v380_v15  ;;  %v308_v62 = vld [vmem:[#allocation2 + $0x8a0] sm:$0xff] }
 0x100   :  { %3513 = vmatpush2.bf16.msra.mxu0 %v4286_v23  ;;  %v4177_v23 = vcombine.high %v116_v11, %v124_v12  ;;  %v300_v11 = vld [vmem:[#allocation2 + $0x860] sm:$0xff] }
 0x101   :  { %3556 = vmatpush2.bf16.msra.mxu1 %v4542_v24  ;;  %3514 = vmatprep.subr.bf16.mxu0 %v4271_v25 }
 0x102   :  { %3557 = vmatprep.subr.bf16.mxu1 %v4527_v26 }
 0x104   :  { %3515 = vmatpush2.bf16.msra.mxu0 %v4270_v32  ;;  %v356_v32 = vld [vmem:[#allocation2 + $0xa20] sm:$0xff] }
 0x105   :  { %3558 = vmatpush2.bf16.msra.mxu1 %v4526_v33  ;;  %3516 = vmatprep.subr.bf16.mxu0 %v4255_v35  ;;  %v364_v33 = vld [vmem:[#allocation2 + $0xa60] sm:$0xff] }
 0x106   :  { %3559 = vmatprep.subr.bf16.mxu1 %v4511_v36 }
 0x108   :  { %3517 = vmatpush2.bf16.msra.mxu0 %v4254_v7 }
 0x109   :  { %3560 = vmatpush2.bf16.msra.mxu1 %v4510_v8  ;;  %3518 = vmatprep.subr.bf16.mxu0 %v4239_v41  ;;  %v4417_v41 = vcombine.high %v356_v32, %v364_v33 }
 0x10a   :  { %3561 = vmatprep.subr.bf16.mxu1 %v4495_v9  ;;  %v84_v9 = vld [vmem:[#allocation2 + $0x1a0] sm:$0xff] }
 0x10b   :  { %v4144_v53 = vcombine.low %v84_v9, %v92_v10 }
 0x10c   :  { %3519 = vmatpush2.bf16.msra.mxu0 %v4238_v45  ;;  %v4416_v45 = vcombine.low %v356_v32, %v364_v33 }
 0x10d   :  { %3562 = vmatpush2.bf16.msra.mxu1 %v4494_v47  ;;  %3520 = vmatprep.subr.bf16.mxu0 %v4223_v48  ;;  %v4145_v47 = vcombine.high %v84_v9, %v92_v10  ;;  %v4401_v48 = vcombine.high %v340_v42, %v348_v43  ;;  %v228_v9 = vld [vmem:[#allocation2 + $0x620] sm:$0xff] }
 0x10e   :  { %3563 = vmatprep.subr.bf16.mxu1 %v4479_v49  ;;  %v68_v49 = vld [vmem:[#allocation2 + $0x120] sm:$0xff] }
 0x10f   :  { %v4128_v0 = vcombine.low %v68_v49, %v76_v50  ;;  %v236_v10 = vld [vmem:[#allocation2 + $0x660] sm:$0xff] }
 0x110   :  { %3521 = vmatpush2.bf16.msra.mxu0 %v4222_v54  ;;  %v4400_v54 = vcombine.low %v340_v42, %v348_v43  ;;  %v484_v42 = vld [vmem:[#allocation2 + $0xe20] sm:$0xff] }
 0x111   :  { %3564 = vmatpush2.bf16.msra.mxu1 %v4478_v56  ;;  %3576 = vmatprep.subr.bf16.mxu0 %v4209_v58  ;;  %v4129_v56 = vcombine.high %v68_v49, %v76_v50  ;;  %v4385_v58 = vcombine.high %v324_v51, %v332_v52  ;;  %v492_v43 = vld [vmem:[#allocation2 + $0xe60] sm:$0xff] }
 0x112   :  { %3619 = vmatprep.subr.bf16.mxu1 %v4465_v59  ;;  %v52_v59 = vld [vmem:[#allocation2 + $0xa0] sm:$0xff] }
 0x113   :  { %v3266_v13 = vpop.f32.mrf.mxu0  ;;  %3523 = vmatmul.mubr.bf16.vlgmr.msra.gmra.mxu0 %v4695_v31  ;;  %v4112_v12 = vcombine.low %v52_v59, %v60_v61  ;;  %v212_v49 = vld [vmem:[#allocation2 + $0x5a0] sm:$0xff] }
 0x114   :  { %v3267_v18 = vadd.f32 %v3266_v13, %v551_v1  ;;  %v3309_v19 = vpop.f32.mrf.mxu1  ;;  %3566 = vmatmul.mubr.bf16.vlgmr.msra.gmra.mxu1 %v4699_v34  ;;  %3577 = vmatpush1.bf16.msra.mxu0 %v4208_v2  ;;  %v4384_v1 = vcombine.low %v324_v51, %v332_v52  ;;  %v4113_v2 = vcombine.high %v52_v59, %v60_v61  ;;  %v220_v50 = vld [vmem:[#allocation2 + $0x5e0] sm:$0xff] }
 0x115   :  { %3620 = vmatpush1.bf16.msra.mxu1 %v4464_v3  ;;  %v3268_v21 = vpop.f32.mrf.mxu0  ;;  %3578 = vmatprep.subr.bf16.mxu0 %v4193_v4  ;;  %v4369_v3 = vcombine.high %v308_v62, %v316_v63  ;;  %v36_v4 = vld [vmem:[#allocation2 + $0x20] sm:$0xff]  ;;  %v4368_v13 = vcombine.low %v308_v62, %v316_v63 }
 0x116   :  { %v3310_v24 = vadd.f32 %v3309_v19, %v3267_v18  ;;  %v3269_v25 = vadd.f32 %v3268_v21, %v555_v5  ;;  %v3311_v26 = vpop.f32.mrf.mxu1  ;;  %3621 = vmatprep.subr.bf16.mxu1 %v4449_v6  ;;  %3608 = vmatprep.mubr.bf16.mxu0 %v4685_v16  ;;  %v44_v5 = vld [vmem:[#allocation2 + $0x60] sm:$0xff] }
 0x117   :  { %v3270_v30 = vpop.f32.mrf.mxu0  ;;  %3651 = vmatprep.mubr.bf16.mxu1 %v4689_v17  ;;  %v292_v6 = vld [vmem:[#allocation2 + $0x820] sm:$0xff]  ;;  %v4097_v14 = vcombine.high %v36_v4, %v44_v5 }
 0x118   :  { %v3312_v35 = vadd.f32 %v3311_v26, %v3269_v25  ;;  %v3313_v36 = vpop.f32.mrf.mxu1  ;;  %3579 = vmatpush1.bf16.msra.mxu0 %v4192_v20  ;;  %v4353_v15 = vcombine.high %v292_v6, %v300_v11  ;;  %v276_v18 = vld [vmem:[#allocation2 + $0x7a0] sm:$0xff] }
 0x119   :  { %3622 = vmatpush1.bf16.msra.mxu1 %v4448_v22  ;;  %v3272_v38 = vpop.f32.mrf.mxu0  ;;  %3580 = vmatprep.subr.bf16.mxu0 %v4177_v23  ;;  %v284_v19 = vld [vmem:[#allocation2 + $0x7e0] sm:$0xff]  ;;  %v4096_v22 = vcombine.low %v36_v4, %v44_v5  ;;  %v4352_v23 = vcombine.low %v292_v6, %v300_v11 }
 0x11a   :  { %v3952_v7 = vcombine.low %v3310_v24, %v3312_v35  ;;  %v3315_v8 = vpop.f32.mrf.mxu1  ;;  %3623 = vmatprep.subr.bf16.mxu1 %v4433_v27  ;;  %v532_v20 = vld [vmem:[#allocation2 + $0xfa0] sm:$0xff]  ;;  %v4337_v24 = vcombine.high %v276_v18, %v284_v19  ;;  %v4336_v30 = vcombine.low %v276_v18, %v284_v19  ;;  %v4577_v35 = vcombine.high %v516_v28, %v524_v29 }
 0x11b   :  { %v540_v21 = vld [vmem:[#allocation2 + $0xfe0] sm:$0xff] }
 0x11c   :  { %4063 = vst [vmem:[%s4815_s3] sm:$0xff] %v3952_v7  ;;  %3581 = vmatpush1.bf16.msra.mxu0 %v4176_v37  ;;  %v4593_v25 = vcombine.high %v532_v20, %v540_v21  ;;  %v260_v26 = vld [vmem:[#allocation2 + $0x720] sm:$0xff]  ;;  %v4592_v32 = vcombine.low %v532_v20, %v540_v21  ;;  %v4576_v7 = vcombine.low %v516_v28, %v524_v29  ;;  %v405_v28 = vld [vmem:[#allocation2 + $0xba8] sm:$0xff] }
 0x11d   :  { %3624 = vmatpush1.bf16.msra.mxu1 %v4432_v39  ;;  %3582 = vmatprep.subr.bf16.mxu0 %v4161_v40  ;;  %v268_v27 = vld [vmem:[#allocation2 + $0x760] sm:$0xff]  ;;  %v413_v29 = vld [vmem:[#allocation2 + $0xbe8] sm:$0xff] }
 0x11e   :  { %3625 = vmatprep.subr.bf16.mxu1 %v4417_v41  ;;  %v4321_v33 = vcombine.high %v260_v26, %v268_v27  ;;  %v244_v36 = vld [vmem:[#allocation2 + $0x6a0] sm:$0xff]  ;;  %v4320_v40 = vcombine.low %v260_v26, %v268_v27  ;;  %v149_v26 = vld [vmem:[#allocation2 + $0x3a8] sm:$0xff] }
 0x11f   :  { %v252_v37 = vld [vmem:[#allocation2 + $0x6e0] sm:$0xff]  ;;  %v157_v27 = vld [vmem:[#allocation2 + $0x3e8] sm:$0xff] }
 0x120   :  { %3583 = vmatpush1.bf16.msra.mxu0 %v4160_v44  ;;  %v500_v38 = vld [vmem:[#allocation2 + $0xea0] sm:$0xff]  ;;  %v4305_v8 = vcombine.high %v244_v36, %v252_v37  ;;  %v4304_v44 = vcombine.low %v244_v36, %v252_v37  ;;  %v4467_v36 = vcombine.high %v405_v28, %v413_v29  ;;  %v562_v37 = vsub.s32 3, %v4660_v46 }
 0x121   :  { %3626 = vmatpush1.bf16.msra.mxu1 %v4416_v45  ;;  %3584 = vmatprep.subr.bf16.mxu0 %v4145_v47  ;;  %v508_v39 = vld [vmem:[#allocation2 + $0xee0] sm:$0xff]  ;;  %v4289_v47 = vcombine.high %v228_v9, %v236_v10 }
 0x122   :  { %3627 = vmatprep.subr.bf16.mxu1 %v4401_v48  ;;  %v4561_v41 = vcombine.high %v500_v38, %v508_v39  ;;  %v4560_v45 = vcombine.low %v500_v38, %v508_v39  ;;  %v4545_v48 = vcombine.high %v484_v42, %v492_v43  ;;  %v468_v51 = vld [vmem:[#allocation2 + $0xda0] sm:$0xff]  ;;  %v133_v38 = vld [vmem:[#allocation2 + $0x328] sm:$0xff] }
 0x123   :  { %v476_v52 = vld [vmem:[#allocation2 + $0xde0] sm:$0xff]  ;;  %v141_v39 = vld [vmem:[#allocation2 + $0x368] sm:$0xff] }
 0x124   :  { %3585 = vmatpush1.bf16.msra.mxu0 %v4144_v53  ;;  %v4288_v53 = vcombine.low %v228_v9, %v236_v10  ;;  %v196_v59 = vld [vmem:[#allocation2 + $0x520] sm:$0xff]  ;;  %v4466_v9 = vcombine.low %v405_v28, %v413_v29  ;;  %v4195_v10 = vcombine.high %v133_v38, %v141_v39  ;;  %v77_v28 = vld [vmem:[#allocation2 + $0x168] sm:$0xff] }
 0x125   :  { %3628 = vmatpush1.bf16.msra.mxu1 %v4400_v54  ;;  %3586 = vmatprep.subr.bf16.mxu0 %v4129_v56  ;;  %v4544_v54 = vcombine.low %v484_v42, %v492_v43  ;;  %v4273_v56 = vcombine.high %v212_v49, %v220_v50  ;;  %v204_v61 = vld [vmem:[#allocation2 + $0x560] sm:$0xff]  ;;  %v563_v42 = vrot.slane %v4717_v57, %v562_v37  ;;  %v325_v29 = vld [vmem:[#allocation2 + $0x928] sm:$0xff] }
 0x126   :  { %3629 = vmatprep.subr.bf16.mxu1 %v4385_v58  ;;  %v4529_v58 = vcombine.high %v468_v51, %v476_v52  ;;  %v452_v62 = vld [vmem:[#allocation2 + $0xd20] sm:$0xff] }
 0x127   :  { %v460_v63 = vld [vmem:[#allocation2 + $0xd60] sm:$0xff] }
 0x128   :  { %3587 = vmatpush1.bf16.msra.mxu0 %v4128_v0  ;;  %v4272_v0 = vcombine.low %v212_v49, %v220_v50  ;;  %v180_v4 = vld [vmem:[#allocation2 + $0x4a0] sm:$0xff]  ;;  %v381_v49 = vld [vmem:[#allocation2 + $0xae8] sm:$0xff] }
 0x129   :  { %3630 = vmatpush1.bf16.msra.mxu1 %v4384_v1  ;;  %3588 = vmatprep.subr.bf16.mxu0 %v4113_v2  ;;  %v4528_v1 = vcombine.low %v468_v51, %v476_v52  ;;  %v4257_v2 = vcombine.high %v196_v59, %v204_v61  ;;  %v188_v5 = vld [vmem:[#allocation2 + $0x4e0] sm:$0xff]  ;;  %v4194_v52 = vcombine.low %v133_v38, %v141_v39  ;;  %v53_v39 = vld [vmem:[#allocation2 + $0xa8] sm:$0xff] }
 0x12a   :  { %3631 = vmatprep.subr.bf16.mxu1 %v4369_v3  ;;  %v4513_v3 = vcombine.high %v452_v62, %v460_v63  ;;  %v436_v6 = vld [vmem:[#allocation2 + $0xca0] sm:$0xff] }
 0x12b   :  { %v444_v11 = vld [vmem:[#allocation2 + $0xce0] sm:$0xff] }
 0x12c   :  { %3589 = vmatpush1.bf16.msra.mxu0 %v4112_v12  ;;  %v4256_v12 = vcombine.low %v196_v59, %v204_v61  ;;  %v164_v18 = vld [vmem:[#allocation2 + $0x420] sm:$0xff] }
 0x12d   :  { %3632 = vmatpush1.bf16.msra.mxu1 %v4368_v13  ;;  %3590 = vmatprep.subr.bf16.mxu0 %v4097_v14  ;;  %v4512_v13 = vcombine.low %v452_v62, %v460_v63  ;;  %v4241_v14 = vcombine.high %v180_v4, %v188_v5  ;;  %v172_v19 = vld [vmem:[#allocation2 + $0x460] sm:$0xff]  ;;  %v101_v63 = vld [vmem:[#allocation2 + $0x228] sm:$0xff] }
 0x12e   :  { %3633 = vmatprep.subr.bf16.mxu1 %v4353_v15  ;;  %v4497_v15 = vcombine.high %v436_v6, %v444_v11  ;;  %v420_v20 = vld [vmem:[#allocation2 + $0xc20] sm:$0xff] }
 0x12f   :  { %v428_v21 = vld [vmem:[#allocation2 + $0xc60] sm:$0xff] }
 0x130   :  { %3591 = vmatpush1.bf16.msra.mxu0 %v4096_v22  ;;  %v4240_v22 = vcombine.low %v180_v4, %v188_v5 }
 0x131   :  { %3634 = vmatpush1.bf16.msra.mxu1 %v4352_v23  ;;  %3592 = vmatprep.subr.bf16.mxu0 %v4337_v24  ;;  %v4496_v23 = vcombine.low %v436_v6, %v444_v11  ;;  %v4225_v24 = vcombine.high %v164_v18, %v172_v19 }
 0x132   :  { %3635 = vmatprep.subr.bf16.mxu1 %v4593_v25  ;;  %v4481_v25 = vcombine.high %v420_v20, %v428_v21 }
 0x134   :  { %3593 = vmatpush2.bf16.msra.mxu0 %v4336_v30  ;;  %v4224_v30 = vcombine.low %v164_v18, %v172_v19  ;;  %v85_v19 = vld [vmem:[#allocation2 + $0x1a8] sm:$0xff] }
 0x135   :  { %3636 = vmatpush2.bf16.msra.mxu1 %v4592_v32  ;;  %3594 = vmatprep.subr.bf16.mxu0 %v4321_v33  ;;  %v558_v32 = vsub.s32 2, %v4660_v46  ;;  %v4480_v33 = vcombine.low %v420_v20, %v428_v21  ;;  %v93_v20 = vld [vmem:[#allocation2 + $0x1e8] sm:$0xff] }
 0x136   :  { %3637 = vmatprep.subr.bf16.mxu1 %v4577_v35  ;;  %v4211_v35 = vcombine.high %v149_v26, %v157_v27  ;;  %v341_v21 = vld [vmem:[#allocation2 + $0x9a8] sm:$0xff] }
 0x138   :  { %3595 = vmatpush2.bf16.msra.mxu0 %v4320_v40  ;;  %v389_v40 = vld [vmem:[#allocation2 + $0xb28] sm:$0xff] }
 0x139   :  { %3638 = vmatpush2.bf16.msra.mxu1 %v4576_v7  ;;  %3596 = vmatprep.subr.bf16.mxu0 %v4305_v8  ;;  %v397_v7 = vld [vmem:[#allocation2 + $0xb68] sm:$0xff]  ;;  %v559_v8 = vrot.slane %v4717_v57, %v558_v32 }
 0x13a   :  { %3639 = vmatprep.subr.bf16.mxu1 %v4561_v41  ;;  %v4210_v41 = vcombine.low %v149_v26, %v157_v27  ;;  %v4451_v43 = vcombine.high %v389_v40, %v397_v7  ;;  %v69_v27 = vld [vmem:[#allocation2 + $0x128] sm:$0xff] }
 0x13c   :  { %3597 = vmatpush2.bf16.msra.mxu0 %v4304_v44  ;;  %v117_v44 = vld [vmem:[#allocation2 + $0x2a8] sm:$0xff] }
 0x13d   :  { %3640 = vmatpush2.bf16.msra.mxu1 %v4560_v45  ;;  %3598 = vmatprep.subr.bf16.mxu0 %v4289_v47  ;;  %v125_v45 = vld [vmem:[#allocation2 + $0x2e8] sm:$0xff] }
 0x13e   :  { %3641 = vmatprep.subr.bf16.mxu1 %v4545_v48  ;;  %v373_v48 = vld [vmem:[#allocation2 + $0xaa8] sm:$0xff]  ;;  %v4178_v6 = vcombine.low %v117_v44, %v125_v45 }
 0x13f   :  { %v4435_v62 = vcombine.high %v373_v48, %v381_v49 }
 0x140   :  { %3599 = vmatpush2.bf16.msra.mxu0 %v4288_v53 }
 0x141   :  { %3642 = vmatpush2.bf16.msra.mxu1 %v4544_v54  ;;  %3600 = vmatprep.subr.bf16.mxu0 %v4273_v56  ;;  %v4450_v54 = vcombine.low %v389_v40, %v397_v7  ;;  %v4179_v56 = vcombine.high %v117_v44, %v125_v45  ;;  %v61_v40 = vld [vmem:[#allocation2 + $0xe8] sm:$0xff] }
 0x142   :  { %3643 = vmatprep.subr.bf16.mxu1 %v4529_v58  ;;  %v309_v7 = vld [vmem:[#allocation2 + $0x8a8] sm:$0xff] }
 0x143   :  { %v45_v44 = vld [vmem:[#allocation2 + $0x68] sm:$0xff] }
 0x144   :  { %3601 = vmatpush2.bf16.msra.mxu0 %v4272_v0  ;;  %v109_v0 = vld [vmem:[#allocation2 + $0x268] sm:$0xff] }
 0x145   :  { %3644 = vmatpush2.bf16.msra.mxu1 %v4528_v1  ;;  %3602 = vmatprep.subr.bf16.mxu0 %v4257_v2  ;;  %v357_v2 = vld [vmem:[#allocation2 + $0xa28] sm:$0xff] }
 0x146   :  { %3645 = vmatprep.subr.bf16.mxu1 %v4513_v3  ;;  %v365_v3 = vld [vmem:[#allocation2 + $0xa68] sm:$0xff] }
 0x147   :  { %v4419_v18 = vcombine.high %v357_v2, %v365_v3  ;;  %v293_v45 = vld [vmem:[#allocation2 + $0x828] sm:$0xff] }
 0x148   :  { %3603 = vmatpush2.bf16.msra.mxu0 %v4256_v12  ;;  %v4434_v12 = vcombine.low %v373_v48, %v381_v49  ;;  %v4114_v48 = vcombine.low %v53_v39, %v61_v40 }
 0x149   :  { %3646 = vmatpush2.bf16.msra.mxu1 %v4512_v13  ;;  %3604 = vmatprep.subr.bf16.mxu0 %v4241_v14  ;;  %v4163_v13 = vcombine.high %v101_v63, %v109_v0 }
 0x14a   :  { %3647 = vmatprep.subr.bf16.mxu1 %v4497_v15 }
 0x14c   :  { %3605 = vmatpush2.bf16.msra.mxu0 %v4240_v22  ;;  %v349_v22 = vld [vmem:[#allocation2 + $0x9e8] sm:$0xff] }
 0x14d   :  { %3648 = vmatpush2.bf16.msra.mxu1 %v4496_v23  ;;  %3606 = vmatprep.subr.bf16.mxu0 %v4225_v24  ;;  %v4162_v23 = vcombine.low %v101_v63, %v109_v0  ;;  %v4418_v24 = vcombine.low %v357_v2, %v365_v3  ;;  %v4403_v26 = vcombine.high %v341_v21, %v349_v22  ;;  %v261_v63 = vld [vmem:[#allocation2 + $0x728] sm:$0xff] }
 0x14e   :  { %3649 = vmatprep.subr.bf16.mxu1 %v4481_v25  ;;  %v4147_v25 = vcombine.high %v85_v19, %v93_v20  ;;  %v269_v0 = vld [vmem:[#allocation2 + $0x768] sm:$0xff] }
 0x14f   :  { %v525_v2 = vld [vmem:[#allocation2 + $0xf68] sm:$0xff] }
 0x150   :  { %3607 = vmatpush2.bf16.msra.mxu0 %v4224_v30  ;;  %v333_v30 = vld [vmem:[#allocation2 + $0x968] sm:$0xff] }
 0x151   :  { %3650 = vmatpush2.bf16.msra.mxu1 %v4480_v33  ;;  %3662 = vmatprep.subr.bf16.mxu0 %v4211_v35  ;;  %v4146_v33 = vcombine.low %v85_v19, %v93_v20  ;;  %v4402_v35 = vcombine.low %v341_v21, %v349_v22  ;;  %v4387_v38 = vcombine.high %v325_v29, %v333_v30  ;;  %v229_v21 = vld [vmem:[#allocation2 + $0x628] sm:$0xff] }
 0x152   :  { %3705 = vmatprep.subr.bf16.mxu1 %v4467_v36  ;;  %v4131_v36 = vcombine.high %v69_v27, %v77_v28  ;;  %v237_v22 = vld [vmem:[#allocation2 + $0x668] sm:$0xff] }
 0x153   :  { %v3352_v47 = vpop.f32.mrf.mxu0  ;;  %3609 = vmatmul.mubr.bf16.vlgmr.msra.gmra.mxu0 %v4695_v31 }
 0x154   :  { %v3353_v50 = vadd.f32 %v3352_v47, %v559_v8  ;;  %v3395_v51 = vpop.f32.mrf.mxu1  ;;  %3652 = vmatmul.mubr.bf16.vlgmr.msra.gmra.mxu1 %v4699_v34  ;;  %3663 = vmatpush1.bf16.msra.mxu0 %v4210_v41  ;;  %v317_v8 = vld [vmem:[#allocation2 + $0x8e8] sm:$0xff]  ;;  %v4130_v41 = vcombine.low %v69_v27, %v77_v28  ;;  %v4291_v27 = vcombine.high %v229_v21, %v237_v22 }
 0x155   :  { %3706 = vmatpush1.bf16.msra.mxu1 %v4466_v9  ;;  %v3354_v53 = vpop.f32.mrf.mxu0  ;;  %3664 = vmatprep.subr.bf16.mxu0 %v4195_v10  ;;  %v4386_v9 = vcombine.low %v325_v29, %v333_v30  ;;  %v4115_v10 = vcombine.high %v53_v39, %v61_v40  ;;  %v301_v47 = vld [vmem:[#allocation2 + $0x868] sm:$0xff]  ;;  %v4370_v49 = vcombine.low %v309_v7, %v317_v8 }
 0x156   :  { %v3396_v58 = vadd.f32 %v3395_v51, %v3353_v50  ;;  %v3355_v59 = vadd.f32 %v3354_v53, %v563_v42  ;;  %v3397_v61 = vpop.f32.mrf.mxu1  ;;  %3707 = vmatprep.subr.bf16.mxu1 %v4451_v43  ;;  %3694 = vmatprep.mubr.bf16.mxu0 %v4685_v16  ;;  %v4371_v42 = vcombine.high %v309_v7, %v317_v8  ;;  %v37_v43 = vld [vmem:[#allocation2 + $0x28] sm:$0xff] }
 0x157   :  { %v3356_v1 = vpop.f32.mrf.mxu0  ;;  %3737 = vmatprep.mubr.bf16.mxu1 %v4689_v17  ;;  %v4099_v50 = vcombine.high %v37_v43, %v45_v44  ;;  %v4355_v51 = vcombine.high %v293_v45, %v301_v47  ;;  %v285_v53 = vld [vmem:[#allocation2 + $0x7e8] sm:$0xff] }
 0x158   :  { %v3398_v4 = vadd.f32 %v3397_v61, %v3355_v59  ;;  %v3399_v5 = vpop.f32.mrf.mxu1  ;;  %3665 = vmatpush1.bf16.msra.mxu0 %v4194_v52  ;;  %v277_v52 = vld [vmem:[#allocation2 + $0x7a8] sm:$0xff]  ;;  %v4354_v59 = vcombine.low %v293_v45, %v301_v47 }
 0x159   :  { %3708 = vmatpush1.bf16.msra.mxu1 %v4450_v54  ;;  %v3358_v11 = vpop.f32.mrf.mxu0  ;;  %3666 = vmatprep.subr.bf16.mxu0 %v4179_v56  ;;  %v533_v54 = vld [vmem:[#allocation2 + $0xfa8] sm:$0xff]  ;;  %v4339_v61 = vcombine.high %v277_v52, %v285_v53  ;;  %v4338_v3 = vcombine.low %v277_v52, %v285_v53  ;;  %v4323_v5 = vcombine.high %v261_v63, %v269_v0 }
 0x15a   :  { %v3954_v14 = vcombine.low %v3396_v58, %v3398_v4  ;;  %v3401_v15 = vpop.f32.mrf.mxu1  ;;  %3709 = vmatprep.subr.bf16.mxu1 %v4435_v62  ;;  %v541_v56 = vld [vmem:[#allocation2 + $0xfe8] sm:$0xff]  ;;  %v4098_v58 = vcombine.low %v37_v43, %v45_v44 }
 0x15b   :  { %v4595_v62 = vcombine.high %v533_v54, %v541_v56  ;;  %v517_v1 = vld [vmem:[#allocation2 + $0xf28] sm:$0xff]  ;;  %v4594_v4 = vcombine.low %v533_v54, %v541_v56  ;;  %v4322_v15 = vcombine.low %v261_v63, %v269_v0 }
 0x15c   :  { %4065 = vst [vmem:[%s4815_s3 + $0x8] sm:$0xff] %v3954_v14  ;;  %3667 = vmatpush1.bf16.msra.mxu0 %v4178_v6  ;;  %v4579_v6 = vcombine.high %v517_v1, %v525_v2  ;;  %v245_v11 = vld [vmem:[#allocation2 + $0x6a8] sm:$0xff] }
 0x15d   :  { %3710 = vmatpush1.bf16.msra.mxu1 %v4434_v12  ;;  %3668 = vmatprep.subr.bf16.mxu0 %v4163_v13  ;;  %v253_v12 = vld [vmem:[#allocation2 + $0x6e8] sm:$0xff] }
 0x15e   :  { %3711 = vmatprep.subr.bf16.mxu1 %v4419_v18  ;;  %v501_v13 = vld [vmem:[#allocation2 + $0xea8] sm:$0xff]  ;;  %v4578_v18 = vcombine.low %v517_v1, %v525_v2  ;;  %v4307_v19 = vcombine.high %v245_v11, %v253_v12  ;;  %v150_v1 = vld [vmem:[#allocation2 + $0x3b0] sm:$0xff] }
 0x15f   :  { %v509_v14 = vld [vmem:[#allocation2 + $0xee8] sm:$0xff]  ;;  %v158_v2 = vld [vmem:[#allocation2 + $0x3f0] sm:$0xff] }
 0x160   :  { %3669 = vmatpush1.bf16.msra.mxu0 %v4162_v23  ;;  %v4563_v20 = vcombine.high %v501_v13, %v509_v14  ;;  %v485_v23 = vld [vmem:[#allocation2 + $0xe28] sm:$0xff] }
 0x161   :  { %3712 = vmatpush1.bf16.msra.mxu1 %v4418_v24  ;;  %3670 = vmatprep.subr.bf16.mxu0 %v4147_v25  ;;  %v493_v24 = vld [vmem:[#allocation2 + $0xe68] sm:$0xff]  ;;  %v4306_v25 = vcombine.low %v245_v11, %v253_v12  ;;  %v4213_v12 = vcombine.high %v150_v1, %v158_v2 }
 0x162   :  { %3713 = vmatprep.subr.bf16.mxu1 %v4403_v26  ;;  %v4562_v26 = vcombine.low %v501_v13, %v509_v14  ;;  %v4547_v28 = vcombine.high %v485_v23, %v493_v24  ;;  %v213_v29 = vld [vmem:[#allocation2 + $0x5a8] sm:$0xff]  ;;  %v570_v14 = vsub.s32 5, %v4660_v46 }
 0x163   :  { %v221_v30 = vld [vmem:[#allocation2 + $0x5e8] sm:$0xff] }
 0x164   :  { %3671 = vmatpush1.bf16.msra.mxu0 %v4146_v33  ;;  %v469_v33 = vld [vmem:[#allocation2 + $0xda8] sm:$0xff]  ;;  %v4275_v39 = vcombine.high %v213_v29, %v221_v30 }
 0x165   :  { %3714 = vmatpush1.bf16.msra.mxu1 %v4402_v35  ;;  %3672 = vmatprep.subr.bf16.mxu0 %v4131_v36  ;;  %v477_v35 = vld [vmem:[#allocation2 + $0xde8] sm:$0xff]  ;;  %v4290_v36 = vcombine.low %v229_v21, %v237_v22  ;;  %v4212_v22 = vcombine.low %v150_v1, %v158_v2 }
 0x166   :  { %3715 = vmatprep.subr.bf16.mxu1 %v4387_v38  ;;  %v4546_v38 = vcombine.low %v485_v23, %v493_v24  ;;  %v4531_v40 = vcombine.high %v469_v33, %v477_v35  ;;  %v197_v7 = vld [vmem:[#allocation2 + $0x528] sm:$0xff] }
 0x167   :  { %v205_v8 = vld [vmem:[#allocation2 + $0x568] sm:$0xff] }
 0x168   :  { %3673 = vmatpush1.bf16.msra.mxu0 %v4130_v41  ;;  %v453_v41 = vld [vmem:[#allocation2 + $0xd28] sm:$0xff]  ;;  %v4259_v43 = vcombine.high %v197_v7, %v205_v8 }
 0x169   :  { %3716 = vmatpush1.bf16.msra.mxu1 %v4386_v9  ;;  %3674 = vmatprep.subr.bf16.mxu0 %v4115_v10  ;;  %v461_v9 = vld [vmem:[#allocation2 + $0xd68] sm:$0xff]  ;;  %v4274_v10 = vcombine.low %v213_v29, %v221_v30  ;;  %v374_v30 = vld [vmem:[#allocation2 + $0xab0] sm:$0xff] }
 0x16a   :  { %3717 = vmatprep.subr.bf16.mxu1 %v4371_v42  ;;  %v4530_v42 = vcombine.low %v469_v33, %v477_v35  ;;  %v4515_v44 = vcombine.high %v453_v41, %v461_v9  ;;  %v181_v45 = vld [vmem:[#allocation2 + $0x4a8] sm:$0xff]  ;;  %v382_v33 = vld [vmem:[#allocation2 + $0xaf0] sm:$0xff] }
 0x16b   :  { %v189_v47 = vld [vmem:[#allocation2 + $0x4e8] sm:$0xff] }
 0x16c   :  { %3675 = vmatpush1.bf16.msra.mxu0 %v4114_v48  ;;  %v437_v48 = vld [vmem:[#allocation2 + $0xca8] sm:$0xff]  ;;  %v4243_v52 = vcombine.high %v181_v45, %v189_v47 }
 0x16d   :  { %3718 = vmatpush1.bf16.msra.mxu1 %v4370_v49  ;;  %3676 = vmatprep.subr.bf16.mxu0 %v4099_v50  ;;  %v445_v49 = vld [vmem:[#allocation2 + $0xce8] sm:$0xff]  ;;  %v4258_v50 = vcombine.low %v197_v7, %v205_v8 }
 0x16e   :  { %3719 = vmatprep.subr.bf16.mxu1 %v4355_v51  ;;  %v4514_v51 = vcombine.low %v453_v41, %v461_v9  ;;  %v4499_v53 = vcombine.high %v437_v48, %v445_v49  ;;  %v165_v54 = vld [vmem:[#allocation2 + $0x428] sm:$0xff]  ;;  %v4437_v9 = vcombine.high %v374_v30, %v382_v33 }
 0x16f   :  { %v173_v56 = vld [vmem:[#allocation2 + $0x468] sm:$0xff] }
 0x170   :  { %3677 = vmatpush1.bf16.msra.mxu0 %v4098_v58  ;;  %v421_v58 = vld [vmem:[#allocation2 + $0xc28] sm:$0xff]  ;;  %v4227_v63 = vcombine.high %v165_v54, %v173_v56 }
 0x171   :  { %3720 = vmatpush1.bf16.msra.mxu1 %v4354_v59  ;;  %3678 = vmatprep.subr.bf16.mxu0 %v4339_v61  ;;  %v429_v59 = vld [vmem:[#allocation2 + $0xc68] sm:$0xff]  ;;  %v4242_v61 = vcombine.low %v181_v45, %v189_v47  ;;  %v366_v45 = vld [vmem:[#allocation2 + $0xa70] sm:$0xff] }
 0x172   :  { %3721 = vmatprep.subr.bf16.mxu1 %v4595_v62  ;;  %v4498_v62 = vcombine.low %v437_v48, %v445_v49  ;;  %v4483_v0 = vcombine.high %v421_v58, %v429_v59  ;;  %v4482_v11 = vcombine.low %v421_v58, %v429_v59  ;;  %v86_v58 = vld [vmem:[#allocation2 + $0x1b0] sm:$0xff] }
 0x173   :  { %v94_v59 = vld [vmem:[#allocation2 + $0x1f0] sm:$0xff] }
 0x174   :  { %3679 = vmatpush2.bf16.msra.mxu0 %v4338_v3  ;;  %v406_v3 = vld [vmem:[#allocation2 + $0xbb0] sm:$0xff]  ;;  %v4149_v1 = vcombine.high %v86_v58, %v94_v59 }
 0x175   :  { %3722 = vmatpush2.bf16.msra.mxu1 %v4594_v4  ;;  %3680 = vmatprep.subr.bf16.mxu0 %v4323_v5  ;;  %v414_v4 = vld [vmem:[#allocation2 + $0xbf0] sm:$0xff]  ;;  %v4226_v5 = vcombine.low %v165_v54, %v173_v56 }
 0x176   :  { %3723 = vmatprep.subr.bf16.mxu1 %v4579_v6  ;;  %v566_v6 = vsub.s32 4, %v4660_v46  ;;  %v4469_v13 = vcombine.high %v406_v3, %v414_v4  ;;  %v4468_v23 = vcombine.low %v406_v3, %v414_v4  ;;  %v70_v3 = vld [vmem:[#allocation2 + $0x130] sm:$0xff] }
 0x177   :  { %v78_v4 = vld [vmem:[#allocation2 + $0x170] sm:$0xff] }
 0x178   :  { %3681 = vmatpush2.bf16.msra.mxu0 %v4322_v15  ;;  %v134_v15 = vld [vmem:[#allocation2 + $0x330] sm:$0xff]  ;;  %v567_v21 = vrot.slane %v4717_v57, %v566_v6 }
 0x179   :  { %3724 = vmatpush2.bf16.msra.mxu1 %v4578_v18  ;;  %3682 = vmatprep.subr.bf16.mxu0 %v4307_v19  ;;  %v142_v18 = vld [vmem:[#allocation2 + $0x370] sm:$0xff] }
 0x17a   :  { %3725 = vmatprep.subr.bf16.mxu1 %v4563_v20  ;;  %v390_v19 = vld [vmem:[#allocation2 + $0xb30] sm:$0xff]  ;;  %v4197_v24 = vcombine.high %v134_v15, %v142_v18 }
 0x17b   :  { %v398_v20 = vld [vmem:[#allocation2 + $0xb70] sm:$0xff] }
 0x17c   :  { %3683 = vmatpush2.bf16.msra.mxu0 %v4306_v25  ;;  %v571_v25 = vrot.slane %v4717_v57, %v570_v14 }
 0x17d   :  { %3726 = vmatpush2.bf16.msra.mxu1 %v4562_v26  ;;  %3684 = vmatprep.subr.bf16.mxu0 %v4291_v27  ;;  %v4453_v26 = vcombine.high %v390_v19, %v398_v20  ;;  %v118_v27 = vld [vmem:[#allocation2 + $0x2b0] sm:$0xff] }
 0x17e   :  { %3727 = vmatprep.subr.bf16.mxu1 %v4547_v28  ;;  %v126_v28 = vld [vmem:[#allocation2 + $0x2f0] sm:$0xff] }
 0x17f   :  { %v4181_v7 = vcombine.high %v118_v27, %v126_v28  ;;  %v4180_v49 = vcombine.low %v118_v27, %v126_v28  ;;  %v38_v27 = vld [vmem:[#allocation2 + $0x30] sm:$0xff] }
 0x180   :  { %3685 = vmatpush2.bf16.msra.mxu0 %v4290_v36  ;;  %v46_v28 = vld [vmem:[#allocation2 + $0x70] sm:$0xff] }
 0x181   :  { %3728 = vmatpush2.bf16.msra.mxu1 %v4546_v38  ;;  %3686 = vmatprep.subr.bf16.mxu0 %v4275_v39  ;;  %v4196_v38 = vcombine.low %v134_v15, %v142_v18  ;;  %v4133_v15 = vcombine.high %v70_v3, %v78_v4 }
 0x182   :  { %3729 = vmatprep.subr.bf16.mxu1 %v4531_v40  ;;  %v4452_v40 = vcombine.low %v390_v19, %v398_v20  ;;  %v54_v19 = vld [vmem:[#allocation2 + $0xb0] sm:$0xff] }
 0x183   :  { %v62_v20 = vld [vmem:[#allocation2 + $0xf0] sm:$0xff] }
 0x184   :  { %3687 = vmatpush2.bf16.msra.mxu0 %v4274_v10  ;;  %v102_v10 = vld [vmem:[#allocation2 + $0x230] sm:$0xff] }
 0x185   :  { %3730 = vmatpush2.bf16.msra.mxu1 %v4530_v42  ;;  %3688 = vmatprep.subr.bf16.mxu0 %v4259_v43  ;;  %v110_v42 = vld [vmem:[#allocation2 + $0x270] sm:$0xff] }
 0x186   :  { %3731 = vmatprep.subr.bf16.mxu1 %v4515_v44  ;;  %v358_v44 = vld [vmem:[#allocation2 + $0xa30] sm:$0xff] }
 0x187   :  { %v4421_v56 = vcombine.high %v358_v44, %v366_v45 }
 0x188   :  { %3689 = vmatpush2.bf16.msra.mxu0 %v4258_v50 }
 0x189   :  { %3732 = vmatpush2.bf16.msra.mxu1 %v4514_v51  ;;  %3690 = vmatprep.subr.bf16.mxu0 %v4243_v52  ;;  %v4436_v51 = vcombine.low %v374_v30, %v382_v33  ;;  %v4165_v52 = vcombine.high %v102_v10, %v110_v42  ;;  %v302_v30 = vld [vmem:[#allocation2 + $0x870] sm:$0xff]  ;;  %v4116_v33 = vcombine.low %v54_v19, %v62_v20 }
 0x18a   :  { %3733 = vmatprep.subr.bf16.mxu1 %v4499_v53 }
 0x18c   :  { %3691 = vmatpush2.bf16.msra.mxu0 %v4242_v61  ;;  %v342_v61 = vld [vmem:[#allocation2 + $0x9b0] sm:$0xff] }
 0x18d   :  { %3734 = vmatpush2.bf16.msra.mxu1 %v4498_v62  ;;  %3692 = vmatprep.subr.bf16.mxu0 %v4227_v63  ;;  %v350_v62 = vld [vmem:[#allocation2 + $0x9f0] sm:$0xff]  ;;  %v4164_v63 = vcombine.low %v102_v10, %v110_v42 }
 0x18e   :  { %3735 = vmatprep.subr.bf16.mxu1 %v4483_v0  ;;  %v4420_v0 = vcombine.low %v358_v44, %v366_v45  ;;  %v4405_v2 = vcombine.high %v342_v61, %v350_v62  ;;  %v262_v42 = vld [vmem:[#allocation2 + $0x730] sm:$0xff] }
 0x18f   :  { %v518_v44 = vld [vmem:[#allocation2 + $0xf30] sm:$0xff] }
 0x190   :  { %3693 = vmatpush2.bf16.msra.mxu0 %v4226_v5  ;;  %v326_v5 = vld [vmem:[#allocation2 + $0x930] sm:$0xff] }
 0x191   :  { %3736 = vmatpush2.bf16.msra.mxu1 %v4482_v11  ;;  %3748 = vmatprep.subr.bf16.mxu0 %v4213_v12  ;;  %v334_v11 = vld [vmem:[#allocation2 + $0x970] sm:$0xff]  ;;  %v4148_v12 = vcombine.low %v86_v58, %v94_v59 }
 0x192   :  { %3791 = vmatprep.subr.bf16.mxu1 %v4469_v13  ;;  %v4404_v13 = vcombine.low %v342_v61, %v350_v62  ;;  %v4389_v18 = vcombine.high %v326_v5, %v334_v11  ;;  %v526_v45 = vld [vmem:[#allocation2 + $0xf70] sm:$0xff] }
 0x193   :  { %v3438_v29 = vpop.f32.mrf.mxu0  ;;  %3695 = vmatmul.mubr.bf16.vlgmr.msra.gmra.mxu0 %v4695_v31  ;;  %v4580_v58 = vcombine.low %v518_v44, %v526_v45  ;;  %v230_v62 = vld [vmem:[#allocation2 + $0x630] sm:$0xff] }
 0x194   :  { %v3439_v35 = vadd.f32 %v3438_v29, %v567_v21  ;;  %v3481_v36 = vpop.f32.mrf.mxu1  ;;  %3738 = vmatmul.mubr.bf16.vlgmr.msra.gmra.mxu1 %v4699_v34  ;;  %3749 = vmatpush1.bf16.msra.mxu0 %v4212_v22  ;;  %v310_v21 = vld [vmem:[#allocation2 + $0x8b0] sm:$0xff] }
 0x195   :  { %3792 = vmatpush1.bf16.msra.mxu1 %v4468_v23  ;;  %v3440_v39 = vpop.f32.mrf.mxu0  ;;  %3750 = vmatprep.subr.bf16.mxu0 %v4197_v24  ;;  %v318_v22 = vld [vmem:[#allocation2 + $0x8f0] sm:$0xff]  ;;  %v4132_v23 = vcombine.low %v70_v3, %v78_v4  ;;  %v4388_v24 = vcombine.low %v326_v5, %v334_v11 }
 0x196   :  { %v3482_v57 = vadd.f32 %v3481_v36, %v3439_v35  ;;  %v3441_v8 = vadd.f32 %v3440_v39, %v571_v25  ;;  %v3483_v41 = vpop.f32.mrf.mxu1  ;;  %3793 = vmatprep.subr.bf16.mxu1 %v4453_v26  ;;  %3780 = vmatprep.mubr.bf16.mxu0 %v4685_v16  ;;  %v4117_v25 = vcombine.high %v54_v19, %v62_v20  ;;  %v294_v29 = vld [vmem:[#allocation2 + $0x830] sm:$0xff] }
 0x197   :  { %v3442_v43 = vpop.f32.mrf.mxu0  ;;  %3823 = vmatprep.mubr.bf16.mxu1 %v4689_v17  ;;  %v4373_v26 = vcombine.high %v310_v21, %v318_v22  ;;  %v4372_v35 = vcombine.low %v310_v21, %v318_v22  ;;  %v4101_v36 = vcombine.high %v38_v27, %v46_v28  ;;  %v278_v39 = vld [vmem:[#allocation2 + $0x7b0] sm:$0xff] }
 0x198   :  { %v3484_v47 = vadd.f32 %v3483_v41, %v3441_v8  ;;  %v3485_v48 = vpop.f32.mrf.mxu1  ;;  %3751 = vmatpush1.bf16.msra.mxu0 %v4196_v38  ;;  %v4357_v38 = vcombine.high %v294_v29, %v302_v30  ;;  %v4100_v8 = vcombine.low %v38_v27, %v46_v28  ;;  %v4356_v41 = vcombine.low %v294_v29, %v302_v30  ;;  %v270_v43 = vld [vmem:[#allocation2 + $0x770] sm:$0xff] }
 0x199   :  { %3794 = vmatpush1.bf16.msra.mxu1 %v4452_v40  ;;  %v3444_v50 = vpop.f32.mrf.mxu0  ;;  %3752 = vmatprep.subr.bf16.mxu0 %v4181_v7  ;;  %v286_v40 = vld [vmem:[#allocation2 + $0x7f0] sm:$0xff] }
 0x19a   :  { %v3956_v53 = vcombine.low %v3482_v57, %v3484_v47  ;;  %v3487_v54 = vpop.f32.mrf.mxu1  ;;  %3795 = vmatprep.subr.bf16.mxu1 %v4437_v9  ;;  %v534_v7 = vld [vmem:[#allocation2 + $0xfb0] sm:$0xff]  ;;  %v4341_v9 = vcombine.high %v278_v39, %v286_v40  ;;  %v4340_v47 = vcombine.low %v278_v39, %v286_v40  ;;  %v4581_v50 = vcombine.high %v518_v44, %v526_v45  ;;  %v151_v45 = vld [vmem:[#allocation2 + $0x3b8] sm:$0xff] }
 0x19b   :  { %v542_v57 = vld [vmem:[#allocation2 + $0xff0] sm:$0xff] }
 0x19c   :  { %4067 = vst [vmem:[%s4815_s3 + $0x10] sm:$0xff] %v3956_v53  ;;  %3753 = vmatpush1.bf16.msra.mxu0 %v4180_v49  ;;  %v4597_v10 = vcombine.high %v534_v7, %v542_v57  ;;  %v4596_v48 = vcombine.low %v534_v7, %v542_v57  ;;  %v4325_v49 = vcombine.high %v262_v42, %v270_v43  ;;  %v502_v53 = vld [vmem:[#allocation2 + $0xeb0] sm:$0xff] }
 0x19d   :  { %3796 = vmatpush1.bf16.msra.mxu1 %v4436_v51  ;;  %3754 = vmatprep.subr.bf16.mxu0 %v4165_v52  ;;  %v246_v51 = vld [vmem:[#allocation2 + $0x6b0] sm:$0xff] }
 0x19e   :  { %3797 = vmatprep.subr.bf16.mxu1 %v4421_v56  ;;  %v254_v52 = vld [vmem:[#allocation2 + $0x6f0] sm:$0xff]  ;;  %v4324_v56 = vcombine.low %v262_v42, %v270_v43 }
 0x19f   :  { %v510_v54 = vld [vmem:[#allocation2 + $0xef0] sm:$0xff]  ;;  %v4309_v59 = vcombine.high %v246_v51, %v254_v52 }
 0x1a0   :  { %3755 = vmatpush1.bf16.msra.mxu0 %v4164_v63  ;;  %v4565_v61 = vcombine.high %v502_v53, %v510_v54  ;;  %v238_v63 = vld [vmem:[#allocation2 + $0x670] sm:$0xff]  ;;  %v4564_v3 = vcombine.low %v502_v53, %v510_v54 }
 0x1a1   :  { %3798 = vmatpush1.bf16.msra.mxu1 %v4420_v0  ;;  %3756 = vmatprep.subr.bf16.mxu0 %v4149_v1  ;;  %v486_v0 = vld [vmem:[#allocation2 + $0xe30] sm:$0xff]  ;;  %v4293_v4 = vcombine.high %v230_v62, %v238_v63 }
 0x1a2   :  { %3799 = vmatprep.subr.bf16.mxu1 %v4405_v2  ;;  %v494_v1 = vld [vmem:[#allocation2 + $0xe70] sm:$0xff]  ;;  %v4308_v2 = vcombine.low %v246_v51, %v254_v52  ;;  %v574_v51 = vsub.s32 6, %v4660_v46 }
 0x1a3   :  { %v4549_v5 = vcombine.high %v486_v0, %v494_v1  ;;  %v214_v11 = vld [vmem:[#allocation2 + $0x5b0] sm:$0xff]  ;;  %v4548_v19 = vcombine.low %v486_v0, %v494_v1 }
 0x1a4   :  { %3757 = vmatpush1.bf16.msra.mxu0 %v4148_v12  ;;  %v222_v12 = vld [vmem:[#allocation2 + $0x5f0] sm:$0xff] }
 0x1a5   :  { %3800 = vmatpush1.bf16.msra.mxu1 %v4404_v13  ;;  %3758 = vmatprep.subr.bf16.mxu0 %v4133_v15  ;;  %v470_v13 = vld [vmem:[#allocation2 + $0xdb0] sm:$0xff]  ;;  %v4277_v20 = vcombine.high %v214_v11, %v222_v12 }
 0x1a6   :  { %3801 = vmatprep.subr.bf16.mxu1 %v4389_v18  ;;  %v478_v15 = vld [vmem:[#allocation2 + $0xdf0] sm:$0xff]  ;;  %v4292_v18 = vcombine.low %v230_v62, %v238_v63  ;;  %v399_v62 = vld [vmem:[#allocation2 + $0xb78] sm:$0xff]  ;;  %v4610_v63 = vld [vmem:[%s4814_s2] sm:$0xff] }
 0x1a7   :  { %v4533_v21 = vcombine.high %v470_v13, %v478_v15  ;;  %v198_v22 = vld [vmem:[#allocation2 + $0x530] sm:$0xff]  ;;  %v4532_v27 = vcombine.low %v470_v13, %v478_v15  ;;  %v575_v0 = vrot.slane %v4610_v63, %v574_v51  ;;  %v375_v15 = vld [vmem:[#allocation2 + $0xab8] sm:$0xff] }
 0x1a8   :  { %3759 = vmatpush1.bf16.msra.mxu0 %v4132_v23  ;;  %v206_v23 = vld [vmem:[#allocation2 + $0x570] sm:$0xff] }
 0x1a9   :  { %3802 = vmatpush1.bf16.msra.mxu1 %v4388_v24  ;;  %3760 = vmatprep.subr.bf16.mxu0 %v4117_v25  ;;  %v454_v24 = vld [vmem:[#allocation2 + $0xd30] sm:$0xff]  ;;  %v4261_v28 = vcombine.high %v198_v22, %v206_v23 }
 0x1aa   :  { %3803 = vmatprep.subr.bf16.mxu1 %v4373_v26  ;;  %v462_v25 = vld [vmem:[#allocation2 + $0xd70] sm:$0xff]  ;;  %v4276_v26 = vcombine.low %v214_v11, %v222_v12  ;;  %v119_v11 = vld [vmem:[#allocation2 + $0x2b8] sm:$0xff] }
 0x1ab   :  { %v4517_v29 = vcombine.high %v454_v24, %v462_v25  ;;  %v182_v30 = vld [vmem:[#allocation2 + $0x4b0] sm:$0xff]  ;;  %v4516_v39 = vcombine.low %v454_v24, %v462_v25  ;;  %v127_v12 = vld [vmem:[#allocation2 + $0x2f8] sm:$0xff] }
 0x1ac   :  { %3761 = vmatpush1.bf16.msra.mxu0 %v4116_v33  ;;  %v190_v33 = vld [vmem:[#allocation2 + $0x4f0] sm:$0xff]  ;;  %v4183_v24 = vcombine.high %v119_v11, %v127_v12 }
 0x1ad   :  { %3804 = vmatpush1.bf16.msra.mxu1 %v4372_v35  ;;  %3762 = vmatprep.subr.bf16.mxu0 %v4101_v36  ;;  %v438_v35 = vld [vmem:[#allocation2 + $0xcb0] sm:$0xff]  ;;  %v4245_v40 = vcombine.high %v182_v30, %v190_v33 }
 0x1ae   :  { %3805 = vmatprep.subr.bf16.mxu1 %v4357_v38  ;;  %v446_v36 = vld [vmem:[#allocation2 + $0xcf0] sm:$0xff]  ;;  %v4260_v38 = vcombine.low %v198_v22, %v206_v23 }
 0x1af   :  { %v4501_v7 = vcombine.high %v438_v35, %v446_v36  ;;  %v166_v57 = vld [vmem:[#allocation2 + $0x430] sm:$0xff]  ;;  %v4500_v42 = vcombine.low %v438_v35, %v446_v36  ;;  %v359_v35 = vld [vmem:[#allocation2 + $0xa38] sm:$0xff] }
 0x1b0   :  { %3763 = vmatpush1.bf16.msra.mxu0 %v4100_v8  ;;  %v174_v8 = vld [vmem:[#allocation2 + $0x470] sm:$0xff]  ;;  %v367_v36 = vld [vmem:[#allocation2 + $0xa78] sm:$0xff] }
 0x1b1   :  { %3806 = vmatpush1.bf16.msra.mxu1 %v4356_v41  ;;  %3764 = vmatprep.subr.bf16.mxu0 %v4341_v9  ;;  %v422_v41 = vld [vmem:[#allocation2 + $0xc30] sm:$0xff]  ;;  %v4229_v43 = vcombine.high %v166_v57, %v174_v8 }
 0x1b2   :  { %3807 = vmatprep.subr.bf16.mxu1 %v4597_v10  ;;  %v430_v9 = vld [vmem:[#allocation2 + $0xc70] sm:$0xff]  ;;  %v4244_v10 = vcombine.low %v182_v30, %v190_v33  ;;  %v111_v30 = vld [vmem:[#allocation2 + $0x278] sm:$0xff] }
 0x1b3   :  { %v4485_v44 = vcombine.high %v422_v41, %v430_v9  ;;  %v4484_v52 = vcombine.low %v422_v41, %v430_v9 }
 0x1b4   :  { %3765 = vmatpush2.bf16.msra.mxu0 %v4340_v47  ;;  %v159_v47 = vld [vmem:[#allocation2 + $0x3f8] sm:$0xff] }
 0x1b5   :  { %3808 = vmatpush2.bf16.msra.mxu1 %v4596_v48  ;;  %3766 = vmatprep.subr.bf16.mxu0 %v4325_v49  ;;  %v407_v48 = vld [vmem:[#allocation2 + $0xbb8] sm:$0xff]  ;;  %v4215_v53 = vcombine.high %v151_v45, %v159_v47  ;;  %v4214_v1 = vcombine.low %v151_v45, %v159_v47  ;;  %v4422_v45 = vcombine.low %v359_v35, %v367_v36 }
 0x1b6   :  { %3809 = vmatprep.subr.bf16.mxu1 %v4581_v50  ;;  %v415_v49 = vld [vmem:[#allocation2 + $0xbf8] sm:$0xff]  ;;  %v4228_v50 = vcombine.low %v166_v57, %v174_v8 }
 0x1b7   :  { %v4471_v54 = vcombine.high %v407_v48, %v415_v49 }
 0x1b8   :  { %3767 = vmatpush2.bf16.msra.mxu0 %v4324_v56  ;;  %v578_v56 = vsub.s32 7, %v4660_v46 }
 0x1b9   :  { %3810 = vmatpush2.bf16.msra.mxu1 %v4580_v58  ;;  %3768 = vmatprep.subr.bf16.mxu0 %v4309_v59  ;;  %v135_v58 = vld [vmem:[#allocation2 + $0x338] sm:$0xff] }
 0x1ba   :  { %3811 = vmatprep.subr.bf16.mxu1 %v4565_v61  ;;  %v143_v59 = vld [vmem:[#allocation2 + $0x378] sm:$0xff] }
 0x1bb   :  { %v391_v61 = vld [vmem:[#allocation2 + $0xb38] sm:$0xff] }
 0x1bc   :  { %3769 = vmatpush2.bf16.msra.mxu0 %v4308_v2  ;;  %v4470_v2 = vcombine.low %v407_v48, %v415_v49  ;;  %v4454_v23 = vcombine.low %v391_v61, %v399_v62  ;;  %v71_v49 = vld [vmem:[#allocation2 + $0x138] sm:$0xff] }
 0x1bd   :  { %3812 = vmatpush2.bf16.msra.mxu1 %v4564_v3  ;;  %3770 = vmatprep.subr.bf16.mxu0 %v4293_v4  ;;  %v4199_v3 = vcombine.high %v135_v58, %v143_v59  ;;  %v579_v4 = vrot.slane %v4610_v63, %v578_v56  ;;  %v63_v63 = vld [vmem:[#allocation2 + $0xf8] sm:$0xff] }
 0x1be   :  { %3813 = vmatprep.subr.bf16.mxu1 %v4549_v5  ;;  %v4455_v5 = vcombine.high %v391_v61, %v399_v62  ;;  %v55_v62 = vld [vmem:[#allocation2 + $0xb8] sm:$0xff] }
 0x1c0   :  { %3771 = vmatpush2.bf16.msra.mxu0 %v4292_v18  ;;  %v383_v18 = vld [vmem:[#allocation2 + $0xaf8] sm:$0xff] }
 0x1c1   :  { %3814 = vmatpush2.bf16.msra.mxu1 %v4548_v19  ;;  %3772 = vmatprep.subr.bf16.mxu0 %v4277_v20  ;;  %v4438_v57 = vcombine.low %v375_v15, %v383_v18 }
 0x1c2   :  { %3815 = vmatprep.subr.bf16.mxu1 %v4533_v21  ;;  %v4198_v21 = vcombine.low %v135_v58, %v143_v59 }
 0x1c4   :  { %3773 = vmatpush2.bf16.msra.mxu0 %v4276_v26 }
 0x1c5   :  { %3816 = vmatpush2.bf16.msra.mxu1 %v4532_v27  ;;  %3774 = vmatprep.subr.bf16.mxu0 %v4261_v28  ;;  %v4439_v28 = vcombine.high %v375_v15, %v383_v18  ;;  %v303_v15 = vld [vmem:[#allocation2 + $0x878] sm:$0xff]  ;;  %v4118_v18 = vcombine.low %v55_v62, %v63_v63 }
 0x1c6   :  { %3817 = vmatprep.subr.bf16.mxu1 %v4517_v29  ;;  %v103_v29 = vld [vmem:[#allocation2 + $0x238] sm:$0xff] }
 0x1c7   :  { %v4167_v8 = vcombine.high %v103_v29, %v111_v30 }
 0x1c8   :  { %3775 = vmatpush2.bf16.msra.mxu0 %v4260_v38 }
 0x1c9   :  { %3818 = vmatpush2.bf16.msra.mxu1 %v4516_v39  ;;  %3776 = vmatprep.subr.bf16.mxu0 %v4245_v40  ;;  %v4182_v40 = vcombine.low %v119_v11, %v127_v12  ;;  %v39_v11 = vld [vmem:[#allocation2 + $0x38] sm:$0xff] }
 0x1ca   :  { %3819 = vmatprep.subr.bf16.mxu1 %v4501_v7  ;;  %v47_v12 = vld [vmem:[#allocation2 + $0x78] sm:$0xff] }
 0x1cc   :  { %3777 = vmatpush2.bf16.msra.mxu0 %v4244_v10  ;;  %v4423_v10 = vcombine.high %v359_v35, %v367_v36  ;;  %v519_v35 = vld [vmem:[#allocation2 + $0xf38] sm:$0xff] }
 0x1cd   :  { %3820 = vmatpush2.bf16.msra.mxu1 %v4500_v42  ;;  %3778 = vmatprep.subr.bf16.mxu0 %v4229_v43  ;;  %v87_v42 = vld [vmem:[#allocation2 + $0x1b8] sm:$0xff] }
 0x1ce   :  { %3821 = vmatprep.subr.bf16.mxu1 %v4485_v44  ;;  %v343_v43 = vld [vmem:[#allocation2 + $0x9b8] sm:$0xff] }
 0x1cf   :  { %v351_v44 = vld [vmem:[#allocation2 + $0x9f8] sm:$0xff] }
 0x1d0   :  { %3779 = vmatpush2.bf16.msra.mxu0 %v4228_v50  ;;  %v4407_v48 = vcombine.high %v343_v43, %v351_v44  ;;  %v79_v50 = vld [vmem:[#allocation2 + $0x178] sm:$0xff]  ;;  %v4406_v58 = vcombine.low %v343_v43, %v351_v44 }
 0x1d1   :  { %3822 = vmatpush2.bf16.msra.mxu1 %v4484_v52  ;;  %3834 = vmatprep.subr.bf16.mxu0 %v4215_v53  ;;  %v327_v52 = vld [vmem:[#allocation2 + $0x938] sm:$0xff]  ;;  %v4135_v59 = vcombine.high %v71_v49, %v79_v50 }
 0x1d2   :  { %3877 = vmatprep.subr.bf16.mxu1 %v4471_v54  ;;  %v335_v53 = vld [vmem:[#allocation2 + $0x978] sm:$0xff] }
 0x1d3   :  { %v3524_v13 = vpop.f32.mrf.mxu0  ;;  %3781 = vmatmul.mubr.bf16.vlgmr.msra.gmra.mxu0 %v4695_v31  ;;  %v4391_v61 = vcombine.high %v327_v52, %v335_v53  ;;  %v527_v36 = vld [vmem:[#allocation2 + $0xf78] sm:$0xff] }
 0x1d4   :  { %v3525_v19 = vadd.f32 %v3524_v13, %v575_v0  ;;  %v3567_v20 = vpop.f32.mrf.mxu1  ;;  %3824 = vmatmul.mubr.bf16.vlgmr.msra.gmra.mxu1 %v4699_v34  ;;  %3835 = vmatpush1.bf16.msra.mxu0 %v4214_v1  ;;  %v311_v0 = vld [vmem:[#allocation2 + $0x8b8] sm:$0xff] }
 0x1d5   :  { %3878 = vmatpush1.bf16.msra.mxu1 %v4470_v2  ;;  %v3526_v22 = vpop.f32.mrf.mxu0  ;;  %3836 = vmatprep.subr.bf16.mxu0 %v4199_v3  ;;  %v319_v1 = vld [vmem:[#allocation2 + $0x8f8] sm:$0xff]  ;;  %v4134_v2 = vcombine.low %v71_v49, %v79_v50  ;;  %v4390_v3 = vcombine.low %v327_v52, %v335_v53 }
 0x1d6   :  { %v3568_v25 = vadd.f32 %v3567_v20, %v3525_v19  ;;  %v3527_v26 = vadd.f32 %v3526_v22, %v579_v4  ;;  %v3569_v27 = vpop.f32.mrf.mxu1  ;;  %3879 = vmatprep.subr.bf16.mxu1 %v4455_v5  ;;  %3866 = vmatprep.mubr.bf16.mxu0 %v4685_v16  ;;  %v95_v16 = vld [vmem:[#allocation2 + $0x1f8] sm:$0xff]  ;;  %v4119_v4 = vcombine.high %v55_v62, %v63_v63 }
 0x1d7   :  { %v3528_v33 = vpop.f32.mrf.mxu0  ;;  %3909 = vmatprep.mubr.bf16.mxu1 %v4689_v17  ;;  %v4166_v17 = vcombine.low %v103_v29, %v111_v30  ;;  %v4151_v47 = vcombine.high %v87_v42, %v95_v16  ;;  %v4150_v54 = vcombine.low %v87_v42, %v95_v16  ;;  %v4375_v5 = vcombine.high %v311_v0, %v319_v1  ;;  %v295_v13 = vld [vmem:[#allocation2 + $0x838] sm:$0xff] }
 0x1d8   :  { %v3570_v38 = vadd.f32 %v3569_v27, %v3527_v26  ;;  %v3571_v39 = vpop.f32.mrf.mxu1  ;;  %3837 = vmatpush1.bf16.msra.mxu0 %v4198_v21  ;;  %v4374_v19 = vcombine.low %v311_v0, %v319_v1  ;;  %v4103_v20 = vcombine.high %v39_v11, %v47_v12  ;;  %v4359_v21 = vcombine.high %v295_v13, %v303_v15  ;;  %v279_v22 = vld [vmem:[#allocation2 + $0x7b8] sm:$0xff] }
 0x1d9   :  { %3880 = vmatpush1.bf16.msra.mxu1 %v4454_v23  ;;  %v3530_v7 = vpop.f32.mrf.mxu0  ;;  %3838 = vmatprep.subr.bf16.mxu0 %v4183_v24  ;;  %v287_v23 = vld [vmem:[#allocation2 + $0x7f8] sm:$0xff]  ;;  %v4102_v26 = vcombine.low %v39_v11, %v47_v12  ;;  %v4358_v27 = vcombine.low %v295_v13, %v303_v15  ;;  %v4582_v42 = vcombine.low %v519_v35, %v527_v36 }
 0x1da   :  { %v3958_v41 = vcombine.low %v3568_v25, %v3570_v38  ;;  %v3573_v9 = vpop.f32.mrf.mxu1  ;;  %3881 = vmatprep.subr.bf16.mxu1 %v4439_v28  ;;  %v535_v24 = vld [vmem:[#allocation2 + $0xfb8] sm:$0xff]  ;;  %v4343_v28 = vcombine.high %v279_v22, %v287_v23  ;;  %v4342_v38 = vcombine.low %v279_v22, %v287_v23  ;;  %v4583_v7 = vcombine.high %v519_v35, %v527_v36 }
 0x1db   :  { %v543_v25 = vld [vmem:[#allocation2 + $0xff8] sm:$0xff] }
 0x1dc   :  { %4069 = vst [vmem:[%s4815_s3 + $0x18] sm:$0xff] %v3958_v41  ;;  %3839 = vmatpush1.bf16.msra.mxu0 %v4182_v40  ;;  %v4599_v29 = vcombine.high %v535_v24, %v543_v25  ;;  %v263_v30 = vld [vmem:[#allocation2 + $0x738] sm:$0xff]  ;;  %v4598_v39 = vcombine.low %v535_v24, %v543_v25 }
 0x1dd   :  { %3882 = vmatpush1.bf16.msra.mxu1 %v4438_v57  ;;  %3840 = vmatprep.subr.bf16.mxu0 %v4167_v8  ;;  %v271_v33 = vld [vmem:[#allocation2 + $0x778] sm:$0xff] }
 0x1de   :  { %3883 = vmatprep.subr.bf16.mxu1 %v4423_v10  ;;  %v4327_v40 = vcombine.high %v263_v30, %v271_v33  ;;  %v247_v57 = vld [vmem:[#allocation2 + $0x6b8] sm:$0xff]  ;;  %v4326_v10 = vcombine.low %v263_v30, %v271_v33 }
 0x1df   :  { %v255_v8 = vld [vmem:[#allocation2 + $0x6f8] sm:$0xff] }
 0x1e0   :  { %3841 = vmatpush1.bf16.msra.mxu0 %v4166_v17  ;;  %v503_v41 = vld [vmem:[#allocation2 + $0xeb8] sm:$0xff]  ;;  %v4311_v16 = vcombine.high %v247_v57, %v255_v8 }
 0x1e1   :  { %3884 = vmatpush1.bf16.msra.mxu1 %v4422_v45  ;;  %3842 = vmatprep.subr.bf16.mxu0 %v4151_v47  ;;  %v511_v9 = vld [vmem:[#allocation2 + $0xef8] sm:$0xff] }
 0x1e2   :  { %3885 = vmatprep.subr.bf16.mxu1 %v4407_v48  ;;  %v4567_v43 = vcombine.high %v503_v41, %v511_v9  ;;  %v231_v44 = vld [vmem:[#allocation2 + $0x638] sm:$0xff]  ;;  %v4310_v48 = vcombine.low %v247_v57, %v255_v8  ;;  %v4566_v49 = vcombine.low %v503_v41, %v511_v9 }
 0x1e3   :  { %v239_v17 = vld [vmem:[#allocation2 + $0x678] sm:$0xff] }
 0x1e4   :  { %3843 = vmatpush1.bf16.msra.mxu0 %v4150_v54  ;;  %v487_v45 = vld [vmem:[#allocation2 + $0xe38] sm:$0xff]  ;;  %v4295_v50 = vcombine.high %v231_v44, %v239_v17 }
 0x1e5   :  { %3886 = vmatpush1.bf16.msra.mxu1 %v4406_v58  ;;  %3844 = vmatprep.subr.bf16.mxu0 %v4135_v59  ;;  %v495_v47 = vld [vmem:[#allocation2 + $0xe78] sm:$0xff] }
 0x1e6   :  { %3887 = vmatprep.subr.bf16.mxu1 %v4391_v61  ;;  %v4551_v52 = vcombine.high %v487_v45, %v495_v47  ;;  %v215_v53 = vld [vmem:[#allocation2 + $0x5b8] sm:$0xff]  ;;  %v4294_v61 = vcombine.low %v231_v44, %v239_v17  ;;  %v4550_v62 = vcombine.low %v487_v45, %v495_v47 }
 0x1e7   :  { %v223_v54 = vld [vmem:[#allocation2 + $0x5f8] sm:$0xff] }
 0x1e8   :  { %3845 = vmatpush1.bf16.msra.mxu0 %v4134_v2  ;;  %v471_v58 = vld [vmem:[#allocation2 + $0xdb8] sm:$0xff]  ;;  %v4279_v63 = vcombine.high %v215_v53, %v223_v54 }
 0x1e9   :  { %3888 = vmatpush1.bf16.msra.mxu1 %v4390_v3  ;;  %3846 = vmatprep.subr.bf16.mxu0 %v4119_v4  ;;  %v479_v59 = vld [vmem:[#allocation2 + $0xdf8] sm:$0xff] }
 0x1ea   :  { %3889 = vmatprep.subr.bf16.mxu1 %v4375_v5  ;;  %v4535_v0 = vcombine.high %v471_v58, %v479_v59  ;;  %v199_v1 = vld [vmem:[#allocation2 + $0x538] sm:$0xff]  ;;  %v4278_v5 = vcombine.low %v215_v53, %v223_v54  ;;  %v4534_v11 = vcombine.low %v471_v58, %v479_v59 }
 0x1eb   :  { %v207_v2 = vld [vmem:[#allocation2 + $0x578] sm:$0xff] }
 0x1ec   :  { %3847 = vmatpush1.bf16.msra.mxu0 %v4118_v18  ;;  %v455_v3 = vld [vmem:[#allocation2 + $0xd38] sm:$0xff]  ;;  %v4263_v12 = vcombine.high %v199_v1, %v207_v2 }
 0x1ed   :  { %3890 = vmatpush1.bf16.msra.mxu1 %v4374_v19  ;;  %3848 = vmatprep.subr.bf16.mxu0 %v4103_v20  ;;  %v463_v4 = vld [vmem:[#allocation2 + $0xd78] sm:$0xff] }
 0x1ee   :  { %3891 = vmatprep.subr.bf16.mxu1 %v4359_v21  ;;  %v4519_v13 = vcombine.high %v455_v3, %v463_v4  ;;  %v183_v15 = vld [vmem:[#allocation2 + $0x4b8] sm:$0xff]  ;;  %v4262_v21 = vcombine.low %v199_v1, %v207_v2  ;;  %v4518_v22 = vcombine.low %v455_v3, %v463_v4 }
 0x1ef   :  { %v191_v18 = vld [vmem:[#allocation2 + $0x4f8] sm:$0xff] }
 0x1f0   :  { %3849 = vmatpush1.bf16.msra.mxu0 %v4102_v26  ;;  %v439_v19 = vld [vmem:[#allocation2 + $0xcb8] sm:$0xff]  ;;  %v4247_v23 = vcombine.high %v183_v15, %v191_v18 }
 0x1f1   :  { %3892 = vmatpush1.bf16.msra.mxu1 %v4358_v27  ;;  %3850 = vmatprep.subr.bf16.mxu0 %v4343_v28  ;;  %v447_v20 = vld [vmem:[#allocation2 + $0xcf8] sm:$0xff] }
 0x1f2   :  { %3893 = vmatprep.subr.bf16.mxu1 %v4599_v29  ;;  %v4503_v24 = vcombine.high %v439_v19, %v447_v20  ;;  %v167_v25 = vld [vmem:[#allocation2 + $0x438] sm:$0xff]  ;;  %v4246_v29 = vcombine.low %v183_v15, %v191_v18  ;;  %v4502_v30 = vcombine.low %v439_v19, %v447_v20 }
 0x1f3   :  { %v175_v26 = vld [vmem:[#allocation2 + $0x478] sm:$0xff] }
 0x1f4   :  { %3851 = vmatpush2.bf16.msra.mxu0 %v4342_v38  ;;  %v423_v27 = vld [vmem:[#allocation2 + $0xc38] sm:$0xff]  ;;  %v4231_v33 = vcombine.high %v167_v25, %v175_v26  ;;  %v4230_v36 = vcombine.low %v167_v25, %v175_v26 }
 0x1f5   :  { %3894 = vmatpush2.bf16.msra.mxu1 %v4598_v39  ;;  %3852 = vmatprep.subr.bf16.mxu0 %v4327_v40  ;;  %v431_v28 = vld [vmem:[#allocation2 + $0xc78] sm:$0xff]  ;;  %v545_v39 = vld [vmem:[%s4814_s2 + $0x8] sm:$0xff] }
 0x1f6   :  { %3895 = vmatprep.subr.bf16.mxu1 %v4583_v7  ;;  %v4487_v35 = vcombine.high %v423_v27, %v431_v28  ;;  %v4486_v38 = vcombine.low %v423_v27, %v431_v28  ;;  %v583_v40 = vrot.slane %v545_v39, %v550_v55  ;;  %v587_v7 = vrot.slane %v545_v39, %v554_v60 }
 0x1f8   :  { %3853 = vmatpush2.bf16.msra.mxu0 %v4326_v10 }
 0x1f9   :  { %3896 = vmatpush2.bf16.msra.mxu1 %v4582_v42  ;;  %3854 = vmatprep.subr.bf16.mxu0 %v4311_v16 }
 0x1fa   :  { %3897 = vmatprep.subr.bf16.mxu1 %v4567_v43 }
 0x1fc   :  { %3855 = vmatpush2.bf16.msra.mxu0 %v4310_v48 }
 0x1fd   :  { %3898 = vmatpush2.bf16.msra.mxu1 %v4566_v49  ;;  %3856 = vmatprep.subr.bf16.mxu0 %v4295_v50 }
 0x1fe   :  { %3899 = vmatprep.subr.bf16.mxu1 %v4551_v52 }
 0x200   :  { %3857 = vmatpush2.bf16.msra.mxu0 %v4294_v61 }
 0x201   :  { %3900 = vmatpush2.bf16.msra.mxu1 %v4550_v62  ;;  %3858 = vmatprep.subr.bf16.mxu0 %v4279_v63 }
 0x202   :  { %3901 = vmatprep.subr.bf16.mxu1 %v4535_v0 }
 0x204   :  { %3859 = vmatpush2.bf16.msra.mxu0 %v4278_v5 }
 0x205   :  { %3902 = vmatpush2.bf16.msra.mxu1 %v4534_v11  ;;  %3860 = vmatprep.subr.bf16.mxu0 %v4263_v12 }
 0x206   :  { %3903 = vmatprep.subr.bf16.mxu1 %v4519_v13 }
 0x208   :  { %3861 = vmatpush2.bf16.msra.mxu0 %v4262_v21 }
 0x209   :  { %3904 = vmatpush2.bf16.msra.mxu1 %v4518_v22  ;;  %3862 = vmatprep.subr.bf16.mxu0 %v4247_v23 }
 0x20a   :  { %3905 = vmatprep.subr.bf16.mxu1 %v4503_v24 }
 0x20c   :  { %3863 = vmatpush2.bf16.msra.mxu0 %v4246_v29 }
 0x20d   :  { %3906 = vmatpush2.bf16.msra.mxu1 %v4502_v30  ;;  %3864 = vmatprep.subr.bf16.mxu0 %v4231_v33 }
 0x20e   :  { %3907 = vmatprep.subr.bf16.mxu1 %v4487_v35 }
 0x210   :  { %3865 = vmatpush2.bf16.msra.mxu0 %v4230_v36 }
 0x211   :  { %3908 = vmatpush2.bf16.msra.mxu1 %v4486_v38 }
 0x213   :  { %v3610_v57 = vpop.f32.mrf.mxu0  ;;  %3867 = vmatmul.mubr.bf16.vlgmr.msra.gmra.mxu0 %v4695_v31  ;;  %v591_v31 = vrot.slane %v545_v39, %v558_v32  ;;  %v599_v32 = vrot.slane %v545_v39, %v566_v6  ;;  %v607_v6 = vrot.slane %v545_v39, %v574_v51 }
 0x214   :  { %v3611_v8 = vadd.f32 %v3610_v57, %v583_v40  ;;  %v3653_v41 = vpop.f32.mrf.mxu1  ;;  %3910 = vmatmul.mubr.bf16.vlgmr.msra.gmra.mxu1 %v4699_v34  ;;  %v595_v34 = vrot.slane %v545_v39, %v562_v37  ;;  %v603_v37 = vrot.slane %v545_v39, %v570_v14  ;;  %v611_v14 = vrot.slane %v545_v39, %v578_v56 }
 0x215   :  { %v3612_v9 = vpop.f32.mrf.mxu0 }
 0x216   :  { %v3654_v10 = vadd.f32 %v3653_v41, %v3611_v8  ;;  %v3613_v42 = vadd.f32 %v3612_v9, %v587_v7  ;;  %v3655_v16 = vpop.f32.mrf.mxu1 }
 0x217   :  { %v3614_v43 = vpop.f32.mrf.mxu0 }
 0x218   :  { %v3656_v44 = vadd.f32 %v3655_v16, %v3613_v42  ;;  %v3657_v17 = vpop.f32.mrf.mxu1 }
 0x219   :  { %v3616_v45 = vpop.f32.mrf.mxu0 }
 0x21a   :  { %v3960_v55 = vcombine.low %v3654_v10, %v3656_v44  ;;  %v3659_v47 = vpop.f32.mrf.mxu1 }
 0x21c   :  { %4071 = vst [vmem:[%s4815_s3 + $0x20] sm:$0xff] %v3960_v55 }
 0x253   :  { %v3696_v60 = vpop.f32.mrf.mxu0 }
 0x254   :  { %v3697_v48 = vadd.f32 %v3696_v60, %v591_v31  ;;  %v3739_v49 = vpop.f32.mrf.mxu1 }
 0x255   :  { %v3698_v50 = vpop.f32.mrf.mxu0 }
 0x256   :  { %v3740_v52 = vadd.f32 %v3739_v49, %v3697_v48  ;;  %v3699_v53 = vadd.f32 %v3698_v50, %v595_v34  ;;  %v3741_v54 = vpop.f32.mrf.mxu1 }
 0x257   :  { %v3700_v58 = vpop.f32.mrf.mxu0 }
 0x258   :  { %v3742_v59 = vadd.f32 %v3741_v54, %v3699_v53  ;;  %v3743_v61 = vpop.f32.mrf.mxu1 }
 0x259   :  { %v3702_v62 = vpop.f32.mrf.mxu0 }
 0x25a   :  { %v3962_v63 = vcombine.low %v3740_v52, %v3742_v59  ;;  %v3745_v0 = vpop.f32.mrf.mxu1 }
 0x25c   :  { %4073 = vst [vmem:[%s4815_s3 + $0x28] sm:$0xff] %v3962_v63 }
 0x293   :  { %v3782_v1 = vpop.f32.mrf.mxu0 }
 0x294   :  { %v3783_v2 = vadd.f32 %v3782_v1, %v599_v32  ;;  %v3825_v3 = vpop.f32.mrf.mxu1 }
 0x295   :  { %v3784_v4 = vpop.f32.mrf.mxu0 }
 0x296   :  { %v3826_v5 = vadd.f32 %v3825_v3, %v3783_v2  ;;  %v3785_v11 = vadd.f32 %v3784_v4, %v603_v37  ;;  %v3827_v12 = vpop.f32.mrf.mxu1 }
 0x297   :  { %v3786_v13 = vpop.f32.mrf.mxu0 }
 0x298   :  { %v3828_v15 = vadd.f32 %v3827_v12, %v3785_v11  ;;  %v3829_v18 = vpop.f32.mrf.mxu1 }
 0x299   :  { %v3788_v19 = vpop.f32.mrf.mxu0 }
 0x29a   :  { %v3964_v20 = vcombine.low %v3826_v5, %v3828_v15  ;;  %v3831_v21 = vpop.f32.mrf.mxu1 }
 0x29c   :  { %4075 = vst [vmem:[%s4815_s3 + $0x30] sm:$0xff] %v3964_v20 }
 0x2d3   :  { %v3868_v22 = vpop.f32.mrf.mxu0 }
 0x2d4   :  { %v3869_v23 = vadd.f32 %v3868_v22, %v607_v6  ;;  %v3911_v24 = vpop.f32.mrf.mxu1 }
 0x2d5   :  { %v3870_v25 = vpop.f32.mrf.mxu0 }
 0x2d6   :  { %v3871_v26 = vadd.f32 %v3870_v25, %v611_v14  ;;  %v3913_v27 = vpop.f32.mrf.mxu1  ;;  %v3912_v29 = vadd.f32 %v3911_v24, %v3869_v23 }
 0x2d7   :  { %v3872_v28 = vpop.f32.mrf.mxu0 }
 0x2d8   :  { %v3914_v30 = vadd.f32 %v3913_v27, %v3871_v26  ;;  %v3915_v33 = vpop.f32.mrf.mxu1 }
 0x2d9   :  { %v3874_v35 = vpop.f32.mrf.mxu0 }
 0x2da   :  { %v3966_v36 = vcombine.low %v3912_v29, %v3914_v30  ;;  %v3917_v38 = vpop.f32.mrf.mxu1 }
 0x2dc   :  { %4077 = vst [vmem:[%s4815_s3 + $0x38] sm:$0xff] %v3966_v36 }
 0x2dd   :  { %4083 = vsyncpa [#allocation3], 1 }

// kernel: _lambda_.21
= control target key start
LH: loop header
LB: loop body
LE: loop exit
PB: predicated region body
PF: predicated region fallthrough
CT: control target
= control target key end

     0   :  { %vm80_vm0 = vcmask 1043456   ;;  %v171_v1 = vmov 0   ;;  %vm76_vm1 = vcmask 588800   ;;  %s228_s1 = inlined_call_operand.vmem [shape: bf16[72,256], index: 1, kind: input, shape index: {}]   ;;  %s229_s2 = inlined_call_operand.vmem [shape: f32[4,1], index: 2, kind: input, shape index: {}]   ;;  %s230_s0 = inlined_call_operand.vmem [shape: bf16[4,72], index: 0, kind: input, shape index: {}]   ;;  %s231_s3 = inlined_call_operand.vmem [shape: f32[4,256], index: 3, kind: output, shape index: {}]  }
   0x1   :  { %v24_v0 = vld [vmem:[%s228_s1 + $0x40] sm:$0xff]  ;;  %119 = vmatprep.mubr.bf16.mxu0 %v171_v1  ;;  %152 = vset.pattern.permute.xlu0 %v171_v1  ;;  %v155_v4 = vld [vmem:[%s228_s1 + $0x34] ss:$8 sps:$4 sm:$0xff]   ;;  %v157_v6 = vld [vmem:[%s228_s1 + $0x30] ss:$8 sps:$4 sm:$0xff]  }
   0x2   :  { %v148_v2 = vcombine.high %v24_v0, %v24_v0  ;;  %v147_v3 = vcombine.low %v24_v0, %v24_v0  ;;  %v158_v7 = vld [vmem:[%s228_s1 + $0x24] ss:$8 sps:$4 sm:$0xff]   ;;  %v25_v8 = vld [vmem:[%s229_s2] sm:$0xf]  ;;  %v161_v10 = vld [vmem:[%s228_s1 + $0x14] ss:$8 sps:$4 sm:$0xff]  }
   0x3   :  { %28 = vperm.xlu0 %152, %v25_v8   ;;  %v160_v9 = vld [vmem:[%s228_s1 + $0x20] ss:$8 sps:$4 sm:$0xff]   ;;  %v163_v11 = vld [vmem:[%s228_s1 + $0x10] ss:$8 sps:$4 sm:$0xff]   ;;  %v164_v12 = vld [vmem:[%s228_s1 + $0x4] ss:$8 sps:$4 sm:$0xff]  }
   0x4   :  { %149 = vmatprep.subr.msk.bf16.mxu0 %vm80_vm0, %v148_v2  ;;  %v82_v5 = vsel %vm80_vm0, %v147_v3, 0  ;;  %v166_v13 = vld [vmem:[%s228_s1] ss:$8 sps:$4 sm:$0xff]  }
   0x5   :  { %94 = vmatpush1.bf16.msra.mxu0 %v82_v5  ;;  %v15_v14 = vld [vmem:[%s230_s0] sm:$0x3] }
   0x6   :  { %95 = vmatprep.subr.bf16.mxu0 %v155_v4 }
   0x9   :  { %96 = vmatpush1.bf16.msra.mxu0 %v157_v6 }
   0xa   :  { %97 = vmatprep.subr.bf16.mxu0 %v158_v7 }
   0xd   :  { %98 = vmatpush1.bf16.msra.mxu0 %v160_v9 }
   0xe   :  { %99 = vmatprep.subr.bf16.mxu0 %v161_v10 }
  0x11   :  { %100 = vmatpush1.bf16.msra.mxu0 %v163_v11 }
  0x12   :  { %101 = vmatprep.subr.bf16.mxu0 %v164_v12 }
  0x15   :  { %102 = vmatpush1.bf16.msra.mxu0 %v166_v13 }
  0x18   :  { %150 = vmatmul.mubr.msk.bf16.vlgmr.msra.gmra.mxu0 %vm76_vm1, %v15_v14 }
  0x7e   :  { %v29_v15 = vpop.permute.xlu0 %28 }
  0xd8   :  { %v121_v16 = vpop.f32.mrf.mxu0 }
  0xd9   :  { %v122_v17 = vadd.f32 %v121_v16, %v29_v15 }
  0xda   :  { %v123_v18 = vpop.f32.mrf.mxu0 }
  0xdb   :  { %v124_v19 = vadd.f32 %v123_v18, %v29_v15  ;;  %167 = vtanh.f32 %v122_v17 }
  0xdc   :  { %v125_v20 = vpop.f32.mrf.mxu0 }
  0xdd   :  { %169 = vtanh.f32 %v124_v19 }
  0xde   :  { %v126_v21 = vpop.f32.mrf.mxu0 }
  0xe8   :  { %v168_v22 = vpop.eup %167 }
  0xea   :  { %v170_v23 = vpop.eup %169 }
  0xeb   :  { %v132_v24 = vcombine.low %v168_v22, %v170_v23 }
  0xed   :  { %134 = vst [vmem:[%s231_s3] sm:$0xff] %v132_v24 }

// kernel: _lambda_.22
= control target key start
LH: loop header
LB: loop body
LE: loop exit
PB: predicated region body
PF: predicated region fallthrough
CT: control target
= control target key end

     0   :  { %vm86_vm0 = vcmask 1041408   ;;  %v255_v2 = vmov 0   ;;  %vm82_vm1 = vcmask 293888   ;;  %v256_v32 = vmov 1983009808   ;;  %s316_s1 = inlined_call_operand.vmem [shape: bf16[36,512], index: 1, kind: input, shape index: {}]   ;;  %s317_s2 = inlined_call_operand.vmem [shape: f32[2,1], index: 2, kind: input, shape index: {}]   ;;  %s318_s0 = inlined_call_operand.vmem [shape: bf16[2,36], index: 0, kind: input, shape index: {}]   ;;  %s319_s3 = inlined_call_operand.vmem [shape: f32[2,512], index: 3, kind: output, shape index: {}]  }
   0x1   :  { %v24_v0 = vld [vmem:[%s316_s1 + $0x40] sm:$0x33]  ;;  %v25_v1 = vld [vmem:[%s316_s1 + $0x48] sm:$0x33]  ;;  %131 = vmatprep.mubr.bf16.mxu0 %v255_v2  ;;  %172 = vmatprep.mubr.bf16.mxu1 %v255_v2  ;;  %v192_v33 = vunpack.c.l.s4 %v256_v32  ;;  %v194_v34 = vlaneseq }
   0x2   :  { %v221_v3 = vcombine.high %v24_v0, %v24_v0  ;;  %v223_v4 = vcombine.high %v25_v1, %v25_v1  ;;  %v220_v5 = vcombine.low %v24_v0, %v24_v0  ;;  %v222_v6 = vcombine.low %v25_v1, %v25_v1  ;;  %v235_v7 = vld [vmem:[%s316_s1 + $0x24] ss:$16 sps:$4 sm:$0xff]   ;;  %230 = vset.pattern.permute.xlu0 %v255_v2  ;;  %v237_v8 = vld [vmem:[%s316_s1 + $0x2c] ss:$16 sps:$4 sm:$0xff]   ;;  %v239_v11 = vld [vmem:[%s316_s1 + $0x20] ss:$16 sps:$4 sm:$0xff]  }
   0x3   :  { %v240_v12 = vld [vmem:[%s316_s1 + $0x28] ss:$16 sps:$4 sm:$0xff]   ;;  %v241_v13 = vld [vmem:[%s316_s1 + $0x4] ss:$16 sps:$4 sm:$0xff]   ;;  %v243_v14 = vld [vmem:[%s316_s1 + $0xc] ss:$16 sps:$4 sm:$0xff]   ;;  %v193_v35 = vunpack.c.0.s8 %v192_v33 }
   0x4   :  { %224 = vmatprep.subr.msk.bf16.mxu0 %vm86_vm0, %v221_v3  ;;  %226 = vmatprep.subr.msk.bf16.mxu1 %vm86_vm0, %v223_v4  ;;  %v88_v9 = vsel %vm86_vm0, %v220_v5, 0  ;;  %v94_v10 = vsel %vm86_vm0, %v222_v6, 0  ;;  %v26_v15 = vld [vmem:[%s317_s2] sm:$0x3]  ;;  %v246_v17 = vld [vmem:[%s316_s1 + $0x8] ss:$16 sps:$4 sm:$0xff]  }
   0x5   :  { %110 = vmatpush1.bf16.msra.mxu0 %v88_v9  ;;  %151 = vmatpush1.bf16.msra.mxu1 %v94_v10  ;;  %v245_v16 = vld [vmem:[%s316_s1] ss:$16 sps:$4 sm:$0xff]   ;;  %v195_v36 = vshrl.u32 %v194_v34, 7 }
   0x6   :  { %111 = vmatprep.subr.bf16.mxu0 %v235_v7  ;;  %152 = vmatprep.subr.bf16.mxu1 %v237_v8  ;;  %v15_v18 = vld [vmem:[%s318_s0] sm:$0x1] }
   0x7   :  { %29 = vperm.xlu0 %230, %v26_v15   ;;  %v196_v39 = vsub.s32 %v193_v35, %v195_v36 }
   0x9   :  { %112 = vmatpush1.bf16.msra.mxu0 %v239_v11  ;;  %153 = vmatpush1.bf16.msra.mxu1 %v240_v12 }
   0xa   :  { %113 = vmatprep.subr.bf16.mxu0 %v241_v13  ;;  %154 = vmatprep.subr.bf16.mxu1 %v243_v14 }
   0xd   :  { %114 = vmatpush1.bf16.msra.mxu0 %v245_v16  ;;  %155 = vmatpush1.bf16.msra.mxu1 %v246_v17 }
  0x10   :  { %225 = vmatmul.mubr.msk.bf16.vlgmr.msra.gmra.mxu0 %vm82_vm1, %v15_v18  ;;  %227 = vmatmul.mubr.msk.bf16.vlgmr.msra.gmra.mxu1 %vm82_vm1, %v15_v18 }
  0x82   :  { %v30_v19 = vpop.permute.xlu0 %29 }
  0xd0   :  { %v133_v20 = vpop.f32.mrf.mxu0  ;;  %v174_v21 = vpop.f32.mrf.mxu1 }
  0xd1   :  { %v134_v22 = vadd.f32 %v133_v20, %v30_v19  ;;  %v175_v23 = vadd.f32 %v174_v21, %v30_v19 }
  0xd2   :  { %v135_v24 = vpop.f32.mrf.mxu0  ;;  %v176_v25 = vpop.f32.mrf.mxu1 }
  0xd3   :  { %247 = vtanh.f32 %v134_v22  ;;  %v136_v26 = vadd.f32 %v135_v24, %v30_v19  ;;  %v177_v27 = vadd.f32 %v176_v25, %v30_v19 }
  0xd4   :  { %249 = vtanh.f32 %v175_v23  ;;  %v137_v28 = vpop.f32.mrf.mxu0  ;;  %v178_v29 = vpop.f32.mrf.mxu1 }
  0xd5   :  { %251 = vtanh.f32 %v136_v26 }
  0xd6   :  { %253 = vtanh.f32 %v177_v27  ;;  %v138_v30 = vpop.f32.mrf.mxu0  ;;  %v179_v31 = vpop.f32.mrf.mxu1 }
  0xe0   :  { %v248_v37 = vpop.eup %247 }
  0xe1   :  { %v250_v38 = vpop.eup %249 }
  0xe2   :  { %v252_v40 = vpop.eup %251 }
  0xe3   :  { %v254_v41 = vpop.eup %253  ;;  %v189_v42 = vcombine.low %v248_v37, %v252_v40 }
  0xe4   :  { %v190_v43 = vcombine.low %v250_v38, %v254_v41 }
  0xe5   :  { %v197_v44 = vrot.slane %v189_v42, %v196_v39 }
  0xe6   :  { %v204_v45 = vrot.slane %v190_v43, %v196_v39 }
  0xe8   :  { %v205_v46 = vcombine.low %v197_v44, %v204_v45 }
  0xea   :  { %207 = vst [vmem:[%s319_s3] sm:$0xff] %v205_v46 }

// kernel: _lambda_.23
= control target key start
LH: loop header
LB: loop body
LE: loop exit
PB: predicated region body
PF: predicated region fallthrough
CT: control target
= control target key end

     0   :  { %vm104_vm0 = vcmask 1040384   ;;  %v391_v3 = vmov 0   ;;  %vm100_vm1 = vcmask 146432   ;;  %v36_v36 = vlaneseq  ;;  %s470_s1 = inlined_call_operand.vmem [shape: bf16[18,1024], index: 1, kind: input, shape index: {}]   ;;  %s471_s2 = inlined_call_operand.<no memory space> [shape: f32[1,1], index: 2, kind: input, shape index: {}]   ;;  %s472_s0 = inlined_call_operand.vmem [shape: bf16[1,18], index: 0, kind: input, shape index: {}]   ;;  %s473_s3 = inlined_call_operand.vmem [shape: f32[1,1024], index: 3, kind: output, shape index: {}]  }
   0x1   :  { %v26_v0 = vld [vmem:[%s470_s1 + $0x40] sm:$0x11]  ;;  %v27_v1 = vld [vmem:[%s470_s1 + $0x48] sm:$0x11]  ;;  %161 = vmatprep.mubr.bf16.mxu0 %v391_v3  ;;  %202 = vmatprep.mubr.bf16.mxu1 %v391_v3  ;;  %v8_v4 = vstv %s471_s2  ;;  %v28_v14 = vld [vmem:[%s470_s1 + $0x50] sm:$0x11] }
   0x2   :  { %v18_v2 = vld [vmem:[%s470_s1] sm:$0xff]  ;;  %v365_v5 = vcombine.high %v26_v0, %v26_v0  ;;  %v367_v6 = vcombine.high %v27_v1, %v27_v1  ;;  %v364_v7 = vcombine.low %v26_v0, %v26_v0  ;;  %v366_v8 = vcombine.low %v27_v1, %v27_v1  ;;  %v19_v10 = vld [vmem:[%s470_s1 + $0x8] sm:$0xff]  ;;  %382 = vset.pattern.permute.xlu0 %v391_v3  ;;  %v29_v15 = vld [vmem:[%s470_s1 + $0x58] sm:$0x11] }
   0x3   :  { %v22_v9 = vld [vmem:[%s470_s1 + $0x20] sm:$0xff]  ;;  %v23_v11 = vld [vmem:[%s470_s1 + $0x28] sm:$0xff]  ;;  %9 = vst [vmem:[#allocation2] sm:$0x1] %v8_v4  ;;  %v369_v20 = vcombine.high %v28_v14, %v28_v14  ;;  %v371_v21 = vcombine.high %v29_v15, %v29_v15  ;;  %v368_v22 = vcombine.low %v28_v14, %v28_v14  ;;  %v370_v23 = vcombine.low %v29_v15, %v29_v15  ;;  %v20_v24 = vld [vmem:[%s470_s1 + $0x10] sm:$0xff] }
   0x4   :  { %v357_v12 = vcombine.high %v18_v2, %v22_v9  ;;  %v359_v13 = vcombine.high %v19_v10, %v23_v11  ;;  %372 = vmatprep.subr.msk.bf16.mxu0 %vm104_vm0, %v365_v5  ;;  %374 = vmatprep.subr.msk.bf16.mxu1 %vm104_vm0, %v367_v6  ;;  %v106_v16 = vsel %vm104_vm0, %v364_v7, 0  ;;  %v112_v17 = vsel %vm104_vm0, %v366_v8, 0  ;;  %v24_v25 = vld [vmem:[%s470_s1 + $0x30] sm:$0xff]  ;;  %v21_v26 = vld [vmem:[%s470_s1 + $0x18] sm:$0xff]  ;;  %v17_v28 = vld [vmem:[%s472_s0] sm:$0x1] }
   0x5   :  { %142 = vmatpush1.bf16.msra.mxu0 %v106_v16  ;;  %183 = vmatpush1.bf16.msra.mxu1 %v112_v17  ;;  %v356_v18 = vcombine.low %v18_v2, %v22_v9  ;;  %v358_v19 = vcombine.low %v19_v10, %v23_v11  ;;  %v25_v27 = vld [vmem:[%s470_s1 + $0x38] sm:$0xff]  ;;  %v118_v30 = vsel %vm104_vm0, %v368_v22, 0  ;;  %v124_v31 = vsel %vm104_vm0, %v370_v23, 0 }
   0x6   :  { %143 = vmatprep.subr.bf16.mxu0 %v357_v12  ;;  %184 = vmatprep.subr.bf16.mxu1 %v359_v13  ;;  %v361_v32 = vcombine.high %v20_v24, %v24_v25  ;;  %v363_v33 = vcombine.high %v21_v26, %v25_v27  ;;  %v360_v34 = vcombine.low %v20_v24, %v24_v25  ;;  %v37_v37 = vshrl.u32 %v36_v36, 7 }
   0x7   :  { %v362_v35 = vcombine.low %v21_v26, %v25_v27  ;;  %v392_v40 = vmov 1966171168  }
   0x8   :  { %v38_v38 = vsub.s32 0, %v37_v37  ;;  %v306_v41 = vunpack.c.l.s4 %v392_v40 }
   0x9   :  { %144 = vmatpush1.bf16.msra.mxu0 %v356_v18  ;;  %185 = vmatpush1.bf16.msra.mxu1 %v358_v19 }
   0xa   :  { %v30_v29 = vld [vmem:[#allocation2] sm:$0x1]  ;;  %376 = vmatprep.subr.msk.bf16.mxu0 %vm104_vm0, %v369_v20  ;;  %378 = vmatprep.subr.msk.bf16.mxu1 %vm104_vm0, %v371_v21  ;;  %v307_v45 = vunpack.c.0.s8 %v306_v41 }
   0xb   :  { %33 = vperm.xlu0 %382, %v30_v29  }
   0xc   :  { %373 = vmatmul.mubr.msk.bf16.vlgmr.msra.gmra.mxu0 %vm100_vm1, %v17_v28  ;;  %375 = vmatmul.mubr.msk.bf16.vlgmr.msra.gmra.mxu1 %vm100_vm1, %v17_v28  ;;  %v310_v54 = vsub.s32 %v307_v45, %v37_v37 }
   0xd   :  { %224 = vmatpush1.bf16.msra.mxu0 %v118_v30  ;;  %265 = vmatpush1.bf16.msra.mxu1 %v124_v31 }
   0xe   :  { %225 = vmatprep.subr.bf16.mxu0 %v361_v32  ;;  %266 = vmatprep.subr.bf16.mxu1 %v363_v33 }
   0xf   :  { %243 = vmatprep.mubr.bf16.mxu0 %v391_v3  ;;  %284 = vmatprep.mubr.bf16.mxu1 %v391_v3 }
  0x11   :  { %226 = vmatpush1.bf16.msra.mxu0 %v360_v34  ;;  %267 = vmatpush1.bf16.msra.mxu1 %v362_v35 }
  0x14   :  { %377 = vmatmul.mubr.msk.bf16.vlgmr.msra.gmra.mxu0 %vm100_vm1, %v17_v28  ;;  %379 = vmatmul.mubr.msk.bf16.vlgmr.msra.gmra.mxu1 %vm100_vm1, %v17_v28 }
  0x86   :  { %v34_v39 = vpop.permute.xlu0 %33 }
  0x87   :  { %v39_v42 = vrot.slane %v34_v39, %v38_v38 }
  0xcc   :  { %v163_v43 = vpop.f32.mrf.mxu0  ;;  %v204_v44 = vpop.f32.mrf.mxu1 }
  0xcd   :  { %v164_v50 = vadd.f32 %v163_v43, %v39_v42  ;;  %v205_v51 = vadd.f32 %v204_v44, %v39_v42 }
  0xce   :  { %v165_v46 = vpop.f32.mrf.mxu0  ;;  %v206_v47 = vpop.f32.mrf.mxu1 }
  0xcf   :  { %v166_v48 = vadd.f32 %v165_v46, %v39_v42  ;;  %v207_v49 = vadd.f32 %v206_v47, %v39_v42 }
  0xd0   :  { %v167_v52 = vpop.f32.mrf.mxu0  ;;  %v208_v53 = vpop.f32.mrf.mxu1 }
  0xd1   :  { %v301_v55 = vcombine.low %v164_v50, %v166_v48  ;;  %v302_v56 = vcombine.low %v205_v51, %v207_v49 }
  0xd2   :  { %v168_v57 = vpop.f32.mrf.mxu0  ;;  %v209_v58 = vpop.f32.mrf.mxu1 }
  0xd3   :  { %v311_v61 = vrot.slane %v301_v55, %v310_v54  ;;  %v318_v62 = vrot.slane %v302_v56, %v310_v54 }
  0xd4   :  { %v245_v59 = vpop.f32.mrf.mxu0  ;;  %v286_v60 = vpop.f32.mrf.mxu1 }
  0xd5   :  { %v246_v1 = vadd.f32 %v245_v59, %v39_v42  ;;  %v287_v2 = vadd.f32 %v286_v60, %v39_v42  ;;  %v333_v11 = vcombine.low %v311_v61, %v318_v62 }
  0xd6   :  { %v247_v63 = vpop.f32.mrf.mxu0  ;;  %v288_v0 = vpop.f32.mrf.mxu1 }
  0xd7   :  { %v248_v3 = vadd.f32 %v247_v63, %v39_v42  ;;  %v289_v4 = vadd.f32 %v288_v0, %v39_v42  ;;  %v341_v15 = vrot.slane %v333_v11, %v310_v54 }
  0xd8   :  { %v249_v5 = vpop.f32.mrf.mxu0  ;;  %v290_v6 = vpop.f32.mrf.mxu1 }
  0xd9   :  { %v303_v7 = vcombine.low %v246_v1, %v248_v3  ;;  %v304_v8 = vcombine.low %v287_v2, %v289_v4 }
  0xda   :  { %v250_v9 = vpop.f32.mrf.mxu0  ;;  %v291_v10 = vpop.f32.mrf.mxu1 }
  0xdb   :  { %v325_v12 = vrot.slane %v303_v7, %v310_v54  ;;  %v332_v13 = vrot.slane %v304_v8, %v310_v54 }
  0xdd   :  { %v334_v14 = vcombine.low %v325_v12, %v332_v13 }
  0xdf   :  { %v348_v16 = vrot.slane %v334_v14, %v310_v54 }
  0xe1   :  { %v349_v17 = vcombine.low %v341_v15, %v348_v16 }
  0xe3   :  { %351 = vst [vmem:[%s473_s3] sm:$0xff] %v349_v17 }

// kernel: _lambda_.20
= control target key start
LH: loop header
LB: loop body
LE: loop exit
PB: predicated region body
PF: predicated region fallthrough
CT: control target
= control target key end

     0   :  { %v643_v2 = vmov 0   ;;  %v644_v34 = vmov 1966171168   ;;  %v88_v36 = vlaneseq  ;;  %vm374_vm0 = vcmask 1043456   ;;  %s841_s1 = inlined_call_operand.vmem [shape: bf16[216,512], index: 1, kind: input, shape index: {}]   ;;  %s842_s2 = inlined_call_operand.vmem [shape: f32[2,1], index: 2, kind: input, shape index: {}]   ;;  %s843_s0 = inlined_call_operand.vmem [shape: bf16[2,216], index: 0, kind: input, shape index: {}]   ;;  %s844_s3 = inlined_call_operand.vmem [shape: f32[2,512], index: 3, kind: output, shape index: {}]  }
   0x1   :  { %v561_v0 = vld [vmem:[%s841_s1 + $0xe4] ss:$16 sps:$4 sm:$0xff]   ;;  %v563_v1 = vld [vmem:[%s841_s1 + $0xec] ss:$16 sps:$4 sm:$0xff]   ;;  %560 = vset.pattern.permute.xlu0 %v643_v2  ;;  %v565_v3 = vld [vmem:[%s841_s1 + $0xe0] ss:$16 sps:$4 sm:$0xff]   ;;  %v86_v35 = vunpack.c.l.s4 %v644_v34 }
   0x2   :  { %387 = vmatprep.subr.bf16.mxu0 %v561_v0  ;;  %v566_v4 = vld [vmem:[%s841_s1 + $0xe8] ss:$16 sps:$4 sm:$0xff]   ;;  %428 = vmatprep.subr.bf16.mxu1 %v563_v1  ;;  %v567_v5 = vld [vmem:[%s841_s1 + $0xc4] ss:$16 sps:$4 sm:$0xff]   ;;  %v569_v6 = vld [vmem:[%s841_s1 + $0xcc] ss:$16 sps:$4 sm:$0xff]  }
   0x3   :  { %388 = vmatpush1.bf16.msra.mxu0 %v565_v3  ;;  %429 = vmatpush1.bf16.msra.mxu1 %v566_v4  ;;  %v571_v7 = vld [vmem:[%s841_s1 + $0xc0] ss:$16 sps:$4 sm:$0xff]   ;;  %v572_v8 = vld [vmem:[%s841_s1 + $0xc8] ss:$16 sps:$4 sm:$0xff]   ;;  %v573_v9 = vld [vmem:[%s841_s1 + $0xa4] ss:$16 sps:$4 sm:$0xff]   ;;  %v87_v42 = vunpack.c.0.s8 %v86_v35 }
   0x4   :  { %389 = vmatprep.subr.bf16.mxu0 %v567_v5  ;;  %430 = vmatprep.subr.bf16.mxu1 %v569_v6  ;;  %v575_v10 = vld [vmem:[%s841_s1 + $0xac] ss:$16 sps:$4 sm:$0xff]   ;;  %v577_v11 = vld [vmem:[%s841_s1 + $0xa0] ss:$16 sps:$4 sm:$0xff]   ;;  %v578_v12 = vld [vmem:[%s841_s1 + $0xa8] ss:$16 sps:$4 sm:$0xff]  }
   0x5   :  { %v579_v13 = vld [vmem:[%s841_s1 + $0x84] ss:$16 sps:$4 sm:$0xff]   ;;  %v581_v14 = vld [vmem:[%s841_s1 + $0x8c] ss:$16 sps:$4 sm:$0xff]   ;;  %v583_v15 = vld [vmem:[%s841_s1 + $0x80] ss:$16 sps:$4 sm:$0xff]  }
   0x6   :  { %v584_v16 = vld [vmem:[%s841_s1 + $0x88] ss:$16 sps:$4 sm:$0xff]   ;;  %v585_v17 = vld [vmem:[%s841_s1 + $0x64] ss:$16 sps:$4 sm:$0xff]   ;;  %v587_v18 = vld [vmem:[%s841_s1 + $0x6c] ss:$16 sps:$4 sm:$0xff]  }
   0x7   :  { %390 = vmatpush1.bf16.msra.mxu0 %v571_v7  ;;  %431 = vmatpush1.bf16.msra.mxu1 %v572_v8  ;;  %v589_v19 = vld [vmem:[%s841_s1 + $0x60] ss:$16 sps:$4 sm:$0xff]   ;;  %v590_v20 = vld [vmem:[%s841_s1 + $0x68] ss:$16 sps:$4 sm:$0xff]   ;;  %v591_v21 = vld [vmem:[%s841_s1 + $0x44] ss:$16 sps:$4 sm:$0xff]  }
   0x8   :  { %391 = vmatprep.subr.bf16.mxu0 %v573_v9  ;;  %432 = vmatprep.subr.bf16.mxu1 %v575_v10  ;;  %v593_v22 = vld [vmem:[%s841_s1 + $0x4c] ss:$16 sps:$4 sm:$0xff]   ;;  %v595_v23 = vld [vmem:[%s841_s1 + $0x40] ss:$16 sps:$4 sm:$0xff]   ;;  %v596_v24 = vld [vmem:[%s841_s1 + $0x48] ss:$16 sps:$4 sm:$0xff]  }
   0x9   :  { %v597_v25 = vld [vmem:[%s841_s1 + $0x24] ss:$16 sps:$4 sm:$0xff]   ;;  %v599_v26 = vld [vmem:[%s841_s1 + $0x2c] ss:$16 sps:$4 sm:$0xff]   ;;  %v601_v27 = vld [vmem:[%s841_s1 + $0x20] ss:$16 sps:$4 sm:$0xff]  }
   0xa   :  { %v602_v28 = vld [vmem:[%s841_s1 + $0x28] ss:$16 sps:$4 sm:$0xff]   ;;  %v603_v29 = vld [vmem:[%s841_s1 + $0x4] ss:$16 sps:$4 sm:$0xff]   ;;  %v605_v30 = vld [vmem:[%s841_s1 + $0xc] ss:$16 sps:$4 sm:$0xff]  }
   0xb   :  { %392 = vmatpush1.bf16.msra.mxu0 %v577_v11  ;;  %433 = vmatpush1.bf16.msra.mxu1 %v578_v12  ;;  %v68_v31 = vld [vmem:[%s841_s1 + $0x1a0] sm:$0xff]  ;;  %v69_v32 = vld [vmem:[%s841_s1 + $0x1a8] sm:$0xff]  ;;  %v768_v43 = vshrl.u32 %v88_v36, 7  ;;  %vm370_vm1 = vcmask 719872   ;;  %v645_v8 = vmov 1983009808  }
   0xc   :  { %393 = vmatprep.subr.bf16.mxu0 %v579_v13  ;;  %434 = vmatprep.subr.bf16.mxu1 %v581_v14  ;;  %v607_v33 = vld [vmem:[%s841_s1] ss:$16 sps:$4 sm:$0xff]   ;;  %v608_v37 = vld [vmem:[%s841_s1 + $0x8] ss:$16 sps:$4 sm:$0xff]   ;;  %v550_v38 = vcombine.high %v68_v31, %v68_v31  ;;  %v552_v39 = vcombine.high %v69_v32, %v69_v32  ;;  %v549_v40 = vcombine.low %v68_v31, %v68_v31  ;;  %v613_v44 = vld [vmem:[%s841_s1 + $0x184] ss:$16 sps:$4 sm:$0xff]   ;;  %v476_v9 = vunpack.c.l.s4 %v645_v8 }
   0xd   :  { %v551_v41 = vcombine.low %v69_v32, %v69_v32  ;;  %v615_v47 = vld [vmem:[%s841_s1 + $0x18c] ss:$16 sps:$4 sm:$0xff]   ;;  %v617_v48 = vld [vmem:[%s841_s1 + $0x180] ss:$16 sps:$4 sm:$0xff]   ;;  %v90_v49 = vsub.s32 %v87_v42, %v768_v43  ;;  %v618_v51 = vld [vmem:[%s841_s1 + $0x188] ss:$16 sps:$4 sm:$0xff]  }
   0xe   :  { %v376_v45 = vsel %vm374_vm0, %v549_v40, 0  ;;  %v70_v50 = vld [vmem:[%s842_s2] sm:$0x3]  ;;  %v619_v53 = vld [vmem:[%s841_s1 + $0x164] ss:$16 sps:$4 sm:$0xff]   ;;  %v477_v10 = vunpack.c.0.s8 %v476_v9 }
   0xf   :  { %394 = vmatpush1.bf16.msra.mxu0 %v583_v15  ;;  %435 = vmatpush1.bf16.msra.mxu1 %v584_v16  ;;  %v382_v46 = vsel %vm374_vm0, %v551_v41, 0  ;;  %v496_v52 = vld.sshfl [vmem:[%s843_s0] sm:$0x11 pattern:$0x75316420] }
  0x10   :  { %395 = vmatprep.subr.bf16.mxu0 %v585_v17  ;;  %436 = vmatprep.subr.bf16.mxu1 %v587_v18  ;;  %v621_v54 = vld [vmem:[%s841_s1 + $0x16c] ss:$16 sps:$4 sm:$0xff]   ;;  %v84_v55 = vcombine.high %v496_v52, %v496_v52  ;;  %v623_v57 = vld [vmem:[%s841_s1 + $0x160] ss:$16 sps:$4 sm:$0xff]   ;;  %v624_v58 = vld [vmem:[%s841_s1 + $0x168] ss:$16 sps:$4 sm:$0xff]   ;;  %v91_v7 = vrot.slane %v496_v52, %v90_v49  ;;  %v480_v15 = vsub.s32 %v477_v10, %v768_v43 }
  0x11   :  { %73 = vperm.xlu0 %560, %v70_v50   ;;  %v625_v59 = vld [vmem:[%s841_s1 + $0x144] ss:$16 sps:$4 sm:$0xff]   ;;  %v627_v60 = vld [vmem:[%s841_s1 + $0x14c] ss:$16 sps:$4 sm:$0xff]   ;;  %v629_v61 = vld [vmem:[%s841_s1 + $0x140] ss:$16 sps:$4 sm:$0xff]  }
  0x12   :  { %v98_v56 = vrot.slane %v84_v55, %v90_v49  ;;  %v630_v62 = vld [vmem:[%s841_s1 + $0x148] ss:$16 sps:$4 sm:$0xff]   ;;  %v631_v63 = vld [vmem:[%s841_s1 + $0x124] ss:$16 sps:$4 sm:$0xff]   ;;  %v633_v0 = vld [vmem:[%s841_s1 + $0x12c] ss:$16 sps:$4 sm:$0xff]  }
  0x13   :  { %396 = vmatpush1.bf16.msra.mxu0 %v589_v19  ;;  %437 = vmatpush1.bf16.msra.mxu1 %v590_v20  ;;  %v635_v1 = vld [vmem:[%s841_s1 + $0x120] ss:$16 sps:$4 sm:$0xff]   ;;  %v636_v2 = vld [vmem:[%s841_s1 + $0x128] ss:$16 sps:$4 sm:$0xff]   ;;  %v637_v3 = vld [vmem:[%s841_s1 + $0x104] ss:$16 sps:$4 sm:$0xff]  }
  0x14   :  { %397 = vmatprep.subr.bf16.mxu0 %v591_v21  ;;  %438 = vmatprep.subr.bf16.mxu1 %v593_v22  ;;  %v639_v4 = vld [vmem:[%s841_s1 + $0x10c] ss:$16 sps:$4 sm:$0xff]   ;;  %v641_v5 = vld [vmem:[%s841_s1 + $0x100] ss:$16 sps:$4 sm:$0xff]   ;;  %v642_v6 = vld [vmem:[%s841_s1 + $0x108] ss:$16 sps:$4 sm:$0xff]  }
  0x15   :  { %554 = vmatprep.mubr.msk.bf16.mxu0 %vm370_vm1, %v98_v56  ;;  %556 = vmatprep.mubr.msk.bf16.mxu1 %vm370_vm1, %v98_v56 }
  0x17   :  { %398 = vmatpush1.bf16.msra.mxu0 %v595_v23  ;;  %439 = vmatpush1.bf16.msra.mxu1 %v596_v24 }
  0x18   :  { %399 = vmatprep.subr.bf16.mxu0 %v597_v25  ;;  %440 = vmatprep.subr.bf16.mxu1 %v599_v26 }
  0x1b   :  { %400 = vmatpush1.bf16.msra.mxu0 %v601_v27  ;;  %441 = vmatpush1.bf16.msra.mxu1 %v602_v28 }
  0x1c   :  { %401 = vmatprep.subr.bf16.mxu0 %v603_v29  ;;  %442 = vmatprep.subr.bf16.mxu1 %v605_v30 }
  0x1f   :  { %402 = vmatpush1.bf16.msra.mxu0 %v607_v33  ;;  %443 = vmatpush1.bf16.msra.mxu1 %v608_v37 }
  0x20   :  { %553 = vmatprep.subr.msk.bf16.mxu0 %vm374_vm0, %v550_v38  ;;  %555 = vmatprep.subr.msk.bf16.mxu1 %vm374_vm0, %v552_v39 }
  0x23   :  { %408 = vmatpush2.bf16.msra.mxu0 %v376_v45  ;;  %449 = vmatpush2.bf16.msra.mxu1 %v382_v46 }
  0x24   :  { %409 = vmatprep.subr.bf16.mxu0 %v613_v44  ;;  %450 = vmatprep.subr.bf16.mxu1 %v615_v47 }
  0x27   :  { %410 = vmatpush2.bf16.msra.mxu0 %v617_v48  ;;  %451 = vmatpush2.bf16.msra.mxu1 %v618_v51 }
  0x28   :  { %411 = vmatprep.subr.bf16.mxu0 %v619_v53  ;;  %452 = vmatprep.subr.bf16.mxu1 %v621_v54 }
  0x2b   :  { %412 = vmatpush2.bf16.msra.mxu0 %v623_v57  ;;  %453 = vmatpush2.bf16.msra.mxu1 %v624_v58 }
  0x2c   :  { %413 = vmatprep.subr.bf16.mxu0 %v625_v59  ;;  %454 = vmatprep.subr.bf16.mxu1 %v627_v60 }
  0x2f   :  { %414 = vmatpush2.bf16.msra.mxu0 %v629_v61  ;;  %455 = vmatpush2.bf16.msra.mxu1 %v630_v62 }
  0x30   :  { %415 = vmatprep.subr.bf16.mxu0 %v631_v63  ;;  %456 = vmatprep.subr.bf16.mxu1 %v633_v0 }
  0x33   :  { %416 = vmatpush2.bf16.msra.mxu0 %v635_v1  ;;  %457 = vmatpush2.bf16.msra.mxu1 %v636_v2 }
  0x34   :  { %417 = vmatprep.subr.bf16.mxu0 %v637_v3  ;;  %458 = vmatprep.subr.bf16.mxu1 %v639_v4 }
  0x37   :  { %418 = vmatpush2.bf16.msra.mxu0 %v641_v5  ;;  %459 = vmatpush2.bf16.msra.mxu1 %v642_v6 }
  0x3a   :  { %420 = vmatmul.mubr.bf16.vlgmr.msra.gmra.mxu0 %v91_v7  ;;  %461 = vmatmul.mubr.bf16.vlgmr.msra.gmra.mxu1 %v91_v7 }
  0x8c   :  { %v74_v11 = vpop.permute.xlu0 %73 }
  0xfa   :  { %v421_v12 = vpop.f32.mrf.mxu0  ;;  %v462_v13 = vpop.f32.mrf.mxu1 }
  0xfb   :  { %v422_v17 = vadd.f32 %v421_v12, %v74_v11  ;;  %v463_v18 = vadd.f32 %v462_v13, %v74_v11 }
  0xfc   :  { %v423_v14 = vpop.f32.mrf.mxu0  ;;  %v464_v16 = vpop.f32.mrf.mxu1 }
  0xfd   :  { %v424_v19 = vadd.f32 %v423_v14, %v74_v11  ;;  %v465_v20 = vadd.f32 %v464_v16, %v74_v11 }
  0xfe   :  { %v425_v21 = vpop.f32.mrf.mxu0  ;;  %v466_v22 = vpop.f32.mrf.mxu1 }
  0xff   :  { %v473_v23 = vcombine.low %v422_v17, %v424_v19  ;;  %v474_v24 = vcombine.low %v463_v18, %v465_v20 }
 0x100   :  { %v426_v25 = vpop.f32.mrf.mxu0  ;;  %v467_v26 = vpop.f32.mrf.mxu1 }
 0x101   :  { %v481_v27 = vrot.slane %v473_v23, %v480_v15  ;;  %v488_v28 = vrot.slane %v474_v24, %v480_v15 }
 0x103   :  { %v489_v29 = vcombine.low %v481_v27, %v488_v28 }
 0x105   :  { %491 = vst [vmem:[%s844_s3] sm:$0xff] %v489_v29 }

</bundles_post_ra>
